<compile_context>
chip_gen: v5e
topology: v5e:2x2
jax: 0.10.0
libtpu: 0.0.40
codegen_flags: <defaults>
</compile_context>

<pallas_src>
import functools

import jax
import jax.numpy as jnp
from jax import lax
from jax.experimental import pallas as pl
from jax.experimental.pallas import tpu as pltpu

_COMPUTE_DTYPE = jnp.bfloat16  # matmul-operand dtype; accumulation stays f32


def _residual_group_kernel(x_ref, w_ref, b_ref, mask_ref, o_ref,
                           pad_ref, res_ref, *, n_resblocks, K, H, W, C):
    """Fused ResidualGroup forward for one image.

    x_ref    : (1, HWp, C)       f32   input (padded-row frame, junk cols = 0)
    w_ref    : (L*K*K, C, C)     bf16  per-tap (Cin, Cout) weight slabs, resident
    b_ref    : (L, 1, C)         f32   biases, resident
    mask_ref : (HWp, C)          f32   1.0 on valid columns (w < W), 0.0 on junk
    o_ref    : (1, HWp, C)       f32   output (padded-row frame)
    pad_ref  : (Hp*Wp + 2p, C)   bf16  flattened zero-padded activation buffer
    res_ref  : (HWp, C)          f32   residual stream carried across all convs
    """
    p = K // 2
    KK = K * K
    Wp = W + 2 * p
    HWp = H * Wp
    n_layers = 2 * n_resblocks + 1
    pad_rows = pad_ref.shape[0]
    int_lo = p * Wp + p           # first flat index of the image interior
    int_hi = int_lo + HWp         # one past the last interior-write position

    valid = mask_ref[...] > 0.5   # (HWp, C) bool

    # Zero ONLY the padding/slack rows the per-conv interior write never touches
    # (top padding + first row's left pad, and everything past the last interior
    # write).  Done every grid step: scratch is per-core and the grid is split
    # across TensorCores, so this must never be gated on program_id.
    if p > 0:
        pad_ref[0:int_lo, :] = jnp.zeros((int_lo, C), _COMPUTE_DTYPE)
        pad_ref[int_hi:pad_rows, :] = jnp.zeros((pad_rows - int_hi, C),
                                                _COMPUTE_DTYPE)

    def conv(src, layer):
        """SAME KxK conv (+bias) of `src` (HWp, C) f32: K*K per-tap MXU dots."""
        # Junk columns must land as zeros: in the flattened padded buffer they
        # become the left/right zero padding of neighbouring image rows.
        pad_ref[int_lo:int_hi, :] = jnp.where(valid, src, 0.0).astype(_COMPUTE_DTYPE)
        acc = jnp.zeros((HWp, C), jnp.float32)
        for kh in range(K):                    # K*K static taps
            for kw in range(K):
                shift = kh * Wp + kw           # contiguous slice, no reshape
                win = pad_ref[shift:shift + HWp, :]
                acc = acc + jnp.dot(win, w_ref[layer * KK + kh * K + kw],
                                    preferred_element_type=jnp.float32)
        return acc + b_ref[layer]

    # Group input -> residual stream (f32, stays in VMEM across all convs).
    res_ref[...] = x_ref[0]

    # Residual blocks: ConvNorm -> ReLU -> ConvNorm, + block skip.  fori_loop keeps
    # code size flat and live ranges bounded at real depths; weights are indexed
    # dynamically per block.
    def block_body(i, carry):
        y = jnp.maximum(conv(res_ref[...], 2 * i), 0.0)
        res_ref[...] = conv(y, 2 * i + 1) + res_ref[...]
        return carry

    lax.fori_loop(0, n_resblocks, block_body, 0)

    # Tail ConvNorm of the body, with the group skip connection (res += x) fused.
    o_ref[0] = (conv(res_ref[...], n_layers - 1) + x_ref[0]).astype(o_ref.dtype)


def residual_group_forward(x_nchw, params):
    """ResidualGroup.forward: res = body(x); res += x.  NCHW in / NCHW out."""
    N, C, H, W = x_nchw.shape
    blocks = params["blocks"]
    wt, bt = params["tail"]
    K = wt.shape[0]
    n_resblocks = len(blocks)
    n_layers = 2 * n_resblocks + 1
    KK = K * K
    p = K // 2
    Wp = W + 2 * p
    HWp = H * Wp
    pad_rows = (H + 2 * p) * Wp + 2 * p

    # Stack weights as per-tap (Cin, Cout) slabs: (L*K*K, C, C), bf16, resident.
    # Weights here are HWIO; real PyTorch OIHW checkpoints must be transposed
    # (2, 3, 1, 0) to HWIO before this reshape.
    ws, bs = [], []
    for (w1, b1, w2, b2) in blocks:
        ws += [w1, w2]
        bs += [b1, b2]
    ws.append(wt)
    bs.append(bt)
    w_all = jnp.stack([w.reshape(KK, C, C) for w in ws])
    w_all = w_all.reshape(n_layers * KK, C, C).astype(_COMPUTE_DTYPE)
    b_all = jnp.stack([b.reshape(1, C) for b in bs]).astype(jnp.float32)

    # NCHW -> padded-row frame (N, H*(W+2p), C): channels-last, each image row
    # followed by 2p zero slack columns so every conv tap is a contiguous slice.
    x = jnp.transpose(x_nchw, (0, 2, 3, 1))                # NHWC
    x = jnp.pad(x, ((0, 0), (0, 0), (0, 2 * p), (0, 0)))   # junk cols = 0
    x = x.reshape(N, HWp, C)

    # 1.0 on valid columns (w < W), 0.0 on the per-row slack.
    mask = (jnp.arange(HWp, dtype=jnp.int32) % Wp < W).astype(jnp.float32)
    mask = jnp.broadcast_to(mask.reshape(HWp, 1), (HWp, C))

    kernel = functools.partial(_residual_group_kernel, n_resblocks=n_resblocks,
                               K=K, H=H, W=W, C=C)

    out = pl.pallas_call(
        kernel,
        out_shape=jax.ShapeDtypeStruct((N, HWp, C), x.dtype),
        grid_spec=pltpu.PrefetchScalarGridSpec(
            num_scalar_prefetch=0,
            grid=(N,),                  # one image per grid step
            in_specs=[
                pl.BlockSpec((1, HWp, C), lambda n: (n, 0, 0)),
                # Constant index_maps: weights / biases / mask are DMA'd into
                # VMEM once and stay resident across the whole grid.
                pl.BlockSpec((n_layers * KK, C, C), lambda n: (0, 0, 0)),
                pl.BlockSpec((n_layers, 1, C), lambda n: (0, 0, 0)),
                pl.BlockSpec((HWp, C), lambda n: (0, 0)),
            ],
            out_specs=pl.BlockSpec((1, HWp, C), lambda n: (n, 0, 0)),
            scratch_shapes=[
                pltpu.VMEM((pad_rows, C), _COMPUTE_DTYPE),  # padded activation
                pltpu.VMEM((HWp, C), jnp.float32),          # residual stream
            ]),
        compiler_params=pltpu.CompilerParams(
            dimension_semantics=("parallel",)),
    )(x, w_all, b_all, mask)

    # Back to NCHW, dropping the per-row slack columns.
    out = out.reshape(N, H, Wp, C)[:, :, :W, :]
    return jnp.transpose(out, (0, 3, 1, 2))


def init_residual_group_params(key, n_resblocks, n_feat, kernel_size):
    """Deterministic synthetic parameters (ConvNorm always has bias=True)."""
    params = {"blocks": [], "tail": None}
    keys = jax.random.split(key, 4 * n_resblocks + 2)
    scale = 0.05
    for i in range(n_resblocks):
        k1, k2, k3, k4 = keys[4 * i: 4 * i + 4]
        w1 = scale * jax.random.normal(
            k1, (kernel_size, kernel_size, n_feat, n_feat), jnp.float32)
        b1 = 0.01 * jax.random.normal(k2, (n_feat,), jnp.float32)
        w2 = scale * jax.random.normal(
            k3, (kernel_size, kernel_size, n_feat, n_feat), jnp.float32)
        b2 = 0.01 * jax.random.normal(k4, (n_feat,), jnp.float32)
        params["blocks"].append((w1, b1, w2, b2))
    wt = scale * jax.random.normal(
        keys[-2], (kernel_size, kernel_size, n_feat, n_feat), jnp.float32)
    bt = 0.01 * jax.random.normal(keys[-1], (n_feat,), jnp.float32)
    params["tail"] = (wt, bt)
    return params


# ---------------- pure-JAX reference (for correctness check) ----------------
def _conv_ref(x, w, b):
    y = jax.lax.conv_general_dilated(
        x, w, window_strides=(1, 1), padding="SAME",
        dimension_numbers=("NHWC", "HWIO", "NHWC"))
    return y + b[None, None, None, :]


def residual_group_ref(x_nchw, params):
    x = jnp.transpose(x_nchw, (0, 2, 3, 1))
    res = x
    for (w1, b1, w2, b2) in params["blocks"]:
        y = jax.nn.relu(_conv_ref(res, w1, b1))
        res = _conv_ref(y, w2, b2) + res
    wt, bt = params["tail"]
    out = _conv_ref(res, wt, bt) + x
    return jnp.transpose(out, (0, 3, 1, 2))


if __name__ == "__main__":
    key = jax.random.PRNGKey(0)
    kx, kp = jax.random.split(key)

    # Small shapes consistent with the module: NCHW input, n_feat channels.
    N, C, H, W = 2, 32, 16, 16
    n_resblocks, kernel_size = 2, 3   # `reduction` has no effect (see TODO)

    x = jax.random.normal(kx, (N, C, H, W), jnp.float32)
    params = init_residual_group_params(kp, n_resblocks, C, kernel_size)

    fwd = jax.jit(residual_group_forward)
    out = jax.block_until_ready(fwd(x, params))

    assert out.shape == x.shape and out.dtype == x.dtype
    ref = residual_group_ref(x, params)
    # bf16 matmul operands (f32 accumulation) vs. the f32 XLA reference conv.
    assert jnp.allclose(out, ref, rtol=3e-2, atol=3e-2), "mismatch vs JAX reference"

    print("KERNEL_OK")
</pallas_src>

<mosaic_0001>
module attributes {stable_mosaic.version = 11 : i64} {
  func.func @_residual_group_kernel(%arg0: i32, %arg1: memref<1x288x32xf32, #tpu.memory_space<vmem>>, %arg2: memref<45x32x32xbf16, #tpu.memory_space<vmem>>, %arg3: memref<5x1x32xf32, #tpu.memory_space<vmem>>, %arg4: memref<288x32xf32, #tpu.memory_space<vmem>>, %arg5: memref<1x288x32xf32, #tpu.memory_space<vmem>>, %arg6: memref<326x32xbf16, #tpu.memory_space<vmem>>, %arg7: memref<288x32xf32, #tpu.memory_space<vmem>>) attributes {dimension_semantics = [#tpu.dimension_semantics<parallel>], iteration_bounds = array<i64: 2>, scalar_prefetch = 0 : i64, scratch_operands = 2 : i64, tpu.core_type = #tpu.core_type<tc>, window_params = [{transform_indices = @transform_0, window_bounds = array<i64: 1, 288, 32>}, {pipeline_mode = #tpu.pipeline_mode<synchronous>, transform_indices = @transform_1, window_bounds = array<i64: 45, 32, 32>}, {pipeline_mode = #tpu.pipeline_mode<synchronous>, transform_indices = @transform_2, window_bounds = array<i64: 5, 1, 32>}, {pipeline_mode = #tpu.pipeline_mode<synchronous>, transform_indices = @transform_3, window_bounds = array<i64: 288, 32>}, {transform_indices = @transform_4, window_bounds = array<i64: 1, 288, 32>}]} {
    %c0 = arith.constant 0 : index
    %c0_0 = arith.constant 0 : index
    %0 = vector.load %arg4[%c0, %c0_0] : memref<288x32xf32, #tpu.memory_space<vmem>>, vector<288x32xf32>
    %cst = arith.constant 5.000000e-01 : f32
    %1 = vector.broadcast %cst : f32 to vector<288x32xf32>
    %2 = arith.cmpf ogt, %0, %1 : vector<288x32xf32>
    %cst_1 = arith.constant 0.000000e+00 : bf16
    %3 = vector.broadcast %cst_1 : bf16 to vector<19x32xbf16>
    %c0_2 = arith.constant 0 : index
    %c0_3 = arith.constant 0 : index
    %4 = vector.load %arg6[%c0_2, %c0_3] : memref<326x32xbf16, #tpu.memory_space<vmem>>, vector<19x32xbf16>
    tpu.vector_store %arg6[%c0_2, %c0_3], %3 {strides = array<i32>} : memref<326x32xbf16, #tpu.memory_space<vmem>>, vector<19x32xbf16>,
    %cst_4 = arith.constant 0.000000e+00 : bf16
    %5 = vector.broadcast %cst_4 : bf16 to vector<19x32xbf16>
    %c307 = arith.constant 307 : index
    %c0_5 = arith.constant 0 : index
    %6 = vector.load %arg6[%c307, %c0_5] : memref<326x32xbf16, #tpu.memory_space<vmem>>, vector<19x32xbf16>
    tpu.vector_store %arg6[%c307, %c0_5], %5 {strides = array<i32>} : memref<326x32xbf16, #tpu.memory_space<vmem>>, vector<19x32xbf16>,
    %c0_6 = arith.constant 0 : index
    %c0_7 = arith.constant 0 : index
    %c0_8 = arith.constant 0 : index
    %7 = vector.load %arg1[%c0_6, %c0_7, %c0_8] : memref<1x288x32xf32, #tpu.memory_space<vmem>>, vector<1x288x32xf32>
    %8 = vector.shape_cast %7 : vector<1x288x32xf32> to vector<288x32xf32>
    %c0_9 = arith.constant 0 : index
    %c0_10 = arith.constant 0 : index
    %9 = vector.load %arg7[%c0_9, %c0_10] : memref<288x32xf32, #tpu.memory_space<vmem>>, vector<288x32xf32>
    tpu.vector_store %arg7[%c0_9, %c0_10], %8 {strides = array<i32>} : memref<288x32xf32, #tpu.memory_space<vmem>>, vector<288x32xf32>,
    %c0_i32 = arith.constant 0 : i32
    %c2_i32 = arith.constant 2 : i32
    %10 = arith.addi %c0_i32, %c2_i32 : i32
    %c1_i32 = arith.constant 1 : i32
    scf.for %arg8 = %c0_i32 to %10 step %c1_i32  : i32 {
      %c0_66 = arith.constant 0 : index
      %c0_67 = arith.constant 0 : index
      %72 = vector.load %arg7[%c0_66, %c0_67] : memref<288x32xf32, #tpu.memory_space<vmem>>, vector<288x32xf32>
      %c2_i32_68 = arith.constant 2 : i32
      %73 = arith.muli %c2_i32_68, %arg8 : i32
      %cst_69 = arith.constant 0.000000e+00 : f32
      %74 = vector.broadcast %cst_69 : f32 to vector<288x32xf32>
      %75 = arith.select %2, %72, %74 : vector<288x32xi1>, vector<288x32xf32>
      %76 = arith.truncf %75 : vector<288x32xf32> to vector<288x32xbf16>
      %c19_70 = arith.constant 19 : index
      %c0_71 = arith.constant 0 : index
      %77 = vector.load %arg6[%c19_70, %c0_71] : memref<326x32xbf16, #tpu.memory_space<vmem>>, vector<288x32xbf16>
      tpu.vector_store %arg6[%c19_70, %c0_71], %76 {strides = array<i32>} : memref<326x32xbf16, #tpu.memory_space<vmem>>, vector<288x32xbf16>,
      %cst_72 = arith.constant 0.000000e+00 : f32
      %78 = vector.broadcast %cst_72 : f32 to vector<288x32xf32>
      %c0_73 = arith.constant 0 : index
      %c0_74 = arith.constant 0 : index
      %79 = vector.load %arg6[%c0_73, %c0_74] : memref<326x32xbf16, #tpu.memory_space<vmem>>, vector<288x32xbf16>
      %c9_i32 = arith.constant 9 : i32
      %80 = arith.muli %73, %c9_i32 : i32
      %c0_i32_75 = arith.constant 0 : i32
      %81 = arith.addi %80, %c0_i32_75 : i32
      %c0_i32_76 = arith.constant 0 : i32
      %82 = arith.addi %81, %c0_i32_76 : i32
      %83 = arith.index_cast %82 : i32 to index
      %c0_77 = arith.constant 0 : index
      %c0_78 = arith.constant 0 : index
      %84 = vector.load %arg2[%83, %c0_77, %c0_78] : memref<45x32x32xbf16, #tpu.memory_space<vmem>>, vector<1x32x32xbf16>
      %85 = vector.shape_cast %84 : vector<1x32x32xbf16> to vector<32x32xbf16>
      %cst_79 = arith.constant dense<0.000000e+00> : vector<288x32xf32>
      %86 = tpu.matmul %79, %85, %cst_79 {dimension_numbers = #tpu.dot_dimension_numbers<[1], [0], [0], [1], [0, 0, 1, 1], [], []>} : vector<288x32xbf16>, vector<32x32xbf16>, vector<288x32xf32> -> vector<288x32xf32>
      %87 = arith.addf %78, %86 : vector<288x32xf32>
      %c1_80 = arith.constant 1 : index
      %c0_81 = arith.constant 0 : index
      %88 = vector.load %arg6[%c1_80, %c0_81] : memref<326x32xbf16, #tpu.memory_space<vmem>>, vector<288x32xbf16>
      %c9_i32_82 = arith.constant 9 : i32
      %89 = arith.muli %73, %c9_i32_82 : i32
      %c0_i32_83 = arith.constant 0 : i32
      %90 = arith.addi %89, %c0_i32_83 : i32
      %c1_i32_84 = arith.constant 1 : i32
      %91 = arith.addi %90, %c1_i32_84 : i32
      %92 = arith.index_cast %91 : i32 to index
      %c0_85 = arith.constant 0 : index
      %c0_86 = arith.constant 0 : index
      %93 = vector.load %arg2[%92, %c0_85, %c0_86] : memref<45x32x32xbf16, #tpu.memory_space<vmem>>, vector<1x32x32xbf16>
      %94 = vector.shape_cast %93 : vector<1x32x32xbf16> to vector<32x32xbf16>
      %cst_87 = arith.constant dense<0.000000e+00> : vector<288x32xf32>
      %95 = tpu.matmul %88, %94, %cst_87 {dimension_numbers = #tpu.dot_dimension_numbers<[1], [0], [0], [1], [0, 0, 1, 1], [], []>} : vector<288x32xbf16>, vector<32x32xbf16>, vector<288x32xf32> -> vector<288x32xf32>
      %96 = arith.addf %87, %95 : vector<288x32xf32>
      %c2_88 = arith.constant 2 : index
      %c0_89 = arith.constant 0 : index
      %97 = vector.load %arg6[%c2_88, %c0_89] : memref<326x32xbf16, #tpu.memory_space<vmem>>, vector<288x32xbf16>
      %c9_i32_90 = arith.constant 9 : i32
      %98 = arith.muli %73, %c9_i32_90 : i32
      %c0_i32_91 = arith.constant 0 : i32
      %99 = arith.addi %98, %c0_i32_91 : i32
      %c2_i32_92 = arith.constant 2 : i32
      %100 = arith.addi %99, %c2_i32_92 : i32
      %101 = arith.index_cast %100 : i32 to index
      %c0_93 = arith.constant 0 : index
      %c0_94 = arith.constant 0 : index
      %102 = vector.load %arg2[%101, %c0_93, %c0_94] : memref<45x32x32xbf16, #tpu.memory_space<vmem>>, vector<1x32x32xbf16>
      %103 = vector.shape_cast %102 : vector<1x32x32xbf16> to vector<32x32xbf16>
      %cst_95 = arith.constant dense<0.000000e+00> : vector<288x32xf32>
      %104 = tpu.matmul %97, %103, %cst_95 {dimension_numbers = #tpu.dot_dimension_numbers<[1], [0], [0], [1], [0, 0, 1, 1], [], []>} : vector<288x32xbf16>, vector<32x32xbf16>, vector<288x32xf32> -> vector<288x32xf32>
      %105 = arith.addf %96, %104 : vector<288x32xf32>
      %c18_96 = arith.constant 18 : index
      %c0_97 = arith.constant 0 : index
      %106 = vector.load %arg6[%c18_96, %c0_97] : memref<326x32xbf16, #tpu.memory_space<vmem>>, vector<288x32xbf16>
      %c9_i32_98 = arith.constant 9 : i32
      %107 = arith.muli %73, %c9_i32_98 : i32
      %c3_i32 = arith.constant 3 : i32
      %108 = arith.addi %107, %c3_i32 : i32
      %c0_i32_99 = arith.constant 0 : i32
      %109 = arith.addi %108, %c0_i32_99 : i32
      %110 = arith.index_cast %109 : i32 to index
      %c0_100 = arith.constant 0 : index
      %c0_101 = arith.constant 0 : index
      %111 = vector.load %arg2[%110, %c0_100, %c0_101] : memref<45x32x32xbf16, #tpu.memory_space<vmem>>, vector<1x32x32xbf16>
      %112 = vector.shape_cast %111 : vector<1x32x32xbf16> to vector<32x32xbf16>
      %cst_102 = arith.constant dense<0.000000e+00> : vector<288x32xf32>
      %113 = tpu.matmul %106, %112, %cst_102 {dimension_numbers = #tpu.dot_dimension_numbers<[1], [0], [0], [1], [0, 0, 1, 1], [], []>} : vector<288x32xbf16>, vector<32x32xbf16>, vector<288x32xf32> -> vector<288x32xf32>
      %114 = arith.addf %105, %113 : vector<288x32xf32>
      %c19_103 = arith.constant 19 : index
      %c0_104 = arith.constant 0 : index
      %115 = vector.load %arg6[%c19_103, %c0_104] : memref<326x32xbf16, #tpu.memory_space<vmem>>, vector<288x32xbf16>
      %c9_i32_105 = arith.constant 9 : i32
      %116 = arith.muli %73, %c9_i32_105 : i32
      %c3_i32_106 = arith.constant 3 : i32
      %117 = arith.addi %116, %c3_i32_106 : i32
      %c1_i32_107 = arith.constant 1 : i32
      %118 = arith.addi %117, %c1_i32_107 : i32
      %119 = arith.index_cast %118 : i32 to index
      %c0_108 = arith.constant 0 : index
      %c0_109 = arith.constant 0 : index
      %120 = vector.load %arg2[%119, %c0_108, %c0_109] : memref<45x32x32xbf16, #tpu.memory_space<vmem>>, vector<1x32x32xbf16>
      %121 = vector.shape_cast %120 : vector<1x32x32xbf16> to vector<32x32xbf16>
      %cst_110 = arith.constant dense<0.000000e+00> : vector<288x32xf32>
      %122 = tpu.matmul %115, %121, %cst_110 {dimension_numbers = #tpu.dot_dimension_numbers<[1], [0], [0], [1], [0, 0, 1, 1], [], []>} : vector<288x32xbf16>, vector<32x32xbf16>, vector<288x32xf32> -> vector<288x32xf32>
      %123 = arith.addf %114, %122 : vector<288x32xf32>
      %c20_111 = arith.constant 20 : index
      %c0_112 = arith.constant 0 : index
      %124 = vector.load %arg6[%c20_111, %c0_112] : memref<326x32xbf16, #tpu.memory_space<vmem>>, vector<288x32xbf16>
      %c9_i32_113 = arith.constant 9 : i32
      %125 = arith.muli %73, %c9_i32_113 : i32
      %c3_i32_114 = arith.constant 3 : i32
      %126 = arith.addi %125, %c3_i32_114 : i32
      %c2_i32_115 = arith.constant 2 : i32
      %127 = arith.addi %126, %c2_i32_115 : i32
      %128 = arith.index_cast %127 : i32 to index
      %c0_116 = arith.constant 0 : index
      %c0_117 = arith.constant 0 : index
      %129 = vector.load %arg2[%128, %c0_116, %c0_117] : memref<45x32x32xbf16, #tpu.memory_space<vmem>>, vector<1x32x32xbf16>
      %130 = vector.shape_cast %129 : vector<1x32x32xbf16> to vector<32x32xbf16>
      %cst_118 = arith.constant dense<0.000000e+00> : vector<288x32xf32>
      %131 = tpu.matmul %124, %130, %cst_118 {dimension_numbers = #tpu.dot_dimension_numbers<[1], [0], [0], [1], [0, 0, 1, 1], [], []>} : vector<288x32xbf16>, vector<32x32xbf16>, vector<288x32xf32> -> vector<288x32xf32>
      %132 = arith.addf %123, %131 : vector<288x32xf32>
      %c36_119 = arith.constant 36 : index
      %c0_120 = arith.constant 0 : index
      %133 = vector.load %arg6[%c36_119, %c0_120] : memref<326x32xbf16, #tpu.memory_space<vmem>>, vector<288x32xbf16>
      %c9_i32_121 = arith.constant 9 : i32
      %134 = arith.muli %73, %c9_i32_121 : i32
      %c6_i32 = arith.constant 6 : i32
      %135 = arith.addi %134, %c6_i32 : i32
      %c0_i32_122 = arith.constant 0 : i32
      %136 = arith.addi %135, %c0_i32_122 : i32
      %137 = arith.index_cast %136 : i32 to index
      %c0_123 = arith.constant 0 : index
      %c0_124 = arith.constant 0 : index
      %138 = vector.load %arg2[%137, %c0_123, %c0_124] : memref<45x32x32xbf16, #tpu.memory_space<vmem>>, vector<1x32x32xbf16>
      %139 = vector.shape_cast %138 : vector<1x32x32xbf16> to vector<32x32xbf16>
      %cst_125 = arith.constant dense<0.000000e+00> : vector<288x32xf32>
      %140 = tpu.matmul %133, %139, %cst_125 {dimension_numbers = #tpu.dot_dimension_numbers<[1], [0], [0], [1], [0, 0, 1, 1], [], []>} : vector<288x32xbf16>, vector<32x32xbf16>, vector<288x32xf32> -> vector<288x32xf32>
      %141 = arith.addf %132, %140 : vector<288x32xf32>
      %c37_126 = arith.constant 37 : index
      %c0_127 = arith.constant 0 : index
      %142 = vector.load %arg6[%c37_126, %c0_127] : memref<326x32xbf16, #tpu.memory_space<vmem>>, vector<288x32xbf16>
      %c9_i32_128 = arith.constant 9 : i32
      %143 = arith.muli %73, %c9_i32_128 : i32
      %c6_i32_129 = arith.constant 6 : i32
      %144 = arith.addi %143, %c6_i32_129 : i32
      %c1_i32_130 = arith.constant 1 : i32
      %145 = arith.addi %144, %c1_i32_130 : i32
      %146 = arith.index_cast %145 : i32 to index
      %c0_131 = arith.constant 0 : index
      %c0_132 = arith.constant 0 : index
      %147 = vector.load %arg2[%146, %c0_131, %c0_132] : memref<45x32x32xbf16, #tpu.memory_space<vmem>>, vector<1x32x32xbf16>
      %148 = vector.shape_cast %147 : vector<1x32x32xbf16> to vector<32x32xbf16>
      %cst_133 = arith.constant dense<0.000000e+00> : vector<288x32xf32>
      %149 = tpu.matmul %142, %148, %cst_133 {dimension_numbers = #tpu.dot_dimension_numbers<[1], [0], [0], [1], [0, 0, 1, 1], [], []>} : vector<288x32xbf16>, vector<32x32xbf16>, vector<288x32xf32> -> vector<288x32xf32>
      %150 = arith.addf %141, %149 : vector<288x32xf32>
      %c38_134 = arith.constant 38 : index
      %c0_135 = arith.constant 0 : index
      %151 = vector.load %arg6[%c38_134, %c0_135] : memref<326x32xbf16, #tpu.memory_space<vmem>>, vector<288x32xbf16>
      %c9_i32_136 = arith.constant 9 : i32
      %152 = arith.muli %73, %c9_i32_136 : i32
      %c6_i32_137 = arith.constant 6 : i32
      %153 = arith.addi %152, %c6_i32_137 : i32
      %c2_i32_138 = arith.constant 2 : i32
      %154 = arith.addi %153, %c2_i32_138 : i32
      %155 = arith.index_cast %154 : i32 to index
      %c0_139 = arith.constant 0 : index
      %c0_140 = arith.constant 0 : index
      %156 = vector.load %arg2[%155, %c0_139, %c0_140] : memref<45x32x32xbf16, #tpu.memory_space<vmem>>, vector<1x32x32xbf16>
      %157 = vector.shape_cast %156 : vector<1x32x32xbf16> to vector<32x32xbf16>
      %cst_141 = arith.constant dense<0.000000e+00> : vector<288x32xf32>
      %158 = tpu.matmul %151, %157, %cst_141 {dimension_numbers = #tpu.dot_dimension_numbers<[1], [0], [0], [1], [0, 0, 1, 1], [], []>} : vector<288x32xbf16>, vector<32x32xbf16>, vector<288x32xf32> -> vector<288x32xf32>
      %159 = arith.addf %150, %158 : vector<288x32xf32>
      %160 = arith.index_cast %73 : i32 to index
      %c0_142 = arith.constant 0 : index
      %c0_143 = arith.constant 0 : index
      %161 = vector.load %arg3[%160, %c0_142, %c0_143] : memref<5x1x32xf32, #tpu.memory_space<vmem>>, vector<1x1x32xf32>
      %162 = vector.shape_cast %161 : vector<1x1x32xf32> to vector<1x32xf32>
      %163 = vector.broadcast %162 : vector<1x32xf32> to vector<288x32xf32>
      %164 = arith.addf %159, %163 : vector<288x32xf32>
      %cst_144 = arith.constant 0.000000e+00 : f32
      %165 = vector.broadcast %cst_144 : f32 to vector<288x32xf32>
      %166 = arith.maximumf %164, %165 : vector<288x32xf32>
      %c2_i32_145 = arith.constant 2 : i32
      %167 = arith.muli %c2_i32_145, %arg8 : i32
      %c1_i32_146 = arith.constant 1 : i32
      %168 = arith.addi %167, %c1_i32_146 : i32
      %cst_147 = arith.constant 0.000000e+00 : f32
      %169 = vector.broadcast %cst_147 : f32 to vector<288x32xf32>
      %170 = arith.select %2, %166, %169 : vector<288x32xi1>, vector<288x32xf32>
      %171 = arith.truncf %170 : vector<288x32xf32> to vector<288x32xbf16>
      %c19_148 = arith.constant 19 : index
      %c0_149 = arith.constant 0 : index
      %172 = vector.load %arg6[%c19_148, %c0_149] : memref<326x32xbf16, #tpu.memory_space<vmem>>, vector<288x32xbf16>
      tpu.vector_store %arg6[%c19_148, %c0_149], %171 {strides = array<i32>} : memref<326x32xbf16, #tpu.memory_space<vmem>>, vector<288x32xbf16>,
      %cst_150 = arith.constant 0.000000e+00 : f32
      %173 = vector.broadcast %cst_150 : f32 to vector<288x32xf32>
      %c0_151 = arith.constant 0 : index
      %c0_152 = arith.constant 0 : index
      %174 = vector.load %arg6[%c0_151, %c0_152] : memref<326x32xbf16, #tpu.memory_space<vmem>>, vector<288x32xbf16>
      %c9_i32_153 = arith.constant 9 : i32
      %175 = arith.muli %168, %c9_i32_153 : i32
      %c0_i32_154 = arith.constant 0 : i32
      %176 = arith.addi %175, %c0_i32_154 : i32
      %c0_i32_155 = arith.constant 0 : i32
      %177 = arith.addi %176, %c0_i32_155 : i32
      %178 = arith.index_cast %177 : i32 to index
      %c0_156 = arith.constant 0 : index
      %c0_157 = arith.constant 0 : index
      %179 = vector.load %arg2[%178, %c0_156, %c0_157] : memref<45x32x32xbf16, #tpu.memory_space<vmem>>, vector<1x32x32xbf16>
      %180 = vector.shape_cast %179 : vector<1x32x32xbf16> to vector<32x32xbf16>
      %cst_158 = arith.constant dense<0.000000e+00> : vector<288x32xf32>
      %181 = tpu.matmul %174, %180, %cst_158 {dimension_numbers = #tpu.dot_dimension_numbers<[1], [0], [0], [1], [0, 0, 1, 1], [], []>} : vector<288x32xbf16>, vector<32x32xbf16>, vector<288x32xf32> -> vector<288x32xf32>
      %182 = arith.addf %173, %181 : vector<288x32xf32>
      %c1_159 = arith.constant 1 : index
      %c0_160 = arith.constant 0 : index
      %183 = vector.load %arg6[%c1_159, %c0_160] : memref<326x32xbf16, #tpu.memory_space<vmem>>, vector<288x32xbf16>
      %c9_i32_161 = arith.constant 9 : i32
      %184 = arith.muli %168, %c9_i32_161 : i32
      %c0_i32_162 = arith.constant 0 : i32
      %185 = arith.addi %184, %c0_i32_162 : i32
      %c1_i32_163 = arith.constant 1 : i32
      %186 = arith.addi %185, %c1_i32_163 : i32
      %187 = arith.index_cast %186 : i32 to index
      %c0_164 = arith.constant 0 : index
      %c0_165 = arith.constant 0 : index
      %188 = vector.load %arg2[%187, %c0_164, %c0_165] : memref<45x32x32xbf16, #tpu.memory_space<vmem>>, vector<1x32x32xbf16>
      %189 = vector.shape_cast %188 : vector<1x32x32xbf16> to vector<32x32xbf16>
      %cst_166 = arith.constant dense<0.000000e+00> : vector<288x32xf32>
      %190 = tpu.matmul %183, %189, %cst_166 {dimension_numbers = #tpu.dot_dimension_numbers<[1], [0], [0], [1], [0, 0, 1, 1], [], []>} : vector<288x32xbf16>, vector<32x32xbf16>, vector<288x32xf32> -> vector<288x32xf32>
      %191 = arith.addf %182, %190 : vector<288x32xf32>
      %c2_167 = arith.constant 2 : index
      %c0_168 = arith.constant 0 : index
      %192 = vector.load %arg6[%c2_167, %c0_168] : memref<326x32xbf16, #tpu.memory_space<vmem>>, vector<288x32xbf16>
      %c9_i32_169 = arith.constant 9 : i32
      %193 = arith.muli %168, %c9_i32_169 : i32
      %c0_i32_170 = arith.constant 0 : i32
      %194 = arith.addi %193, %c0_i32_170 : i32
      %c2_i32_171 = arith.constant 2 : i32
      %195 = arith.addi %194, %c2_i32_171 : i32
      %196 = arith.index_cast %195 : i32 to index
      %c0_172 = arith.constant 0 : index
      %c0_173 = arith.constant 0 : index
      %197 = vector.load %arg2[%196, %c0_172, %c0_173] : memref<45x32x32xbf16, #tpu.memory_space<vmem>>, vector<1x32x32xbf16>
      %198 = vector.shape_cast %197 : vector<1x32x32xbf16> to vector<32x32xbf16>
      %cst_174 = arith.constant dense<0.000000e+00> : vector<288x32xf32>
      %199 = tpu.matmul %192, %198, %cst_174 {dimension_numbers = #tpu.dot_dimension_numbers<[1], [0], [0], [1], [0, 0, 1, 1], [], []>} : vector<288x32xbf16>, vector<32x32xbf16>, vector<288x32xf32> -> vector<288x32xf32>
      %200 = arith.addf %191, %199 : vector<288x32xf32>
      %c18_175 = arith.constant 18 : index
      %c0_176 = arith.constant 0 : index
      %201 = vector.load %arg6[%c18_175, %c0_176] : memref<326x32xbf16, #tpu.memory_space<vmem>>, vector<288x32xbf16>
      %c9_i32_177 = arith.constant 9 : i32
      %202 = arith.muli %168, %c9_i32_177 : i32
      %c3_i32_178 = arith.constant 3 : i32
      %203 = arith.addi %202, %c3_i32_178 : i32
      %c0_i32_179 = arith.constant 0 : i32
      %204 = arith.addi %203, %c0_i32_179 : i32
      %205 = arith.index_cast %204 : i32 to index
      %c0_180 = arith.constant 0 : index
      %c0_181 = arith.constant 0 : index
      %206 = vector.load %arg2[%205, %c0_180, %c0_181] : memref<45x32x32xbf16, #tpu.memory_space<vmem>>, vector<1x32x32xbf16>
      %207 = vector.shape_cast %206 : vector<1x32x32xbf16> to vector<32x32xbf16>
      %cst_182 = arith.constant dense<0.000000e+00> : vector<288x32xf32>
      %208 = tpu.matmul %201, %207, %cst_182 {dimension_numbers = #tpu.dot_dimension_numbers<[1], [0], [0], [1], [0, 0, 1, 1], [], []>} : vector<288x32xbf16>, vector<32x32xbf16>, vector<288x32xf32> -> vector<288x32xf32>
      %209 = arith.addf %200, %208 : vector<288x32xf32>
      %c19_183 = arith.constant 19 : index
      %c0_184 = arith.constant 0 : index
      %210 = vector.load %arg6[%c19_183, %c0_184] : memref<326x32xbf16, #tpu.memory_space<vmem>>, vector<288x32xbf16>
      %c9_i32_185 = arith.constant 9 : i32
      %211 = arith.muli %168, %c9_i32_185 : i32
      %c3_i32_186 = arith.constant 3 : i32
      %212 = arith.addi %211, %c3_i32_186 : i32
      %c1_i32_187 = arith.constant 1 : i32
      %213 = arith.addi %212, %c1_i32_187 : i32
      %214 = arith.index_cast %213 : i32 to index
      %c0_188 = arith.constant 0 : index
      %c0_189 = arith.constant 0 : index
      %215 = vector.load %arg2[%214, %c0_188, %c0_189] : memref<45x32x32xbf16, #tpu.memory_space<vmem>>, vector<1x32x32xbf16>
      %216 = vector.shape_cast %215 : vector<1x32x32xbf16> to vector<32x32xbf16>
      %cst_190 = arith.constant dense<0.000000e+00> : vector<288x32xf32>
      %217 = tpu.matmul %210, %216, %cst_190 {dimension_numbers = #tpu.dot_dimension_numbers<[1], [0], [0], [1], [0, 0, 1, 1], [], []>} : vector<288x32xbf16>, vector<32x32xbf16>, vector<288x32xf32> -> vector<288x32xf32>
      %218 = arith.addf %209, %217 : vector<288x32xf32>
      %c20_191 = arith.constant 20 : index
      %c0_192 = arith.constant 0 : index
      %219 = vector.load %arg6[%c20_191, %c0_192] : memref<326x32xbf16, #tpu.memory_space<vmem>>, vector<288x32xbf16>
      %c9_i32_193 = arith.constant 9 : i32
      %220 = arith.muli %168, %c9_i32_193 : i32
      %c3_i32_194 = arith.constant 3 : i32
      %221 = arith.addi %220, %c3_i32_194 : i32
      %c2_i32_195 = arith.constant 2 : i32
      %222 = arith.addi %221, %c2_i32_195 : i32
      %223 = arith.index_cast %222 : i32 to index
      %c0_196 = arith.constant 0 : index
      %c0_197 = arith.constant 0 : index
      %224 = vector.load %arg2[%223, %c0_196, %c0_197] : memref<45x32x32xbf16, #tpu.memory_space<vmem>>, vector<1x32x32xbf16>
      %225 = vector.shape_cast %224 : vector<1x32x32xbf16> to vector<32x32xbf16>
      %cst_198 = arith.constant dense<0.000000e+00> : vector<288x32xf32>
      %226 = tpu.matmul %219, %225, %cst_198 {dimension_numbers = #tpu.dot_dimension_numbers<[1], [0], [0], [1], [0, 0, 1, 1], [], []>} : vector<288x32xbf16>, vector<32x32xbf16>, vector<288x32xf32> -> vector<288x32xf32>
      %227 = arith.addf %218, %226 : vector<288x32xf32>
      %c36_199 = arith.constant 36 : index
      %c0_200 = arith.constant 0 : index
      %228 = vector.load %arg6[%c36_199, %c0_200] : memref<326x32xbf16, #tpu.memory_space<vmem>>, vector<288x32xbf16>
      %c9_i32_201 = arith.constant 9 : i32
      %229 = arith.muli %168, %c9_i32_201 : i32
      %c6_i32_202 = arith.constant 6 : i32
      %230 = arith.addi %229, %c6_i32_202 : i32
      %c0_i32_203 = arith.constant 0 : i32
      %231 = arith.addi %230, %c0_i32_203 : i32
      %232 = arith.index_cast %231 : i32 to index
      %c0_204 = arith.constant 0 : index
      %c0_205 = arith.constant 0 : index
      %233 = vector.load %arg2[%232, %c0_204, %c0_205] : memref<45x32x32xbf16, #tpu.memory_space<vmem>>, vector<1x32x32xbf16>
      %234 = vector.shape_cast %233 : vector<1x32x32xbf16> to vector<32x32xbf16>
      %cst_206 = arith.constant dense<0.000000e+00> : vector<288x32xf32>
      %235 = tpu.matmul %228, %234, %cst_206 {dimension_numbers = #tpu.dot_dimension_numbers<[1], [0], [0], [1], [0, 0, 1, 1], [], []>} : vector<288x32xbf16>, vector<32x32xbf16>, vector<288x32xf32> -> vector<288x32xf32>
      %236 = arith.addf %227, %235 : vector<288x32xf32>
      %c37_207 = arith.constant 37 : index
      %c0_208 = arith.constant 0 : index
      %237 = vector.load %arg6[%c37_207, %c0_208] : memref<326x32xbf16, #tpu.memory_space<vmem>>, vector<288x32xbf16>
      %c9_i32_209 = arith.constant 9 : i32
      %238 = arith.muli %168, %c9_i32_209 : i32
      %c6_i32_210 = arith.constant 6 : i32
      %239 = arith.addi %238, %c6_i32_210 : i32
      %c1_i32_211 = arith.constant 1 : i32
      %240 = arith.addi %239, %c1_i32_211 : i32
      %241 = arith.index_cast %240 : i32 to index
      %c0_212 = arith.constant 0 : index
      %c0_213 = arith.constant 0 : index
      %242 = vector.load %arg2[%241, %c0_212, %c0_213] : memref<45x32x32xbf16, #tpu.memory_space<vmem>>, vector<1x32x32xbf16>
      %243 = vector.shape_cast %242 : vector<1x32x32xbf16> to vector<32x32xbf16>
      %cst_214 = arith.constant dense<0.000000e+00> : vector<288x32xf32>
      %244 = tpu.matmul %237, %243, %cst_214 {dimension_numbers = #tpu.dot_dimension_numbers<[1], [0], [0], [1], [0, 0, 1, 1], [], []>} : vector<288x32xbf16>, vector<32x32xbf16>, vector<288x32xf32> -> vector<288x32xf32>
      %245 = arith.addf %236, %244 : vector<288x32xf32>
      %c38_215 = arith.constant 38 : index
      %c0_216 = arith.constant 0 : index
      %246 = vector.load %arg6[%c38_215, %c0_216] : memref<326x32xbf16, #tpu.memory_space<vmem>>, vector<288x32xbf16>
      %c9_i32_217 = arith.constant 9 : i32
      %247 = arith.muli %168, %c9_i32_217 : i32
      %c6_i32_218 = arith.constant 6 : i32
      %248 = arith.addi %247, %c6_i32_218 : i32
      %c2_i32_219 = arith.constant 2 : i32
      %249 = arith.addi %248, %c2_i32_219 : i32
      %250 = arith.index_cast %249 : i32 to index
      %c0_220 = arith.constant 0 : index
      %c0_221 = arith.constant 0 : index
      %251 = vector.load %arg2[%250, %c0_220, %c0_221] : memref<45x32x32xbf16, #tpu.memory_space<vmem>>, vector<1x32x32xbf16>
      %252 = vector.shape_cast %251 : vector<1x32x32xbf16> to vector<32x32xbf16>
      %cst_222 = arith.constant dense<0.000000e+00> : vector<288x32xf32>
      %253 = tpu.matmul %246, %252, %cst_222 {dimension_numbers = #tpu.dot_dimension_numbers<[1], [0], [0], [1], [0, 0, 1, 1], [], []>} : vector<288x32xbf16>, vector<32x32xbf16>, vector<288x32xf32> -> vector<288x32xf32>
      %254 = arith.addf %245, %253 : vector<288x32xf32>
      %255 = arith.index_cast %168 : i32 to index
      %c0_223 = arith.constant 0 : index
      %c0_224 = arith.constant 0 : index
      %256 = vector.load %arg3[%255, %c0_223, %c0_224] : memref<5x1x32xf32, #tpu.memory_space<vmem>>, vector<1x1x32xf32>
      %257 = vector.shape_cast %256 : vector<1x1x32xf32> to vector<1x32xf32>
      %258 = vector.broadcast %257 : vector<1x32xf32> to vector<288x32xf32>
      %259 = arith.addf %254, %258 : vector<288x32xf32>
      %c0_225 = arith.constant 0 : index
      %c0_226 = arith.constant 0 : index
      %260 = vector.load %arg7[%c0_225, %c0_226] : memref<288x32xf32, #tpu.memory_space<vmem>>, vector<288x32xf32>
      %261 = arith.addf %259, %260 : vector<288x32xf32>
      %c0_227 = arith.constant 0 : index
      %c0_228 = arith.constant 0 : index
      %262 = vector.load %arg7[%c0_227, %c0_228] : memref<288x32xf32, #tpu.memory_space<vmem>>, vector<288x32xf32>
      tpu.vector_store %arg7[%c0_227, %c0_228], %261 {strides = array<i32>} : memref<288x32xf32, #tpu.memory_space<vmem>>, vector<288x32xf32>,
    }
    %c2_i32_11 = arith.constant 2 : i32
    %c0_12 = arith.constant 0 : index
    %c0_13 = arith.constant 0 : index
    %11 = vector.load %arg7[%c0_12, %c0_13] : memref<288x32xf32, #tpu.memory_space<vmem>>, vector<288x32xf32>
    %cst_14 = arith.constant 0.000000e+00 : f32
    %12 = vector.broadcast %cst_14 : f32 to vector<288x32xf32>
    %13 = arith.select %2, %11, %12 : vector<288x32xi1>, vector<288x32xf32>
    %14 = arith.truncf %13 : vector<288x32xf32> to vector<288x32xbf16>
    %c19 = arith.constant 19 : index
    %c0_15 = arith.constant 0 : index
    %15 = vector.load %arg6[%c19, %c0_15] : memref<326x32xbf16, #tpu.memory_space<vmem>>, vector<288x32xbf16>
    tpu.vector_store %arg6[%c19, %c0_15], %14 {strides = array<i32>} : memref<326x32xbf16, #tpu.memory_space<vmem>>, vector<288x32xbf16>,
    %cst_16 = arith.constant 0.000000e+00 : f32
    %16 = vector.broadcast %cst_16 : f32 to vector<288x32xf32>
    %c0_17 = arith.constant 0 : index
    %c0_18 = arith.constant 0 : index
    %17 = vector.load %arg6[%c0_17, %c0_18] : memref<326x32xbf16, #tpu.memory_space<vmem>>, vector<288x32xbf16>
    %c36 = arith.constant 36 : index
    %c0_19 = arith.constant 0 : index
    %c0_20 = arith.constant 0 : index
    %18 = vector.load %arg2[%c36, %c0_19, %c0_20] : memref<45x32x32xbf16, #tpu.memory_space<vmem>>, vector<1x32x32xbf16>
    %19 = vector.shape_cast %18 : vector<1x32x32xbf16> to vector<32x32xbf16>
    %cst_21 = arith.constant dense<0.000000e+00> : vector<288x32xf32>
    %20 = tpu.matmul %17, %19, %cst_21 {dimension_numbers = #tpu.dot_dimension_numbers<[1], [0], [0], [1], [0, 0, 1, 1], [], []>} : vector<288x32xbf16>, vector<32x32xbf16>, vector<288x32xf32> -> vector<288x32xf32>
    %21 = arith.addf %16, %20 : vector<288x32xf32>
    %c1 = arith.constant 1 : index
    %c0_22 = arith.constant 0 : index
    %22 = vector.load %arg6[%c1, %c0_22] : memref<326x32xbf16, #tpu.memory_space<vmem>>, vector<288x32xbf16>
    %c37 = arith.constant 37 : index
    %c0_23 = arith.constant 0 : index
    %c0_24 = arith.constant 0 : index
    %23 = vector.load %arg2[%c37, %c0_23, %c0_24] : memref<45x32x32xbf16, #tpu.memory_space<vmem>>, vector<1x32x32xbf16>
    %24 = vector.shape_cast %23 : vector<1x32x32xbf16> to vector<32x32xbf16>
    %cst_25 = arith.constant dense<0.000000e+00> : vector<288x32xf32>
    %25 = tpu.matmul %22, %24, %cst_25 {dimension_numbers = #tpu.dot_dimension_numbers<[1], [0], [0], [1], [0, 0, 1, 1], [], []>} : vector<288x32xbf16>, vector<32x32xbf16>, vector<288x32xf32> -> vector<288x32xf32>
    %26 = arith.addf %21, %25 : vector<288x32xf32>
    %c2 = arith.constant 2 : index
    %c0_26 = arith.constant 0 : index
    %27 = vector.load %arg6[%c2, %c0_26] : memref<326x32xbf16, #tpu.memory_space<vmem>>, vector<288x32xbf16>
    %c38 = arith.constant 38 : index
    %c0_27 = arith.constant 0 : index
    %c0_28 = arith.constant 0 : index
    %28 = vector.load %arg2[%c38, %c0_27, %c0_28] : memref<45x32x32xbf16, #tpu.memory_space<vmem>>, vector<1x32x32xbf16>
    %29 = vector.shape_cast %28 : vector<1x32x32xbf16> to vector<32x32xbf16>
    %cst_29 = arith.constant dense<0.000000e+00> : vector<288x32xf32>
    %30 = tpu.matmul %27, %29, %cst_29 {dimension_numbers = #tpu.dot_dimension_numbers<[1], [0], [0], [1], [0, 0, 1, 1], [], []>} : vector<288x32xbf16>, vector<32x32xbf16>, vector<288x32xf32> -> vector<288x32xf32>
    %31 = arith.addf %26, %30 : vector<288x32xf32>
    %c18 = arith.constant 18 : index
    %c0_30 = arith.constant 0 : index
    %32 = vector.load %arg6[%c18, %c0_30] : memref<326x32xbf16, #tpu.memory_space<vmem>>, vector<288x32xbf16>
    %c39 = arith.constant 39 : index
    %c0_31 = arith.constant 0 : index
    %c0_32 = arith.constant 0 : index
    %33 = vector.load %arg2[%c39, %c0_31, %c0_32] : memref<45x32x32xbf16, #tpu.memory_space<vmem>>, vector<1x32x32xbf16>
    %34 = vector.shape_cast %33 : vector<1x32x32xbf16> to vector<32x32xbf16>
    %cst_33 = arith.constant dense<0.000000e+00> : vector<288x32xf32>
    %35 = tpu.matmul %32, %34, %cst_33 {dimension_numbers = #tpu.dot_dimension_numbers<[1], [0], [0], [1], [0, 0, 1, 1], [], []>} : vector<288x32xbf16>, vector<32x32xbf16>, vector<288x32xf32> -> vector<288x32xf32>
    %36 = arith.addf %31, %35 : vector<288x32xf32>
    %c19_34 = arith.constant 19 : index
    %c0_35 = arith.constant 0 : index
    %37 = vector.load %arg6[%c19_34, %c0_35] : memref<326x32xbf16, #tpu.memory_space<vmem>>, vector<288x32xbf16>
    %c40 = arith.constant 40 : index
    %c0_36 = arith.constant 0 : index
    %c0_37 = arith.constant 0 : index
    %38 = vector.load %arg2[%c40, %c0_36, %c0_37] : memref<45x32x32xbf16, #tpu.memory_space<vmem>>, vector<1x32x32xbf16>
    %39 = vector.shape_cast %38 : vector<1x32x32xbf16> to vector<32x32xbf16>
    %cst_38 = arith.constant dense<0.000000e+00> : vector<288x32xf32>
    %40 = tpu.matmul %37, %39, %cst_38 {dimension_numbers = #tpu.dot_dimension_numbers<[1], [0], [0], [1], [0, 0, 1, 1], [], []>} : vector<288x32xbf16>, vector<32x32xbf16>, vector<288x32xf32> -> vector<288x32xf32>
    %41 = arith.addf %36, %40 : vector<288x32xf32>
    %c20 = arith.constant 20 : index
    %c0_39 = arith.constant 0 : index
    %42 = vector.load %arg6[%c20, %c0_39] : memref<326x32xbf16, #tpu.memory_space<vmem>>, vector<288x32xbf16>
    %c41 = arith.constant 41 : index
    %c0_40 = arith.constant 0 : index
    %c0_41 = arith.constant 0 : index
    %43 = vector.load %arg2[%c41, %c0_40, %c0_41] : memref<45x32x32xbf16, #tpu.memory_space<vmem>>, vector<1x32x32xbf16>
    %44 = vector.shape_cast %43 : vector<1x32x32xbf16> to vector<32x32xbf16>
    %cst_42 = arith.constant dense<0.000000e+00> : vector<288x32xf32>
    %45 = tpu.matmul %42, %44, %cst_42 {dimension_numbers = #tpu.dot_dimension_numbers<[1], [0], [0], [1], [0, 0, 1, 1], [], []>} : vector<288x32xbf16>, vector<32x32xbf16>, vector<288x32xf32> -> vector<288x32xf32>
    %46 = arith.addf %41, %45 : vector<288x32xf32>
    %c36_43 = arith.constant 36 : index
    %c0_44 = arith.constant 0 : index
    %47 = vector.load %arg6[%c36_43, %c0_44] : memref<326x32xbf16, #tpu.memory_space<vmem>>, vector<288x32xbf16>
    %c42 = arith.constant 42 : index
    %c0_45 = arith.constant 0 : index
    %c0_46 = arith.constant 0 : index
    %48 = vector.load %arg2[%c42, %c0_45, %c0_46] : memref<45x32x32xbf16, #tpu.memory_space<vmem>>, vector<1x32x32xbf16>
    %49 = vector.shape_cast %48 : vector<1x32x32xbf16> to vector<32x32xbf16>
    %cst_47 = arith.constant dense<0.000000e+00> : vector<288x32xf32>
    %50 = tpu.matmul %47, %49, %cst_47 {dimension_numbers = #tpu.dot_dimension_numbers<[1], [0], [0], [1], [0, 0, 1, 1], [], []>} : vector<288x32xbf16>, vector<32x32xbf16>, vector<288x32xf32> -> vector<288x32xf32>
    %51 = arith.addf %46, %50 : vector<288x32xf32>
    %c37_48 = arith.constant 37 : index
    %c0_49 = arith.constant 0 : index
    %52 = vector.load %arg6[%c37_48, %c0_49] : memref<326x32xbf16, #tpu.memory_space<vmem>>, vector<288x32xbf16>
    %c43 = arith.constant 43 : index
    %c0_50 = arith.constant 0 : index
    %c0_51 = arith.constant 0 : index
    %53 = vector.load %arg2[%c43, %c0_50, %c0_51] : memref<45x32x32xbf16, #tpu.memory_space<vmem>>, vector<1x32x32xbf16>
    %54 = vector.shape_cast %53 : vector<1x32x32xbf16> to vector<32x32xbf16>
    %cst_52 = arith.constant dense<0.000000e+00> : vector<288x32xf32>
    %55 = tpu.matmul %52, %54, %cst_52 {dimension_numbers = #tpu.dot_dimension_numbers<[1], [0], [0], [1], [0, 0, 1, 1], [], []>} : vector<288x32xbf16>, vector<32x32xbf16>, vector<288x32xf32> -> vector<288x32xf32>
    %56 = arith.addf %51, %55 : vector<288x32xf32>
    %c38_53 = arith.constant 38 : index
    %c0_54 = arith.constant 0 : index
    %57 = vector.load %arg6[%c38_53, %c0_54] : memref<326x32xbf16, #tpu.memory_space<vmem>>, vector<288x32xbf16>
    %c44 = arith.constant 44 : index
    %c0_55 = arith.constant 0 : index
    %c0_56 = arith.constant 0 : index
    %58 = vector.load %arg2[%c44, %c0_55, %c0_56] : memref<45x32x32xbf16, #tpu.memory_space<vmem>>, vector<1x32x32xbf16>
    %59 = vector.shape_cast %58 : vector<1x32x32xbf16> to vector<32x32xbf16>
    %cst_57 = arith.constant dense<0.000000e+00> : vector<288x32xf32>
    %60 = tpu.matmul %57, %59, %cst_57 {dimension_numbers = #tpu.dot_dimension_numbers<[1], [0], [0], [1], [0, 0, 1, 1], [], []>} : vector<288x32xbf16>, vector<32x32xbf16>, vector<288x32xf32> -> vector<288x32xf32>
    %61 = arith.addf %56, %60 : vector<288x32xf32>
    %c4 = arith.constant 4 : index
    %c0_58 = arith.constant 0 : index
    %c0_59 = arith.constant 0 : index
    %62 = vector.load %arg3[%c4, %c0_58, %c0_59] : memref<5x1x32xf32, #tpu.memory_space<vmem>>, vector<1x1x32xf32>
    %63 = vector.shape_cast %62 : vector<1x1x32xf32> to vector<1x32xf32>
    %64 = vector.broadcast %63 : vector<1x32xf32> to vector<288x32xf32>
    %65 = arith.addf %61, %64 : vector<288x32xf32>
    %c0_60 = arith.constant 0 : index
    %c0_61 = arith.constant 0 : index
    %c0_62 = arith.constant 0 : index
    %66 = vector.load %arg1[%c0_60, %c0_61, %c0_62] : memref<1x288x32xf32, #tpu.memory_space<vmem>>, vector<1x288x32xf32>
    %67 = vector.shape_cast %66 : vector<1x288x32xf32> to vector<288x32xf32>
    %68 = arith.addf %65, %67 : vector<288x32xf32>
    %c0_63 = arith.constant 0 : index
    %c0_64 = arith.constant 0 : index
    %c0_65 = arith.constant 0 : index
    %69 = vector.load %arg5[%c0_63, %c0_64, %c0_65] : memref<1x288x32xf32, #tpu.memory_space<vmem>>, vector<1x288x32xf32>
    %70 = vector.shape_cast %69 : vector<1x288x32xf32> to vector<288x32xf32>
    %71 = vector.shape_cast %68 : vector<288x32xf32> to vector<1x288x32xf32>
    tpu.vector_store %arg5[%c0_63, %c0_64, %c0_65], %71 {strides = array<i32>} : memref<1x288x32xf32, #tpu.memory_space<vmem>>, vector<1x288x32xf32>,
    return
  }
  func.func @transform_0(%arg0: i32) -> (i32, i32, i32) {
    %c0_i32 = arith.constant 0 : i32
    %c0_i32_0 = arith.constant 0 : i32
    %c0_i32_1 = arith.constant 0 : i32
    return %arg0, %c0_i32, %c0_i32_0 : i32, i32, i32
  }
  func.func @transform_1(%arg0: i32) -> (i32, i32, i32) {
    %c0_i32 = arith.constant 0 : i32
    %c0_i32_0 = arith.constant 0 : i32
    %c0_i32_1 = arith.constant 0 : i32
    %c0_i32_2 = arith.constant 0 : i32
    return %c0_i32, %c0_i32_0, %c0_i32_1 : i32, i32, i32
  }
  func.func @transform_2(%arg0: i32) -> (i32, i32, i32) {
    %c0_i32 = arith.constant 0 : i32
    %c0_i32_0 = arith.constant 0 : i32
    %c0_i32_1 = arith.constant 0 : i32
    %c0_i32_2 = arith.constant 0 : i32
    return %c0_i32, %c0_i32_0, %c0_i32_1 : i32, i32, i32
  }
  func.func @transform_3(%arg0: i32) -> (i32, i32) {
    %c0_i32 = arith.constant 0 : i32
    %c0_i32_0 = arith.constant 0 : i32
    %c0_i32_1 = arith.constant 0 : i32
    return %c0_i32, %c0_i32_0 : i32, i32
  }
  func.func @transform_4(%arg0: i32) -> (i32, i32, i32) {
    %c0_i32 = arith.constant 0 : i32
    %c0_i32_0 = arith.constant 0 : i32
    %c0_i32_1 = arith.constant 0 : i32
    return %arg0, %c0_i32, %c0_i32_0 : i32, i32, i32
  }
}

</mosaic_0001>

<bundles_post_ra>
// kernel: residual_group_forward.1
= control target key start
LH: loop header
LB: loop body
LE: loop exit
PB: predicated region body
PF: predicated region fallthrough
CT: control target
= control target key end

     0   :  { %s12932_s15 = smov 0   ;;  %s17600_s0 = inlined_call_operand.vmem [shape: f32[2,288,32], index: 0, kind: input, shape index: {}]   ;;  %s17601_s1 = inlined_call_operand.vmem [shape: bf16[45,32,32], index: 1, kind: input, shape index: {}]   ;;  %s17602_s2 = inlined_call_operand.vmem [shape: f32[5,1,32], index: 2, kind: input, shape index: {}]   ;;  %s17603_s3 = inlined_call_operand.vmem [shape: f32[288,32], index: 3, kind: input, shape index: {}]   ;;  %s17604_s4 = inlined_call_operand.vmem [shape: f32[2,288,32], index: 4, kind: output, shape index: {}]  }
   0x1 LB: > { %s11097_s16 = sadd.s32 4294967295, %s12900_s15   ;;  %p11101_p0 = scmp.ge.s32.totalorder %s12900_s15, 1  ;;  %s12900_s15 = sphi %s12932_s15, %s14_s15  }
   0x2   : > { %p162_p1 = scmp.lt.s32.totalorder %s12900_s15, 3 }
   0x4   : > { %p163_p2 = pnand %p11101_p0, %p162_p1 }
   0x6   : > { %166 = sbr.rel (%p163_p2) target bundleno = 2569 (0xa09), region = 36 }
   0xb   : > { %v12943_v0 = vld [vmem:[%s17603_s3] sm:$0xff]  ;;  %v12948_v1 = vld [vmem:[%s17603_s3 + $0x8] sm:$0xff]  ;;  %v12953_v2 = vld [vmem:[%s17603_s3 + $0x10] sm:$0xff]  ;;  %vm271_vm3 = vcmask 257024   ;;  %vm274_vm10 = vcmask 254976   ;;  %v12906_v36 = vmov 0  }
   0xc   : > { %17705 = vst [vmem:[#allocation4_spill] sm:$0xff] %v12943_v0  ;;  %v12958_v3 = vld [vmem:[%s17603_s3 + $0x18] sm:$0xff]  ;;  %v12963_v4 = vld [vmem:[%s17603_s3 + $0x20] sm:$0xff]  ;;  %v12968_v5 = vld [vmem:[%s17603_s3 + $0x28] sm:$0xff]  ;;  %vm235_vm0 = vcmp.gt.f32.partialorder %v12943_v0, 0.5  ;;  %vm280_vm2 = vcmask 257025  }
   0xd   : > { %17706 = vst [vmem:[#allocation5_spill] sm:$0xff] %v12948_v1  ;;  %v12976_v6 = vld [vmem:[%s17603_s3 + $0x30] sm:$0xff]  ;;  %v12981_v7 = vld [vmem:[%s17603_s3 + $0x38] sm:$0xff]  ;;  %v12986_v8 = vld [vmem:[%s17603_s3 + $0x40] sm:$0xff]  ;;  %vm17609_vm11 = vsmask.f32 1280 }
   0xe   : > { %17707 = vst [vmem:[#allocation6_spill] sm:$0xff] %v12953_v2  ;;  %v12994_v9 = vld [vmem:[%s17603_s3 + $0x48] sm:$0xff]  ;;  %v12999_v10 = vld [vmem:[%s17603_s3 + $0x50] sm:$0xff]  ;;  %v13004_v11 = vld [vmem:[%s17603_s3 + $0x58] sm:$0xff]  ;;  %v17741_v38 = vmov 0  ;;  %v17744_v41 = vmov 0 }
   0xf   : > { %17708 = vst [vmem:[#allocation7_spill] sm:$0xff] %v12958_v3  ;;  %v13012_v12 = vld [vmem:[%s17603_s3 + $0x60] sm:$0xff]  ;;  %v13017_v13 = vld [vmem:[%s17603_s3 + $0x68] sm:$0xff]  ;;  %v13022_v14 = vld [vmem:[%s17603_s3 + $0x70] sm:$0xff]  ;;  %vm281_vm9 = vsmask.f32 7942 }
  0x10   : > { %17709 = vst [vmem:[#allocation8_spill] sm:$0xff] %v12963_v4  ;;  %v13030_v15 = vld [vmem:[%s17603_s3 + $0x78] sm:$0xff]  ;;  %v13035_v16 = vld [vmem:[%s17603_s3 + $0x80] sm:$0xff]  ;;  %v13040_v17 = vld [vmem:[%s17603_s3 + $0x88] sm:$0xff]  ;;  %vm287_vm8 = vcmask 256000   ;;  %p188_p3 = scmp.lt.s32.totalorder %s11097_s16, 1 }
  0x11   : > { %17710 = vst [vmem:[#allocation9_spill] sm:$0xff] %v12968_v5  ;;  %v13048_v18 = vld [vmem:[%s17603_s3 + $0x90] sm:$0xff]  ;;  %v13053_v19 = vld [vmem:[%s17603_s3 + $0x98] sm:$0xff]  ;;  %v13058_v20 = vld [vmem:[%s17603_s3 + $0xa0] sm:$0xff]  ;;  %vm250_vm14 = vcmp.gt.f32.partialorder %v13030_v15, 0.5  ;;  %vm251_vm15 = vcmp.gt.f32.partialorder %v13035_v16, 0.5 }
  0x12   : > { %17711 = vst [vmem:[#allocation10_spill] sm:$0xff] %v12976_v6  ;;  %vm252_vm13 = vcmp.gt.f32.partialorder %v13040_v17, 0.5  ;;  %v13066_v21 = vld [vmem:[%s17603_s3 + $0xa8] sm:$0xff]  ;;  %v13071_v22 = vld [vmem:[%s17603_s3 + $0xb0] sm:$0xff]  ;;  %v13076_v23 = vld [vmem:[%s17603_s3 + $0xb8] sm:$0xff]  ;;  %s18267_s16 = smov (!%p188_p3, %s11097_s16), 1 }
  0x13   : > { %17712 = vst [vmem:[#allocation11_spill] sm:$0xff] %v12981_v7  ;;  %v13084_v24 = vld [vmem:[%s17603_s3 + $0xc0] sm:$0xff]  ;;  %v13089_v25 = vld [vmem:[%s17603_s3 + $0xc8] sm:$0xff]  ;;  %v13094_v26 = vld [vmem:[%s17603_s3 + $0xd0] sm:$0xff]  ;;  %s12803_s17 = smul.u32 288, %s18267_s16  ;;  %s13259_s16 = smov 0  }
  0x14   : > { %17713 = vst [vmem:[#allocation12_spill] sm:$0xff] %v12986_v8  ;;  %v13102_v27 = vld [vmem:[%s17603_s3 + $0xd8] sm:$0xff]  ;;  %v13107_v28 = vld [vmem:[%s17603_s3 + $0xe0] sm:$0xff]  ;;  %v13112_v29 = vld [vmem:[%s17603_s3 + $0xe8] sm:$0xff] }
  0x15   : > { %17714 = vst [vmem:[#allocation13_spill] sm:$0xff] %v12994_v9  ;;  %v13120_v30 = vld [vmem:[%s17603_s3 + $0xf0] sm:$0xff]  ;;  %v13125_v31 = vld [vmem:[%s17603_s3 + $0xf8] sm:$0xff]  ;;  %v13130_v32 = vld [vmem:[%s17603_s3 + $0x100] sm:$0xff]  ;;  %s13180_s20 = scalar_lea.vmem %s17600_s0, %s12803_s17  ;;  %s13185_s23 = scalar_lea.vmem %s17604_s4, %s12803_s17 }
  0x16   : > { %17715 = vst [vmem:[#allocation14_spill] sm:$0xff] %v12999_v10  ;;  %v13138_v33 = vld [vmem:[%s17603_s3 + $0x108] sm:$0xff]  ;;  %v13143_v34 = vld [vmem:[%s17603_s3 + $0x110] sm:$0xff]  ;;  %v13148_v35 = vld [vmem:[%s17603_s3 + $0x118] sm:$0xff] }
  0x17   : > { %17716 = vst [vmem:[#allocation15_spill] sm:$0xff] %v13004_v11  ;;  %v277_v37 = vld [vmem:[#allocation2 + $0x8] sm:$0x3]  ;;  %vm13161_vm6 = vmand %vm274_vm10, %vm17609_vm11  ;;  %v283_v39 = vld [vmem:[#allocation2 + $0x98] sm:$0xe]  ;;  %vm325_vm10 = vcmask 261120  }
  0x18   : > { %17717 = vst [vmem:[#allocation16_spill] sm:$0xff] %v13012_v12  ;;  %v17742_v38 = vsel %vm13161_vm6, 4294967295, %v17741_v38  ;;  %v278_v40 = vsel %vm13161_vm6, 0, %v277_v37  ;;  %vm13167_vm4 = vmand %vm280_vm2, %vm281_vm9  ;;  %v289_v43 = vld [vmem:[%s13180_s20] sm:$0xff]  ;;  %v290_v44 = vld [vmem:[%s13180_s20 + $0x8] sm:$0xff] }
  0x19   : > { %17718 = vst [vmem:[#allocation17_spill] sm:$0xff] %v13017_v13  ;;  %v17745_v41 = vsel %vm13167_vm4, 4294967295, %v17744_v41  ;;  %v284_v42 = vsel %vm13167_vm4, 0, %v283_v39  ;;  %v291_v45 = vld [vmem:[%s13180_s20 + $0x10] sm:$0xff]  ;;  %v292_v46 = vld [vmem:[%s13180_s20 + $0x18] sm:$0xff]  ;;  %v293_v47 = vld [vmem:[%s13180_s20 + $0x20] sm:$0xff] }
  0x1a   : > { %17719 = vst [vmem:[#allocation18_spill] sm:$0xff] %v13022_v14  ;;  %v294_v48 = vld [vmem:[%s13180_s20 + $0x28] sm:$0xff]  ;;  %v295_v49 = vld [vmem:[%s13180_s20 + $0x30] sm:$0xff]  ;;  %v296_v50 = vld [vmem:[%s13180_s20 + $0x38] sm:$0xff] }
  0x1b   : > { %17720 = vst [vmem:[#allocation19_spill] sm:$0xff] %v13030_v15  ;;  %v297_v51 = vld [vmem:[%s13180_s20 + $0x40] sm:$0xff]  ;;  %v298_v52 = vld [vmem:[%s13180_s20 + $0x48] sm:$0xff]  ;;  %v299_v53 = vld [vmem:[%s13180_s20 + $0x50] sm:$0xff] }
  0x1c   : > { %17721 = vst [vmem:[#allocation20_spill] sm:$0xff] %v13035_v16  ;;  %v300_v54 = vld [vmem:[%s13180_s20 + $0x58] sm:$0xff]  ;;  %v301_v55 = vld [vmem:[%s13180_s20 + $0x60] sm:$0xff]  ;;  %v302_v56 = vld [vmem:[%s13180_s20 + $0x68] sm:$0xff] }
  0x1d   : > { %17722 = vst [vmem:[#allocation21_spill] sm:$0xff] %v13040_v17  ;;  %v303_v57 = vld [vmem:[%s13180_s20 + $0x70] sm:$0xff]  ;;  %v304_v58 = vld [vmem:[%s13180_s20 + $0x78] sm:$0xff]  ;;  %v305_v59 = vld [vmem:[%s13180_s20 + $0x80] sm:$0xff] }
  0x1e   : > { %17723 = vst [vmem:[#allocation22_spill] sm:$0xff] %v13048_v18  ;;  %v306_v60 = vld [vmem:[%s13180_s20 + $0x88] sm:$0xff]  ;;  %v307_v61 = vld [vmem:[%s13180_s20 + $0x90] sm:$0xff]  ;;  %v308_v62 = vld [vmem:[%s13180_s20 + $0x98] sm:$0xff] }
  0x1f   : > { %17724 = vst [vmem:[#allocation23_spill] sm:$0xff] %v13053_v19  ;;  %v309_v63 = vld [vmem:[%s13180_s20 + $0xa0] sm:$0xff]  ;;  %v311_v37 = vld [vmem:[%s13180_s20 + $0xb0] sm:$0xff]  ;;  %v312_v39 = vld [vmem:[%s13180_s20 + $0xb8] sm:$0xff] }
  0x20   : > { %17725 = vst [vmem:[#allocation24_spill] sm:$0xff] %v13058_v20 }
  0x21   : > { %17726 = vst [vmem:[#allocation25_spill] sm:$0xff] %v13066_v21 }
  0x22   : > { %17727 = vst [vmem:[#allocation26_spill] sm:$0xff] %v13071_v22 }
  0x23   : > { %17728 = vst [vmem:[#allocation27_spill] sm:$0xff] %v13076_v23 }
  0x24   : > { %17729 = vst [vmem:[#allocation28_spill] sm:$0xff] %v13084_v24 }
  0x25   : > { %17730 = vst [vmem:[#allocation29_spill] sm:$0xff] %v13089_v25 }
  0x26   : > { %17731 = vst [vmem:[#allocation30_spill] sm:$0xff] %v13094_v26 }
  0x27   : > { %17732 = vst [vmem:[#allocation31_spill] sm:$0xff] %v13102_v27 }
  0x28   : > { %17733 = vst [vmem:[#allocation32_spill] sm:$0xff] %v13107_v28 }
  0x29   : > { %17734 = vst [vmem:[#allocation33_spill] sm:$0xff] %v13112_v29 }
  0x2a   : > { %17735 = vst [vmem:[#allocation34_spill] sm:$0xff] %v13120_v30 }
  0x2b   : > { %17736 = vst [vmem:[#allocation35_spill] sm:$0xff] %v13125_v31 }
  0x2c   : > { %17737 = vst [vmem:[#allocation36_spill] sm:$0xff] %v13130_v32 }
  0x2d   : > { %17738 = vst [vmem:[#allocation37_spill] sm:$0xff] %v13138_v33 }
  0x2e   : > { %17739 = vst [vmem:[#allocation38_spill] sm:$0xff] %v13143_v34 }
  0x2f   : > { %17740 = vst [vmem:[#allocation39_spill] sm:$0xff] %v13148_v35 }
  0x30   : > { %272 = vst.msk [vmem:[#allocation2] sm:$0xf] %vm271_vm3, %v12906_v36 }
  0x31   : > { %273 = vst.msk [vmem:[#allocation2 + $0x4] sm:$0xf] %vm271_vm3, %v12906_v36 }
  0x32   : > { %286 = vst.msk [vmem:[#allocation2 + $0x9c] sm:$0xf] %vm271_vm3, %v12906_v36 }
  0x33   : > { %17743 = vst [vmem:[#allocation40_spill] sm:$0xff] %v17742_v38 }
  0x34   : > { %17746 = vst [vmem:[#allocation41_spill] sm:$0xff] %v17745_v41 }
  0x35   : > { %279 = vst [vmem:[#allocation2 + $0x8] sm:$0x3] %v278_v40  ;;  %v313_v40 = vld [vmem:[%s13180_s20 + $0xc0] sm:$0xff] }
  0x36   : > { %285 = vst [vmem:[#allocation2 + $0x98] sm:$0xe] %v284_v42  ;;  %v314_v42 = vld [vmem:[%s13180_s20 + $0xc8] sm:$0xff] }
  0x37   : > { %288 = vst.msk [vmem:[#allocation2 + $0xa0] sm:$0x7] %vm287_vm8, %v12906_v36  ;;  %v310_v36 = vld [vmem:[%s13180_s20 + $0xa8] sm:$0xff] }
  0x38   : > { %326 = vst.msk [vmem:[#allocation3] sm:$0xff] %vm325_vm10, %v289_v43  ;;  %v315_v43 = vld [vmem:[%s13180_s20 + $0xd0] sm:$0xff] }
  0x39   : > { %327 = vst.msk [vmem:[#allocation3 + $0x8] sm:$0xff] %vm325_vm10, %v290_v44  ;;  %v316_v44 = vld [vmem:[%s13180_s20 + $0xd8] sm:$0xff] }
  0x3a   : > { %328 = vst.msk [vmem:[#allocation3 + $0x10] sm:$0xff] %vm325_vm10, %v291_v45  ;;  %v317_v45 = vld [vmem:[%s13180_s20 + $0xe0] sm:$0xff] }
  0x3b   : > { %329 = vst.msk [vmem:[#allocation3 + $0x18] sm:$0xff] %vm325_vm10, %v292_v46  ;;  %v318_v46 = vld [vmem:[%s13180_s20 + $0xe8] sm:$0xff] }
  0x3c   : > { %330 = vst.msk [vmem:[#allocation3 + $0x20] sm:$0xff] %vm325_vm10, %v293_v47  ;;  %v319_v47 = vld [vmem:[%s13180_s20 + $0xf0] sm:$0xff] }
  0x3d   : > { %331 = vst.msk [vmem:[#allocation3 + $0x28] sm:$0xff] %vm325_vm10, %v294_v48  ;;  %v320_v48 = vld [vmem:[%s13180_s20 + $0xf8] sm:$0xff] }
  0x3e   : > { %332 = vst.msk [vmem:[#allocation3 + $0x30] sm:$0xff] %vm325_vm10, %v295_v49  ;;  %v321_v49 = vld [vmem:[%s13180_s20 + $0x100] sm:$0xff] }
  0x3f   : > { %333 = vst.msk [vmem:[#allocation3 + $0x38] sm:$0xff] %vm325_vm10, %v296_v50  ;;  %v322_v50 = vld [vmem:[%s13180_s20 + $0x108] sm:$0xff] }
  0x40   : > { %334 = vst.msk [vmem:[#allocation3 + $0x40] sm:$0xff] %vm325_vm10, %v297_v51  ;;  %v323_v51 = vld [vmem:[%s13180_s20 + $0x110] sm:$0xff] }
  0x41   : > { %335 = vst.msk [vmem:[#allocation3 + $0x48] sm:$0xff] %vm325_vm10, %v298_v52  ;;  %v324_v52 = vld [vmem:[%s13180_s20 + $0x118] sm:$0xff] }
  0x42   : > { %336 = vst.msk [vmem:[#allocation3 + $0x50] sm:$0xff] %vm325_vm10, %v299_v53 }
  0x43   : > { %337 = vst.msk [vmem:[#allocation3 + $0x58] sm:$0xff] %vm325_vm10, %v300_v54 }
  0x44   : > { %338 = vst.msk [vmem:[#allocation3 + $0x60] sm:$0xff] %vm325_vm10, %v301_v55 }
  0x45   : > { %339 = vst.msk [vmem:[#allocation3 + $0x68] sm:$0xff] %vm325_vm10, %v302_v56 }
  0x46   : > { %340 = vst.msk [vmem:[#allocation3 + $0x70] sm:$0xff] %vm325_vm10, %v303_v57 }
  0x47   : > { %341 = vst.msk [vmem:[#allocation3 + $0x78] sm:$0xff] %vm325_vm10, %v304_v58 }
  0x48   : > { %342 = vst.msk [vmem:[#allocation3 + $0x80] sm:$0xff] %vm325_vm10, %v305_v59 }
  0x49   : > { %343 = vst.msk [vmem:[#allocation3 + $0x88] sm:$0xff] %vm325_vm10, %v306_v60 }
  0x4a   : > { %344 = vst.msk [vmem:[#allocation3 + $0x90] sm:$0xff] %vm325_vm10, %v307_v61 }
  0x4b   : > { %345 = vst.msk [vmem:[#allocation3 + $0x98] sm:$0xff] %vm325_vm10, %v308_v62 }
  0x4c   : > { %346 = vst.msk [vmem:[#allocation3 + $0xa0] sm:$0xff] %vm325_vm10, %v309_v63 }
  0x4d   : > { %347 = vst.msk [vmem:[#allocation3 + $0xa8] sm:$0xff] %vm325_vm10, %v310_v36 }
  0x4e   : > { %348 = vst.msk [vmem:[#allocation3 + $0xb0] sm:$0xff] %vm325_vm10, %v311_v37 }
  0x4f   : > { %349 = vst.msk [vmem:[#allocation3 + $0xb8] sm:$0xff] %vm325_vm10, %v312_v39 }
  0x50   : > { %350 = vst.msk [vmem:[#allocation3 + $0xc0] sm:$0xff] %vm325_vm10, %v313_v40 }
  0x51   : > { %351 = vst.msk [vmem:[#allocation3 + $0xc8] sm:$0xff] %vm325_vm10, %v314_v42 }
  0x52   : > { %352 = vst.msk [vmem:[#allocation3 + $0xd0] sm:$0xff] %vm325_vm10, %v315_v43 }
  0x53   : > { %353 = vst.msk [vmem:[#allocation3 + $0xd8] sm:$0xff] %vm325_vm10, %v316_v44 }
  0x54   : > { %354 = vst.msk [vmem:[#allocation3 + $0xe0] sm:$0xff] %vm325_vm10, %v317_v45 }
  0x55   : > { %355 = vst.msk [vmem:[#allocation3 + $0xe8] sm:$0xff] %vm325_vm10, %v318_v46 }
  0x56   : > { %356 = vst.msk [vmem:[#allocation3 + $0xf0] sm:$0xff] %vm325_vm10, %v319_v47 }
  0x57   : > { %357 = vst.msk [vmem:[#allocation3 + $0xf8] sm:$0xff] %vm325_vm10, %v320_v48 }
  0x58   : > { %358 = vst.msk [vmem:[#allocation3 + $0x100] sm:$0xff] %vm325_vm10, %v321_v49 }
  0x59   : > { %359 = vst.msk [vmem:[#allocation3 + $0x108] sm:$0xff] %vm325_vm10, %v322_v50 }
  0x5a   : > { %360 = vst.msk [vmem:[#allocation3 + $0x110] sm:$0xff] %vm325_vm10, %v323_v51 }
  0x5b   : > { %361 = vst.msk [vmem:[#allocation3 + $0x118] sm:$0xff] %vm325_vm10, %v324_v52 }
  0x5c LB: >> { %v383_v53 = vld [vmem:[#allocation3 + $0x78] sm:$0xff]  ;;  %v384_v54 = vld [vmem:[#allocation3 + $0x80] sm:$0xff]  ;;  %v385_v55 = vld [vmem:[#allocation3 + $0x88] sm:$0xff]  ;;  %s12581_s24 = smul.u32 288, %s12904_s16  ;;  %vm477_vm2 = vsmask.f32 5392  ;;  %s12904_s16 = sphi %s13259_s16, %s367_s16  }
  0x5d   : >> { %v420_v56 = vsel %vm250_vm14, %v383_v53, 0.0  ;;  %v421_v57 = vsel %vm251_vm15, %v384_v54, 0.0  ;;  %v422_v58 = vsel %vm252_vm13, %v385_v55, 0.0  ;;  %v368_v59 = vld [vmem:[#allocation3] sm:$0xff]  ;;  %v369_v60 = vld [vmem:[#allocation3 + $0x8] sm:$0xff]  ;;  %v17757_v18 = vld [vmem:[#allocation22_spill] sm:$0xff] }
  0x5e   : >> { %v456_v61 = vpack.c.bf16 %v420_v56, %v420_v56  ;;  %v457_v62 = vpack.c.bf16 %v421_v57, %v421_v57  ;;  %v458_v63 = vpack.c.bf16 %v422_v58, %v422_v58  ;;  %v405_v36 = vsel %vm235_vm0, %v368_v59, 0.0  ;;  %v17751_v1 = vld [vmem:[#allocation5_spill] sm:$0xff]  ;;  %s13278_s27 = scalar_lea.vmem %s17601_s1, %s12581_s24  ;;  %v13282_v55 = vld [vmem:[#allocation2] sm:$0xff]   ;;  %v386_v56 = vld [vmem:[#allocation3 + $0x90] sm:$0xff]  ;;  %s11104_s28 = sshll.u32 %s12904_s16, 1 }
  0x5f   : >> { %vm17752_vm1 = vcmp.gt.f32.partialorder %v17751_v1, 0.5  ;;  %v441_v39 = vpack.c.bf16 %v405_v36, %v405_v36  ;;  %v12583_v45 = vld [vmem:[%s13278_s27 + $0x8] sm:$0xff]  ;;  %v12585_v46 = vld [vmem:[%s13278_s27 + $0x18] sm:$0xff]  ;;  %v12582_v57 = vld [vmem:[%s13278_s27] sm:$0xff]  ;;  %vm17753_vm11 = vsmask.f32 1280  ;;  %s14080_s5 = scalar_lea.vmem %s17602_s2, %s11104_s28 }
  0x60   : >> { %v406_v37 = vsel %vm17752_vm1, %v369_v60, 0.0  ;;  %v629_v40 = vshrl.u32 %v456_v61, 16  ;;  %v632_v42 = vshll.u32 %v456_v61, 16  ;;  %v639_v43 = vshrl.u32 %v457_v62, 16  ;;  %12795 = vmatpush.bf16.msra.mxu3 %v12583_v45  ;;  %1283 = vmatpush.bf16.msra.mxu0 %v12585_v46  ;;  %v12584_v60 = vld [vmem:[%s13278_s27 + $0x10] sm:$0xff]  ;;  %vm13290_vm8 = vmor %vm17753_vm11, %vm477_vm2  ;;  %v12608_v17 = vld [vmem:[%s13278_s27 + $0x48] sm:$0xff] }
  0x61   : >> { %v642_v44 = vshll.u32 %v457_v62, 16  ;;  %v649_v47 = vshrl.u32 %v458_v63, 16  ;;  %v652_v48 = vshll.u32 %v458_v63, 16  ;;  %v442_v49 = vpack.c.bf16 %v406_v37, %v406_v37  ;;  %12793 = vmatpush.bf16.msra.mxu2 %v12585_v46  ;;  %1430 = vmatpush.bf16.msra.mxu1 %v12583_v45  ;;  %v17759_v19 = vld [vmem:[#allocation23_spill] sm:$0xff]  ;;  %v17761_v2 = vld [vmem:[#allocation6_spill] sm:$0xff]  ;;  %v17766_v20 = vld [vmem:[#allocation24_spill] sm:$0xff] }
  0x62   : >> { %v480_v50 = vshrl.u32 %v441_v39, 16  ;;  %v631_v51 = vrot.slane %v629_v40, 6  ;;  %v634_v52 = vrot.slane %v632_v42, 7  ;;  %v641_v53 = vrot.slane %v639_v43, 6  ;;  %v875_v42 = vld [vmem:[#allocation2 + $0x8] sm:$0xe] }
  0x63   : >> { %v644_v54 = vrot.slane %v642_v44, 7  ;;  %v651_v58 = vrot.slane %v649_v47, 6  ;;  %v654_v59 = vrot.slane %v652_v48, 7  ;;  %v483_v62 = vshll.u32 %v441_v39, 16  ;;  %v387_v43 = vld [vmem:[#allocation3 + $0x98] sm:$0xff]  ;;  %v12587_v48 = vld [vmem:[%s13278_s27 + $0x28] sm:$0xff] }
  0x64   : >> { %v482_v61 = vrot.slane %v480_v50, 6  ;;  %v13286_v63 = vor.u32 %v634_v52, %v631_v51  ;;  %v489_v37 = vshrl.u32 %v442_v49, 16  ;;  %v492_v40 = vshll.u32 %v442_v49, 16  ;;  %v370_v50 = vld [vmem:[#allocation3 + $0x10] sm:$0xff]  ;;  %12796 = vmatpush.bf16.msra.mxu3 %v12582_v57  ;;  %1284 = vmatpush.bf16.msra.mxu0 %v12584_v60  ;;  %v17764_v3 = vld [vmem:[#allocation7_spill] sm:$0xff]  ;;  %v17768_v21 = vld [vmem:[#allocation25_spill] sm:$0xff] }
  0x65   : >> { %v645_v36 = vor.u32 %v644_v54, %v641_v53  ;;  %v17754_v44 = vmov 0  ;;  %v13294_v47 = vor.u32 %v654_v59, %v651_v58  ;;  %v485_v39 = vrot.slane %v483_v62, 7  ;;  %v12606_v54 = vld [vmem:[%s13278_s27 + $0x38] sm:$0xff]  ;;  %12794 = vmatpush.bf16.msra.mxu2 %v12584_v60  ;;  %1431 = vmatpush.bf16.msra.mxu1 %v12582_v57  ;;  %v17771_v4 = vld [vmem:[#allocation8_spill] sm:$0xff]  ;;  %v17773_v5 = vld [vmem:[#allocation9_spill] sm:$0xff]  ;;  %s367_s16 = sadd.s32 1, %s12904_s16  }
  0x66   : >> { %v17755_v44 = vsel %vm13290_vm8, 4294967295, %v17754_v44  ;;  %v1066_v46 = vshll.u32 %v13282_v55, 16  ;;  %vm17758_vm12 = vcmp.gt.f32.partialorder %v17757_v18, 0.5  ;;  %v637_v49 = vrot.slane %v13286_v63, 4  ;;  %v17775_v22 = vld [vmem:[#allocation26_spill] sm:$0xff]  ;;  %v17777_v23 = vld [vmem:[#allocation27_spill] sm:$0xff] }
  0x67   : >> { %17756 = vst [vmem:[#allocation42_spill] sm:$0xff] %v17755_v44  ;;  %v423_v45 = vsel %vm17758_vm12, %v386_v56, 0.0  ;;  %v647_v51 = vrot.slane %v645_v36, 4  ;;  %v491_v52 = vrot.slane %v489_v37, 6  ;;  %v494_v53 = vrot.slane %v492_v40, 7  ;;  %v371_v56 = vld [vmem:[#allocation3 + $0x18] sm:$0xff] }
  0x68   : >> { %v657_v16 = vrot.slane %v13294_v47, 4  ;;  %v486_v58 = vor.u32 %v485_v39, %v482_v61  ;;  %vm17760_vm9 = vcmp.gt.f32.partialorder %v17759_v19, 0.5  ;;  %v646_v18 = vsel %vm13290_vm8, %v637_v49, %v645_v36  ;;  %2021 = vmatpush.bf16.msrb.mxu3 %v12606_v54  ;;  %2405 = vmatpush.bf16.msrb.mxu0 %v12608_v17  ;;  %v17779_v6 = vld [vmem:[#allocation10_spill] sm:$0xff]  ;;  %v17781_v7 = vld [vmem:[#allocation11_spill] sm:$0xff]  ;;  %v17783_v24 = vld [vmem:[#allocation28_spill] sm:$0xff]  ;;  %p364_p4 = scmp.ge.s32.totalorder %s367_s16, 2  }
  0x69   : >> { %v424_v62 = vsel %vm17760_vm9, %v387_v43, 0.0  ;;  %v656_v37 = vsel %vm13290_vm8, %v647_v51, %v13294_v47  ;;  %v495_v40 = vor.u32 %v494_v53, %v491_v52  ;;  %vm17762_vm2 = vcmp.gt.f32.partialorder %v17761_v2, 0.5  ;;  %893 = vst.msk [vmem:[#allocation2 + $0x48] sm:$0xf] %vm271_vm3, %v646_v18  ;;  %1645 = vmatpush.bf16.msrb.mxu2 %v12587_v48  ;;  %11214 = vmatmul.msk.bf16.vlgmr.msra.gmra.mxu1 %vm325_vm10, %v13282_v55  ;;  %v17785_v25 = vld [vmem:[#allocation29_spill] sm:$0xff]  ;;  %v17787_v8 = vld [vmem:[#allocation12_spill] sm:$0xff] }
  0x6a   : >> { %v407_v15 = vsel %vm17762_vm2, %v370_v50, 0.0  ;;  %v487_v61 = vrot.slane %v486_v58, 4  ;;  %v876_v43 = vsel %vm13167_vm4, %v486_v58, %v875_v42  ;;  %v1068_v39 = vrot.slane %v1066_v46, 1  ;;  %894 = vst.msk [vmem:[#allocation2 + $0x4c] sm:$0xf] %vm271_vm3, %v656_v37  ;;  %v388_v46 = vld [vmem:[#allocation3 + $0xa0] sm:$0xff] }
  0x6b   : >> { %v459_v59 = vpack.c.bf16 %v423_v45, %v423_v45  ;;  %v460_v36 = vpack.c.bf16 %v424_v62, %v424_v62  ;;  %vm17765_vm9 = vcmp.gt.f32.partialorder %v17764_v3, 0.5  ;;  %v443_v60 = vpack.c.bf16 %v407_v15, %v407_v15  ;;  %877 = vst [vmem:[#allocation2 + $0x8] sm:$0xe] %v876_v43  ;;  %v389_v58 = vld [vmem:[#allocation3 + $0xa8] sm:$0xff]  ;;  %v17791_v26 = vld [vmem:[#allocation30_spill] sm:$0xff]  ;;  %v17793_v27 = vld [vmem:[#allocation31_spill] sm:$0xff] }
  0x6c   : >> { %v408_v57 = vsel %vm17765_vm9, %v371_v56, 0.0  ;;  %v497_v47 = vrot.slane %v495_v40, 4  ;;  %v496_v18 = vsel %vm13290_vm8, %v487_v61, %v495_v40  ;;  %vm1062_vm2 = vsmask.f32 7424  ;;  %v17789_v9 = vld [vmem:[#allocation13_spill] sm:$0xff]  ;;  %v17795_v10 = vld [vmem:[#allocation14_spill] sm:$0xff] }
  0x6d   : >> { %v659_v50 = vshrl.u32 %v459_v59, 16  ;;  %v662_v49 = vshll.u32 %v459_v59, 16  ;;  %v444_v42 = vpack.c.bf16 %v408_v57, %v408_v57  ;;  %878 = vst.msk [vmem:[#allocation2 + $0xc] sm:$0xf] %vm271_vm3, %v496_v18  ;;  %v669_v45 = vshrl.u32 %v460_v36, 16  ;;  %v17797_v11 = vld [vmem:[#allocation15_spill] sm:$0xff] }
  0x6e   : >> { %v672_v17 = vshll.u32 %v460_v36, 16  ;;  %v499_v48 = vshrl.u32 %v443_v60, 16  ;;  %v502_v51 = vshll.u32 %v443_v60, 16  ;;  %vm17767_vm9 = vcmp.gt.f32.partialorder %v17766_v20, 0.5  ;;  %v375_v20 = vld [vmem:[#allocation3 + $0x38] sm:$0xff]  ;;  %v17799_v28 = vld [vmem:[#allocation32_spill] sm:$0xff] }
  0x6f   : >> { %v661_v52 = vrot.slane %v659_v50, 6  ;;  %v664_v15 = vrot.slane %v662_v49, 7  ;;  %v509_v53 = vshrl.u32 %v444_v42, 16  ;;  %v512_v54 = vshll.u32 %v444_v42, 16  ;;  %v17801_v29 = vld [vmem:[#allocation33_spill] sm:$0xff]  ;;  %v17803_v12 = vld [vmem:[#allocation16_spill] sm:$0xff] }
  0x70   : >> { %v671_v62 = vrot.slane %v669_v45, 6  ;;  %v674_v56 = vrot.slane %v672_v17, 7  ;;  %v501_v59 = vrot.slane %v499_v48, 6  ;;  %v504_v37 = vrot.slane %v502_v51, 7  ;;  %v17805_v13 = vld [vmem:[#allocation17_spill] sm:$0xff]  ;;  %v17807_v30 = vld [vmem:[#allocation34_spill] sm:$0xff] }
  0x71   : >> { %v665_v40 = vor.u32 %v664_v15, %v661_v52  ;;  %v511_v61 = vrot.slane %v509_v53, 6  ;;  %v514_v43 = vrot.slane %v512_v54, 7  ;;  %v425_v57 = vsel %vm17767_vm9, %v388_v46, 0.0  ;;  %v13329_v49 = vld [vmem:[#allocation2 + $0x48] sm:$0xff]  ;;  %v17809_v31 = vld [vmem:[#allocation35_spill] sm:$0xff]  ;;  %v17811_v14 = vld [vmem:[#allocation18_spill] sm:$0xff] }
  0x72   : >> { %v675_v18 = vor.u32 %v674_v56, %v671_v62  ;;  %v505_v36 = vor.u32 %v504_v37, %v501_v59  ;;  %vm17769_vm11 = vcmp.gt.f32.partialorder %v17768_v21, 0.5  ;;  %v461_v50 = vpack.c.bf16 %v425_v57, %v425_v57  ;;  %v372_v15 = vld [vmem:[#allocation3 + $0x20] sm:$0xff]  ;;  %11223 = vmatmul.msk.bf16.vlgmr.msra.gmra.mxu3 %vm325_vm10, %v13329_v49  ;;  %v373_v62 = vld [vmem:[#allocation3 + $0x28] sm:$0xff]  ;;  %v17817_v34 = vld [vmem:[#allocation38_spill] sm:$0xff] }
  0x73   : >> { %v426_v60 = vsel %vm17769_vm11, %v389_v58, 0.0  ;;  %v666_v42 = vsel %vm13290_vm8, %v657_v16, %v665_v40  ;;  %v667_v45 = vrot.slane %v665_v40, 4  ;;  %v13333_v17 = vor.u32 %v514_v43, %v511_v61  ;;  %v17813_v32 = vld [vmem:[#allocation36_spill] sm:$0xff]  ;;  %v17815_v33 = vld [vmem:[#allocation37_spill] sm:$0xff]  ;;  %v17826_v35 = vld [vmem:[#allocation39_spill] sm:$0xff] }
  0x74   : >> { %v462_v48 = vpack.c.bf16 %v426_v60, %v426_v60  ;;  %895 = vst.msk [vmem:[#allocation2 + $0x50] sm:$0xf] %vm271_vm3, %v666_v42  ;;  %v506_v46 = vsel %vm13290_vm8, %v497_v47, %v505_v36  ;;  %v507_v51 = vrot.slane %v505_v36, 4  ;;  %v679_v52 = vshrl.u32 %v461_v50, 16  ;;  %v13340_v53 = vld [vmem:[#allocation2 + $0x8] sm:$0xff]  ;;  %v390_v60 = vld [vmem:[#allocation3 + $0xb0] sm:$0xff] }
  0x75   : >> { %v676_v16 = vsel %vm13290_vm8, %v667_v45, %v675_v18  ;;  %v1135_v54 = vshll.u32 %v13329_v49, 16  ;;  %879 = vst.msk [vmem:[#allocation2 + $0x10] sm:$0xf] %vm271_vm3, %v506_v46  ;;  %v682_v58 = vshll.u32 %v461_v50, 16  ;;  %v17770_v40 = vshrl.u32 %v13282_v55, 16  ;;  %v12628_v2 = vld [vmem:[%s13278_s27 + $0x60] sm:$0xff] }
  0x76   : >> { %896 = vst.msk [vmem:[#allocation2 + $0x54] sm:$0xf] %vm271_vm3, %v676_v16  ;;  %v516_v47 = vsel %vm13290_vm8, %v507_v51, %v13333_v17  ;;  %v681_v56 = vrot.slane %v679_v52, 6  ;;  %v689_v59 = vshrl.u32 %v462_v48, 16  ;;  %v692_v37 = vshll.u32 %v462_v48, 16  ;;  %v12632_v1 = vld [vmem:[%s13278_s27 + $0x80] sm:$0xff] }
  0x77   : >> { %v1069_v61 = vor.u32 %v1068_v39, %v17770_v40  ;;  %v1071_v43 = vshll.u32 %v13340_v53, 16  ;;  %880 = vst.msk [vmem:[#allocation2 + $0x14] sm:$0xf] %vm271_vm3, %v516_v47  ;;  %v677_v57 = vrot.slane %v675_v18, 4  ;;  %v684_v36 = vrot.slane %v682_v58, 7  ;;  %v391_v18 = vld [vmem:[#allocation3 + $0xb8] sm:$0xff] }
  0x78   : >> { %v691_v50 = vrot.slane %v689_v59, 6  ;;  %v694_v42 = vrot.slane %v692_v37, 7  ;;  %vm17772_vm11 = vcmp.gt.f32.partialorder %v17771_v4, 0.5  ;;  %vm17774_vm9 = vcmp.gt.f32.partialorder %v17773_v5, 0.5 }
  0x79   : >> { %v409_v45 = vsel %vm17772_vm11, %v372_v15, 0.0  ;;  %v410_v46 = vsel %vm17774_vm9, %v373_v62, 0.0  ;;  %v1073_v51 = vrot.slane %v1071_v43, 1  ;;  %v1139_v48 = vshrl.u32 %v13329_v49, 16  ;;  %11215 = vmatmul.msk.bf16.gmra.mxu1 %vm325_vm10, %v13340_v53 }
  0x7a   : >> { %v685_v55 = vor.u32 %v684_v36, %v681_v56  ;;  %v445_v39 = vpack.c.bf16 %v409_v45, %v409_v45  ;;  %v13359_v52 = vrot.slane %v1135_v54, 1  ;;  %v695_v16 = vor.u32 %v694_v42, %v691_v50 }
  0x7b   : >> { %v446_v47 = vpack.c.bf16 %v410_v46, %v410_v46  ;;  %vm17776_vm12 = vcmp.gt.f32.partialorder %v17775_v22, 0.5  ;;  %v1074_v59 = vsel %vm1062_vm2, %v1069_v61, %v1073_v51  ;;  %v1075_v15 = vshrl.u32 %v13340_v53, 16 }
  0x7c   : >> { %v427_v58 = vsel %vm17776_vm12, %v390_v60, 0.0  ;;  %v686_v62 = vsel %vm13290_vm8, %v677_v57, %v685_v55  ;;  %v687_v37 = vrot.slane %v685_v55, 4  ;;  %11188 = vmatmul.msk.bf16.vlgmr.msra.gmra.mxu0 %vm325_vm10, %v1074_v59  ;;  %v519_v49 = vshrl.u32 %v445_v39, 16 }
  0x7d   : >> { %897 = vst.msk [vmem:[#allocation2 + $0x58] sm:$0xf] %vm271_vm3, %v686_v62  ;;  %v522_v54 = vshll.u32 %v445_v39, 16  ;;  %v529_v56 = vshrl.u32 %v446_v47, 16  ;;  %v532_v40 = vshll.u32 %v446_v47, 16  ;;  %v13369_v43 = vld [vmem:[#allocation2 + $0x50] sm:$0xff]  ;;  %v463_v60 = vpack.c.bf16 %v427_v58, %v427_v58 }
  0x7e   : >> { %v696_v36 = vsel %vm13290_vm8, %v687_v37, %v695_v16  ;;  %v517_v61 = vrot.slane %v13333_v17, 4  ;;  %vm17778_vm12 = vcmp.gt.f32.partialorder %v17777_v23, 0.5  ;;  %v13378_v50 = vld [vmem:[#allocation2 + $0x10] sm:$0xff]  ;;  %v521_v42 = vrot.slane %v519_v49, 6 }
  0x7f   : >> { %v428_v57 = vsel %vm17778_vm12, %v391_v18, 0.0  ;;  %898 = vst.msk [vmem:[#allocation2 + $0x5c] sm:$0xf] %vm271_vm3, %v696_v36  ;;  %v524_v45 = vrot.slane %v522_v54, 7  ;;  %v531_v46 = vrot.slane %v529_v56, 6  ;;  %v1141_v39 = vor.u32 %v1139_v48, %v13359_v52 }
  0x80   : >> { %v464_v55 = vpack.c.bf16 %v428_v57, %v428_v57  ;;  %v1143_v47 = vshll.u32 %v13369_v43, 16  ;;  %v534_v59 = vrot.slane %v532_v40, 7  ;;  %v699_v62 = vshrl.u32 %v463_v60, 16  ;;  %v374_v57 = vld [vmem:[#allocation3 + $0x30] sm:$0xff] }
  0x81   : >> { %v1077_v37 = vor.u32 %v1075_v15, %v1073_v51  ;;  %v1079_v17 = vshll.u32 %v13378_v50, 16  ;;  %v525_v23 = vor.u32 %v524_v45, %v521_v42  ;;  %v702_v18 = vshll.u32 %v463_v60, 16 }
  0x82   : >> { %v1145_v58 = vrot.slane %v1143_v47, 1  ;;  %v13384_v22 = vor.u32 %v534_v59, %v531_v46  ;;  %v701_v21 = vrot.slane %v699_v62, 6  ;;  %v709_v36 = vshrl.u32 %v464_v55, 16  ;;  %11224 = vmatmul.msk.bf16.gmra.mxu3 %vm325_vm10, %v13369_v43  ;;  %v392_v59 = vld [vmem:[#allocation3 + $0xc0] sm:$0xff]  ;;  %v393_v62 = vld [vmem:[#allocation3 + $0xc8] sm:$0xff] }
  0x83   : >> { %v526_v49 = vsel %vm13290_vm8, %v517_v61, %v525_v23  ;;  %v527_v54 = vrot.slane %v525_v23, 4  ;;  %v697_v56 = vrot.slane %v695_v16, 4  ;;  %v704_v48 = vrot.slane %v702_v18, 7 }
  0x84   : >> { %v1146_v40 = vsel %vm1062_vm2, %v1141_v39, %v1145_v58  ;;  %v13389_v51 = vrot.slane %v1079_v17, 1  ;;  %881 = vst.msk [vmem:[#allocation2 + $0x18] sm:$0xf] %vm271_vm3, %v526_v49  ;;  %v711_v15 = vrot.slane %v709_v36, 6  ;;  %v712_v60 = vshll.u32 %v464_v55, 16 }
  0x85   : >> { %11197 = vmatmul.msk.bf16.vlgmr.msra.gmra.mxu2 %vm325_vm10, %v1146_v40  ;;  %v536_v42 = vsel %vm13290_vm8, %v527_v54, %v13384_v22  ;;  %v705_v61 = vor.u32 %v704_v48, %v701_v21  ;;  %vm17780_vm11 = vcmp.gt.f32.partialorder %v17779_v6, 0.5  ;;  %vm17782_vm9 = vcmp.gt.f32.partialorder %v17781_v7, 0.5 }
  0x86   : >> { %v13398_v23 = vld [vmem:[#allocation2 + $0x58] sm:$0xff]  ;;  %882 = vst.msk [vmem:[#allocation2 + $0x1c] sm:$0xf] %vm271_vm3, %v536_v42  ;;  %v714_v16 = vrot.slane %v712_v60, 7  ;;  %v411_v45 = vsel %vm17780_vm11, %v374_v57, 0.0  ;;  %v412_v46 = vsel %vm17782_vm9, %v375_v20, 0.0  ;;  %v1082_v17 = vsel %vm1062_vm2, %v1077_v37, %v13389_v51 }
  0x87   : >> { %v706_v55 = vsel %vm13290_vm8, %v697_v56, %v705_v61  ;;  %v707_v39 = vrot.slane %v705_v61, 4  ;;  %v447_v47 = vpack.c.bf16 %v411_v45, %v411_v45  ;;  %v448_v21 = vpack.c.bf16 %v412_v46, %v412_v46  ;;  %v376_v37 = vld [vmem:[#allocation3 + $0x40] sm:$0xff] }
  0x88   : >> { %v1147_v18 = vshrl.u32 %v13369_v43, 16  ;;  %v1151_v36 = vshll.u32 %v13398_v23, 16  ;;  %v715_v49 = vor.u32 %v714_v16, %v711_v15  ;;  %899 = vst.msk [vmem:[#allocation2 + $0x60] sm:$0xf] %vm271_vm3, %v706_v55  ;;  %v537_v40 = vrot.slane %v13384_v22, 4 }
  0x89   : >> { %v539_v54 = vshrl.u32 %v447_v47, 16  ;;  %v542_v20 = vshll.u32 %v447_v47, 16  ;;  %v549_v48 = vshrl.u32 %v448_v21, 16  ;;  %v552_v57 = vshll.u32 %v448_v21, 16  ;;  %11216 = vmatmul.msk.bf16.gmra.mxu1 %vm325_vm10, %v13378_v50 }
  0x8a   : >> { %v716_v56 = vsel %vm13290_vm8, %v707_v39, %v715_v49  ;;  %vm17784_vm12 = vcmp.gt.f32.partialorder %v17783_v24, 0.5  ;;  %vm17786_vm11 = vcmp.gt.f32.partialorder %v17785_v25, 0.5  ;;  %v1149_v45 = vor.u32 %v1147_v18, %v1145_v58 }
  0x8b   : >> { %v429_v60 = vsel %vm17784_vm12, %v392_v59, 0.0  ;;  %v430_v43 = vsel %vm17786_vm11, %v393_v62, 0.0  ;;  %900 = vst.msk [vmem:[#allocation2 + $0x64] sm:$0xf] %vm271_vm3, %v716_v56  ;;  %v541_v15 = vrot.slane %v539_v54, 6  ;;  %v544_v42 = vrot.slane %v542_v20, 7 }
  0x8c   : >> { %v551_v61 = vrot.slane %v549_v48, 6  ;;  %v554_v16 = vrot.slane %v552_v57, 7  ;;  %v1083_v46 = vshrl.u32 %v13378_v50, 16  ;;  %v465_v55 = vpack.c.bf16 %v429_v60, %v429_v60  ;;  %11189 = vmatmul.msk.bf16.gmra.mxu0 %vm325_vm10, %v1082_v17  ;;  %v377_v48 = vld [vmem:[#allocation3 + $0x48] sm:$0xff] }
  0x8d   : >> { %v466_v39 = vpack.c.bf16 %v430_v43, %v430_v43  ;;  %v1153_v22 = vrot.slane %v1151_v36, 1  ;;  %v13422_v47 = vld [vmem:[#allocation2 + $0x18] sm:$0xff]  ;;  %v545_v21 = vor.u32 %v544_v42, %v541_v15  ;;  %vm17788_vm9 = vcmp.gt.f32.partialorder %v17787_v8, 0.5 }
  0x8e   : >> { %v555_v59 = vor.u32 %v554_v16, %v551_v61  ;;  %v413_v62 = vsel %vm17788_vm9, %v376_v37, 0.0  ;;  %v719_v54 = vshrl.u32 %v465_v55, 16  ;;  %v722_v20 = vshll.u32 %v465_v55, 16 }
  0x8f   : >> { %v729_v58 = vshrl.u32 %v466_v39, 16  ;;  %v732_v18 = vshll.u32 %v466_v39, 16  ;;  %v1087_v57 = vshll.u32 %v13422_v47, 16  ;;  %v546_v17 = vsel %vm13290_vm8, %v537_v40, %v545_v21 }
  0x90   : >> { %v547_v36 = vrot.slane %v545_v21, 4  ;;  %v717_v56 = vrot.slane %v715_v49, 4  ;;  %883 = vst.msk [vmem:[#allocation2 + $0x20] sm:$0xf] %vm271_vm3, %v546_v17  ;;  %v721_v60 = vrot.slane %v719_v54, 6  ;;  %v724_v43 = vrot.slane %v722_v20, 7 }
  0x91   : >> { %v731_v37 = vrot.slane %v729_v58, 6  ;;  %v734_v15 = vrot.slane %v732_v18, 7  ;;  %vm17790_vm12 = vcmp.gt.f32.partialorder %v17789_v9, 0.5  ;;  %v449_v16 = vpack.c.bf16 %v413_v62, %v413_v62  ;;  %v394_v17 = vld [vmem:[#allocation3 + $0xd0] sm:$0xff] }
  0x92   : >> { %v556_v42 = vsel %vm13290_vm8, %v547_v36, %v555_v59  ;;  %v414_v61 = vsel %vm17790_vm12, %v377_v48, 0.0  ;;  %v1154_v55 = vsel %vm1062_vm2, %v1149_v45, %v1153_v22  ;;  %v13437_v39 = vld [vmem:[#allocation2 + $0x60] sm:$0xff]  ;;  %v725_v49 = vor.u32 %v724_v43, %v721_v60  ;;  %11225 = vmatmul.msk.bf16.gmra.mxu3 %vm325_vm10, %v13398_v23 }
  0x93   : >> { %884 = vst.msk [vmem:[#allocation2 + $0x24] sm:$0xf] %vm271_vm3, %v556_v42  ;;  %v13440_v40 = vor.u32 %v734_v15, %v731_v37  ;;  %v450_v21 = vpack.c.bf16 %v414_v61, %v414_v61  ;;  %v1085_v54 = vor.u32 %v1083_v46, %v13389_v51  ;;  %v1155_v20 = vshrl.u32 %v13398_v23, 16  ;;  %v395_v36 = vld [vmem:[#allocation3 + $0xd8] sm:$0xff] }
  0x94   : >> { %v559_v58 = vshrl.u32 %v449_v16, 16  ;;  %v562_v18 = vshll.u32 %v449_v16, 16  ;;  %v13444_v48 = vrot.slane %v1087_v57, 1  ;;  %v726_v45 = vsel %vm13290_vm8, %v717_v56, %v725_v49 }
  0x95   : >> { %v727_v62 = vrot.slane %v725_v49, 4  ;;  %v557_v25 = vrot.slane %v555_v59, 4  ;;  %11198 = vmatmul.msk.bf16.gmra.mxu2 %vm325_vm10, %v1154_v55  ;;  %901 = vst.msk [vmem:[#allocation2 + $0x68] sm:$0xf] %vm271_vm3, %v726_v45  ;;  %v569_v51 = vshrl.u32 %v450_v21, 16  ;;  %v572_v46 = vshll.u32 %v450_v21, 16 }
  0x96   : >> { %v561_v60 = vrot.slane %v559_v58, 6  ;;  %v564_v43 = vrot.slane %v562_v18, 7  ;;  %v1159_v37 = vshll.u32 %v13437_v39, 16  ;;  %vm17792_vm11 = vcmp.gt.f32.partialorder %v17791_v26, 0.5  ;;  %v378_v45 = vld [vmem:[#allocation3 + $0x50] sm:$0xff] }
  0x97   : >> { %v736_v57 = vsel %vm13290_vm8, %v727_v62, %v13440_v40  ;;  %v431_v59 = vsel %vm17792_vm11, %v394_v17, 0.0  ;;  %vm17794_vm9 = vcmp.gt.f32.partialorder %v17793_v27, 0.5  ;;  %v571_v42 = vrot.slane %v569_v51, 6 }
  0x98   : >> { %v432_v56 = vsel %vm17794_vm9, %v395_v36, 0.0  ;;  %902 = vst.msk [vmem:[#allocation2 + $0x6c] sm:$0xf] %vm271_vm3, %v736_v57  ;;  %v565_v15 = vor.u32 %v564_v43, %v561_v60  ;;  %v574_v61 = vrot.slane %v572_v46, 7  ;;  %v467_v16 = vpack.c.bf16 %v431_v59, %v431_v59  ;;  %v379_v43 = vld [vmem:[#allocation3 + $0x58] sm:$0xff]  ;;  %v396_v46 = vld [vmem:[#allocation3 + $0xe0] sm:$0xff] }
  0x99   : >> { %v1157_v55 = vor.u32 %v1155_v20, %v1153_v22  ;;  %v468_v23 = vpack.c.bf16 %v432_v56, %v432_v56  ;;  %v1090_v17 = vsel %vm1062_vm2, %v1085_v54, %v13444_v48  ;;  %v13466_v51 = vrot.slane %v1159_v37, 1  ;;  %11217 = vmatmul.msk.bf16.gmra.mxu1 %vm325_vm10, %v13422_v47 }
  0x9a   : >> { %v566_v49 = vsel %vm13290_vm8, %v557_v25, %v565_v15  ;;  %v567_v21 = vrot.slane %v565_v15, 4  ;;  %v575_v58 = vor.u32 %v574_v61, %v571_v42  ;;  %v739_v18 = vshrl.u32 %v467_v16, 16  ;;  %v397_v42 = vld [vmem:[#allocation3 + $0xe8] sm:$0xff]  ;;  %v13477_v61 = vld [vmem:[#allocation2 + $0x20] sm:$0xff] }
  0x9b   : >> { %885 = vst.msk [vmem:[#allocation2 + $0x28] sm:$0xf] %vm271_vm3, %v566_v49  ;;  %v742_v36 = vshll.u32 %v467_v16, 16  ;;  %v749_v62 = vshrl.u32 %v468_v23, 16  ;;  %v752_v60 = vshll.u32 %v468_v23, 16  ;;  %v737_v25 = vrot.slane %v13440_v40, 4 }
  0x9c   : >> { %v576_v22 = vsel %vm13290_vm8, %v567_v21, %v575_v58  ;;  %v741_v20 = vrot.slane %v739_v18, 6  ;;  %vm17796_vm12 = vcmp.gt.f32.partialorder %v17795_v10, 0.5  ;;  %11190 = vmatmul.msk.bf16.gmra.mxu0 %vm325_vm10, %v1090_v17  ;;  %vm17798_vm11 = vcmp.gt.f32.partialorder %v17797_v11, 0.5 }
  0x9d   : >> { %886 = vst.msk [vmem:[#allocation2 + $0x2c] sm:$0xf] %vm271_vm3, %v576_v22  ;;  %v744_v57 = vrot.slane %v742_v36, 7  ;;  %v751_v59 = vrot.slane %v749_v62, 6  ;;  %v754_v54 = vrot.slane %v752_v60, 7  ;;  %v415_v56 = vsel %vm17796_vm12, %v378_v45, 0.0 }
  0x9e   : >> { %v416_v37 = vsel %vm17798_vm11, %v379_v43, 0.0  ;;  %v451_v15 = vpack.c.bf16 %v415_v56, %v415_v56  ;;  %v1091_v49 = vshrl.u32 %v13422_v47, 16  ;;  %vm17800_vm9 = vcmp.gt.f32.partialorder %v17799_v28, 0.5 }
  0x9f   : >> { %v745_v40 = vor.u32 %v744_v57, %v741_v20  ;;  %v13481_v16 = vor.u32 %v754_v54, %v751_v59  ;;  %v452_v23 = vpack.c.bf16 %v416_v37, %v416_v37  ;;  %v433_v45 = vsel %vm17800_vm9, %v396_v46, 0.0 }
  0xa0   : >> { %v579_v21 = vshrl.u32 %v451_v15, 16  ;;  %v582_v18 = vshll.u32 %v451_v15, 16  ;;  %v1162_v17 = vsel %vm1062_vm2, %v1157_v55, %v13466_v51  ;;  %vm17802_vm12 = vcmp.gt.f32.partialorder %v17801_v29, 0.5 }
  0xa1   : >> { %v746_v36 = vsel %vm13290_vm8, %v737_v25, %v745_v40  ;;  %v747_v62 = vrot.slane %v745_v40, 4  ;;  %v434_v60 = vsel %vm17802_vm12, %v397_v42, 0.0  ;;  %v589_v20 = vshrl.u32 %v452_v23, 16  ;;  %v13497_v25 = vld [vmem:[#allocation2 + $0x68] sm:$0xff] }
  0xa2   : >> { %903 = vst.msk [vmem:[#allocation2 + $0x70] sm:$0xf] %vm271_vm3, %v746_v36  ;;  %v581_v43 = vrot.slane %v579_v21, 6  ;;  %v584_v22 = vrot.slane %v582_v18, 7  ;;  %v592_v57 = vshll.u32 %v452_v23, 16  ;;  %v1095_v59 = vshll.u32 %v13477_v61, 16  ;;  %11226 = vmatmul.msk.bf16.gmra.mxu3 %vm325_vm10, %v13437_v39 }
  0xa3   : >> { %v756_v55 = vsel %vm13290_vm8, %v747_v62, %v13481_v16  ;;  %v577_v46 = vrot.slane %v575_v58, 4  ;;  %v469_v54 = vpack.c.bf16 %v433_v45, %v433_v45  ;;  %v591_v37 = vrot.slane %v589_v20, 6  ;;  %v12586_v21 = vld [vmem:[%s13278_s27 + $0x20] sm:$0xff] }
  0xa4   : >> { %904 = vst.msk [vmem:[#allocation2 + $0x74] sm:$0xf] %vm271_vm3, %v756_v55  ;;  %v585_v56 = vor.u32 %v584_v22, %v581_v43  ;;  %v594_v15 = vrot.slane %v592_v57, 7  ;;  %v470_v42 = vpack.c.bf16 %v434_v60, %v434_v60  ;;  %v1163_v23 = vshrl.u32 %v13437_v39, 16  ;;  %v12605_v60 = vld [vmem:[%s13278_s27 + $0x30] sm:$0xff]  ;;  %1646 = vmatpush.bf16.msrb.mxu2 %v12586_v21 }
  0xa5   : >> { %v759_v40 = vshrl.u32 %v469_v54, 16  ;;  %11199 = vmatmul.msk.bf16.gmra.mxu2 %vm325_vm10, %v1162_v17  ;;  %v1093_v36 = vor.u32 %v1091_v49, %v13444_v48  ;;  %v13510_v62 = vrot.slane %v1095_v59, 1  ;;  %v762_v43 = vshll.u32 %v469_v54, 16  ;;  %2022 = vmatpush.bf16.msrb.mxu3 %v12605_v60  ;;  %v380_v49 = vld [vmem:[#allocation3 + $0x60] sm:$0xff] }
  0xa6   : >> { %v586_v18 = vsel %vm13290_vm8, %v577_v46, %v585_v56  ;;  %v587_v58 = vrot.slane %v585_v56, 4  ;;  %v13505_v45 = vor.u32 %v594_v15, %v591_v37  ;;  %v1167_v22 = vshll.u32 %v13497_v25, 16  ;;  %v381_v15 = vld [vmem:[#allocation3 + $0x68] sm:$0xff] }
  0xa7   : >> { %887 = vst.msk [vmem:[#allocation2 + $0x30] sm:$0xf] %vm271_vm3, %v586_v18  ;;  %v761_v17 = vrot.slane %v759_v40, 6  ;;  %v769_v57 = vshrl.u32 %v470_v42, 16  ;;  %v772_v55 = vshll.u32 %v470_v42, 16  ;;  %v757_v39 = vrot.slane %v13481_v16, 4 }
  0xa8   : >> { %v596_v20 = vsel %vm13290_vm8, %v587_v58, %v13505_v45  ;;  %v764_v48 = vrot.slane %v762_v43, 7  ;;  %v1098_v54 = vsel %vm1062_vm2, %v1093_v36, %v13510_v62  ;;  %v1165_v56 = vor.u32 %v1163_v23, %v13466_v51  ;;  %v398_v42 = vld [vmem:[#allocation3 + $0xf0] sm:$0xff]  ;;  %v13534_v23 = vld [vmem:[#allocation2 + $0x28] sm:$0xff] }
  0xa9   : >> { %888 = vst.msk [vmem:[#allocation2 + $0x34] sm:$0xf] %vm271_vm3, %v596_v20  ;;  %v771_v59 = vrot.slane %v769_v57, 6  ;;  %v774_v46 = vrot.slane %v772_v55, 7  ;;  %vm17804_vm11 = vcmp.gt.f32.partialorder %v17803_v12, 0.5  ;;  %v13525_v21 = vrot.slane %v1167_v22, 1  ;;  %11218 = vmatmul.msk.bf16.gmra.mxu1 %vm325_vm10, %v13477_v61 }
  0xaa   : >> { %v765_v37 = vor.u32 %v764_v48, %v761_v17  ;;  %v417_v40 = vsel %vm17804_vm11, %v380_v49, 0.0  ;;  %vm17806_vm9 = vcmp.gt.f32.partialorder %v17805_v13, 0.5  ;;  %v399_v20 = vld [vmem:[#allocation3 + $0xf8] sm:$0xff]  ;;  %vm17808_vm5 = vcmp.gt.f32.partialorder %v17807_v30, 0.5 }
  0xab   : >> { %v775_v18 = vor.u32 %v774_v46, %v771_v59  ;;  %v418_v16 = vsel %vm17806_vm9, %v381_v15, 0.0  ;;  %v453_v58 = vpack.c.bf16 %v417_v40, %v417_v40  ;;  %v435_v51 = vsel %vm17808_vm5, %v398_v42, 0.0 }
  0xac   : >> { %v766_v60 = vsel %vm13290_vm8, %v757_v39, %v765_v37  ;;  %v767_v43 = vrot.slane %v765_v37, 4  ;;  %v454_v36 = vpack.c.bf16 %v418_v16, %v418_v16  ;;  %11191 = vmatmul.msk.bf16.gmra.mxu0 %vm325_vm10, %v1098_v54  ;;  %vm17810_vm7 = vcmp.gt.f32.partialorder %v17809_v31, 0.5 }
  0xad   : >> { %905 = vst.msk [vmem:[#allocation2 + $0x78] sm:$0xf] %vm271_vm3, %v766_v60  ;;  %v599_v17 = vshrl.u32 %v453_v58, 16  ;;  %v602_v22 = vshll.u32 %v453_v58, 16  ;;  %v436_v57 = vsel %vm17810_vm7, %v399_v20, 0.0  ;;  %v471_v46 = vpack.c.bf16 %v435_v51, %v435_v51 }
  0xae   : >> { %v776_v55 = vsel %vm13290_vm8, %v767_v43, %v775_v18  ;;  %v609_v39 = vshrl.u32 %v454_v36, 16  ;;  %v612_v48 = vshll.u32 %v454_v36, 16  ;;  %v472_v54 = vpack.c.bf16 %v436_v57, %v436_v57 }
  0xaf   : >> { %906 = vst.msk [vmem:[#allocation2 + $0x7c] sm:$0xf] %vm271_vm3, %v776_v55  ;;  %v601_v49 = vrot.slane %v599_v17, 6  ;;  %v604_v59 = vrot.slane %v602_v22, 7  ;;  %v1170_v37 = vsel %vm1062_vm2, %v1165_v56, %v13525_v21  ;;  %v1099_v15 = vshrl.u32 %v13477_v61, 16 }
  0xb0   : >> { %v611_v40 = vrot.slane %v609_v39, 6  ;;  %v614_v42 = vrot.slane %v612_v48, 7  ;;  %v1103_v16 = vshll.u32 %v13534_v23, 16  ;;  %v779_v60 = vshrl.u32 %v471_v46, 16 }
  0xb1   : >> { %v605_v58 = vor.u32 %v604_v59, %v601_v49  ;;  %v782_v43 = vshll.u32 %v471_v46, 16  ;;  %v597_v36 = vrot.slane %v13505_v45, 4  ;;  %v789_v17 = vshrl.u32 %v472_v54, 16  ;;  %v13554_v49 = vld [vmem:[#allocation2 + $0x70] sm:$0xff]  ;;  %v12607_v59 = vld [vmem:[%s13278_s27 + $0x40] sm:$0xff] }
  0xb2   : >> { %v13549_v20 = vor.u32 %v614_v42, %v611_v40  ;;  %v792_v51 = vshll.u32 %v472_v54, 16  ;;  %v781_v57 = vrot.slane %v779_v60, 6  ;;  %v777_v39 = vrot.slane %v775_v18, 4  ;;  %11227 = vmatmul.msk.bf16.gmra.mxu3 %vm325_vm10, %v13497_v25  ;;  %2406 = vmatpush.bf16.msrb.mxu0 %v12607_v59 }
  0xb3   : >> { %v607_v22 = vrot.slane %v605_v58, 4  ;;  %v784_v55 = vrot.slane %v782_v43, 7  ;;  %v606_v56 = vsel %vm13290_vm8, %v597_v36, %v605_v58  ;;  %v791_v48 = vrot.slane %v789_v17, 6  ;;  %v382_v58 = vld [vmem:[#allocation3 + $0x70] sm:$0xff] }
  0xb4   : >> { %v794_v31 = vrot.slane %v792_v51, 7  ;;  %889 = vst.msk [vmem:[#allocation2 + $0x38] sm:$0xf] %vm271_vm3, %v606_v56  ;;  %v1101_v54 = vor.u32 %v1099_v15, %v13510_v62  ;;  %v1105_v18 = vrot.slane %v1103_v16, 1  ;;  %v1171_v60 = vshrl.u32 %v13497_v25, 16  ;;  %v400_v16 = vld [vmem:[#allocation3 + $0x100] sm:$0xff] }
  0xb5   : >> { %11200 = vmatmul.msk.bf16.gmra.mxu2 %vm325_vm10, %v1170_v37  ;;  %v616_v45 = vsel %vm13290_vm8, %v607_v22, %v13549_v20  ;;  %v785_v46 = vor.u32 %v784_v55, %v781_v57  ;;  %v1175_v43 = vshll.u32 %v13554_v49, 16  ;;  %vm17812_vm12 = vcmp.gt.f32.partialorder %v17811_v14, 0.5  ;;  %v401_v25 = vld [vmem:[#allocation3 + $0x108] sm:$0xff] }
  0xb6   : >> { %890 = vst.msk [vmem:[#allocation2 + $0x3c] sm:$0xf] %vm271_vm3, %v616_v45  ;;  %v795_v40 = vor.u32 %v794_v31, %v791_v48  ;;  %v419_v62 = vsel %vm17812_vm12, %v382_v58, 0.0  ;;  %v1106_v31 = vsel %vm1062_vm2, %v1101_v54, %v1105_v18  ;;  %vm17814_vm11 = vcmp.gt.f32.partialorder %v17813_v32, 0.5 }
  0xb7   : >> { %v786_v37 = vsel %vm13290_vm8, %v777_v39, %v785_v46  ;;  %v787_v42 = vrot.slane %v785_v46, 4  ;;  %v455_v15 = vpack.c.bf16 %v419_v62, %v419_v62  ;;  %v437_v17 = vsel %vm17814_vm11, %v400_v16, 0.0  ;;  %v13580_v39 = vld [vmem:[#allocation2 + $0x30] sm:$0xff] }
  0xb8   : >> { %907 = vst.msk [vmem:[#allocation2 + $0x80] sm:$0xf] %vm271_vm3, %v786_v37  ;;  %v473_v57 = vpack.c.bf16 %v437_v17, %v437_v17  ;;  %v1173_v55 = vor.u32 %v1171_v60, %v13525_v21  ;;  %v1177_v56 = vrot.slane %v1175_v43, 1  ;;  %vm17816_vm9 = vcmp.gt.f32.partialorder %v17815_v33, 0.5 }
  0xb9   : >> { %v796_v36 = vsel %vm13290_vm8, %v787_v42, %v795_v40  ;;  %v619_v51 = vshrl.u32 %v455_v15, 16  ;;  %v622_v22 = vshll.u32 %v455_v15, 16  ;;  %v438_v48 = vsel %vm17816_vm9, %v401_v25, 0.0  ;;  %11219 = vmatmul.msk.bf16.gmra.mxu1 %vm325_vm10, %v13534_v23 }
  0xba   : >> { %908 = vst.msk [vmem:[#allocation2 + $0x84] sm:$0xf] %vm271_vm3, %v796_v36  ;;  %v474_v46 = vpack.c.bf16 %v438_v48, %v438_v48  ;;  %v799_v54 = vshrl.u32 %v473_v57, 16  ;;  %v802_v37 = vshll.u32 %v473_v57, 16  ;;  %v1178_v21 = vsel %vm1062_vm2, %v1173_v55, %v1177_v56 }
  0xbb   : >> { %v621_v59 = vrot.slane %v619_v51, 6  ;;  %v624_v45 = vrot.slane %v622_v22, 7  ;;  %v1107_v60 = vshrl.u32 %v13534_v23, 16  ;;  %v1111_v43 = vshll.u32 %v13580_v39, 16 }
  0xbc   : >> { %11192 = vmatmul.msk.bf16.gmra.mxu0 %vm325_vm10, %v1106_v31  ;;  %v801_v58 = vrot.slane %v799_v54, 6  ;;  %v809_v36 = vshrl.u32 %v474_v46, 16  ;;  %v812_v62 = vshll.u32 %v474_v46, 16  ;;  %v804_v31 = vrot.slane %v802_v37, 7  ;;  %v12578_v46 = vld [vmem:[#allocation2 + $0x78] sm:$0xff] }
  0xbd   : >> { %v625_v42 = vor.u32 %v624_v45, %v621_v59  ;;  %v617_v15 = vrot.slane %v13549_v20, 4  ;;  %v797_v48 = vrot.slane %v795_v40, 4  ;;  %v1109_v20 = vor.u32 %v1107_v60, %v1105_v18  ;;  %v402_v40 = vld [vmem:[#allocation3 + $0x110] sm:$0xff] }
  0xbe   : >> { %v811_v17 = vrot.slane %v809_v36, 6  ;;  %v814_v51 = vrot.slane %v812_v62, 7  ;;  %v805_v22 = vor.u32 %v804_v31, %v801_v58  ;;  %v1113_v45 = vrot.slane %v1111_v43, 1  ;;  %v13611_v31 = vld [vmem:[#allocation2 + $0x38] sm:$0xff] }
  0xbf   : >> { %v627_v16 = vrot.slane %v625_v42, 4  ;;  %v626_v25 = vsel %vm13290_vm8, %v617_v15, %v625_v42  ;;  %v1179_v42 = vshrl.u32 %v13554_v49, 16  ;;  %v1183_v18 = vshll.u32 %v12578_v46, 16 }
  0xc0   : >> { %v815_v55 = vor.u32 %v814_v51, %v811_v17  ;;  %891 = vst.msk [vmem:[#allocation2 + $0x40] sm:$0xf] %vm271_vm3, %v626_v25  ;;  %v807_v59 = vrot.slane %v805_v22, 4  ;;  %v806_v54 = vsel %vm13290_vm8, %v797_v48, %v805_v22  ;;  %v1114_v37 = vsel %vm1062_vm2, %v1109_v20, %v1113_v45 }
  0xc1   : >> { %v636_v57 = vsel %vm13290_vm8, %v627_v16, %v13286_v63  ;;  %909 = vst.msk [vmem:[#allocation2 + $0x88] sm:$0xf] %vm271_vm3, %v806_v54  ;;  %vm17818_vm12 = vcmp.gt.f32.partialorder %v17817_v34, 0.5  ;;  %v1181_v60 = vor.u32 %v1179_v42, %v1177_v56  ;;  %v1185_v43 = vrot.slane %v1183_v18, 1 }
  0xc2   : >> { %11228 = vmatmul.msk.bf16.gmra.mxu3 %vm325_vm10, %v13554_v49  ;;  %892 = vst.msk [vmem:[#allocation2 + $0x44] sm:$0xf] %vm271_vm3, %v636_v57  ;;  %v816_v63 = vsel %vm13290_vm8, %v807_v59, %v815_v55  ;;  %v439_v58 = vsel %vm17818_vm12, %v402_v40, 0.0  ;;  %v817_v17 = vrot.slane %v815_v55, 4  ;;  %v1115_v22 = vshrl.u32 %v13580_v39, 16  ;;  %v12579_v55 = vld [vmem:[#allocation2 + $0x80] sm:$0xff] }
  0xc3   : >> { %910 = vst.msk [vmem:[#allocation2 + $0x8c] sm:$0xf] %vm271_vm3, %v816_v63  ;;  %v475_v36 = vpack.c.bf16 %v439_v58, %v439_v58  ;;  %v1186_v51 = vsel %vm1062_vm2, %v1181_v60, %v1185_v43  ;;  %v1119_v25 = vshll.u32 %v13611_v31, 16  ;;  %v1187_v20 = vshrl.u32 %v12578_v46, 16 }
  0xc4   : >> { %v1117_v57 = vor.u32 %v1115_v22, %v1113_v45  ;;  %v1191_v54 = vshll.u32 %v12579_v55, 16  ;;  %v1123_v18 = vshrl.u32 %v13611_v31, 16  ;;  %vm17701_vm11 = vcmask 1045504  }
  0xc5   : >> { %11201 = vmatmul.msk.bf16.gmra.mxu2 %vm325_vm10, %v1178_v21  ;;  %v819_v62 = vshrl.u32 %v475_v36, 16  ;;  %v822_v21 = vshll.u32 %v475_v36, 16  ;;  %v1121_v48 = vrot.slane %v1119_v25, 1  ;;  %v1189_v63 = vor.u32 %v1187_v20, %v1185_v43 }
  0xc6   : >> { %v1193_v40 = vrot.slane %v1191_v54, 1  ;;  %v12629_v54 = vld [vmem:[%s13278_s27 + $0x68] sm:$0xff]  ;;  %vm1535_vm9 = vcmask 1046528   ;;  %vm2162_vm12 = vsmask.f32 6400  ;;  %vm17827_vm7 = vcmp.gt.f32.partialorder %v17826_v35, 0.5 }
  0xc7   : >> { %v821_v15 = vrot.slane %v819_v62, 6  ;;  %v824_v16 = vrot.slane %v822_v21, 7  ;;  %v1122_v59 = vsel %vm1062_vm2, %v1117_v57, %v1121_v48  ;;  %v1195_v21 = vshrl.u32 %v12579_v55, 16  ;;  %v1775_v57 = vld [vmem:[#allocation2 + $0xc] sm:$0xf]  ;;  %3032 = vmatpush.bf16.msra.mxu2 %v12629_v54 }
  0xc8   : >> { %v1194_v42 = vsel %vm1062_vm2, %v1189_v63, %v1193_v40  ;;  %v1857_v20 = vunpack.c.l.b16 %v1775_v57  ;;  %v12631_v63 = vld [vmem:[%s13278_s27 + $0x78] sm:$0xff]  ;;  %vm17700_vm5 = vcmask 1044480  }
  0xc9   : >> { %11220 = vmatmul.msk.bf16.gmra.mxu1 %vm325_vm10, %v13580_v39  ;;  %v13615_v49 = vor.u32 %v824_v16, %v821_v15  ;;  %v1197_v15 = vor.u32 %v1195_v21, %v1193_v40  ;;  %3416 = vmatpush.bf16.msra.mxu3 %v12631_v63  ;;  %v12633_v21 = vld [vmem:[%s13278_s27 + $0x88] sm:$0xff] }
  0xca   : >> { %v12580_v36 = vld [vmem:[#allocation2 + $0x88] sm:$0xff]  ;;  %3667 = vmatpush.bf16.msra.mxu0 %v12633_v21 }
  0xcb   : >> { %v826_v56 = vsel %vm13290_vm8, %v817_v17, %v13615_v49  ;;  %v1199_v60 = vshll.u32 %v12580_v36, 16  ;;  %3033 = vmatpush.bf16.msra.mxu2 %v12628_v2 }
  0xcc   : >> { %11193 = vmatmul.msk.bf16.gmra.mxu0 %vm325_vm10, %v1114_v37  ;;  %911 = vst.msk [vmem:[#allocation2 + $0x90] sm:$0xf] %vm271_vm3, %v826_v56  ;;  %v13628_v37 = vld [vmem:[#allocation2 + $0x40] sm:$0xff]  ;;  %v1774_v56 = vld [vmem:[#allocation2 + $0x8] sm:$0xe] }
  0xcd   : >> { %v1127_v45 = vshll.u32 %v13628_v37, 16  ;;  %v1201_v16 = vrot.slane %v1199_v60, 1  ;;  %v1131_v25 = vshrl.u32 %v13628_v37, 16 }
  0xce   : >> { %3668 = vmatpush.bf16.msra.mxu0 %v12632_v1 }
  0xcf   : >> { %v1129_v58 = vrot.slane %v1127_v45, 1  ;;  %v1202_v22 = vsel %vm1062_vm2, %v1197_v15, %v1201_v16  ;;  %v1203_v45 = vshrl.u32 %v12580_v36, 16 }
  0xd1   : >> { %v1133_v40 = vor.u32 %v1131_v25, %v1129_v58 }
  0xd2   : >> { %11229 = vmatmul.msk.bf16.gmra.mxu3 %vm325_vm10, %v12578_v46  ;;  %v1125_v46 = vor.u32 %v1123_v18, %v1121_v48 }
  0xd3   : >> { %v960_v17 = vld [vmem:[#allocation2 + $0x90] sm:$0x1]  ;;  %v1138_v15 = vsel %vm1062_vm2, %v1133_v40, %v13359_v52 }
  0xd4   : >> { %v1130_v62 = vsel %vm1062_vm2, %v1125_v46, %v1129_v58 }
  0xd5   : >> { %11202 = vmatmul.msk.bf16.gmra.mxu2 %vm325_vm10, %v1186_v51  ;;  %v1042_v51 = vunpack.c.l.b16 %v960_v17  ;;  %v13654_v17 = vld [vmem:[#allocation2 + $0x10] sm:$0xff] }
  0xd6   : >> { %v2172_v34 = vshrl.u32 %v13654_v17, 16  ;;  %v2175_v52 = vshll.u32 %v13654_v17, 16  ;;  %v2548_v40 = vrot.slane %v13654_v17, 2 }
  0xd9   : >> { %11221 = vmatmul.msk.bf16.gmra.mxu1 %vm325_vm10, %v13611_v31 }
  0xdc   : >> { %11194 = vmatmul.msk.bf16.gmra.mxu0 %vm325_vm10, %v1122_v59  ;;  %v1856_v59 = vunpack.c.l.b16 %v1774_v56 }
  0xe2   : >> { %11230 = vmatmul.msk.bf16.gmra.mxu3 %vm325_vm10, %v12579_v55  ;;  %v13644_v55 = vpack.c.b16 %v1042_v51, %v1042_v51  ;;  %v12609_v51 = vld [vmem:[%s13278_s27 + $0x50] sm:$0xff] }
  0xe4   : >> { %v1207_v46 = vshll.u32 %v13644_v55, 16 }
  0xe5   : >> { %11203 = vmatmul.msk.bf16.gmra.mxu2 %vm325_vm10, %v1194_v42  ;;  %v12610_v42 = vld [vmem:[%s13278_s27 + $0x58] sm:$0xff] }
  0xe6   : >> { %v1433_v43 = vpop.f32.mrf.mxu1  ;;  %2656 = vmatpush.bf16.msrb.mxu1 %v12610_v42  ;;  %v1209_v57 = vrot.slane %v1207_v46, 1 }
  0xe9   : >> { %11222 = vmatmul.msk.bf16.gmra.mxu1 %vm325_vm10, %v13628_v37 }
  0xea   : >> { %2657 = vmatpush.bf16.msrb.mxu1 %v12609_v51 }
  0xec   : >> { %11195 = vmatmul.msk.bf16.gmra.mxu0 %vm325_vm10, %v1130_v62  ;;  %v1893_v62 = vpack.c.b16 %v1857_v20, %v1856_v59 }
  0xee   : >> { %v1435_v48 = vpop.f32.mrf.mxu1  ;;  %v2164_v59 = vshrl.u32 %v1893_v62, 16  ;;  %v2167_v63 = vshll.u32 %v1893_v62, 16  ;;  %v1912_v42 = vrot.slane %v1893_v62, 1 }
  0xf0   : >> { %v2166_v46 = vrot.slane %v2164_v59, 1 }
  0xf2   : >> { %11231 = vmatmul.msk.bf16.gmra.mxu3 %vm325_vm10, %v12580_v36  ;;  %v1205_v36 = vor.u32 %v1203_v45, %v1201_v16 }
  0xf5   : >> { %11204 = vmatmul.msk.bf16.gmra.mxu2 %vm325_vm10, %v1202_v22  ;;  %v1478_v18 = vpop.f32.mrf.mxu3  ;;  %v2534_v22 = vld [vmem:[#allocation2 + $0x8] sm:$0xc] }
  0xf6   : >> { %v1438_v58 = vpop.f32.mrf.mxu1  ;;  %v2544_v25 = vunpack.c.l.b16 %v2534_v22  ;;  %v2174_v22 = vrot.slane %v2172_v34, 1 }
  0xf8   : >> { %v2545_v54 = vpack.c.b16 %v1857_v20, %v2544_v25  ;;  %v2177_v25 = vrot.slane %v2175_v52, 2 }
  0xf9   : >> { %v1286_v60 = vpop.f32.mrf.mxu0 }
  0xfa   : >> { %v13657_v56 = vadd.f32 %v1433_v43, %v1286_v60  ;;  %v1913_v43 = vrot.slane %v13654_v17, 1  ;;  %v2547_v21 = vrot.slane %v2545_v54, 2  ;;  %v1210_v60 = vsel %vm1062_vm2, %v1205_v36, %v1209_v57  ;;  %v12784_v54 = vld [vmem:[#allocation2] sm:$0xf0] }
  0xfb   : >> { %v2178_v57 = vor.u32 %v2177_v25, %v2174_v22 }
  0xfc   : >> { %11196 = vmatmul.msk.bf16.gmra.mxu0 %vm325_vm10, %v1138_v15  ;;  %v2549_v45 = vsel %vm17701_vm11, %v2547_v21, %v2548_v40  ;;  %v2169_v15 = vrot.slane %v2167_v63, 2  ;;  %v1914_v62 = vsel %vm1535_vm9, %v1912_v42, %v1913_v43  ;;  %v12785_v21 = vld [vmem:[#allocation2] sm:$0xe] }
  0xfd   : >> { %v1480_v16 = vpop.f32.mrf.mxu3  ;;  %11406 = vmatmul.msk.bf16.vlgmr.msrb.gmra.mxu1 %vm325_vm10, %v2549_v45  ;;  %v12786_v45 = vor.u32 %v12785_v21, %v12784_v54 }
  0xfe   : >> { %v1440_v17 = vpop.f32.mrf.mxu1  ;;  %v2170_v36 = vor.u32 %v2169_v15, %v2166_v46 }
  0xff   : >> { %v1536_v46 = vrot.slane %v12786_v45, 1 }
 0x101   : >> { %v1288_v20 = vpop.f32.mrf.mxu0 }
 0x102   : >> { %v13667_v51 = vadd.f32 %v1435_v48, %v1288_v20  ;;  %11344 = vmatmul.msk.bf16.vlgmr.msrb.gmra.mxu3 %vm325_vm10, %v1914_v62  ;;  %v2179_v48 = vsel %vm2162_vm12, %v2170_v36, %v2178_v57  ;;  %v12589_v20 = vld [vmem:[#allocation2 + $0x18] sm:$0xff] }
 0x103   : >> { %v2181_v15 = vshrl.u32 %v12589_v20, 16  ;;  %v2184_v22 = vshll.u32 %v12589_v20, 16  ;;  %v2550_v25 = vrot.slane %v12589_v20, 2  ;;  %v1915_v62 = vrot.slane %v12589_v20, 1 }
 0x105   : >> { %11205 = vmatmul.msk.bf16.gmra.mxu2 %vm325_vm10, %v1210_v60  ;;  %v1483_v34 = vpop.f32.mrf.mxu3  ;;  %v1537_v60 = vrot.slane %v13340_v53, 1  ;;  %v2183_v21 = vrot.slane %v2181_v15, 1  ;;  %v1916_v53 = vsel %vm1535_vm9, %v1913_v43, %v1915_v62  ;;  %v1539_v43 = vrot.slane %v13378_v50, 1 }
 0x106   : >> { %v1443_v33 = vpop.f32.mrf.mxu1 }
 0x107   : >> { %v1538_v54 = vsel %vm1535_vm9, %v1536_v46, %v1537_v60 }
 0x108   : >> { %v1331_v59 = vpop.f32.mrf.mxu2 }
 0x109   : >> { %v13672_v63 = vadd.f32 %v1478_v18, %v1331_v59  ;;  %v1291_v52 = vpop.f32.mrf.mxu0  ;;  %v2551_v59 = vsel %vm17701_vm11, %v2548_v40, %v2550_v25 }
 0x10a   : >> { %v13675_v42 = vadd.f32 %v1438_v58, %v1291_v52  ;;  %v2186_v52 = vrot.slane %v2184_v22, 2  ;;  %v12590_v22 = vld [vmem:[#allocation2 + $0x20] sm:$0xff] }
 0x10c   : >> { %11375 = vmatmul.msk.bf16.vlgmr.msrb.gmra.mxu0 %vm325_vm10, %v2179_v48  ;;  %v2187_v40 = vor.u32 %v2186_v52, %v2183_v21 }
 0x10d   : >> { %v1485_v36 = vpop.f32.mrf.mxu3  ;;  %11407 = vmatmul.msk.bf16.gmra.mxu1 %vm325_vm10, %v2551_v59  ;;  %v2190_v59 = vshrl.u32 %v12590_v22, 16 }
 0x10e   : >> { %v1445_v45 = vpop.f32.mrf.mxu1  ;;  %v2188_v15 = vsel %vm2162_vm12, %v2178_v57, %v2187_v40  ;;  %v1540_v57 = vsel %vm1535_vm9, %v1537_v60, %v1539_v43 }
 0x110   : >> { %v1333_v18 = vpop.f32.mrf.mxu2 }
 0x111   : >> { %v13680_v32 = vadd.f32 %v1480_v16, %v1333_v18  ;;  %v1293_v58 = vpop.f32.mrf.mxu0 }
 0x112   : >> { %v13684_v48 = vadd.f32 %v1440_v17, %v1293_v58  ;;  %11345 = vmatmul.msk.bf16.gmra.mxu3 %vm325_vm10, %v1916_v53  ;;  %v2552_v58 = vrot.slane %v12590_v22, 2  ;;  %v1917_v53 = vrot.slane %v12590_v22, 1 }
 0x114   : >> { %v1918_v50 = vsel %vm1535_vm9, %v1915_v62, %v1917_v53  ;;  %v1541_v62 = vrot.slane %v13422_v47, 1 }
 0x115   : >> { %11245 = vmatmul.msk.bf16.vlgmr.msrb.gmra.mxu2 %vm325_vm10, %v1538_v54  ;;  %v1488_v18 = vpop.f32.mrf.mxu3  ;;  %v2193_v54 = vshll.u32 %v12590_v22, 16 }
 0x116   : >> { %v1448_v17 = vpop.f32.mrf.mxu1 }
 0x118   : >> { %v1336_v16 = vpop.f32.mrf.mxu2 }
 0x119   : >> { %v13689_v20 = vadd.f32 %v1483_v34, %v1336_v16  ;;  %v1296_v46 = vpop.f32.mrf.mxu0  ;;  %v2553_v34 = vsel %vm17701_vm11, %v2550_v25, %v2552_v58 }
 0x11a   : >> { %v13692_v30 = vadd.f32 %v1443_v33, %v1296_v46  ;;  %v2192_v33 = vrot.slane %v2190_v59, 1  ;;  %v2195_v46 = vrot.slane %v2193_v54, 2  ;;  %v12591_v54 = vld [vmem:[#allocation2 + $0x28] sm:$0xff] }
 0x11c   : >> { %11376 = vmatmul.msk.bf16.gmra.mxu0 %vm325_vm10, %v2188_v15  ;;  %v2196_v25 = vor.u32 %v2195_v46, %v2192_v33 }
 0x11d   : >> { %v1490_v16 = vpop.f32.mrf.mxu3  ;;  %11408 = vmatmul.msk.bf16.gmra.mxu1 %vm325_vm10, %v2553_v34  ;;  %v2202_v34 = vshll.u32 %v12591_v54, 16 }
 0x11e   : >> { %v1450_v28 = vpop.f32.mrf.mxu1  ;;  %v2197_v59 = vsel %vm2162_vm12, %v2187_v40, %v2196_v25  ;;  %v1542_v40 = vsel %vm1535_vm9, %v1539_v43, %v1541_v62 }
 0x120   : >> { %v1338_v21 = vpop.f32.mrf.mxu2 }
 0x121   : >> { %v13697_v52 = vadd.f32 %v1485_v36, %v1338_v21  ;;  %v1298_v29 = vpop.f32.mrf.mxu0 }
 0x122   : >> { %v13701_v15 = vadd.f32 %v1445_v45, %v1298_v29  ;;  %11346 = vmatmul.msk.bf16.gmra.mxu3 %vm325_vm10, %v1918_v50  ;;  %v2199_v45 = vshrl.u32 %v12591_v54, 16  ;;  %v1919_v50 = vrot.slane %v12591_v54, 1 }
 0x124   : >> { %v1920_v47 = vsel %vm1535_vm9, %v1917_v53, %v1919_v50 }
 0x125   : >> { %11246 = vmatmul.msk.bf16.gmra.mxu2 %vm325_vm10, %v1540_v57  ;;  %v1493_v21 = vpop.f32.mrf.mxu3  ;;  %v2554_v57 = vrot.slane %v12591_v54, 2 }
 0x126   : >> { %v1453_v29 = vpop.f32.mrf.mxu1 }
 0x128   : >> { %v1341_v36 = vpop.f32.mrf.mxu2 }
 0x129   : >> { %v13706_v22 = vadd.f32 %v1488_v18, %v1341_v36  ;;  %v1301_v60 = vpop.f32.mrf.mxu0  ;;  %v2555_v18 = vsel %vm17701_vm11, %v2552_v58, %v2554_v57 }
 0x12a   : >> { %v13709_v27 = vadd.f32 %v1448_v17, %v1301_v60  ;;  %v2201_v17 = vrot.slane %v2199_v45, 1  ;;  %v2204_v60 = vrot.slane %v2202_v34, 2  ;;  %v12592_v34 = vld [vmem:[#allocation2 + $0x30] sm:$0xff] }
 0x12b   : >> { %v2208_v53 = vshrl.u32 %v12592_v34, 16 }
 0x12c   : >> { %11377 = vmatmul.msk.bf16.gmra.mxu0 %vm325_vm10, %v2197_v59  ;;  %v2205_v58 = vor.u32 %v2204_v60, %v2201_v17 }
 0x12d   : >> { %v1495_v36 = vpop.f32.mrf.mxu3  ;;  %11409 = vmatmul.msk.bf16.gmra.mxu1 %vm325_vm10, %v2555_v18  ;;  %v2211_v18 = vshll.u32 %v12592_v34, 16 }
 0x12e   : >> { %v1455_v24 = vpop.f32.mrf.mxu1  ;;  %v2206_v45 = vsel %vm2162_vm12, %v2196_v25, %v2205_v58 }
 0x130   : >> { %v1343_v33 = vpop.f32.mrf.mxu2 }
 0x131   : >> { %v13714_v46 = vadd.f32 %v1490_v16, %v1343_v33  ;;  %v1303_v26 = vpop.f32.mrf.mxu0 }
 0x132   : >> { %v13718_v59 = vadd.f32 %v1450_v28, %v1303_v26  ;;  %11347 = vmatmul.msk.bf16.gmra.mxu3 %vm325_vm10, %v1920_v47  ;;  %v1543_v28 = vrot.slane %v13477_v61, 1  ;;  %v1921_v47 = vrot.slane %v12592_v34, 1 }
 0x134   : >> { %v1544_v25 = vsel %vm1535_vm9, %v1541_v62, %v1543_v28  ;;  %v1922_v61 = vsel %vm1535_vm9, %v1919_v50, %v1921_v47 }
 0x135   : >> { %11247 = vmatmul.msk.bf16.gmra.mxu2 %vm325_vm10, %v1542_v40  ;;  %v1498_v33 = vpop.f32.mrf.mxu3  ;;  %v2556_v40 = vrot.slane %v12592_v34, 2 }
 0x136   : >> { %v1458_v26 = vpop.f32.mrf.mxu1 }
 0x138   : >> { %v1346_v16 = vpop.f32.mrf.mxu2 }
 0x139   : >> { %v13723_v54 = vadd.f32 %v1493_v21, %v1346_v16  ;;  %v1306_v43 = vpop.f32.mrf.mxu0  ;;  %v2557_v21 = vsel %vm17701_vm11, %v2554_v57, %v2556_v40 }
 0x13a   : >> { %v13726_v19 = vadd.f32 %v1453_v29, %v1306_v43  ;;  %v2210_v29 = vrot.slane %v2208_v53, 1  ;;  %v2213_v43 = vrot.slane %v2211_v18, 2  ;;  %v12593_v18 = vld [vmem:[#allocation2 + $0x38] sm:$0xff] }
 0x13b   : >> { %v2217_v50 = vshrl.u32 %v12593_v18, 16 }
 0x13c   : >> { %11378 = vmatmul.msk.bf16.gmra.mxu0 %vm325_vm10, %v2206_v45  ;;  %v2214_v57 = vor.u32 %v2213_v43, %v2210_v29 }
 0x13d   : >> { %v1500_v16 = vpop.f32.mrf.mxu3  ;;  %11410 = vmatmul.msk.bf16.gmra.mxu1 %vm325_vm10, %v2557_v21  ;;  %v2220_v21 = vshll.u32 %v12593_v18, 16 }
 0x13e   : >> { %v1460_v13 = vpop.f32.mrf.mxu1  ;;  %v2215_v53 = vsel %vm2162_vm12, %v2205_v58, %v2214_v57 }
 0x140   : >> { %v1348_v17 = vpop.f32.mrf.mxu2 }
 0x141   : >> { %v13731_v60 = vadd.f32 %v1495_v36, %v1348_v17  ;;  %v1308_v14 = vpop.f32.mrf.mxu0 }
 0x142   : >> { %v13735_v45 = vadd.f32 %v1455_v24, %v1308_v14  ;;  %11348 = vmatmul.msk.bf16.gmra.mxu3 %vm325_vm10, %v1922_v61  ;;  %v1545_v24 = vrot.slane %v13534_v23, 1  ;;  %v1923_v61 = vrot.slane %v12593_v18, 1 }
 0x144   : >> { %v1546_v58 = vsel %vm1535_vm9, %v1543_v28, %v1545_v24  ;;  %v1924_v23 = vsel %vm1535_vm9, %v1921_v47, %v1923_v61 }
 0x145   : >> { %11248 = vmatmul.msk.bf16.gmra.mxu2 %vm325_vm10, %v1544_v25  ;;  %v1503_v17 = vpop.f32.mrf.mxu3  ;;  %v2558_v25 = vrot.slane %v12593_v18, 2 }
 0x146   : >> { %v1463_v14 = vpop.f32.mrf.mxu1 }
 0x148   : >> { %v1351_v36 = vpop.f32.mrf.mxu2 }
 0x149   : >> { %v13740_v34 = vadd.f32 %v1498_v33, %v1351_v36  ;;  %v1311_v62 = vpop.f32.mrf.mxu0  ;;  %v2559_v33 = vsel %vm17701_vm11, %v2556_v40, %v2558_v25 }
 0x14a   : >> { %v13743_v12 = vadd.f32 %v1458_v26, %v1311_v62  ;;  %v2219_v26 = vrot.slane %v2217_v50, 1  ;;  %v2222_v62 = vrot.slane %v2220_v21, 2  ;;  %v12594_v21 = vld [vmem:[#allocation2 + $0x40] sm:$0xff] }
 0x14b   : >> { %v2226_v47 = vshrl.u32 %v12594_v21, 16 }
 0x14c   : >> { %11379 = vmatmul.msk.bf16.gmra.mxu0 %vm325_vm10, %v2215_v53  ;;  %v2223_v40 = vor.u32 %v2222_v62, %v2219_v26 }
 0x14d   : >> { %v1505_v36 = vpop.f32.mrf.mxu3  ;;  %11411 = vmatmul.msk.bf16.gmra.mxu1 %vm325_vm10, %v2559_v33  ;;  %v2229_v33 = vshll.u32 %v12594_v21, 16 }
 0x14e   : >> { %v1465_v10 = vpop.f32.mrf.mxu1  ;;  %v2224_v50 = vsel %vm2162_vm12, %v2214_v57, %v2223_v40 }
 0x150   : >> { %v1353_v29 = vpop.f32.mrf.mxu2 }
 0x151   : >> { %v13748_v43 = vadd.f32 %v1500_v16, %v1353_v29  ;;  %v1313_v11 = vpop.f32.mrf.mxu0 }
 0x152   : >> { %v13752_v53 = vadd.f32 %v1460_v13, %v1313_v11  ;;  %11349 = vmatmul.msk.bf16.gmra.mxu3 %vm325_vm10, %v1924_v23  ;;  %v1547_v13 = vrot.slane %v13580_v39, 1  ;;  %v1925_v23 = vrot.slane %v12594_v21, 1 }
 0x154   : >> { %v1548_v57 = vsel %vm1535_vm9, %v1545_v24, %v1547_v13  ;;  %v1926_v39 = vsel %vm1535_vm9, %v1923_v61, %v1925_v23 }
 0x155   : >> { %11249 = vmatmul.msk.bf16.gmra.mxu2 %vm325_vm10, %v1546_v58  ;;  %v1508_v29 = vpop.f32.mrf.mxu3  ;;  %v2560_v58 = vrot.slane %v12594_v21, 2 }
 0x156   : >> { %v1468_v11 = vpop.f32.mrf.mxu1 }
 0x158   : >> { %v1356_v16 = vpop.f32.mrf.mxu2 }
 0x159   : >> { %v13757_v18 = vadd.f32 %v1503_v17, %v1356_v16  ;;  %v1316_v28 = vpop.f32.mrf.mxu0  ;;  %v2561_v17 = vsel %vm17701_vm11, %v2558_v25, %v2560_v58 }
 0x15a   : >> { %v13760_v9 = vadd.f32 %v1463_v14, %v1316_v28  ;;  %v2228_v14 = vrot.slane %v2226_v47, 1  ;;  %v2231_v28 = vrot.slane %v2229_v33, 2  ;;  %v12595_v33 = vld [vmem:[#allocation2 + $0x48] sm:$0xff] }
 0x15b   : >> { %v2235_v61 = vshrl.u32 %v12595_v33, 16 }
 0x15c   : >> { %11380 = vmatmul.msk.bf16.gmra.mxu0 %vm325_vm10, %v2224_v50  ;;  %v2232_v25 = vor.u32 %v2231_v28, %v2228_v14 }
 0x15d   : >> { %v1510_v16 = vpop.f32.mrf.mxu3  ;;  %11412 = vmatmul.msk.bf16.gmra.mxu1 %vm325_vm10, %v2561_v17  ;;  %v2238_v17 = vshll.u32 %v12595_v33, 16 }
 0x15e   : >> { %v1470_v7 = vpop.f32.mrf.mxu1  ;;  %v2233_v47 = vsel %vm2162_vm12, %v2223_v40, %v2232_v25 }
 0x160   : >> { %v1358_v26 = vpop.f32.mrf.mxu2 }
 0x161   : >> { %v13765_v62 = vadd.f32 %v1505_v36, %v1358_v26  ;;  %v1318_v8 = vpop.f32.mrf.mxu0 }
 0x162   : >> { %v13769_v50 = vadd.f32 %v1465_v10, %v1318_v8  ;;  %11350 = vmatmul.msk.bf16.gmra.mxu3 %vm325_vm10, %v1926_v39  ;;  %v1549_v10 = vrot.slane %v13611_v31, 1  ;;  %v1927_v39 = vrot.slane %v12595_v33, 1 }
 0x164   : >> { %v1550_v40 = vsel %vm1535_vm9, %v1547_v13, %v1549_v10  ;;  %v1928_v31 = vsel %vm1535_vm9, %v1925_v23, %v1927_v39 }
 0x165   : >> { %11250 = vmatmul.msk.bf16.gmra.mxu2 %vm325_vm10, %v1548_v57  ;;  %v1513_v26 = vpop.f32.mrf.mxu3  ;;  %v2562_v57 = vrot.slane %v12595_v33, 2 }
 0x166   : >> { %v1473_v8 = vpop.f32.mrf.mxu1 }
 0x168   : >> { %v1361_v36 = vpop.f32.mrf.mxu2 }
 0x169   : >> { %v13774_v21 = vadd.f32 %v1508_v29, %v1361_v36  ;;  %v1321_v24 = vpop.f32.mrf.mxu0  ;;  %v2563_v29 = vsel %vm17701_vm11, %v2560_v58, %v2562_v57 }
 0x16a   : >> { %v13777_v6 = vadd.f32 %v1468_v11, %v1321_v24  ;;  %v2237_v11 = vrot.slane %v2235_v61, 1  ;;  %v2240_v24 = vrot.slane %v2238_v17, 2  ;;  %v12596_v17 = vld [vmem:[#allocation2 + $0x50] sm:$0xff] }
 0x16b   : >> { %17819 = vst [vmem:[#allocation43_spill] sm:$0xff] %v13774_v21  ;;  %v2247_v23 = vshll.u32 %v12596_v17, 16 }
 0x16c   : >> { %11381 = vmatmul.msk.bf16.gmra.mxu0 %vm325_vm10, %v2233_v47  ;;  %v2241_v33 = vor.u32 %v2240_v24, %v2237_v11 }
 0x16d   : >> { %v1515_v36 = vpop.f32.mrf.mxu3  ;;  %11413 = vmatmul.msk.bf16.gmra.mxu1 %vm325_vm10, %v2563_v29  ;;  %v2564_v29 = vrot.slane %v12596_v17, 2 }
 0x16e   : >> { %v1475_v58 = vpop.f32.mrf.mxu1  ;;  %v2242_v61 = vsel %vm2162_vm12, %v2232_v25, %v2241_v33 }
 0x16f   : >> { %v2565_v24 = vsel %vm17701_vm11, %v2562_v57, %v2564_v29 }
 0x170   : >> { %v1363_v14 = vpop.f32.mrf.mxu2 }
 0x171   : >> { %v13782_v28 = vadd.f32 %v1510_v16, %v1363_v14  ;;  %v1323_v5 = vpop.f32.mrf.mxu0 }
 0x172   : >> { %v13786_v47 = vadd.f32 %v1470_v7, %v1323_v5  ;;  %11351 = vmatmul.msk.bf16.gmra.mxu3 %vm325_vm10, %v1928_v31  ;;  %v1551_v5 = vrot.slane %v13628_v37, 1  ;;  %v2244_v7 = vshrl.u32 %v12596_v17, 16 }
 0x173   : >> { %17820 = vst [vmem:[#allocation44_spill] sm:$0xff] %v13782_v28 }
 0x175   : >> { %11251 = vmatmul.msk.bf16.gmra.mxu2 %vm325_vm10, %v1550_v40  ;;  %v1518_v4 = vpop.f32.mrf.mxu3  ;;  %v1929_v40 = vrot.slane %v12596_v17, 1 }
 0x177   : >> { %v1930_v17 = vsel %vm1535_vm9, %v1927_v39, %v1929_v40  ;;  %v12597_v39 = vld [vmem:[#allocation2 + $0x58] sm:$0xff] }
 0x178   : >> { %v1366_v16 = vpop.f32.mrf.mxu2  ;;  %v2566_v2 = vrot.slane %v12597_v39, 2 }
 0x179   : >> { %v13791_v14 = vadd.f32 %v1513_v26, %v1366_v16  ;;  %v1326_v13 = vpop.f32.mrf.mxu0 }
 0x17a   : >> { %v13794_v3 = vadd.f32 %v1473_v8, %v1326_v13  ;;  %v13798_v11 = vpop.f32.mrf.mxu1  ;;  %v1552_v8 = vsel %vm1535_vm9, %v1549_v10, %v1551_v5  ;;  %v2246_v13 = vrot.slane %v2244_v7, 1 }
 0x17b   : >> { %17821 = vst [vmem:[#allocation45_spill] sm:$0xff] %v13791_v14 }
 0x17c   : >> { %11382 = vmatmul.msk.bf16.gmra.mxu0 %vm325_vm10, %v2242_v61  ;;  %v2249_v61 = vrot.slane %v2247_v23, 2 }
 0x17d   : >> { %v1520_v25 = vpop.f32.mrf.mxu3  ;;  %11414 = vmatmul.msk.bf16.gmra.mxu1 %vm325_vm10, %v2565_v24 }
 0x17e   : >> { %v2250_v57 = vor.u32 %v2249_v61, %v2246_v13  ;;  %v2256_v13 = vshll.u32 %v12597_v39, 16  ;;  %v1931_v61 = vrot.slane %v12597_v39, 1 }
 0x180   : >> { %v1368_v26 = vpop.f32.mrf.mxu2  ;;  %v2251_v24 = vsel %vm2162_vm12, %v2241_v33, %v2250_v57 }
 0x181   : >> { %v13801_v31 = vadd.f32 %v1515_v36, %v1368_v26  ;;  %v1328_v16 = vpop.f32.mrf.mxu0  ;;  %v12630_v26 = vld [vmem:[%s13278_s27 + $0x70] sm:$0xff] }
 0x182   : >> { %v13805_v37 = vadd.f32 %v1475_v58, %v1328_v16  ;;  %11352 = vmatmul.msk.bf16.gmra.mxu3 %vm325_vm10, %v1930_v17  ;;  %v13811_v36 = vpop.f32.mrf.mxu1  ;;  %v2253_v17 = vshrl.u32 %v12597_v39, 16 }
 0x183   : >> { %17822 = vst [vmem:[#allocation46_spill] sm:$0xff] %v13801_v31  ;;  %3417 = vmatpush.bf16.msra.mxu3 %v12630_v26  ;;  %v2258_v31 = vrot.slane %v2256_v13, 2 }
 0x185   : >> { %11252 = vmatmul.msk.bf16.gmra.mxu2 %vm325_vm10, %v1552_v8  ;;  %v2024_v23 = vpop.f32.mrf.mxu3  ;;  %v12823_v8 = vld [vmem:[#allocation2 + $0x48] sm:$0xff] }
 0x186   : >> { %v1553_v16 = vrot.slane %v12823_v8, 1  ;;  %v1932_v8 = vsel %vm1535_vm9, %v1929_v40, %v1931_v61  ;;  %v12824_v40 = vld [vmem:[#allocation2 + $0x50] sm:$0xff] }
 0x188   : >> { %v1371_v10 = vpop.f32.mrf.mxu2  ;;  %v1554_v33 = vsel %vm1535_vm9, %v1551_v5, %v1553_v16 }
 0x189   : >> { %v13814_v7 = vadd.f32 %v1518_v4, %v1371_v10  ;;  %v2408_v58 = vpop.f32.mrf.mxu0  ;;  %v2567_v4 = vsel %vm17701_vm11, %v2564_v29, %v2566_v2 }
 0x18a   : >> { %v13818_v41 = vpop.f32.mrf.mxu1 }
 0x18b   : >> { %17823 = vst [vmem:[#allocation47_spill] sm:$0xff] %v13814_v7 }
 0x18c   : >> { %11383 = vmatmul.msk.bf16.gmra.mxu0 %vm325_vm10, %v2251_v24  ;;  %v2255_v24 = vrot.slane %v2253_v17, 1  ;;  %v12598_v17 = vld [vmem:[#allocation2 + $0x60] sm:$0xff] }
 0x18d   : >> { %v2026_v26 = vpop.f32.mrf.mxu3  ;;  %11415 = vmatmul.msk.bf16.gmra.mxu1 %vm325_vm10, %v2567_v4  ;;  %v1555_v4 = vrot.slane %v12824_v40, 1  ;;  %v2265_v28 = vshll.u32 %v12598_v17, 16 }
 0x18e   : >> { %v2259_v39 = vor.u32 %v2258_v31, %v2255_v24  ;;  %v2568_v31 = vrot.slane %v12598_v17, 2 }
 0x18f   : >> { %v2267_v40 = vrot.slane %v2265_v28, 2 }
 0x190   : >> { %v1373_v0 = vpop.f32.mrf.mxu2  ;;  %v2260_v5 = vsel %vm2162_vm12, %v2250_v57, %v2259_v39  ;;  %v2569_v57 = vsel %vm17701_vm11, %v2566_v2, %v2568_v31 }
 0x191   : >> { %v13822_v10 = vadd.f32 %v1520_v25, %v1373_v0  ;;  %v2410_v7 = vpop.f32.mrf.mxu0 }
 0x192   : >> { %11353 = vmatmul.msk.bf16.gmra.mxu3 %vm325_vm10, %v1932_v8  ;;  %v13829_v14 = vpop.f32.mrf.mxu1  ;;  %v1933_v8 = vrot.slane %v12598_v17, 1 }
 0x193   : >> { %17824 = vst [vmem:[#allocation48_spill] sm:$0xff] %v13822_v10 }
 0x195   : >> { %11253 = vmatmul.msk.bf16.gmra.mxu2 %vm325_vm10, %v1554_v33  ;;  %v2029_v1 = vpop.f32.mrf.mxu3  ;;  %v2262_v33 = vshrl.u32 %v12598_v17, 16 }
 0x198   : >> { %v1648_v0 = vpop.f32.mrf.mxu2 }
 0x199   : >> { %v1738_v29 = vadd.f32 %v1648_v0, %v13657_v56  ;;  %v2413_v25 = vpop.f32.mrf.mxu0 }
 0x19a   : >> { %v13837_v56 = vpop.f32.mrf.mxu1 }
 0x19b   : >> { %v2114_v13 = vadd.f32 %v2024_v23, %v1738_v29  ;;  %v1556_v29 = vsel %vm1535_vm9, %v1553_v16, %v1555_v4 }
 0x19c   : >> { %11384 = vmatmul.msk.bf16.gmra.mxu0 %vm325_vm10, %v2260_v5 }
 0x19d   : >> { %v2498_v10 = vadd.f32 %v2408_v58, %v2114_v13  ;;  %v2031_v58 = vpop.f32.mrf.mxu3  ;;  %v2264_v13 = vrot.slane %v2262_v33, 1  ;;  %11416 = vmatmul.msk.bf16.gmra.mxu1 %vm325_vm10, %v2569_v57  ;;  %v12599_v57 = vld [vmem:[#allocation2 + $0x68] sm:$0xff] }
 0x19f   : >> { %v13835_v24 = vadd.f32 %v13798_v11, %v2498_v10  ;;  %v1934_v11 = vsel %vm1535_vm9, %v1931_v61, %v1933_v8  ;;  %v12654_v10 = vld [vmem:[%s13278_s27 + $0xa8] sm:$0xff]  ;;  %v2268_v2 = vor.u32 %v2267_v40, %v2264_v13  ;;  %v2271_v13 = vshrl.u32 %v12599_v57, 16 }
 0x1a0   : >> { %v1650_v0 = vpop.f32.mrf.mxu2  ;;  %4748 = vmatpush.bf16.msra.mxu1 %v12654_v10  ;;  %v2274_v40 = vshll.u32 %v12599_v57, 16  ;;  %v1935_v10 = vrot.slane %v12599_v57, 1 }
 0x1a1   : >> { %v1739_v23 = vadd.f32 %v1650_v0, %v13667_v51  ;;  %v2415_v5 = vpop.f32.mrf.mxu0  ;;  %v2269_v61 = vsel %vm2162_vm12, %v2259_v39, %v2268_v2 }
 0x1a2   : >> { %11354 = vmatmul.msk.bf16.gmra.mxu3 %vm325_vm10, %v1934_v11  ;;  %v13850_v16 = vpop.f32.mrf.mxu1 }
 0x1a3   : >> { %v2115_v21 = vadd.f32 %v2026_v26, %v1739_v23 }
 0x1a5   : >> { %11254 = vmatmul.msk.bf16.gmra.mxu2 %vm325_vm10, %v1556_v29  ;;  %v2499_v17 = vadd.f32 %v2410_v7, %v2115_v21  ;;  %v2034_v0 = vpop.f32.mrf.mxu3  ;;  %v12825_v21 = vld [vmem:[#allocation2 + $0x58] sm:$0xff] }
 0x1a6   : >> { %v1557_v7 = vrot.slane %v12825_v21, 1 }
 0x1a7   : >> { %v13848_v51 = vadd.f32 %v13811_v36, %v2499_v17  ;;  %v2570_v36 = vrot.slane %v12599_v57, 2 }
 0x1a8   : >> { %v1653_v33 = vpop.f32.mrf.mxu2 }
 0x1a9   : >> { %v1740_v28 = vadd.f32 %v1653_v33, %v13675_v42  ;;  %v2418_v26 = vpop.f32.mrf.mxu0  ;;  %v2571_v33 = vsel %vm17701_vm11, %v2568_v31, %v2570_v36 }
 0x1aa   : >> { %v13858_v17 = vpop.f32.mrf.mxu1 }
 0x1ab   : >> { %v2116_v23 = vadd.f32 %v2029_v1, %v1740_v28 }
 0x1ac   : >> { %11385 = vmatmul.msk.bf16.gmra.mxu0 %vm325_vm10, %v2269_v61  ;;  %v2273_v61 = vrot.slane %v2271_v13, 1 }
 0x1ad   : >> { %v2500_v29 = vadd.f32 %v2413_v25, %v2116_v23  ;;  %v2036_v1 = vpop.f32.mrf.mxu3  ;;  %v1558_v25 = vsel %vm1535_vm9, %v1555_v4, %v1557_v7  ;;  %v2276_v23 = vrot.slane %v2274_v40, 2  ;;  %11417 = vmatmul.msk.bf16.gmra.mxu1 %vm325_vm10, %v2571_v33  ;;  %v12600_v33 = vld [vmem:[#allocation2 + $0x70] sm:$0xff] }
 0x1af   : >> { %v13856_v11 = vadd.f32 %v13818_v41, %v2500_v29  ;;  %v1936_v41 = vsel %vm1535_vm9, %v1933_v8, %v1935_v10  ;;  %v2277_v29 = vor.u32 %v2276_v23, %v2273_v61  ;;  %v2280_v61 = vshrl.u32 %v12600_v33, 16 }
 0x1b0   : >> { %v1655_v42 = vpop.f32.mrf.mxu2  ;;  %v2283_v23 = vshll.u32 %v12600_v33, 16 }
 0x1b1   : >> { %v1741_v39 = vadd.f32 %v1655_v42, %v13684_v48  ;;  %v2420_v28 = vpop.f32.mrf.mxu0 }
 0x1b2   : >> { %11355 = vmatmul.msk.bf16.gmra.mxu3 %vm325_vm10, %v1936_v41  ;;  %v13870_v48 = vpop.f32.mrf.mxu1  ;;  %v1937_v41 = vrot.slane %v12600_v33, 1 }
 0x1b3   : >> { %v2117_v21 = vadd.f32 %v2031_v58, %v1741_v39  ;;  %v2278_v58 = vsel %vm2162_vm12, %v2268_v2, %v2277_v29 }
 0x1b5   : >> { %11255 = vmatmul.msk.bf16.gmra.mxu2 %vm325_vm10, %v1558_v25  ;;  %v2501_v57 = vadd.f32 %v2415_v5, %v2117_v21  ;;  %v2039_v40 = vpop.f32.mrf.mxu3  ;;  %v12826_v5 = vld [vmem:[#allocation2 + $0x60] sm:$0xff] }
 0x1b6   : >> { %v1559_v25 = vrot.slane %v12826_v5, 1 }
 0x1b7   : >> { %v13868_v31 = vadd.f32 %v13829_v14, %v2501_v57  ;;  %v2572_v14 = vrot.slane %v12600_v33, 2 }
 0x1b8   : >> { %v1658_v4 = vpop.f32.mrf.mxu2 }
 0x1b9   : >> { %v1742_v13 = vadd.f32 %v1658_v4, %v13692_v30  ;;  %v2423_v42 = vpop.f32.mrf.mxu0  ;;  %v2573_v4 = vsel %vm17701_vm11, %v2570_v36, %v2572_v14 }
 0x1ba   : >> { %v13878_v57 = vpop.f32.mrf.mxu1 }
 0x1bb   : >> { %v2118_v8 = vadd.f32 %v2034_v0, %v1742_v13 }
 0x1bc   : >> { %11386 = vmatmul.msk.bf16.gmra.mxu0 %vm325_vm10, %v2278_v58  ;;  %v2282_v58 = vrot.slane %v2280_v61, 1 }
 0x1bd   : >> { %v2502_v39 = vadd.f32 %v2418_v26, %v2118_v8  ;;  %v2041_v0 = vpop.f32.mrf.mxu3  ;;  %v1560_v26 = vsel %vm1535_vm9, %v1557_v7, %v1559_v25  ;;  %v2285_v8 = vrot.slane %v2283_v23, 2  ;;  %11418 = vmatmul.msk.bf16.gmra.mxu1 %vm325_vm10, %v2573_v4  ;;  %v13894_v4 = vld [vmem:[#allocation2 + $0x78] sm:$0xff] }
 0x1bf   : >> { %v13876_v21 = vadd.f32 %v13837_v56, %v2502_v39  ;;  %v1938_v56 = vsel %vm1535_vm9, %v1935_v10, %v1937_v41  ;;  %v2286_v39 = vor.u32 %v2285_v8, %v2282_v58  ;;  %v2292_v58 = vshll.u32 %v13894_v4, 16 }
 0x1c0   : >> { %v1660_v30 = vpop.f32.mrf.mxu2  ;;  %v2574_v8 = vrot.slane %v13894_v4, 2 }
 0x1c1   : >> { %v1743_v2 = vadd.f32 %v1660_v30, %v13701_v15  ;;  %v2425_v13 = vpop.f32.mrf.mxu0 }
 0x1c2   : >> { %11356 = vmatmul.msk.bf16.gmra.mxu3 %vm325_vm10, %v1938_v56  ;;  %v13890_v15 = vpop.f32.mrf.mxu1 }
 0x1c3   : >> { %v2119_v5 = vadd.f32 %v2036_v1, %v1743_v2  ;;  %v2287_v1 = vsel %vm2162_vm12, %v2277_v29, %v2286_v39 }
 0x1c5   : >> { %11256 = vmatmul.msk.bf16.gmra.mxu2 %vm325_vm10, %v1560_v26  ;;  %v2503_v33 = vadd.f32 %v2420_v28, %v2119_v5  ;;  %v2044_v23 = vpop.f32.mrf.mxu3  ;;  %v12827_v28 = vld [vmem:[#allocation2 + $0x68] sm:$0xff]  ;;  %v1939_v5 = vrot.slane %v13894_v4, 1 }
 0x1c6   : >> { %v1561_v26 = vrot.slane %v12827_v28, 1 }
 0x1c7   : >> { %v13888_v36 = vadd.f32 %v13850_v16, %v2503_v33  ;;  %v2289_v16 = vshrl.u32 %v13894_v4, 16 }
 0x1c8   : >> { %v1663_v7 = vpop.f32.mrf.mxu2 }
 0x1c9   : >> { %v1744_v61 = vadd.f32 %v1663_v7, %v13709_v27  ;;  %v2428_v30 = vpop.f32.mrf.mxu0  ;;  %v1562_v7 = vsel %vm1535_vm9, %v1559_v25, %v1561_v26  ;;  %v403_v25 = vld [vmem:[#allocation3 + $0x118] sm:$0xff] }
 0x1ca   : >> { %v13904_v29 = vpop.f32.mrf.mxu1 }
 0x1cb   : >> { %v2120_v10 = vadd.f32 %v2039_v40, %v1744_v61  ;;  %v2575_v40 = vsel %vm17701_vm11, %v2572_v14, %v2574_v8 }
 0x1cc   : >> { %11387 = vmatmul.msk.bf16.gmra.mxu0 %vm325_vm10, %v2287_v1  ;;  %v2291_v1 = vrot.slane %v2289_v16, 1  ;;  %v440_v16 = vsel %vm17827_vm7, %v403_v25, 0.0  ;;  %v12828_v25 = vld [vmem:[#allocation2 + $0x70] sm:$0xff]  ;;  %vm17702_vm7 = vsmask.f32 5376 }
 0x1cd   : >> { %v2504_v2 = vadd.f32 %v2423_v42, %v2120_v10  ;;  %v2046_v33 = vpop.f32.mrf.mxu3  ;;  %v2294_v10 = vrot.slane %v2292_v58, 2  ;;  %11419 = vmatmul.msk.bf16.gmra.mxu1 %vm325_vm10, %v2575_v40  ;;  %v1563_v35 = vrot.slane %v12828_v25, 1 }
 0x1cf   : >> { %v13901_v27 = vadd.f32 %v13858_v17, %v2504_v2  ;;  %v1940_v17 = vsel %vm1535_vm9, %v1937_v41, %v1939_v5  ;;  %v2295_v2 = vor.u32 %v2294_v10, %v2291_v1  ;;  %v476_v41 = vpack.c.bf16 %v440_v16, %v440_v16 }
 0x1d0   : >> { %v1665_v56 = vpop.f32.mrf.mxu2  ;;  %v827_v10 = vrot.slane %v13615_v49, 4 }
 0x1d1   : >> { %v1745_v42 = vadd.f32 %v1665_v56, %v13718_v59  ;;  %v2430_v61 = vpop.f32.mrf.mxu0  ;;  %v829_v1 = vshrl.u32 %v476_v41, 16 }
 0x1d2   : >> { %11357 = vmatmul.msk.bf16.gmra.mxu3 %vm325_vm10, %v1940_v17  ;;  %v13916_v59 = vpop.f32.mrf.mxu1 }
 0x1d3   : >> { %v2121_v28 = vadd.f32 %v2041_v0, %v1745_v42  ;;  %v13922_v42 = vld [vmem:[#allocation2 + $0x80] sm:$0xff]  ;;  %v831_v17 = vrot.slane %v829_v1, 6 }
 0x1d5   : >> { %11257 = vmatmul.msk.bf16.gmra.mxu2 %vm325_vm10, %v1562_v7  ;;  %v2505_v4 = vadd.f32 %v2425_v13, %v2121_v28  ;;  %v2049_v58 = vpop.f32.mrf.mxu3  ;;  %v2296_v13 = vsel %vm2162_vm12, %v2286_v39, %v2295_v2  ;;  %v2576_v39 = vrot.slane %v13922_v42, 2 }
 0x1d7   : >> { %v13914_v14 = vadd.f32 %v13870_v48, %v2505_v4  ;;  %v832_v48 = vshll.u32 %v476_v41, 16  ;;  %v2577_v41 = vsel %vm17701_vm11, %v2574_v8, %v2576_v39 }
 0x1d8   : >> { %v1668_v56 = vpop.f32.mrf.mxu2 }
 0x1d9   : >> { %17825 = vst [vmem:[#allocation49_spill] sm:$0xff] %v13914_v14  ;;  %v1746_v0 = vadd.f32 %v1668_v56, %v13726_v19  ;;  %v2433_v40 = vpop.f32.mrf.mxu0  ;;  %v834_v4 = vrot.slane %v832_v48, 7  ;;  %v2298_v19 = vshrl.u32 %v13922_v42, 16  ;;  %v2301_v56 = vshll.u32 %v13922_v42, 16 }
 0x1da   : >> { %v1564_v48 = vsel %vm1535_vm9, %v1561_v26, %v1563_v35 }
 0x1db   : >> { %v2122_v7 = vadd.f32 %v2044_v23, %v1746_v0  ;;  %v1941_v23 = vrot.slane %v13922_v42, 1  ;;  %v13933_v0 = vpop.f32.mrf.mxu1  ;;  %v835_v49 = vor.u32 %v834_v4, %v831_v17  ;;  %v2300_v14 = vrot.slane %v2298_v19, 1 }
 0x1dc   : >> { %11388 = vmatmul.msk.bf16.gmra.mxu0 %vm325_vm10, %v2296_v13 }
 0x1dd   : >> { %v2506_v28 = vadd.f32 %v2428_v30, %v2122_v7  ;;  %v2051_v7 = vpop.f32.mrf.mxu3  ;;  %v836_v1 = vsel %vm13290_vm8, %v827_v10, %v835_v49  ;;  %11420 = vmatmul.msk.bf16.gmra.mxu1 %vm325_vm10, %v2577_v41  ;;  %v837_v41 = vrot.slane %v835_v49, 4 }
 0x1de   : >> { %912 = vst.msk [vmem:[#allocation2 + $0x94] sm:$0xf] %vm271_vm3, %v836_v1 }
 0x1df   : >> { %v13930_v16 = vadd.f32 %v13878_v57, %v2506_v28  ;;  %v2303_v57 = vrot.slane %v2301_v56, 2  ;;  %v1942_v28 = vsel %vm1535_vm9, %v1939_v5, %v1941_v23 }
 0x1e0   : >> { %v1670_v30 = vpop.f32.mrf.mxu2 }
 0x1e1   : >> { %v1747_v13 = vadd.f32 %v1670_v30, %v13735_v45  ;;  %v2435_v25 = vpop.f32.mrf.mxu0  ;;  %v2304_v45 = vor.u32 %v2303_v57, %v2300_v14  ;;  %v13952_v30 = vld [vmem:[#allocation2 + $0x88] sm:$0xff]  ;;  %v12829_v14 = vld [vmem:[#allocation2 + $0x78] sm:$0xff] }
 0x1e2   : >> { %11358 = vmatmul.msk.bf16.gmra.mxu3 %vm325_vm10, %v1942_v28  ;;  %v2307_v1 = vshrl.u32 %v13952_v30, 16 }
 0x1e3   : >> { %v2123_v42 = vadd.f32 %v2046_v33, %v1747_v13  ;;  %v13948_v26 = vpop.f32.mrf.mxu1  ;;  %v2305_v33 = vsel %vm2162_vm12, %v2295_v2, %v2304_v45  ;;  %v1565_v13 = vrot.slane %v12829_v14, 1 }
 0x1e5   : >> { %11258 = vmatmul.msk.bf16.gmra.mxu2 %vm325_vm10, %v1564_v48  ;;  %v2507_v8 = vadd.f32 %v2430_v61, %v2123_v42  ;;  %v2054_v19 = vpop.f32.mrf.mxu3  ;;  %v2310_v48 = vshll.u32 %v13952_v30, 16 }
 0x1e7   : >> { %v13946_v10 = vadd.f32 %v13890_v15, %v2507_v8  ;;  %v913_v15 = vld [vmem:[#allocation2 + $0x98] sm:$0x3] }
 0x1e8   : >> { %v1673_v17 = vpop.f32.mrf.mxu2  ;;  %v914_v57 = vsel %vm13161_vm6, %v837_v41, %v913_v15 }
 0x1e9   : >> { %v1748_v4 = vadd.f32 %v1673_v17, %v13743_v12  ;;  %v2438_v56 = vpop.f32.mrf.mxu0  ;;  %v2578_v12 = vrot.slane %v13952_v30, 2  ;;  %915 = vst [vmem:[#allocation2 + $0x98] sm:$0x3] %v914_v57  ;;  %v1566_v17 = vsel %vm1535_vm9, %v1563_v35, %v1565_v13 }
 0x1eb   : >> { %v2124_v5 = vadd.f32 %v2049_v58, %v1748_v4  ;;  %v1943_v58 = vrot.slane %v13952_v30, 1  ;;  %v2579_v42 = vsel %vm17701_vm11, %v2576_v39, %v2578_v12 }
 0x1ec   : >> { %11389 = vmatmul.msk.bf16.gmra.mxu0 %vm325_vm10, %v2305_v33  ;;  %v2309_v33 = vrot.slane %v2307_v1, 1 }
 0x1ed   : >> { %v2508_v61 = vadd.f32 %v2433_v40, %v2124_v5  ;;  %v13964_v40 = vpop.f32.mrf.mxu1  ;;  %v2056_v8 = vpop.f32.mrf.mxu3  ;;  %v2312_v5 = vrot.slane %v2310_v48, 2  ;;  %11421 = vmatmul.msk.bf16.gmra.mxu1 %vm325_vm10, %v2579_v42  ;;  %v1944_v41 = vsel %vm1535_vm9, %v1941_v23, %v1943_v58  ;;  %v13980_v48 = vld [vmem:[#allocation2 + $0x90] sm:$0xff] }
 0x1ee   : >> { %v2319_v42 = vshll.u32 %v13980_v48, 16 }
 0x1ef   : >> { %v13961_v2 = vadd.f32 %v13904_v29, %v2508_v61  ;;  %v2313_v61 = vor.u32 %v2312_v5, %v2309_v33 }
 0x1f0   : >> { %v1675_v49 = vpop.f32.mrf.mxu2 }
 0x1f1   : >> { %v1749_v28 = vadd.f32 %v1675_v49, %v13752_v53  ;;  %v2440_v4 = vpop.f32.mrf.mxu0 }
 0x1f2   : >> { %11359 = vmatmul.msk.bf16.gmra.mxu3 %vm325_vm10, %v1944_v41 }
 0x1f3   : >> { %v2125_v29 = vadd.f32 %v2051_v7, %v1749_v28  ;;  %v2314_v7 = vsel %vm2162_vm12, %v2304_v45, %v2313_v61  ;;  %v2580_v28 = vrot.slane %v13980_v48, 2 }
 0x1f5   : >> { %11259 = vmatmul.msk.bf16.gmra.mxu2 %vm325_vm10, %v1566_v17  ;;  %v2509_v30 = vadd.f32 %v2435_v25, %v2125_v29  ;;  %v13976_v53 = vpop.f32.mrf.mxu1  ;;  %v2059_v15 = vpop.f32.mrf.mxu3  ;;  %v12830_v25 = vld [vmem:[#allocation2 + $0x80] sm:$0xff]  ;;  %v1945_v17 = vrot.slane %v13980_v48, 1 }
 0x1f6   : >> { %17829 = vst [vmem:[#allocation50_spill] sm:$0xff] %v13976_v53  ;;  %v1567_v49 = vrot.slane %v12830_v25, 1 }
 0x1f7   : >> { %v13974_v39 = vadd.f32 %v13916_v59, %v2509_v30  ;;  %v2316_v59 = vshrl.u32 %v13980_v48, 16  ;;  %v1810_v48 = vld [vmem:[#allocation2 + $0x98] sm:$0x1] }
 0x1f8   : >> { %v1678_v35 = vpop.f32.mrf.mxu2  ;;  %v1568_v29 = vsel %vm1535_vm9, %v1565_v13, %v1567_v49 }
 0x1f9   : >> { %v1750_v14 = vadd.f32 %v1678_v35, %v13760_v9  ;;  %v2443_v1 = vpop.f32.mrf.mxu0  ;;  %v2318_v30 = vrot.slane %v2316_v59, 1  ;;  %v2321_v35 = vrot.slane %v2319_v42, 2 }
 0x1fb   : >> { %v2126_v23 = vadd.f32 %v2054_v19, %v1750_v14  ;;  %v2581_v19 = vsel %vm17701_vm11, %v2578_v12, %v2580_v28  ;;  %v2150_v14 = vld [vmem:[#allocation2 + $0x98] sm:$0x3] }
 0x1fc   : >> { %11390 = vmatmul.msk.bf16.gmra.mxu0 %vm325_vm10, %v2314_v7  ;;  %v1946_v7 = vsel %vm1535_vm9, %v1943_v58, %v1945_v17  ;;  %v2160_v12 = vunpack.c.l.b16 %v2150_v14  ;;  %v12831_v14 = vld [vmem:[#allocation2 + $0x88] sm:$0xff] }
 0x1fd   : >> { %v2510_v57 = vadd.f32 %v2438_v56, %v2126_v23  ;;  %v13990_v45 = vpop.f32.mrf.mxu1  ;;  %v2061_v5 = vpop.f32.mrf.mxu3  ;;  %11422 = vmatmul.msk.bf16.gmra.mxu1 %vm325_vm10, %v2581_v19 }
 0x1ff   : >> { %v13987_v9 = vadd.f32 %v13933_v0, %v2510_v57  ;;  %v1892_v57 = vunpack.c.l.b16 %v1810_v48 }
 0x200   : >> { %v1680_v33 = vpop.f32.mrf.mxu2 }
 0x201   : >> { %v1751_v56 = vadd.f32 %v1680_v33, %v13769_v50  ;;  %v2445_v41 = vpop.f32.mrf.mxu0  ;;  %v2322_v50 = vor.u32 %v2321_v35, %v2318_v30  ;;  %v2161_v33 = vpack.c.b16 %v2160_v12, %v2160_v12  ;;  %v1569_v30 = vrot.slane %v12831_v14, 1 }
 0x202   : >> { %11360 = vmatmul.msk.bf16.gmra.mxu3 %vm325_vm10, %v1946_v7 }
 0x203   : >> { %v2127_v0 = vadd.f32 %v2056_v8, %v1751_v56  ;;  %v2323_v58 = vsel %vm2162_vm12, %v2313_v61, %v2322_v50  ;;  %v1911_v56 = vpack.c.b16 %v1892_v57, %v1892_v57  ;;  %v2325_v35 = vshrl.u32 %v2161_v33, 16 }
 0x204   : >> { %v2328_v7 = vshll.u32 %v2161_v33, 16 }
 0x205   : >> { %11260 = vmatmul.msk.bf16.gmra.mxu2 %vm325_vm10, %v1568_v29  ;;  %v13998_v23 = vadd.f32 %v2440_v4, %v2127_v0  ;;  %v14001_v13 = vpop.f32.mrf.mxu1  ;;  %v2064_v42 = vpop.f32.mrf.mxu3  ;;  %v2785_v29 = vld [vmem:[#allocation2 + $0x10] sm:$0xc]  ;;  %v2786_v4 = vld [vmem:[#allocation2 + $0x14] sm:$0xf]  ;;  %v1947_v12 = vrot.slane %v1911_v56, 1  ;;  %v14018_v56 = vld [vmem:[#allocation2 + $0x18] sm:$0xff] }
 0x206   : >> { %17830 = vst [vmem:[#allocation51_spill] sm:$0xff] %v14001_v13  ;;  %v2867_v48 = vunpack.c.l.b16 %v2785_v29  ;;  %v2868_v38 = vunpack.c.l.b16 %v2786_v4  ;;  %v2582_v13 = vrot.slane %v2161_v33, 2  ;;  %v2330_v14 = vrot.slane %v2328_v7, 2 }
 0x207   : >> { %v1948_v33 = vsel %vm1535_vm9, %v1945_v17, %v1947_v12  ;;  %v3183_v4 = vshrl.u32 %v14018_v56, 16 }
 0x208   : >> { %v1683_v25 = vpop.f32.mrf.mxu2  ;;  %v14014_v29 = vpack.c.b16 %v2868_v38, %v2867_v48 }
 0x209   : >> { %v1752_v59 = vadd.f32 %v1683_v25, %v13777_v6  ;;  %v2448_v8 = vpop.f32.mrf.mxu0 }
 0x20b   : >> { %v2128_v19 = vadd.f32 %v2059_v15, %v1752_v59  ;;  %v2583_v15 = vsel %vm17701_vm11, %v2580_v28, %v2582_v13  ;;  %v1570_v59 = vsel %vm1535_vm9, %v1567_v49, %v1569_v30  ;;  %v3175_v49 = vshrl.u32 %v14014_v29, 16 }
 0x20c   : >> { %11391 = vmatmul.msk.bf16.gmra.mxu0 %vm325_vm10, %v2323_v58  ;;  %v3178_v13 = vshll.u32 %v14014_v29, 16 }
 0x20d   : >> { %v2512_v0 = vadd.f32 %v2443_v1, %v2128_v19  ;;  %v14009_v25 = vpop.f32.mrf.mxu1  ;;  %v2066_v57 = vpop.f32.mrf.mxu3  ;;  %v2327_v19 = vrot.slane %v2325_v35, 1  ;;  %11423 = vmatmul.msk.bf16.gmra.mxu1 %vm325_vm10, %v2583_v15  ;;  %v3177_v12 = vrot.slane %v3175_v49, 2 }
 0x20e   : >> { %v3180_v15 = vrot.slane %v3178_v13, 3 }
 0x20f   : >> { %v14007_v6 = vadd.f32 %v13964_v40, %v2512_v0  ;;  %v3186_v0 = vshll.u32 %v14018_v56, 16 }
 0x210   : >> { %v1685_v61 = vpop.f32.mrf.mxu2 }
 0x211   : >> { %v1753_v1 = vadd.f32 %v1685_v61, %v13786_v47  ;;  %v2450_v58 = vpop.f32.mrf.mxu0  ;;  %v2331_v47 = vor.u32 %v2330_v14, %v2327_v19  ;;  %v3545_v19 = vld [vmem:[#allocation2 + $0x10] sm:$0x8] }
 0x212   : >> { %11361 = vmatmul.msk.bf16.gmra.mxu3 %vm325_vm10, %v1948_v33  ;;  %v3555_v33 = vunpack.c.l.b16 %v3545_v19 }
 0x213   : >> { %v2129_v40 = vadd.f32 %v2061_v5, %v1753_v1  ;;  %v3185_v1 = vrot.slane %v3183_v4, 2 }
 0x214   : >> { %v3556_v13 = vpack.c.b16 %v2868_v38, %v3555_v33 }
 0x215   : >> { %11261 = vmatmul.msk.bf16.gmra.mxu2 %vm325_vm10, %v1570_v59  ;;  %v14021_v28 = vadd.f32 %v2445_v41, %v2129_v40  ;;  %v14028_v5 = vpop.f32.mrf.mxu1  ;;  %v2069_v7 = vpop.f32.mrf.mxu3  ;;  %v2332_v41 = vsel %vm2162_vm12, %v2322_v50, %v2331_v47  ;;  %v3188_v59 = vrot.slane %v3186_v0, 3  ;;  %v1571_v40 = vrot.slane %v13644_v55, 1  ;;  %v14042_v0 = vld [vmem:[#allocation2 + $0x20] sm:$0xff] }
 0x216   : >> { %17831 = vst [vmem:[#allocation52_spill] sm:$0xff] %v14028_v5 }
 0x217   : >> { %v1572_v49 = vsel %vm1535_vm9, %v1569_v30, %v1571_v40  ;;  %v2924_v40 = vrot.slane %v14018_v56, 2 }
 0x218   : >> { %v1688_v17 = vpop.f32.mrf.mxu2 }
 0x219   : >> { %v1754_v35 = vadd.f32 %v1688_v17, %v13794_v3  ;;  %v2453_v48 = vpop.f32.mrf.mxu0  ;;  %v3181_v3 = vor.u32 %v3180_v15, %v3177_v12  ;;  %v3189_v17 = vor.u32 %v3188_v59, %v3185_v1 }
 0x21b   : >> { %v2130_v61 = vadd.f32 %v2064_v42, %v1754_v35  ;;  %v3190_v55 = vsel %vm17702_vm7, %v3181_v3, %v3189_v17  ;;  %v3558_v35 = vrot.slane %v3556_v13, 3 }
 0x21c   : >> { %11392 = vmatmul.msk.bf16.gmra.mxu0 %vm325_vm10, %v2332_v41  ;;  %v3559_v41 = vrot.slane %v14018_v56, 3 }
 0x21d   : >> { %v2514_v14 = vadd.f32 %v2448_v8, %v2130_v61  ;;  %v14037_v50 = vpop.f32.mrf.mxu1  ;;  %v2071_v47 = vpop.f32.mrf.mxu3 }
 0x21e   : >> { %v3560_v61 = vsel %vm17700_vm5, %v3558_v35, %v3559_v41 }
 0x21f   : >> { %v14035_v5 = vadd.f32 %v13990_v45, %v2514_v14  ;;  %v2923_v14 = vrot.slane %v14014_v29, 2  ;;  %v12653_v29 = vld [vmem:[%s13278_s27 + $0xa0] sm:$0xff] }
 0x220   : >> { %v1690_v53 = vpop.f32.mrf.mxu2  ;;  %4749 = vmatpush.bf16.msra.mxu1 %v12653_v29 }
 0x221   : >> { %v1755_v42 = vadd.f32 %v1690_v53, %v13805_v37  ;;  %v2455_v8 = vpop.f32.mrf.mxu0  ;;  %v3192_v37 = vshrl.u32 %v14042_v0, 16  ;;  %v3195_v53 = vshll.u32 %v14042_v0, 16 }
 0x222   : >> { %11536 = vmatmul.msk.bf16.vlgmr.msra.gmra.mxu3 %vm325_vm10, %v3190_v55  ;;  %v14064_v55 = vld [vmem:[#allocation2 + $0x28] sm:$0xff] }
 0x223   : >> { %v2131_v4 = vadd.f32 %v2066_v57, %v1755_v42  ;;  %v3194_v1 = vrot.slane %v3192_v37, 2  ;;  %v3197_v59 = vrot.slane %v3195_v53, 3  ;;  %v3201_v56 = vshrl.u32 %v14064_v55, 16 }
 0x224   : >> { %v3204_v37 = vshll.u32 %v14064_v55, 16 }
 0x225   : >> { %11262 = vmatmul.msk.bf16.gmra.mxu2 %vm325_vm10, %v1572_v49  ;;  %v14045_v45 = vadd.f32 %v2450_v58, %v2131_v4  ;;  %v2074_v57 = vpop.f32.mrf.mxu3  ;;  %v14053_v15 = vpop.f32.mrf.mxu1 }
 0x228   : >> { %v1693_v38 = vpop.f32.mrf.mxu2 }
 0x229   : >> { %v1756_v30 = vadd.f32 %v1693_v38, %v13672_v63  ;;  %v2458_v12 = vpop.f32.mrf.mxu0  ;;  %v3198_v63 = vor.u32 %v3197_v59, %v3194_v1  ;;  %v2926_v59 = vrot.slane %v14042_v0, 2 }
 0x22b   : >> { %v2132_v58 = vadd.f32 %v2069_v7, %v1756_v30  ;;  %v2925_v7 = vsel %vm17701_vm11, %v2923_v14, %v2924_v40 }
 0x22c   : >> { %11567 = vmatmul.msk.bf16.vlgmr.msra.gmra.mxu0 %vm325_vm10, %v3560_v61 }
 0x22d   : >> { %v2516_v19 = vadd.f32 %v2453_v48, %v2132_v58  ;;  %v2076_v49 = vpop.f32.mrf.mxu3  ;;  %v3199_v48 = vsel %vm17702_vm7, %v3189_v17, %v3198_v63  ;;  %v2714_v35 = vpop.f32.mrf.mxu1  ;;  %v3206_v58 = vrot.slane %v3204_v37, 3 }
 0x22f   : >> { %v14059_v33 = vadd.f32 %v14009_v25, %v2516_v19 }
 0x230   : >> { %v1695_v3 = vpop.f32.mrf.mxu2 }
 0x231   : >> { %v1757_v42 = vadd.f32 %v1695_v3, %v13680_v32  ;;  %v2460_v13 = vpop.f32.mrf.mxu0  ;;  %v3561_v32 = vrot.slane %v14042_v0, 3 }
 0x232   : >> { %11537 = vmatmul.msk.bf16.gmra.mxu3 %vm325_vm10, %v3199_v48  ;;  %v14092_v48 = vld [vmem:[#allocation2 + $0x30] sm:$0xff] }
 0x233   : >> { %v2133_v4 = vadd.f32 %v2071_v47, %v1757_v42  ;;  %v3562_v30 = vsel %vm17700_vm5, %v3559_v41, %v3561_v32  ;;  %v2927_v42 = vsel %vm17701_vm11, %v2924_v40, %v2926_v59  ;;  %v3210_v29 = vshrl.u32 %v14092_v48, 16 }
 0x235   : >> { %11505 = vmatmul.msk.bf16.vlgmr.msra.gmra.mxu2 %vm325_vm10, %v2925_v7  ;;  %v14068_v25 = vadd.f32 %v2455_v8, %v2133_v4  ;;  %v2079_v53 = vpop.f32.mrf.mxu3  ;;  %v3203_v8 = vrot.slane %v3201_v56, 2  ;;  %v14084_v19 = vpop.f32.mrf.mxu1 }
 0x237   : >> { %v3207_v14 = vor.u32 %v3206_v58, %v3203_v8  ;;  %v2928_v8 = vrot.slane %v14064_v55, 2 }
 0x238   : >> { %v1698_v47 = vpop.f32.mrf.mxu2 }
 0x239   : >> { %v1758_v17 = vadd.f32 %v1698_v47, %v13689_v20  ;;  %v2463_v38 = vpop.f32.mrf.mxu0 }
 0x23b   : >> { %v2134_v61 = vadd.f32 %v2074_v57, %v1758_v17 }
 0x23c   : >> { %11568 = vmatmul.msk.bf16.gmra.mxu0 %vm325_vm10, %v3562_v30  ;;  %v3212_v30 = vrot.slane %v3210_v29, 2 }
 0x23d   : >> { %v2518_v1 = vadd.f32 %v2458_v12, %v2134_v61  ;;  %v2081_v3 = vpop.f32.mrf.mxu3  ;;  %v3208_v12 = vsel %vm17702_vm7, %v3198_v63, %v3207_v14  ;;  %v2719_v40 = vpop.f32.mrf.mxu1 }
 0x23f   : >> { %v14087_v20 = vadd.f32 %v14037_v50, %v2518_v1  ;;  %v3563_v50 = vrot.slane %v14064_v55, 3 }
 0x240   : >> { %v1700_v41 = vpop.f32.mrf.mxu2 }
 0x241   : >> { %v1759_v57 = vadd.f32 %v1700_v41, %v13697_v52  ;;  %v2465_v7 = vpop.f32.mrf.mxu0  ;;  %v3213_v52 = vshll.u32 %v14092_v48, 16  ;;  %v3564_v47 = vsel %vm17700_vm5, %v3561_v32, %v3563_v50 }
 0x242   : >> { %11538 = vmatmul.msk.bf16.gmra.mxu3 %vm325_vm10, %v3208_v12 }
 0x243   : >> { %v2135_v4 = vadd.f32 %v2076_v49, %v1759_v57 }
 0x245   : >> { %11506 = vmatmul.msk.bf16.gmra.mxu2 %vm325_vm10, %v2927_v42  ;;  %v14095_v0 = vadd.f32 %v2460_v13, %v2135_v4  ;;  %v2084_v37 = vpop.f32.mrf.mxu3  ;;  %v3215_v13 = vrot.slane %v3213_v52, 3  ;;  %v14109_v12 = vpop.f32.mrf.mxu1 }
 0x247   : >> { %v3216_v1 = vor.u32 %v3215_v13, %v3212_v30  ;;  %v2930_v13 = vrot.slane %v14092_v48, 2 }
 0x248   : >> { %v1703_v56 = vpop.f32.mrf.mxu2 }
 0x249   : >> { %v1760_v49 = vadd.f32 %v1703_v56, %v13706_v22  ;;  %v2468_v63 = vpop.f32.mrf.mxu0  ;;  %v2929_v22 = vsel %vm17701_vm11, %v2926_v59, %v2928_v8 }
 0x24b   : >> { %v2136_v17 = vadd.f32 %v2079_v53, %v1760_v49  ;;  %v3217_v53 = vsel %vm17702_vm7, %v3207_v14, %v3216_v1 }
 0x24c   : >> { %11569 = vmatmul.msk.bf16.gmra.mxu0 %vm325_vm10, %v3564_v47 }
 0x24d   : >> { %v2520_v61 = vadd.f32 %v2463_v38, %v2136_v17  ;;  %v2086_v42 = vpop.f32.mrf.mxu3  ;;  %v14112_v38 = vld [vmem:[#allocation2 + $0x38] sm:$0xff] }
 0x24e   : >> { %v3222_v59 = vshll.u32 %v14112_v38, 16 }
 0x24f   : >> { %v14105_v58 = vadd.f32 %v2714_v35, %v2520_v61  ;;  %v3565_v35 = vrot.slane %v14092_v48, 3  ;;  %v3567_v48 = vrot.slane %v14112_v38, 3 }
 0x250   : >> { %v1705_v41 = vpop.f32.mrf.mxu2  ;;  %v3224_v17 = vrot.slane %v3222_v59, 3 }
 0x251   : >> { %v1761_v57 = vadd.f32 %v1705_v41, %v13714_v46  ;;  %v2470_v4 = vpop.f32.mrf.mxu0  ;;  %v3219_v46 = vshrl.u32 %v14112_v38, 16  ;;  %v3566_v14 = vsel %vm17700_vm5, %v3563_v50, %v3565_v35 }
 0x252   : >> { %11539 = vmatmul.msk.bf16.gmra.mxu3 %vm325_vm10, %v3217_v53 }
 0x253   : >> { %v2137_v32 = vadd.f32 %v2081_v3, %v1761_v57  ;;  %v3221_v47 = vrot.slane %v3219_v46, 2  ;;  %v14130_v46 = vld [vmem:[#allocation2 + $0x40] sm:$0xff] }
 0x255   : >> { %11507 = vmatmul.msk.bf16.gmra.mxu2 %vm325_vm10, %v2929_v22  ;;  %v14115_v55 = vadd.f32 %v2465_v7, %v2137_v32  ;;  %v2089_v3 = vpop.f32.mrf.mxu3  ;;  %v2724_v7 = vpop.f32.mrf.mxu1  ;;  %v3225_v41 = vor.u32 %v3224_v17, %v3221_v47  ;;  %v2931_v32 = vsel %vm17701_vm11, %v2928_v8, %v2930_v13  ;;  %v3231_v8 = vshll.u32 %v14130_v46, 16 }
 0x256   : >> { %v2932_v17 = vrot.slane %v14112_v38, 2  ;;  %v3569_v38 = vrot.slane %v14130_v46, 3 }
 0x258   : >> { %v1708_v29 = vpop.f32.mrf.mxu2 }
 0x259   : >> { %v1762_v52 = vadd.f32 %v1708_v29, %v13723_v54  ;;  %v2473_v56 = vpop.f32.mrf.mxu0 }
 0x25b   : >> { %v2138_v49 = vadd.f32 %v2084_v37, %v1762_v52  ;;  %v3226_v37 = vsel %vm17702_vm7, %v3216_v1, %v3225_v41  ;;  %v3568_v52 = vsel %vm17700_vm5, %v3565_v35, %v3567_v48 }
 0x25c   : >> { %11570 = vmatmul.msk.bf16.gmra.mxu0 %vm325_vm10, %v3566_v14 }
 0x25d   : >> { %v2522_v30 = vadd.f32 %v2468_v63, %v2138_v49  ;;  %v2091_v54 = vpop.f32.mrf.mxu3  ;;  %v3233_v49 = vrot.slane %v3231_v8, 3 }
 0x25f   : >> { %v14125_v61 = vadd.f32 %v2719_v40, %v2522_v30  ;;  %v14137_v40 = vpop.f32.mrf.mxu1 }
 0x260   : >> { %v1710_v57 = vpop.f32.mrf.mxu2  ;;  %17832 = vst [vmem:[#allocation53_spill] sm:$0xff] %v14137_v40 }
 0x261   : >> { %v1763_v22 = vadd.f32 %v1710_v57, %v13731_v60  ;;  %v2475_v53 = vpop.f32.mrf.mxu0  ;;  %v3228_v60 = vshrl.u32 %v14130_v46, 16 }
 0x262   : >> { %11540 = vmatmul.msk.bf16.gmra.mxu3 %vm325_vm10, %v3226_v37  ;;  %v2933_v37 = vsel %vm17701_vm11, %v2930_v13, %v2932_v17 }
 0x263   : >> { %v2139_v50 = vadd.f32 %v2086_v42, %v1763_v22 }
 0x265   : >> { %11508 = vmatmul.msk.bf16.gmra.mxu2 %vm325_vm10, %v2931_v32  ;;  %v14133_v63 = vadd.f32 %v2470_v4, %v2139_v50  ;;  %v2094_v1 = vpop.f32.mrf.mxu3  ;;  %v3230_v4 = vrot.slane %v3228_v60, 2  ;;  %v14150_v60 = vld [vmem:[#allocation2 + $0x48] sm:$0xff] }
 0x267   : >> { %v3234_v57 = vor.u32 %v3233_v49, %v3230_v4  ;;  %v2729_v32 = vpop.f32.mrf.mxu1 }
 0x268   : >> { %v1713_v59 = vpop.f32.mrf.mxu2 }
 0x269   : >> { %v1764_v42 = vadd.f32 %v1713_v59, %v13740_v34  ;;  %v2478_v29 = vpop.f32.mrf.mxu0 }
 0x26b   : >> { %v2140_v14 = vadd.f32 %v2089_v3, %v1764_v42  ;;  %v3235_v3 = vsel %vm17702_vm7, %v3225_v41, %v3234_v57  ;;  %v3570_v41 = vsel %vm17700_vm5, %v3567_v48, %v3569_v38 }
 0x26c   : >> { %11571 = vmatmul.msk.bf16.gmra.mxu0 %vm325_vm10, %v3568_v52 }
 0x26d   : >> { %v2524_v47 = vadd.f32 %v2473_v56, %v2140_v14  ;;  %v2096_v34 = vpop.f32.mrf.mxu3 }
 0x26f   : >> { %v14145_v30 = vadd.f32 %v2724_v7, %v2524_v47  ;;  %v3237_v7 = vshrl.u32 %v14150_v60, 16  ;;  %v14161_v52 = vpop.f32.mrf.mxu1  ;;  %v2934_v47 = vrot.slane %v14130_v46, 2  ;;  %v3571_v46 = vrot.slane %v14150_v60, 3 }
 0x270   : >> { %v1715_v22 = vpop.f32.mrf.mxu2  ;;  %17835 = vst [vmem:[#allocation56_spill] sm:$0xff] %v14161_v52  ;;  %v17841_v52 = vld [vmem:[#allocation44_spill] sm:$0xff] }
 0x271   : >> { %17833 = vst [vmem:[#allocation54_spill] sm:$0xff] %v14145_v30  ;;  %v1765_v50 = vadd.f32 %v1715_v22, %v13748_v43  ;;  %v2480_v59 = vpop.f32.mrf.mxu0  ;;  %v3240_v43 = vshll.u32 %v14150_v60, 16 }
 0x272   : >> { %11541 = vmatmul.msk.bf16.gmra.mxu3 %vm325_vm10, %v3235_v3  ;;  %v2935_v3 = vsel %vm17701_vm11, %v2932_v17, %v2934_v47 }
 0x273   : >> { %v2141_v35 = vadd.f32 %v2091_v54, %v1765_v50  ;;  %v3242_v4 = vrot.slane %v3240_v43, 3 }
 0x275   : >> { %11509 = vmatmul.msk.bf16.gmra.mxu2 %vm325_vm10, %v2933_v37  ;;  %v14153_v56 = vadd.f32 %v2475_v53, %v2141_v35  ;;  %v2099_v54 = vpop.f32.mrf.mxu3  ;;  %v3239_v53 = vrot.slane %v3237_v7, 2  ;;  %v14170_v7 = vld [vmem:[#allocation2 + $0x50] sm:$0xff] }
 0x277   : >> { %17834 = vst [vmem:[#allocation55_spill] sm:$0xff] %v14153_v56  ;;  %v3243_v50 = vor.u32 %v3242_v4, %v3239_v53 }
 0x278   : >> { %v1718_v8 = vpop.f32.mrf.mxu2 }
 0x279   : >> { %v1766_v13 = vadd.f32 %v1718_v8, %v13757_v18  ;;  %v2483_v42 = vpop.f32.mrf.mxu0 }
 0x27b   : >> { %v2142_v14 = vadd.f32 %v2094_v1, %v1766_v13  ;;  %v3244_v1 = vsel %vm17702_vm7, %v3234_v57, %v3243_v50  ;;  %v17838_v13 = vld [vmem:[#allocation43_spill] sm:$0xff] }
 0x27c   : >> { %11572 = vmatmul.msk.bf16.gmra.mxu0 %vm325_vm10, %v3570_v41 }
 0x27d   : >> { %v2526_v49 = vadd.f32 %v2478_v29, %v2142_v14  ;;  %v2101_v35 = vpop.f32.mrf.mxu3  ;;  %v2734_v29 = vpop.f32.mrf.mxu1  ;;  %v3572_v14 = vsel %vm17700_vm5, %v3569_v38, %v3571_v46 }
 0x27f   : >> { %v14165_v22 = vadd.f32 %v2729_v32, %v2526_v49  ;;  %v3249_v32 = vshll.u32 %v14170_v7, 16 }
 0x280   : >> { %v1720_v37 = vpop.f32.mrf.mxu2 }
 0x281   : >> { %17836 = vst [vmem:[#allocation57_spill] sm:$0xff] %v14165_v22  ;;  %v1767_v18 = vadd.f32 %v1720_v37, %v13765_v62  ;;  %v2485_v48 = vpop.f32.mrf.mxu0  ;;  %v3246_v62 = vshrl.u32 %v14170_v7, 16  ;;  %v3251_v49 = vrot.slane %v3249_v32, 3  ;;  %v2936_v37 = vrot.slane %v14150_v60, 2 }
 0x282   : >> { %11542 = vmatmul.msk.bf16.gmra.mxu3 %vm325_vm10, %v3244_v1 }
 0x283   : >> { %v2143_v8 = vadd.f32 %v2096_v34, %v1767_v18  ;;  %v3248_v4 = vrot.slane %v3246_v62, 2 }
 0x285   : >> { %11510 = vmatmul.msk.bf16.gmra.mxu2 %vm325_vm10, %v2935_v3  ;;  %v14173_v43 = vadd.f32 %v2480_v59, %v2143_v8  ;;  %v2104_v41 = vpop.f32.mrf.mxu3  ;;  %v14183_v18 = vpop.f32.mrf.mxu1  ;;  %v3252_v8 = vor.u32 %v3251_v49, %v3248_v4 }
 0x286   : >> { %17839 = vst [vmem:[#allocation43_spill] sm:$0xff] %v14183_v18  ;;  %v17845_v18 = vld [vmem:[#allocation46_spill] sm:$0xff] }
 0x287   : >> { %17837 = vst [vmem:[#allocation58_spill] sm:$0xff] %v14173_v43  ;;  %v2937_v43 = vsel %vm17701_vm11, %v2934_v47, %v2936_v37  ;;  %v3253_v62 = vsel %vm17702_vm7, %v3243_v50, %v3252_v8 }
 0x288   : >> { %v1723_v17 = vpop.f32.mrf.mxu2 }
 0x289   : >> { %v1768_v34 = vadd.f32 %v1723_v17, %v17838_v13  ;;  %v2488_v57 = vpop.f32.mrf.mxu0 }
 0x28b   : >> { %v2144_v53 = vadd.f32 %v2099_v54, %v1768_v34 }
 0x28c   : >> { %11573 = vmatmul.msk.bf16.gmra.mxu0 %vm325_vm10, %v3572_v14  ;;  %v17843_v14 = vld [vmem:[#allocation45_spill] sm:$0xff] }
 0x28d   : >> { %v2528_v59 = vadd.f32 %v2483_v42, %v2144_v53  ;;  %v2106_v13 = vpop.f32.mrf.mxu3  ;;  %v14190_v42 = vld [vmem:[#allocation2 + $0x58] sm:$0xff]  ;;  %v2739_v47 = vpop.f32.mrf.mxu1 }
 0x28e   : >> { %v3255_v32 = vshrl.u32 %v14190_v42, 16 }
 0x28f   : >> { %v14185_v3 = vadd.f32 %v2734_v29, %v2528_v59  ;;  %v3573_v29 = vrot.slane %v14170_v7, 3 }
 0x290   : >> { %v1725_v1 = vpop.f32.mrf.mxu2 }
 0x291   : >> { %17840 = vst [vmem:[#allocation59_spill] sm:$0xff] %v14185_v3  ;;  %v1769_v17 = vadd.f32 %v1725_v1, %v17841_v52  ;;  %v2490_v38 = vpop.f32.mrf.mxu0  ;;  %v3258_v52 = vshll.u32 %v14190_v42, 16  ;;  %v3574_v4 = vsel %vm17700_vm5, %v3571_v46, %v3573_v29  ;;  %v2938_v1 = vrot.slane %v14170_v7, 2 }
 0x292   : >> { %11543 = vmatmul.msk.bf16.gmra.mxu3 %vm325_vm10, %v3253_v62 }
 0x293   : >> { %v2145_v54 = vadd.f32 %v2101_v35, %v1769_v17 }
 0x295   : >> { %11511 = vmatmul.msk.bf16.gmra.mxu2 %vm325_vm10, %v2937_v43  ;;  %v14193_v60 = vadd.f32 %v2485_v48, %v2145_v54  ;;  %v2109_v53 = vpop.f32.mrf.mxu3  ;;  %v3257_v43 = vrot.slane %v3255_v32, 2  ;;  %v3260_v48 = vrot.slane %v3258_v52, 3  ;;  %v3575_v52 = vrot.slane %v14190_v42, 3 }
 0x297   : >> { %17842 = vst [vmem:[#allocation44_spill] sm:$0xff] %v14193_v60  ;;  %v3261_v54 = vor.u32 %v3260_v48, %v3257_v43 }
 0x298   : >> { %v1728_v34 = vpop.f32.mrf.mxu2 }
 0x299   : >> { %v1770_v35 = vadd.f32 %v1728_v34, %v17843_v14  ;;  %v2493_v50 = vpop.f32.mrf.mxu0  ;;  %v2939_v34 = vsel %vm17701_vm11, %v2936_v37, %v2938_v1  ;;  %v14207_v14 = vpop.f32.mrf.mxu1  ;;  %v3262_v32 = vsel %vm17702_vm7, %v3252_v8, %v3261_v54  ;;  %v3576_v8 = vsel %vm17700_vm5, %v3573_v29, %v3575_v52 }
 0x29a   : >> { %17846 = vst [vmem:[#allocation46_spill] sm:$0xff] %v14207_v14  ;;  %v17850_v14 = vld [vmem:[#allocation48_spill] sm:$0xff] }
 0x29b   : >> { %v2146_v49 = vadd.f32 %v2104_v41, %v1770_v35  ;;  %v17848_v35 = vld [vmem:[#allocation47_spill] sm:$0xff] }
 0x29c   : >> { %11574 = vmatmul.msk.bf16.gmra.mxu0 %vm325_vm10, %v3574_v4 }
 0x29d   : >> { %v2530_v59 = vadd.f32 %v2488_v57, %v2146_v49  ;;  %v2111_v3 = vpop.f32.mrf.mxu3  ;;  %v14210_v57 = vld [vmem:[#allocation2 + $0x60] sm:$0xff] }
 0x29e   : >> { %v3267_v37 = vshll.u32 %v14210_v57, 16 }
 0x29f   : >> { %v14203_v17 = vadd.f32 %v2739_v47, %v2530_v59 }
 0x2a0   : >> { %v1730_v62 = vpop.f32.mrf.mxu2  ;;  %v3269_v48 = vrot.slane %v3267_v37, 3 }
 0x2a1   : >> { %17844 = vst [vmem:[#allocation45_spill] sm:$0xff] %v14203_v17  ;;  %v1771_v60 = vadd.f32 %v1730_v62, %v17845_v18  ;;  %v2495_v46 = vpop.f32.mrf.mxu0  ;;  %v3264_v18 = vshrl.u32 %v14210_v57, 16  ;;  %v2940_v62 = vrot.slane %v14190_v42, 2  ;;  %v3577_v42 = vrot.slane %v14210_v57, 3 }
 0x2a2   : >> { %11544 = vmatmul.msk.bf16.gmra.mxu3 %vm325_vm10, %v3262_v32 }
 0x2a3   : >> { %v2147_v41 = vadd.f32 %v2106_v13, %v1771_v60  ;;  %v3266_v43 = vrot.slane %v3264_v18, 2  ;;  %v14228_v18 = vld [vmem:[#allocation2 + $0x68] sm:$0xff] }
 0x2a4   : >> { %v3276_v37 = vshll.u32 %v14228_v18, 16 }
 0x2a5   : >> { %11512 = vmatmul.msk.bf16.gmra.mxu2 %vm325_vm10, %v2939_v34  ;;  %v14213_v7 = vadd.f32 %v2490_v38, %v2147_v41  ;;  %v3419_v13 = vpop.f32.mrf.mxu3  ;;  %v2744_v38 = vpop.f32.mrf.mxu1  ;;  %v3270_v41 = vor.u32 %v3269_v48, %v3266_v43 }
 0x2a6   : >> { %v3278_v43 = vrot.slane %v3276_v37, 3 }
 0x2a7   : >> { %17847 = vst [vmem:[#allocation60_spill] sm:$0xff] %v14213_v7 }
 0x2a8   : >> { %v1733_v47 = vpop.f32.mrf.mxu2 }
 0x2a9   : >> { %v1772_v4 = vadd.f32 %v1733_v47, %v17848_v35  ;;  %v3670_v60 = vpop.f32.mrf.mxu0  ;;  %v2941_v35 = vsel %vm17701_vm11, %v2938_v1, %v2940_v62 }
 0x2ab   : >> { %v2148_v49 = vadd.f32 %v2109_v53, %v1772_v4  ;;  %v3271_v53 = vsel %vm17702_vm7, %v3261_v54, %v3270_v41  ;;  %v3578_v54 = vsel %vm17700_vm5, %v3575_v52, %v3577_v42 }
 0x2ac   : >> { %11575 = vmatmul.msk.bf16.gmra.mxu0 %vm325_vm10, %v3576_v8 }
 0x2ad   : >> { %v2532_v59 = vadd.f32 %v2493_v50, %v2148_v49  ;;  %v3421_v47 = vpop.f32.mrf.mxu3  ;;  %v14240_v49 = vld [vmem:[%s14080_s5] ss:$0 sm:$0xff] }
 0x2af   : >> { %v14223_v34 = vadd.f32 %v2744_v38, %v2532_v59  ;;  %v2942_v38 = vrot.slane %v14210_v57, 2  ;;  %v14253_v57 = vld [vmem:[#allocation2 + $0x70] sm:$0xff] }
 0x2b0   : >> { %v1735_v32 = vpop.f32.mrf.mxu2 }
 0x2b1   : >> { %17849 = vst [vmem:[#allocation47_spill] sm:$0xff] %v14223_v34  ;;  %v1773_v7 = vadd.f32 %v1735_v32, %v17850_v14  ;;  %v3672_v17 = vpop.f32.mrf.mxu0  ;;  %v3273_v14 = vshrl.u32 %v14228_v18, 16  ;;  %v2943_v52 = vsel %vm17701_vm11, %v2940_v62, %v2942_v38 }
 0x2b2   : >> { %11545 = vmatmul.msk.bf16.gmra.mxu3 %vm325_vm10, %v3271_v53 }
 0x2b3   : >> { %v2149_v29 = vadd.f32 %v2111_v3, %v1773_v7 }
 0x2b5   : >> { %11513 = vmatmul.msk.bf16.gmra.mxu2 %vm325_vm10, %v2941_v35  ;;  %v14231_v50 = vadd.f32 %v2495_v46, %v2149_v29  ;;  %v3424_v3 = vpop.f32.mrf.mxu3  ;;  %v3275_v46 = vrot.slane %v3273_v14, 2 }
 0x2b7   : >> { %17851 = vst [vmem:[#allocation48_spill] sm:$0xff] %v14231_v50  ;;  %v14245_v32 = vor.u32 %v3278_v43, %v3275_v46  ;;  %v3282_v43 = vshrl.u32 %v14253_v57, 16 }
 0x2b8   : >> { %v3035_v1 = vpop.f32.mrf.mxu2 }
 0x2b9   : >> { %v3125_v4 = vadd.f32 %v3035_v1, %v13835_v24  ;;  %v3675_v7 = vpop.f32.mrf.mxu0  ;;  %v3280_v37 = vsel %vm17702_vm7, %v3270_v41, %v14245_v32 }
 0x2bb   : >> { %v3509_v8 = vadd.f32 %v3419_v13, %v3125_v4 }
 0x2bc   : >> { %11576 = vmatmul.msk.bf16.gmra.mxu0 %vm325_vm10, %v3578_v54 }
 0x2bd   : >> { %v3760_v48 = vadd.f32 %v3670_v60, %v3509_v8  ;;  %v3426_v53 = vpop.f32.mrf.mxu3 }
 0x2bf   : >> { %v3801_v59 = vadd.f32 %v14240_v49, %v3760_v48 }
 0x2c0   : >> { %v3037_v35 = vpop.f32.mrf.mxu2 }
 0x2c1   : >> { %v3837_v24 = vmax.f32 %v3801_v59, 0.0  ;;  %v3126_v29 = vadd.f32 %v3037_v35, %v13848_v51  ;;  %v3677_v13 = vpop.f32.mrf.mxu0  ;;  %v3579_v51 = vrot.slane %v14228_v18, 3 }
 0x2c2   : >> { %11546 = vmatmul.msk.bf16.gmra.mxu3 %vm325_vm10, %v3280_v37 }
 0x2c3   : >> { %v3874_v14 = vsel %vm235_vm0, %v3837_v24, 0.0  ;;  %v3510_v60 = vadd.f32 %v3421_v47, %v3126_v29  ;;  %v3285_v47 = vshll.u32 %v14253_v57, 16  ;;  %v3580_v1 = vsel %vm17700_vm5, %v3577_v42, %v3579_v51 }
 0x2c4   : >> { %v3910_v4 = vpack.c.bf16 %v3874_v14, %v3874_v14  ;;  %v2944_v42 = vrot.slane %v14228_v18, 2 }
 0x2c5   : >> { %v3761_v54 = vadd.f32 %v3672_v17, %v3510_v60  ;;  %11514 = vmatmul.msk.bf16.gmra.mxu2 %vm325_vm10, %v2943_v52  ;;  %v14262_v24 = vpop.f32.mrf.mxu3 }
 0x2c6   : >> { %v3947_v8 = vshrl.u32 %v3910_v4, 16  ;;  %v3950_v46 = vshll.u32 %v3910_v4, 16  ;;  %v3284_v4 = vrot.slane %v3282_v43, 2 }
 0x2c7   : >> { %v3802_v62 = vadd.f32 %v14240_v49, %v3761_v54  ;;  %v3287_v54 = vrot.slane %v3285_v47, 3 }
 0x2c8   : >> { %v3949_v48 = vrot.slane %v3947_v8, 6  ;;  %v3952_v41 = vrot.slane %v3950_v46, 7  ;;  %v3040_v59 = vpop.f32.mrf.mxu2  ;;  %v12832_v8 = vld [vmem:[#allocation2 + $0x8] sm:$0xe] }
 0x2c9   : >> { %v3838_v35 = vmax.f32 %v3802_v62, 0.0  ;;  %v3127_v17 = vadd.f32 %v3040_v59, %v13856_v11  ;;  %v14264_v52 = vpop.f32.mrf.mxu0 }
 0x2ca   : >> { %v3953_v29 = vor.u32 %v3952_v41, %v3949_v48  ;;  %v12652_v48 = vld [vmem:[%s13278_s27 + $0x98] sm:$0xff] }
 0x2cb   : >> { %v3875_v60 = vsel %vm17752_vm1, %v3838_v35, 0.0  ;;  %v3511_v37 = vadd.f32 %v3424_v3, %v3127_v17  ;;  %v12656_v41 = vld [vmem:[%s13278_s27 + $0xb8] sm:$0xff]  ;;  %4895 = vmatpush.bf16.msrb.mxu2 %v12652_v48  ;;  %v14278_v3 = vor.u32 %v3287_v54, %v3284_v4  ;;  %v12777_v4 = vld [vmem:[#allocation2] sm:$0xff]  }
 0x2cc   : >> { %v4342_v11 = vsel %vm13167_vm4, %v3953_v29, %v12832_v8  ;;  %v3911_v62 = vpack.c.bf16 %v3875_v60, %v3875_v60  ;;  %11577 = vmatmul.msk.bf16.gmra.mxu0 %vm325_vm10, %v3580_v1  ;;  %5109 = vmatpush.bf16.msrb.mxu3 %v12656_v41  ;;  %v3954_v60 = vrot.slane %v3953_v29, 4  ;;  %v2945_v8 = vsel %vm17701_vm11, %v2942_v38, %v2944_v42  ;;  %v17855_v54 = vld [vmem:[#allocation6_spill] sm:$0xff] }
 0x2cd   : >> { %4343 = vst [vmem:[#allocation2 + $0x8] sm:$0xe] %v4342_v11  ;;  %v3762_v59 = vadd.f32 %v3675_v7, %v3511_v37  ;;  %v14281_v1 = vpop.f32.mrf.mxu3  ;;  %vm17856_vm1 = vcmp.gt.f32.partialorder %v17855_v54, 0.5  ;;  %v14293_v11 = vld [vmem:[#allocation2 + $0x78] sm:$0xff]  ;;  %v4531_v48 = vshll.u32 %v12777_v4, 16 }
 0x2ce   : >> { %v3956_v50 = vshrl.u32 %v3911_v62, 16  ;;  %v3959_v34 = vshll.u32 %v3911_v62, 16  ;;  %v12677_v41 = vld [vmem:[%s13278_s27 + $0xd8] sm:$0xff] }
 0x2cf   : >> { %v3803_v35 = vadd.f32 %v14240_v49, %v3762_v59  ;;  %v12675_v59 = vld [vmem:[%s13278_s27 + $0xc8] sm:$0xff]  ;;  %5868 = vmatpush.bf16.msrb.mxu1 %v12677_v41 }
 0x2d0   : >> { %v3958_v43 = vrot.slane %v3956_v50, 6  ;;  %v3961_v47 = vrot.slane %v3959_v34, 7  ;;  %v3042_v17 = vpop.f32.mrf.mxu2  ;;  %5485 = vmatpush.bf16.msrb.mxu0 %v12675_v59  ;;  %v17857_v59 = vld [vmem:[#allocation7_spill] sm:$0xff] }
 0x2d1   : >> { %v3839_v14 = vmax.f32 %v3803_v35, 0.0  ;;  %v3128_v7 = vadd.f32 %v3042_v17, %v13868_v31  ;;  %v14286_v46 = vpop.f32.mrf.mxu0  ;;  %v3289_v31 = vsel %vm17702_vm7, %v14245_v32, %v14278_v3  ;;  %v3581_v32 = vrot.slane %v14253_v57, 3 }
 0x2d2   : >> { %v3962_v37 = vor.u32 %v3961_v47, %v3958_v43  ;;  %11547 = vmatmul.msk.bf16.gmra.mxu3 %vm325_vm10, %v3289_v31  ;;  %v3291_v47 = vshrl.u32 %v14293_v11, 16  ;;  %v3294_v17 = vshll.u32 %v14293_v11, 16 }
 0x2d3   : >> { %v3876_v34 = vsel %vm17856_vm1, %v3839_v14, 0.0  ;;  %v3512_v50 = vadd.f32 %v3426_v53, %v3128_v7  ;;  %vm17858_vm1 = vcmp.gt.f32.partialorder %v17857_v59, 0.5 }
 0x2d4   : >> { %v3963_v29 = vsel %vm13290_vm8, %v3954_v60, %v3962_v37  ;;  %v3912_v62 = vpack.c.bf16 %v3876_v34, %v3876_v34  ;;  %v4529_v34 = vshrl.u32 %v12777_v4, 16  ;;  %v3964_v31 = vrot.slane %v3962_v37, 4 }
 0x2d5   : >> { %4344 = vst.msk [vmem:[#allocation2 + $0xc] sm:$0xf] %vm271_vm3, %v3963_v29  ;;  %v3763_v38 = vadd.f32 %v3677_v13, %v3512_v50  ;;  %11515 = vmatmul.msk.bf16.gmra.mxu2 %vm325_vm10, %v2945_v8  ;;  %v14307_v54 = vpop.f32.mrf.mxu3  ;;  %v4533_v50 = vrot.slane %v4531_v48, 1 }
 0x2d6   : >> { %v3966_v35 = vshrl.u32 %v3912_v62, 16  ;;  %v3969_v53 = vshll.u32 %v3912_v62, 16 }
 0x2d7   : >> { %v3804_v43 = vadd.f32 %v14240_v49, %v3763_v38  ;;  %v3582_v38 = vsel %vm17700_vm5, %v3579_v51, %v3581_v32  ;;  %v4534_v51 = vor.u32 %v4533_v50, %v4529_v34 }
 0x2d8   : >> { %v3968_v13 = vrot.slane %v3966_v35, 6  ;;  %v3971_v14 = vrot.slane %v3969_v53, 7  ;;  %v3045_v7 = vpop.f32.mrf.mxu2  ;;  %v3296_v53 = vrot.slane %v3294_v17, 3 }
 0x2d9   : >> { %v3840_v60 = vmax.f32 %v3804_v43, 0.0  ;;  %v3129_v8 = vadd.f32 %v3045_v7, %v13876_v21  ;;  %v14309_v62 = vpop.f32.mrf.mxu0  ;;  %v3293_v21 = vrot.slane %v3291_v47, 2 }
 0x2da   : >> { %v3972_v29 = vor.u32 %v3971_v14, %v3968_v13 }
 0x2db   : >> { %v3877_v41 = vsel %vm17858_vm1, %v3840_v60, 0.0  ;;  %v3513_v35 = vadd.f32 %v14262_v24, %v3129_v8  ;;  %v17646_v24 = vrot.slane %v14253_v57, 2  ;;  %v14329_v17 = vor.u32 %v3296_v53, %v3293_v21 }
 0x2dc   : >> { %v3973_v4 = vsel %vm13290_vm8, %v3964_v31, %v3972_v29  ;;  %v3913_v37 = vpack.c.bf16 %v3877_v41, %v3877_v41  ;;  %v14321_v48 = vld [vmem:[#allocation2 + $0x8] sm:$0xff]  ;;  %11578 = vmatmul.msk.bf16.gmra.mxu0 %vm325_vm10, %v3582_v38  ;;  %v3974_v34 = vrot.slane %v3972_v29, 4 }
 0x2dd   : >> { %4345 = vst.msk [vmem:[#allocation2 + $0x10] sm:$0xf] %vm271_vm3, %v3973_v4  ;;  %v3764_v43 = vadd.f32 %v14264_v52, %v3513_v35  ;;  %v4536_v7 = vshll.u32 %v14321_v48, 16  ;;  %v14332_v35 = vpop.f32.mrf.mxu3  ;;  %v2947_v21 = vsel %vm17701_vm11, %v2944_v42, %v17646_v24  ;;  %v14342_v4 = vld [vmem:[#allocation2 + $0x80] sm:$0xff]  ;;  %v3298_v29 = vsel %vm17702_vm7, %v14278_v3, %v14329_v17  ;;  %v14353_v42 = vld [vmem:[#allocation2 + $0xc] sm:$0xf] }
 0x2de   : >> { %v3976_v13 = vshrl.u32 %v3913_v37, 16  ;;  %v3979_v14 = vshll.u32 %v3913_v37, 16  ;;  %v17859_v37 = vld [vmem:[#allocation8_spill] sm:$0xff]  ;;  %v3300_v3 = vshrl.u32 %v14342_v4, 16  ;;  %v17863_v24 = vld [vmem:[#allocation49_spill] sm:$0xff] }
 0x2df   : >> { %v3805_v47 = vadd.f32 %v14240_v49, %v3764_v43  ;;  %v4538_v59 = vrot.slane %v4536_v7, 1  ;;  %vm17860_vm1 = vcmp.gt.f32.partialorder %v17859_v37, 0.5 }
 0x2e0   : >> { %v3978_v60 = vrot.slane %v3976_v13, 6  ;;  %v3981_v8 = vrot.slane %v3979_v14, 7  ;;  %v3047_v31 = vpop.f32.mrf.mxu2 }
 0x2e1   : >> { %v3841_v41 = vmax.f32 %v3805_v47, 0.0  ;;  %v3130_v52 = vadd.f32 %v3047_v31, %v13888_v36  ;;  %v4539_v38 = vsel %vm1062_vm2, %v4534_v51, %v4538_v59  ;;  %v14340_v53 = vpop.f32.mrf.mxu0  ;;  %v3303_v47 = vshll.u32 %v14342_v4, 16 }
 0x2e2   : >> { %v3982_v50 = vor.u32 %v3981_v8, %v3978_v60  ;;  %11674 = vmatmul.msk.bf16.vlgmr.msra.gmra.mxu1 %vm325_vm10, %v4539_v38  ;;  %11548 = vmatmul.msk.bf16.gmra.mxu3 %vm325_vm10, %v3298_v29  ;;  %v5238_v60 = vld [vmem:[#allocation2 + $0x8] sm:$0xe]  ;;  %v17645_v31 = vunpack.c.l.b16 %v14353_v42 }
 0x2e3   : >> { %v3878_v43 = vsel %vm17860_vm1, %v3841_v41, 0.0  ;;  %v3514_v36 = vadd.f32 %v14281_v1, %v3130_v52  ;;  %v17644_v1 = vrot.slane %v14293_v11, 3 }
 0x2e4   : >> { %v3983_v18 = vsel %vm13290_vm8, %v3974_v34, %v3982_v50  ;;  %v3914_v51 = vpack.c.bf16 %v3878_v43, %v3878_v43  ;;  %v5320_v43 = vunpack.c.l.b16 %v5238_v60 }
 0x2e5   : >> { %4346 = vst.msk [vmem:[#allocation2 + $0x14] sm:$0xf] %vm271_vm3, %v3983_v18  ;;  %v3765_v13 = vadd.f32 %v14286_v46, %v3514_v36  ;;  %11516 = vmatmul.msk.bf16.gmra.mxu2 %vm325_vm10, %v2947_v21  ;;  %v14365_v21 = vpop.f32.mrf.mxu3  ;;  %v3584_v37 = vsel %vm17700_vm5, %v3581_v32, %v17644_v1  ;;  %v3984_v36 = vrot.slane %v3982_v50, 4 }
 0x2e6   : >> { %v3986_v14 = vshrl.u32 %v3914_v51, 16  ;;  %v3989_v7 = vshll.u32 %v3914_v51, 16  ;;  %v3302_v51 = vrot.slane %v3300_v3, 2 }
 0x2e7   : >> { %v3806_v8 = vadd.f32 %v14240_v49, %v3765_v13  ;;  %v3305_v13 = vrot.slane %v3303_v47, 3 }
 0x2e8   : >> { %v3988_v41 = vrot.slane %v3986_v14, 6  ;;  %v3991_v52 = vrot.slane %v3989_v7, 7  ;;  %v3050_v46 = vpop.f32.mrf.mxu2  ;;  %v17861_v14 = vld [vmem:[#allocation9_spill] sm:$0xff] }
 0x2e9   : >> { %v3842_v34 = vmax.f32 %v3806_v8, 0.0  ;;  %v3131_v38 = vadd.f32 %v3050_v46, %v13901_v27  ;;  %v14372_v18 = vpop.f32.mrf.mxu0  ;;  %vm17862_vm1 = vcmp.gt.f32.partialorder %v17861_v14, 0.5  ;;  %v14379_v8 = vpack.c.b16 %v17645_v31, %v5320_v43  ;;  %v5997_v43 = vld [vmem:[#allocation2 + $0x8] sm:$0xc] }
 0x2ea   : >> { %v3992_v29 = vor.u32 %v3991_v52, %v3988_v41 }
 0x2eb   : >> { %v3879_v7 = vsel %vm17862_vm1, %v3842_v34, 0.0  ;;  %v3515_v27 = vadd.f32 %v14307_v54, %v3131_v38  ;;  %v4540_v54 = vshrl.u32 %v14321_v48, 16  ;;  %v14393_v38 = vor.u32 %v3305_v13, %v3302_v51 }
 0x2ec   : >> { %v3993_v46 = vsel %vm13290_vm8, %v3984_v36, %v3992_v29  ;;  %v3915_v32 = vpack.c.bf16 %v3879_v7, %v3879_v7  ;;  %v14383_v60 = vld [vmem:[#allocation2 + $0x10] sm:$0xff]  ;;  %11579 = vmatmul.msk.bf16.gmra.mxu0 %vm325_vm10, %v3584_v37  ;;  %v5627_v7 = vshrl.u32 %v14379_v8, 16  ;;  %v17864_v51 = vrot.slane %v14293_v11, 2 }
 0x2ed   : >> { %v14385_v50 = vld [vmem:[#allocation2 + $0x10] sm:$0xff]  ;;  %4347 = vst.msk [vmem:[#allocation2 + $0x18] sm:$0xf] %vm271_vm3, %v3993_v46  ;;  %v3766_v3 = vadd.f32 %v14309_v62, %v3515_v27  ;;  %v4544_v34 = vshll.u32 %v14383_v60, 16  ;;  %v4542_v14 = vor.u32 %v4540_v54, %v4538_v59  ;;  %v5630_v62 = vshll.u32 %v14379_v8, 16 }
 0x2ee   : >> { %v3996_v41 = vshrl.u32 %v3915_v32, 16  ;;  %v3999_v52 = vshll.u32 %v3915_v32, 16  ;;  %v5635_v31 = vshrl.u32 %v14385_v50, 16  ;;  %v17865_v13 = vrot.slane %v14253_v57, 2 }
 0x2ef   : >> { %v3807_v36 = vadd.f32 %v14240_v49, %v3766_v3  ;;  %v14398_v1 = vrot.slane %v4544_v34, 1  ;;  %v14407_v3 = vpop.f32.mrf.mxu3  ;;  %v6007_v54 = vunpack.c.l.b16 %v5997_v43  ;;  %v3994_v22 = vrot.slane %v3992_v29, 4 }
 0x2f0   : >> { %v3998_v27 = vrot.slane %v3996_v41, 6  ;;  %v4001_v37 = vrot.slane %v3999_v52, 7  ;;  %v3052_v46 = vpop.f32.mrf.mxu2  ;;  %v2949_v59 = vsel %vm17701_vm11, %v17865_v13, %v17864_v51  ;;  %v5629_v29 = vrot.slane %v5627_v7, 1 }
 0x2f1   : >> { %v3843_v32 = vmax.f32 %v3807_v36, 0.0  ;;  %v3132_v47 = vadd.f32 %v3052_v46, %v17863_v24  ;;  %v4547_v52 = vsel %vm1062_vm2, %v4542_v14, %v14398_v1  ;;  %v14411_v34 = vpop.f32.mrf.mxu0  ;;  %v3307_v24 = vsel %vm17702_vm7, %v14329_v17, %v14393_v38  ;;  %v14416_v36 = vld [vmem:[#allocation2 + $0x88] sm:$0xff]  ;;  %v17866_v46 = vld [vmem:[#allocation10_spill] sm:$0xff] }
 0x2f2   : >> { %v4002_v41 = vor.u32 %v4001_v37, %v3998_v27  ;;  %vm17867_vm1 = vcmp.gt.f32.partialorder %v17866_v46, 0.5  ;;  %11675 = vmatmul.msk.bf16.gmra.mxu1 %vm325_vm10, %v4547_v52  ;;  %v5632_v43 = vrot.slane %v5630_v62, 2  ;;  %v5637_v37 = vrot.slane %v5635_v31, 1  ;;  %11549 = vmatmul.msk.bf16.gmra.mxu3 %vm325_vm10, %v3307_v24 }
 0x2f3   : >> { %v3880_v57 = vsel %vm17867_vm1, %v3843_v32, 0.0  ;;  %v3516_v51 = vadd.f32 %v14332_v35, %v3132_v47  ;;  %v5638_v13 = vshll.u32 %v14385_v50, 16  ;;  %v17868_v35 = vunpack.c.l.b16 %v14353_v42 }
 0x2f4   : >> { %v4003_v14 = vsel %vm13290_vm8, %v3994_v22, %v4002_v41  ;;  %v3916_v27 = vpack.c.bf16 %v3880_v57, %v3880_v57  ;;  %v3309_v22 = vshrl.u32 %v14416_v36, 16  ;;  %v3312_v46 = vshll.u32 %v14416_v36, 16 }
 0x2f5   : >> { %4348 = vst.msk [vmem:[#allocation2 + $0x1c] sm:$0xf] %vm271_vm3, %v4003_v14  ;;  %v3767_v17 = vadd.f32 %v14340_v53, %v3516_v51  ;;  %11517 = vmatmul.msk.bf16.gmra.mxu2 %vm325_vm10, %v2949_v59  ;;  %v6008_v47 = vpack.c.b16 %v17868_v35, %v6007_v54  ;;  %v5640_v31 = vrot.slane %v5638_v13, 2  ;;  %v5633_v14 = vor.u32 %v5632_v43, %v5629_v29  ;;  %v17872_v43 = vld [vmem:[#allocation11_spill] sm:$0xff] }
 0x2f6   : >> { %v4006_v7 = vshrl.u32 %v3916_v27, 16  ;;  %v4009_v62 = vshll.u32 %v3916_v27, 16  ;;  %v17869_v24 = vrot.slane %v14342_v4, 3  ;;  %v17870_v13 = vrot.slane %v14293_v11, 3 }
 0x2f7   : >> { %v3808_v52 = vadd.f32 %v14240_v49, %v3767_v17  ;;  %v14436_v32 = vor.u32 %v5640_v31, %v5637_v37  ;;  %v14439_v27 = vpop.f32.mrf.mxu3  ;;  %v6009_v35 = vrot.slane %v6008_v47, 2  ;;  %v4004_v40 = vrot.slane %v4002_v41, 4 }
 0x2f8   : >> { %v4008_v57 = vrot.slane %v4006_v7, 6  ;;  %v4011_v59 = vrot.slane %v4009_v62, 7  ;;  %v3055_v51 = vpop.f32.mrf.mxu2  ;;  %v3586_v17 = vsel %vm17700_vm5, %v17870_v13, %v17869_v24  ;;  %v3311_v62 = vrot.slane %v3309_v22, 2 }
 0x2f9   : >> { %v3844_v42 = vmax.f32 %v3808_v52, 0.0  ;;  %v3133_v54 = vadd.f32 %v3055_v51, %v13930_v16  ;;  %v14446_v7 = vpop.f32.mrf.mxu0  ;;  %v14450_v29 = vsel %vm2162_vm12, %v5633_v14, %v14436_v32  ;;  %vm17873_vm1 = vcmp.gt.f32.partialorder %v17872_v43, 0.5 }
 0x2fa   : >> { %v4012_v53 = vor.u32 %v4011_v59, %v4008_v57  ;;  %17871 = vst [vmem:[#allocation49_spill] sm:$0xff] %v14450_v29  ;;  %v3314_v31 = vrot.slane %v3312_v46, 3  ;;  %v17874_v52 = vrot.slane %v14385_v50, 2 }
 0x2fb   : >> { %v3881_v16 = vsel %vm17873_vm1, %v3844_v42, 0.0  ;;  %v3517_v37 = vadd.f32 %v14365_v21, %v3133_v54  ;;  %v4548_v21 = vshrl.u32 %v14383_v60, 16 }
 0x2fc   : >> { %v14458_v51 = vsel %vm17701_vm11, %v6009_v35, %v17874_v52  ;;  %v4013_v41 = vsel %vm13290_vm8, %v4004_v40, %v4012_v53  ;;  %v3917_v47 = vpack.c.bf16 %v3881_v16, %v3881_v16  ;;  %v14462_v22 = vld [vmem:[#allocation2 + $0x18] sm:$0xff]  ;;  %11580 = vmatmul.msk.bf16.gmra.mxu0 %vm325_vm10, %v3586_v17  ;;  %v14474_v13 = vor.u32 %v3314_v31, %v3311_v62 }
 0x2fd   : >> { %17875 = vst [vmem:[#allocation61_spill] sm:$0xff] %v14458_v51  ;;  %v14464_v57 = vld [vmem:[#allocation2 + $0x18] sm:$0xff]  ;;  %v3768_v59 = vadd.f32 %v14372_v18, %v3517_v37  ;;  %v4552_v42 = vshll.u32 %v14462_v22, 16  ;;  %v4550_v24 = vor.u32 %v4548_v21, %v14398_v1  ;;  %v17876_v1 = vrot.slane %v14342_v4, 2 }
 0x2fe   : >> { %4349 = vst.msk [vmem:[#allocation2 + $0x20] sm:$0xf] %vm271_vm3, %v4013_v41  ;;  %v4016_v46 = vshrl.u32 %v3917_v47, 16  ;;  %v4019_v14 = vshll.u32 %v3917_v47, 16  ;;  %v5644_v17 = vshrl.u32 %v14464_v57, 16  ;;  %v4014_v47 = vrot.slane %v4012_v53, 4 }
 0x2ff   : >> { %v3809_v40 = vadd.f32 %v14240_v49, %v3768_v59  ;;  %v14476_v18 = vrot.slane %v4552_v42, 1  ;;  %v14480_v41 = vpop.f32.mrf.mxu3  ;;  %v17877_v62 = vrot.slane %v14293_v11, 2  ;;  %v3316_v53 = vsel %vm17702_vm7, %v14393_v38, %v14474_v13  ;;  %v14498_v42 = vld [vmem:[#allocation2 + $0x90] sm:$0xff] }
 0x300   : >> { %v4018_v35 = vrot.slane %v4016_v46, 6  ;;  %v4021_v43 = vrot.slane %v4019_v14, 7  ;;  %v3057_v16 = vpop.f32.mrf.mxu2  ;;  %v17878_v46 = vld [vmem:[#allocation12_spill] sm:$0xff]  ;;  %v17900_v56 = vrot.slane %v14464_v57, 2 }
 0x301   : >> { %v3845_v37 = vmax.f32 %v3809_v40, 0.0  ;;  %v3134_v52 = vadd.f32 %v3057_v16, %v13946_v10  ;;  %v4555_v59 = vsel %vm1062_vm2, %v4550_v24, %v14476_v18  ;;  %v2951_v31 = vsel %vm17701_vm11, %v17877_v62, %v17876_v1  ;;  %v14489_v21 = vpop.f32.mrf.mxu0 }
 0x302   : >> { %v4022_v54 = vor.u32 %v4021_v43, %v4018_v35  ;;  %vm17879_vm1 = vcmp.gt.f32.partialorder %v17878_v46, 0.5  ;;  %11676 = vmatmul.msk.bf16.gmra.mxu1 %vm325_vm10, %v4555_v59  ;;  %v5646_v24 = vrot.slane %v5644_v17, 1  ;;  %v5647_v35 = vshll.u32 %v14464_v57, 16  ;;  %11550 = vmatmul.msk.bf16.gmra.mxu3 %vm325_vm10, %v3316_v53 }
 0x303   : >> { %v3882_v14 = vsel %vm17879_vm1, %v3845_v37, 0.0  ;;  %v3518_v10 = vadd.f32 %v14407_v3, %v3134_v52  ;;  %v17647_v3 = vrot.slane %v14416_v36, 3  ;;  %v3321_v17 = vshll.u32 %v14498_v42, 16 }
 0x304   : >> { %v4023_v11 = vsel %vm13290_vm8, %v4014_v47, %v4022_v54  ;;  %v3918_v40 = vpack.c.bf16 %v3882_v14, %v3882_v14  ;;  %v5649_v38 = vrot.slane %v5647_v35, 2  ;;  %v3318_v47 = vshrl.u32 %v14498_v42, 16 }
 0x305   : >> { %4350 = vst.msk [vmem:[#allocation2 + $0x24] sm:$0xf] %vm271_vm3, %v4023_v11  ;;  %v3769_v43 = vadd.f32 %v14411_v34, %v3518_v10  ;;  %11518 = vmatmul.msk.bf16.gmra.mxu2 %vm325_vm10, %v2951_v31  ;;  %v17880_v10 = vrot.slane %v14342_v4, 3  ;;  %v4024_v11 = vrot.slane %v4022_v54, 4 }
 0x306   : >> { %v4026_v16 = vshrl.u32 %v3918_v40, 16  ;;  %v4029_v37 = vshll.u32 %v3918_v40, 16  ;;  %v14511_v46 = vor.u32 %v5649_v38, %v5646_v24  ;;  %v3320_v38 = vrot.slane %v3318_v47, 2 }
 0x307   : >> { %v3810_v52 = vadd.f32 %v14240_v49, %v3769_v43  ;;  %v14514_v14 = vpop.f32.mrf.mxu3  ;;  %v3588_v53 = vsel %vm17700_vm5, %v17880_v10, %v17647_v3  ;;  %v17648_v43 = vrot.slane %v14464_v57, 2 }
 0x308   : >> { %v4028_v59 = vrot.slane %v4026_v16, 6  ;;  %v4031_v1 = vrot.slane %v4029_v37, 7  ;;  %v3060_v62 = vpop.f32.mrf.mxu2  ;;  %v14526_v24 = vsel %vm2162_vm12, %v14436_v32, %v14511_v46 }
 0x309   : >> { %v3846_v34 = vmax.f32 %v3810_v52, 0.0  ;;  %v3135_v31 = vadd.f32 %v3060_v62, %v13961_v2  ;;  %v14521_v35 = vpop.f32.mrf.mxu0  ;;  %17881 = vst [vmem:[#allocation62_spill] sm:$0xff] %v14526_v24  ;;  %v17882_v2 = vld [vmem:[#allocation13_spill] sm:$0xff]  ;;  %v3323_v52 = vrot.slane %v3321_v17, 3  ;;  %v17649_v62 = vrot.slane %v14416_v36, 2 }
 0x30a   : >> { %v4032_v40 = vor.u32 %v4031_v1, %v4028_v59  ;;  %vm17883_vm1 = vcmp.gt.f32.partialorder %v17882_v2, 0.5 }
 0x30b   : >> { %v3883_v16 = vsel %vm17883_vm1, %v3846_v34, 0.0  ;;  %v3519_v37 = vadd.f32 %v14439_v27, %v3135_v31  ;;  %v17884_v27 = vrot.slane %v14385_v50, 2  ;;  %v4556_v31 = vshrl.u32 %v14462_v22, 16 }
 0x30c   : >> { %v4033_v54 = vsel %vm13290_vm8, %v4024_v11, %v4032_v40  ;;  %v3919_v59 = vpack.c.bf16 %v3883_v16, %v3883_v16  ;;  %v14534_v1 = vld [vmem:[#allocation2 + $0x20] sm:$0xff]  ;;  %11581 = vmatmul.msk.bf16.gmra.mxu0 %vm325_vm10, %v3588_v53  ;;  %v14552_v53 = vor.u32 %v3323_v52, %v3320_v38  ;;  %v4034_v38 = vrot.slane %v4032_v40, 4  ;;  %v14577_v40 = vld [vmem:[#allocation2 + $0x98] sm:$0xff] }
 0x30d   : >> { %4351 = vst.msk [vmem:[#allocation2 + $0x28] sm:$0xf] %vm271_vm3, %v4033_v54  ;;  %v3770_v32 = vadd.f32 %v14446_v7, %v3519_v37  ;;  %v14545_v47 = vsel %vm17701_vm11, %v17884_v27, %v17648_v43  ;;  %v4560_v10 = vshll.u32 %v14534_v1, 16  ;;  %v14549_v11 = vld [vmem:[#allocation2 + $0x20] sm:$0xff]  ;;  %v4558_v54 = vor.u32 %v4556_v31, %v14476_v18 }
 0x30e   : >> { %17885 = vst [vmem:[#allocation63_spill] sm:$0xff] %v14545_v47  ;;  %v4036_v17 = vshrl.u32 %v3919_v59, 16  ;;  %v4039_v34 = vshll.u32 %v3919_v59, 16  ;;  %v17886_v43 = vrot.slane %v14342_v4, 2  ;;  %v5653_v18 = vshrl.u32 %v14549_v11, 16 }
 0x30f   : >> { %v3811_v7 = vadd.f32 %v14240_v49, %v3770_v32  ;;  %v14555_v3 = vrot.slane %v4560_v10, 1  ;;  %v14563_v51 = vpop.f32.mrf.mxu3  ;;  %v3325_v4 = vsel %vm17702_vm7, %v14474_v13, %v14552_v53  ;;  %v17650_v13 = vrot.slane %v14498_v42, 3 }
 0x310   : >> { %v4038_v2 = vrot.slane %v4036_v17, 6  ;;  %v4041_v16 = vrot.slane %v4039_v34, 7  ;;  %v3062_v37 = vpop.f32.mrf.mxu2  ;;  %v2953_v47 = vsel %vm17701_vm11, %v17886_v43, %v17649_v62  ;;  %v17887_v34 = vld [vmem:[#allocation14_spill] sm:$0xff] }
 0x311   : >> { %v3847_v27 = vmax.f32 %v3811_v7, 0.0  ;;  %v3136_v59 = vadd.f32 %v3062_v37, %v13974_v39  ;;  %v4563_v32 = vsel %vm1062_vm2, %v4558_v54, %v14555_v3  ;;  %v14567_v17 = vpop.f32.mrf.mxu0  ;;  %vm17888_vm1 = vcmp.gt.f32.partialorder %v17887_v34, 0.5 }
 0x312   : >> { %v4042_v52 = vor.u32 %v4041_v16, %v4038_v2  ;;  %11677 = vmatmul.msk.bf16.gmra.mxu1 %vm325_vm10, %v4563_v32  ;;  %11551 = vmatmul.msk.bf16.gmra.mxu3 %vm325_vm10, %v3325_v4  ;;  %v5655_v37 = vrot.slane %v5653_v18, 1  ;;  %v17889_v18 = vrot.slane %v14416_v36, 3 }
 0x313   : >> { %v3884_v39 = vsel %vm17888_vm1, %v3847_v27, 0.0  ;;  %v3520_v31 = vadd.f32 %v14480_v41, %v3136_v59  ;;  %v5656_v41 = vshll.u32 %v14549_v11, 16  ;;  %v3327_v27 = vshrl.u32 %v14577_v40, 16 }
 0x314   : >> { %v4043_v43 = vsel %vm13290_vm8, %v4034_v38, %v4042_v52  ;;  %v3920_v10 = vpack.c.bf16 %v3884_v39, %v3884_v39  ;;  %v3330_v59 = vshll.u32 %v14577_v40, 16  ;;  %v4044_v4 = vrot.slane %v4042_v52, 4 }
 0x315   : >> { %4352 = vst.msk [vmem:[#allocation2 + $0x2c] sm:$0xf] %vm271_vm3, %v4043_v43  ;;  %v3771_v7 = vadd.f32 %v14489_v21, %v3520_v31  ;;  %11519 = vmatmul.msk.bf16.gmra.mxu2 %vm325_vm10, %v2953_v47  ;;  %v5658_v38 = vrot.slane %v5656_v41, 2  ;;  %v3161_v43 = vld [vmem:[#allocation2 + $0xa0] sm:$0x7] }
 0x316   : >> { %v4046_v2 = vshrl.u32 %v3920_v10, 16  ;;  %v4049_v16 = vshll.u32 %v3920_v10, 16  ;;  %v3332_v52 = vrot.slane %v3330_v59, 3  ;;  %v3171_v29 = vunpack.c.l.b16 %v3161_v43 }
 0x317   : >> { %v3812_v54 = vadd.f32 %v14240_v49, %v3771_v7  ;;  %v14591_v31 = vpop.f32.mrf.mxu3  ;;  %v3590_v7 = vsel %vm17700_vm5, %v17889_v18, %v17650_v13  ;;  %v14600_v41 = vor.u32 %v5658_v38, %v5655_v37  ;;  %v7006_v38 = vld [vmem:[#allocation2 + $0x10] sm:$0x8] }
 0x318   : >> { %v4048_v32 = vrot.slane %v4046_v2, 6  ;;  %v4051_v21 = vrot.slane %v4049_v16, 7  ;;  %v3065_v34 = vpop.f32.mrf.mxu2  ;;  %v14602_v2 = vld [vmem:[#allocation2 + $0x14] sm:$0xf]  ;;  %v17891_v16 = vld [vmem:[#allocation15_spill] sm:$0xff] }
 0x319   : >> { %v3848_v47 = vmax.f32 %v3812_v54, 0.0  ;;  %v3137_v39 = vadd.f32 %v3065_v34, %v13987_v9  ;;  %v14593_v62 = vpop.f32.mrf.mxu0  ;;  %17890 = vst [vmem:[#allocation64_spill] sm:$0xff] %v14602_v2  ;;  %vm17892_vm1 = vcmp.gt.f32.partialorder %v17891_v16, 0.5  ;;  %v3329_v34 = vrot.slane %v3327_v27, 2 }
 0x31a   : >> { %v4052_v10 = vor.u32 %v4051_v21, %v4048_v32  ;;  %v14614_v37 = vsel %vm2162_vm12, %v14511_v46, %v14600_v41  ;;  %v4564_v27 = vshrl.u32 %v14534_v1, 16  ;;  %v7016_v16 = vunpack.c.l.b16 %v7006_v38 }
 0x31b   : >> { %v3885_v9 = vsel %vm17892_vm1, %v3848_v47, 0.0  ;;  %v3521_v54 = vadd.f32 %v14514_v14, %v3137_v39  ;;  %17893 = vst [vmem:[#allocation65_spill] sm:$0xff] %v14614_v37  ;;  %v2762_v47 = vadd.f32 %v13948_v26, %v13998_v23  ;;  %v14627_v23 = vor.u32 %v3332_v52, %v3329_v34 }
 0x31c   : >> { %v4053_v32 = vsel %vm13290_vm8, %v4044_v4, %v4052_v10  ;;  %v3921_v21 = vpack.c.bf16 %v3885_v9, %v3885_v9  ;;  %v14609_v24 = vld [vmem:[#allocation2 + $0x28] sm:$0xff]  ;;  %11582 = vmatmul.msk.bf16.gmra.mxu0 %vm325_vm10, %v3590_v7  ;;  %v4566_v26 = vor.u32 %v4564_v27, %v14555_v3  ;;  %v4054_v3 = vrot.slane %v4052_v10, 4 }
 0x31d   : >> { %4353 = vst.msk [vmem:[#allocation2 + $0x30] sm:$0xf] %vm271_vm3, %v4053_v32  ;;  %v3772_v14 = vadd.f32 %v14521_v35, %v3521_v54  ;;  %v4568_v4 = vshll.u32 %v14609_v24, 16  ;;  %v14631_v32 = vpack.c.b16 %v3171_v29, %v3171_v29  ;;  %v14633_v13 = vld [vmem:[#allocation2 + $0x28] sm:$0xff]  ;;  %v17895_v38 = vrot.slane %v14498_v42, 2 }
 0x31e   : >> { %v4056_v39 = vshrl.u32 %v3921_v21, 16  ;;  %v4059_v43 = vshll.u32 %v3921_v21, 16  ;;  %v17896_v27 = vrot.slane %v14416_v36, 2  ;;  %v3334_v10 = vsel %vm17702_vm7, %v14552_v53, %v14627_v23 }
 0x31f   : >> { %v3813_v18 = vadd.f32 %v14240_v49, %v3772_v14  ;;  %v14629_v54 = vrot.slane %v4568_v4, 1  ;;  %v14635_v37 = vpop.f32.mrf.mxu3  ;;  %v17894_v14 = vunpack.c.l.b16 %v14602_v2  ;;  %v3339_v53 = vshll.u32 %v14631_v32, 16 }
 0x320   : >> { %v4058_v35 = vrot.slane %v4056_v39, 6  ;;  %v4061_v9 = vrot.slane %v4059_v43, 7  ;;  %v3067_v7 = vpop.f32.mrf.mxu2  ;;  %v2955_v29 = vsel %vm17701_vm11, %v17896_v27, %v17895_v38  ;;  %v17897_v43 = vld [vmem:[#allocation16_spill] sm:$0xff] }
 0x321   : >> { %v3849_v21 = vmax.f32 %v3813_v18, 0.0  ;;  %v3138_v59 = vadd.f32 %v3067_v7, %v2762_v47  ;;  %v7017_v46 = vpack.c.b16 %v17894_v14, %v7016_v16  ;;  %v4571_v52 = vsel %vm1062_vm2, %v4566_v26, %v14629_v54  ;;  %v14646_v39 = vpop.f32.mrf.mxu0  ;;  %v14656_v26 = vld [vmem:[#allocation2 + $0x18] sm:$0xff] }
 0x322   : >> { %v4062_v34 = vor.u32 %v4061_v9, %v4058_v35  ;;  %vm17898_vm1 = vcmp.gt.f32.partialorder %v17897_v43, 0.5  ;;  %11678 = vmatmul.msk.bf16.gmra.mxu1 %vm325_vm10, %v4571_v52  ;;  %v17652_v18 = vrot.slane %v14577_v40, 3  ;;  %v3336_v35 = vshrl.u32 %v14631_v32, 16  ;;  %11552 = vmatmul.msk.bf16.gmra.mxu3 %vm325_vm10, %v3334_v10 }
 0x323   : >> { %v3886_v47 = vsel %vm17898_vm1, %v3849_v21, 0.0  ;;  %v3522_v4 = vadd.f32 %v14563_v51, %v3138_v59  ;;  %v5662_v9 = vshrl.u32 %v14633_v13, 16  ;;  %v5665_v59 = vshll.u32 %v14633_v13, 16 }
 0x324   : >> { %v4063_v36 = vsel %vm13290_vm8, %v4054_v3, %v4062_v34  ;;  %v3922_v16 = vpack.c.bf16 %v3886_v47, %v3886_v47  ;;  %v6014_v3 = vrot.slane %v14549_v11, 2  ;;  %v7018_v27 = vrot.slane %v7017_v46, 3 }
 0x325   : >> { %4354 = vst.msk [vmem:[#allocation2 + $0x34] sm:$0xf] %vm271_vm3, %v4063_v36  ;;  %v3773_v51 = vadd.f32 %v14567_v17, %v3522_v4  ;;  %11520 = vmatmul.msk.bf16.gmra.mxu2 %vm325_vm10, %v2955_v29  ;;  %v5664_v14 = vrot.slane %v5662_v9, 1  ;;  %v5667_v38 = vrot.slane %v5665_v59, 2  ;;  %v17899_v4 = vrot.slane %v14498_v42, 3  ;;  %v12655_v59 = vld [vmem:[%s13278_s27 + $0xb0] sm:$0xff] }
 0x326   : >> { %v4066_v7 = vshrl.u32 %v3922_v16, 16  ;;  %v4069_v21 = vshll.u32 %v3922_v16, 16  ;;  %v3338_v10 = vrot.slane %v3336_v35, 2  ;;  %v4064_v17 = vrot.slane %v4062_v34, 4  ;;  %5110 = vmatpush.bf16.msrb.mxu3 %v12655_v59 }
 0x327   : >> { %v3814_v52 = vadd.f32 %v14240_v49, %v3773_v51  ;;  %v3592_v36 = vsel %vm17700_vm5, %v17899_v4, %v17652_v18  ;;  %v14677_v2 = vpop.f32.mrf.mxu3  ;;  %v3341_v51 = vrot.slane %v3339_v53, 3  ;;  %v14680_v46 = vor.u32 %v5667_v38, %v5664_v14  ;;  %v17907_v4 = vld [vmem:[#allocation50_spill] sm:$0xff] }
 0x328   : >> { %v4068_v43 = vrot.slane %v4066_v7, 6  ;;  %v4071_v29 = vrot.slane %v4069_v21, 7  ;;  %v3070_v47 = vpop.f32.mrf.mxu2  ;;  %v14687_v30 = vsel %vm17701_vm11, %v17900_v56, %v6014_v3  ;;  %v17653_v35 = vrot.slane %v14633_v13, 2 }
 0x329   : >> { %v3850_v16 = vmax.f32 %v3814_v52, 0.0  ;;  %v3139_v9 = vadd.f32 %v3070_v47, %v14007_v6  ;;  %v14682_v21 = vpop.f32.mrf.mxu0  ;;  %17901 = vst [vmem:[#allocation66_spill] sm:$0xff] %v14687_v30  ;;  %v17902_v52 = vld [vmem:[#allocation17_spill] sm:$0xff]  ;;  %v14696_v34 = vsel %vm2162_vm12, %v14600_v41, %v14680_v46  ;;  %v17904_v53 = vrot.slane %v14656_v26, 3 }
 0x32a   : >> { %v4072_v7 = vor.u32 %v4071_v29, %v4068_v43  ;;  %vm17903_vm1 = vcmp.gt.f32.partialorder %v17902_v52, 0.5  ;;  %v4572_v41 = vshrl.u32 %v14609_v24, 16 }
 0x32b   : >> { %v3887_v6 = vsel %vm17903_vm1, %v3850_v16, 0.0  ;;  %v3523_v47 = vadd.f32 %v14591_v31, %v3139_v9  ;;  %v14701_v14 = vsel %vm17700_vm5, %v7018_v27, %v17904_v53  ;;  %v2764_v16 = vadd.f32 %v17907_v4, %v14021_v28  ;;  %v12681_v4 = vld [vmem:[#allocation2 + $0x20] sm:$0xff] }
 0x32c   : >> { %17905 = vst [vmem:[#allocation67_spill] sm:$0xff] %v14701_v14  ;;  %v4073_v56 = vsel %vm13290_vm8, %v4064_v17, %v4072_v7  ;;  %v3923_v38 = vpack.c.bf16 %v3887_v6, %v3887_v6  ;;  %v14705_v43 = vld [vmem:[#allocation2 + $0x30] sm:$0xff]  ;;  %11583 = vmatmul.msk.bf16.gmra.mxu0 %vm325_vm10, %v3592_v36  ;;  %v14717_v17 = vsel %vm17701_vm11, %v6014_v3, %v17653_v35  ;;  %v17908_v14 = vrot.slane %v14577_v40, 2 }
 0x32d   : >> { %v14707_v29 = vld [vmem:[#allocation2 + $0x30] sm:$0xff]  ;;  %4355 = vst.msk [vmem:[#allocation2 + $0x38] sm:$0xf] %vm271_vm3, %v4073_v56  ;;  %v3774_v31 = vadd.f32 %v14593_v62, %v3523_v47  ;;  %v4576_v52 = vshll.u32 %v14705_v43, 16  ;;  %v4574_v36 = vor.u32 %v4572_v41, %v14629_v54  ;;  %v3342_v6 = vor.u32 %v3341_v51, %v3338_v10  ;;  %v12674_v47 = vld [vmem:[%s13278_s27 + $0xc0] sm:$0xff]  ;;  %v12682_v41 = vld [vmem:[#allocation2 + $0x28] sm:$0xff] }
 0x32e   : >> { %17906 = vst [vmem:[#allocation68_spill] sm:$0xff] %v14717_v17  ;;  %v4076_v9 = vshrl.u32 %v3923_v38, 16  ;;  %v4079_v59 = vshll.u32 %v3923_v38, 16  ;;  %v5671_v53 = vshrl.u32 %v14707_v29, 16  ;;  %v5674_v28 = vshll.u32 %v14707_v29, 16  ;;  %5486 = vmatpush.bf16.msrb.mxu0 %v12674_v47  ;;  %v12651_v51 = vld [vmem:[%s13278_s27 + $0x90] sm:$0xff] }
 0x32f   : >> { %v3815_v62 = vadd.f32 %v14240_v49, %v3774_v31  ;;  %v14726_v35 = vrot.slane %v4576_v52, 1  ;;  %v17909_v31 = vrot.slane %v14498_v42, 2  ;;  %v14734_v10 = vpop.f32.mrf.mxu3  ;;  %4896 = vmatpush.bf16.msrb.mxu2 %v12651_v51  ;;  %v7021_v47 = vrot.slane %v12681_v4, 3 }
 0x330   : >> { %v4078_v56 = vrot.slane %v4076_v9, 6  ;;  %v4081_v18 = vrot.slane %v4079_v59, 7  ;;  %v3072_v3 = vpop.f32.mrf.mxu2  ;;  %v4074_v9 = vrot.slane %v4072_v7, 4  ;;  %v5676_v7 = vrot.slane %v5674_v28, 2 }
 0x331   : >> { %v3851_v38 = vmax.f32 %v3815_v62, 0.0  ;;  %v3140_v27 = vadd.f32 %v3072_v3, %v2764_v16  ;;  %v2957_v54 = vsel %vm17701_vm11, %v17909_v31, %v17908_v14  ;;  %v4579_v52 = vsel %vm1062_vm2, %v4574_v36, %v14726_v35  ;;  %v14739_v17 = vpop.f32.mrf.mxu0  ;;  %v2821_v62 = vld [vmem:[#allocation2 + $0xa0] sm:$0x3]  ;;  %v17910_v3 = vld [vmem:[#allocation18_spill] sm:$0xff] }
 0x332   : >> { %v4082_v59 = vor.u32 %v4081_v18, %v4078_v56  ;;  %v5673_v16 = vrot.slane %v5671_v53, 1  ;;  %vm17911_vm1 = vcmp.gt.f32.partialorder %v17910_v3, 0.5  ;;  %11679 = vmatmul.msk.bf16.gmra.mxu1 %vm325_vm10, %v4579_v52  ;;  %v3343_v14 = vsel %vm17702_vm7, %v14627_v23, %v3342_v6  ;;  %v14756_v6 = vld [vmem:[#allocation2 + $0x30] sm:$0xff] }
 0x333   : >> { %v3888_v30 = vsel %vm17911_vm1, %v3851_v38, 0.0  ;;  %v3524_v42 = vadd.f32 %v14635_v37, %v3140_v27  ;;  %v2903_v56 = vunpack.c.l.b16 %v2821_v62  ;;  %v7023_v27 = vrot.slane %v12682_v41, 3  ;;  %11553 = vmatmul.msk.bf16.gmra.mxu3 %vm325_vm10, %v3343_v14  ;;  %v12787_v41 = vld [vmem:[#allocation2] sm:$0xf0] }
 0x334   : >> { %v4083_v18 = vsel %vm13290_vm8, %v4074_v9, %v4082_v59  ;;  %v3924_v36 = vpack.c.bf16 %v3888_v30, %v3888_v30  ;;  %v14752_v37 = vor.u32 %v5676_v7, %v5673_v16  ;;  %v3593_v23 = vrot.slane %v14631_v32, 3  ;;  %v12788_v9 = vld [vmem:[#allocation2] sm:$0xe] }
 0x335   : >> { %4356 = vst.msk [vmem:[#allocation2 + $0x3c] sm:$0xf] %vm271_vm3, %v4083_v18  ;;  %v3775_v53 = vadd.f32 %v14646_v39, %v3524_v42  ;;  %11521 = vmatmul.msk.bf16.gmra.mxu2 %vm325_vm10, %v2957_v54  ;;  %v17655_v30 = vrot.slane %v14707_v29, 2  ;;  %v17912_v32 = vrot.slane %v14633_v13, 2  ;;  %v17914_v62 = vrot.slane %v14656_v26, 3 }
 0x336   : >> { %v4086_v38 = vshrl.u32 %v3924_v36, 16  ;;  %v4089_v31 = vshll.u32 %v3924_v36, 16  ;;  %v14763_v39 = vsel %vm2162_vm12, %v14680_v46, %v14752_v37  ;;  %v2922_v42 = vpack.c.b16 %v2903_v56, %v2903_v56 }
 0x337   : >> { %v3816_v28 = vadd.f32 %v14240_v49, %v3775_v53  ;;  %v14770_v52 = vsel %vm17701_vm11, %v17912_v32, %v17655_v30  ;;  %v14775_v49 = vsel %vm17700_vm5, %v17914_v62, %v7021_v47  ;;  %v14778_v3 = vpop.f32.mrf.mxu3  ;;  %v14781_v14 = vsel %vm17700_vm5, %v7021_v47, %v7023_v27 }
 0x338   : >> { %v4088_v4 = vrot.slane %v4086_v38, 6  ;;  %v4091_v54 = vrot.slane %v4089_v31, 7  ;;  %v3075_v51 = vpop.f32.mrf.mxu2  ;;  %17913 = vst [vmem:[#allocation50_spill] sm:$0xff] %v14770_v52  ;;  %v4084_v7 = vrot.slane %v4082_v59, 4  ;;  %v17917_v53 = vrot.slane %v14577_v40, 3 }
 0x339   : >> { %17915 = vst [vmem:[#allocation69_spill] sm:$0xff] %v14775_v49  ;;  %v3852_v16 = vmax.f32 %v3816_v28, 0.0  ;;  %v3141_v46 = vadd.f32 %v3075_v51, %v14035_v5  ;;  %v14783_v36 = vpop.f32.mrf.mxu0  ;;  %v17654_v38 = vrot.slane %v14756_v6, 3  ;;  %v12789_v56 = vor.u32 %v12788_v9, %v12787_v41  ;;  %v17920_v9 = vld [vmem:[#allocation51_spill] sm:$0xff] }
 0x33a   : >> { %17916 = vst [vmem:[#allocation70_spill] sm:$0xff] %v14781_v14  ;;  %v4092_v18 = vor.u32 %v4091_v54, %v4088_v4  ;;  %v3594_v26 = vsel %vm17700_vm5, %v17917_v53, %v3593_v23  ;;  %v2958_v41 = vrot.slane %v2922_v42, 2  ;;  %v2766_v32 = vadd.f32 %v17920_v9, %v14045_v45 }
 0x33b   : >> { %v3889_v28 = vsel %vm250_vm14, %v3852_v16, 0.0  ;;  %v3525_v5 = vadd.f32 %v14677_v2, %v3141_v46  ;;  %v14801_v23 = vsel %vm17700_vm5, %v7023_v27, %v17654_v38  ;;  %v4580_v2 = vshrl.u32 %v14705_v43, 16 }
 0x33c   : >> { %v4093_v47 = vsel %vm13290_vm8, %v4084_v7, %v4092_v18  ;;  %v3925_v59 = vpack.c.bf16 %v3889_v28, %v3889_v28  ;;  %v14794_v4 = vld [vmem:[#allocation2 + $0x38] sm:$0xff]  ;;  %17919 = vst [vmem:[#allocation71_spill] sm:$0xff] %v14801_v23  ;;  %11584 = vmatmul.msk.bf16.gmra.mxu0 %vm325_vm10, %v3594_v26  ;;  %v14811_v7 = vld [vmem:[%s14080_s5] ss:$0 sm:$0xff]  ;;  %v5000_v31 = vrot.slane %v12789_v56, 1 }
 0x33d   : >> { %v14796_v54 = vld [vmem:[#allocation2 + $0x38] sm:$0xff]  ;;  %4357 = vst.msk [vmem:[#allocation2 + $0x40] sm:$0xf] %vm271_vm3, %v4093_v47  ;;  %v3776_v51 = vadd.f32 %v14682_v21, %v3525_v5  ;;  %v4584_v46 = vshll.u32 %v14794_v4, 16  ;;  %v4582_v53 = vor.u32 %v4580_v2, %v14726_v35  ;;  %v4094_v35 = vrot.slane %v4092_v18, 4 }
 0x33e   : >> { %v4096_v62 = vshrl.u32 %v3925_v59, 16  ;;  %v4099_v16 = vshll.u32 %v3925_v59, 16  ;;  %v5680_v21 = vshrl.u32 %v14796_v54, 16  ;;  %v5683_v47 = vshll.u32 %v14796_v54, 16 }
 0x33f   : >> { %v3817_v27 = vadd.f32 %v14811_v7, %v3776_v51  ;;  %v4586_v42 = vrot.slane %v4584_v46, 1  ;;  %v17921_v59 = vrot.slane %v14577_v40, 2  ;;  %v14820_v30 = vpop.f32.mrf.mxu3  ;;  %v17659_v51 = vrot.slane %v14321_v48, 1 }
 0x340   : >> { %v4098_v26 = vrot.slane %v4096_v62, 6  ;;  %v4101_v28 = vrot.slane %v4099_v16, 7  ;;  %v3077_v5 = vpop.f32.mrf.mxu2  ;;  %v5682_v16 = vrot.slane %v5680_v21, 1  ;;  %v5685_v40 = vrot.slane %v5683_v47, 2 }
 0x341   : >> { %v3853_v45 = vmax.f32 %v3817_v27, 0.0  ;;  %v3142_v9 = vadd.f32 %v3077_v5, %v2766_v32  ;;  %v2959_v38 = vsel %vm17701_vm11, %v17921_v59, %v2958_v41  ;;  %v4587_v2 = vsel %vm1062_vm2, %v4582_v53, %v4586_v42  ;;  %v14824_v62 = vpop.f32.mrf.mxu0 }
 0x342   : >> { %v4102_v56 = vor.u32 %v4101_v28, %v4098_v26  ;;  %11680 = vmatmul.msk.bf16.gmra.mxu1 %vm325_vm10, %v4587_v2  ;;  %v5002_v53 = vsel %vm1535_vm9, %v5000_v31, %v17659_v51  ;;  %v14838_v21 = vor.u32 %v5685_v40, %v5682_v16 }
 0x343   : >> { %v3890_v23 = vsel %vm251_vm15, %v3853_v45, 0.0  ;;  %v3526_v32 = vadd.f32 %v14734_v10, %v3142_v9  ;;  %v14840_v10 = vld [vmem:[#allocation2 + $0x38] sm:$0xff]  ;;  %11733 = vmatmul.msk.bf16.vlgmr.msrb.gmra.mxu3 %vm325_vm10, %v5002_v53  ;;  %v17656_v45 = vrot.slane %v14385_v50, 1  ;;  %v17923_v9 = vrot.slane %v14707_v29, 2 }
 0x344   : >> { %v4103_v41 = vsel %vm13290_vm8, %v4094_v35, %v4102_v56  ;;  %v3926_v27 = vpack.c.bf16 %v3890_v23, %v3890_v23  ;;  %v17658_v23 = vrot.slane %v14796_v54, 2  ;;  %v4104_v46 = vrot.slane %v4102_v56, 4 }
 0x345   : >> { %4358 = vst.msk [vmem:[#allocation2 + $0x44] sm:$0xf] %vm271_vm3, %v4103_v41  ;;  %v3777_v18 = vadd.f32 %v14739_v17, %v3526_v32  ;;  %11522 = vmatmul.msk.bf16.gmra.mxu2 %vm325_vm10, %v2959_v38  ;;  %v14848_v17 = vsel %vm2162_vm12, %v14752_v37, %v14838_v21  ;;  %v17657_v37 = vrot.slane %v14840_v10, 3  ;;  %v5376_v41 = vrot.slane %v14379_v8, 1 }
 0x346   : >> { %v4106_v26 = vshrl.u32 %v3926_v27, 16  ;;  %v4109_v28 = vshll.u32 %v3926_v27, 16  ;;  %v14856_v59 = vsel %vm17701_vm11, %v17923_v9, %v17658_v23 }
 0x347   : >> { %v3818_v5 = vadd.f32 %v14811_v7, %v3777_v18  ;;  %17924 = vst [vmem:[#allocation51_spill] sm:$0xff] %v14856_v59  ;;  %v14859_v16 = vpop.f32.mrf.mxu3  ;;  %v5378_v8 = vsel %vm1535_vm9, %v5376_v41, %v17656_v45  ;;  %v17680_v59 = vrot.slane %v14794_v4, 1 }
 0x348   : >> { %v4108_v38 = vrot.slane %v4106_v26, 6  ;;  %v4111_v47 = vrot.slane %v4109_v28, 7  ;;  %v3080_v31 = vpop.f32.mrf.mxu2  ;;  %v17926_v26 = vrot.slane %v14756_v6, 3  ;;  %v4588_v6 = vshrl.u32 %v14794_v4, 16 }
 0x349   : >> { %v3854_v35 = vmax.f32 %v3818_v5, 0.0  ;;  %v3143_v2 = vadd.f32 %v3080_v31, %v14059_v33  ;;  %v14862_v40 = vpop.f32.mrf.mxu0 }
 0x34a   : >> { %v4112_v32 = vor.u32 %v4111_v47, %v4108_v38  ;;  %v14873_v33 = vsel %vm17700_vm5, %v17926_v26, %v17657_v37  ;;  %v4590_v41 = vor.u32 %v4588_v6, %v4586_v42  ;;  %v17929_v6 = vld [vmem:[#allocation22_spill] sm:$0xff] }
 0x34b   : >> { %v3891_v18 = vsel %vm252_vm13, %v3854_v35, 0.0  ;;  %v3527_v53 = vadd.f32 %v14778_v3, %v3143_v2  ;;  %17927 = vst [vmem:[#allocation72_spill] sm:$0xff] %v14873_v33  ;;  %v17928_v35 = vld [vmem:[#allocation52_spill] sm:$0xff]  ;;  %vm17930_vm1 = vcmp.gt.f32.partialorder %v17929_v6, 0.5  ;;  %v17932_v6 = vrot.slane %v14796_v54, 2 }
 0x34c   : >> { %v4113_v56 = vsel %vm13290_vm8, %v4104_v46, %v4112_v32  ;;  %v3927_v28 = vpack.c.bf16 %v3891_v18, %v3891_v18  ;;  %v14880_v5 = vld [vmem:[#allocation2 + $0x40] sm:$0xff]  ;;  %11834 = vmatmul.msk.bf16.vlgmr.msrb.gmra.mxu0 %vm325_vm10, %v5378_v8  ;;  %v2768_v2 = vadd.f32 %v17928_v35, %v14068_v25  ;;  %v4114_v23 = vrot.slane %v4112_v32, 4 }
 0x34d   : >> { %v14882_v38 = vld [vmem:[#allocation2 + $0x40] sm:$0xff]  ;;  %4359 = vst.msk [vmem:[#allocation2 + $0x48] sm:$0xf] %vm271_vm3, %v4113_v56  ;;  %v3778_v3 = vadd.f32 %v14783_v36, %v3527_v53  ;;  %v4592_v9 = vshll.u32 %v14880_v5, 16  ;;  %v17672_v33 = vrot.slane %v14609_v24, 1 }
 0x34e   : >> { %v4116_v47 = vshrl.u32 %v3927_v28, 16  ;;  %v4119_v31 = vshll.u32 %v3927_v28, 16  ;;  %v5689_v27 = vshrl.u32 %v14882_v38, 16  ;;  %v5692_v53 = vshll.u32 %v14882_v38, 16 }
 0x34f   : >> { %v3819_v46 = vadd.f32 %v14811_v7, %v3778_v3  ;;  %v4594_v36 = vrot.slane %v4592_v9, 1  ;;  %v14894_v37 = vpop.f32.mrf.mxu3  ;;  %v17663_v28 = vrot.slane %v14383_v60, 1 }
 0x350   : >> { %v4118_v18 = vrot.slane %v4116_v47, 6  ;;  %v4121_v26 = vrot.slane %v4119_v31, 7  ;;  %v3082_v56 = vpop.f32.mrf.mxu2  ;;  %v5691_v42 = vrot.slane %v5689_v27, 1  ;;  %v5694_v9 = vrot.slane %v5692_v53, 2  ;;  %v14916_v27 = vld [vmem:[#allocation2 + $0x40] sm:$0xff] }
 0x351   : >> { %v3855_v8 = vmax.f32 %v3819_v46, 0.0  ;;  %v3144_v45 = vadd.f32 %v3082_v56, %v2768_v2  ;;  %v4595_v25 = vsel %vm1062_vm2, %v4590_v41, %v4594_v36  ;;  %v14898_v3 = vpop.f32.mrf.mxu0  ;;  %v12834_v46 = vld [vmem:[#allocation2] sm:$0xff]   ;;  %v17931_v41 = vrot.slane %v14321_v48, 1  ;;  %v14926_v48 = vpop.f32.mrf.mxu1 }
 0x352   : >> { %v4122_v51 = vor.u32 %v4121_v26, %v4118_v18  ;;  %11681 = vmatmul.msk.bf16.gmra.mxu1 %vm325_vm10, %v4595_v25  ;;  %v17662_v26 = vrot.slane %v14882_v38, 2 }
 0x353   : >> { %v3892_v47 = vsel %vm17930_vm1, %v3855_v8, 0.0  ;;  %v3528_v31 = vadd.f32 %v14820_v30, %v3144_v45  ;;  %v5004_v30 = vsel %vm1535_vm9, %v17931_v41, %v17663_v28  ;;  %v14914_v45 = vor.u32 %v5694_v9, %v5691_v42  ;;  %v17934_v41 = vld [vmem:[#allocation23_spill] sm:$0xff] }
 0x354   : >> { %v4123_v35 = vsel %vm13290_vm8, %v4114_v23, %v4122_v51  ;;  %v3928_v2 = vpack.c.bf16 %v3892_v47, %v3892_v47  ;;  %11734 = vmatmul.msk.bf16.gmra.mxu3 %vm325_vm10, %v5004_v30  ;;  %v17660_v42 = vrot.slane %v14464_v57, 1  ;;  %v14934_v47 = vsel %vm17701_vm11, %v17932_v6, %v17662_v26 }
 0x355   : >> { %4360 = vst.msk [vmem:[#allocation2 + $0x4c] sm:$0xf] %vm271_vm3, %v4123_v35  ;;  %v3779_v32 = vadd.f32 %v14824_v62, %v3528_v31  ;;  %11700 = vmatmul.msk.bf16.vlgmr.msrb.gmra.mxu2 %vm325_vm10, %v12834_v46  ;;  %v14924_v56 = vsel %vm2162_vm12, %v14838_v21, %v14914_v45  ;;  %v17661_v21 = vrot.slane %v14916_v27, 3  ;;  %vm17935_vm1 = vcmp.gt.f32.partialorder %v17934_v41, 0.5 }
 0x356   : >> { %v4126_v18 = vshrl.u32 %v3928_v2, 16  ;;  %v4129_v23 = vshll.u32 %v3928_v2, 16  ;;  %17933 = vst [vmem:[#allocation52_spill] sm:$0xff] %v14934_v47  ;;  %v4124_v2 = vrot.slane %v4122_v51, 4  ;;  %v17938_v51 = vrot.slane %v14385_v50, 1 }
 0x357   : >> { %v3820_v62 = vadd.f32 %v14811_v7, %v3779_v32  ;;  %v14937_v35 = vpop.f32.mrf.mxu3  ;;  %v4596_v6 = vshrl.u32 %v14880_v5, 16  ;;  %v2770_v50 = vadd.f32 %v14053_v15, %v14095_v0  ;;  %v17664_v28 = vrot.slane %v14462_v22, 1 }
 0x358   : >> { %v4128_v53 = vrot.slane %v4126_v18, 6  ;;  %v4131_v8 = vrot.slane %v4129_v23, 7  ;;  %v3085_v25 = vpop.f32.mrf.mxu2  ;;  %v17936_v23 = vrot.slane %v14840_v10, 3 }
 0x359   : >> { %v3856_v31 = vmax.f32 %v3820_v62, 0.0  ;;  %v3145_v9 = vadd.f32 %v3085_v25, %v14087_v20  ;;  %v14940_v46 = vpop.f32.mrf.mxu0 }
 0x35a   : >> { %v4132_v32 = vor.u32 %v4131_v8, %v4128_v53  ;;  %v14950_v62 = vsel %vm17700_vm5, %v17936_v23, %v17661_v21  ;;  %v5380_v53 = vsel %vm1535_vm9, %v17938_v51, %v17660_v42 }
 0x35b   : >> { %v3893_v30 = vsel %vm17935_vm1, %v3856_v31, 0.0  ;;  %v3529_v18 = vadd.f32 %v14859_v16, %v3145_v9  ;;  %17937 = vst [vmem:[#allocation73_spill] sm:$0xff] %v14950_v62  ;;  %v17668_v62 = vrot.slane %v14534_v1, 1 }
 0x35c   : >> { %v4133_v20 = vsel %vm13290_vm8, %v4124_v2, %v4132_v32  ;;  %v3929_v25 = vpack.c.bf16 %v3893_v30, %v3893_v30  ;;  %v14959_v8 = vld [vmem:[#allocation2 + $0x48] sm:$0xff]  ;;  %11835 = vmatmul.msk.bf16.gmra.mxu0 %vm325_vm10, %v5380_v53  ;;  %v4598_v30 = vor.u32 %v4596_v6, %v4594_v36  ;;  %v4134_v15 = vrot.slane %v4132_v32, 4 }
 0x35d   : >> { %v14961_v16 = vld [vmem:[#allocation2 + $0x48] sm:$0xff]  ;;  %4361 = vst.msk [vmem:[#allocation2 + $0x50] sm:$0xf] %vm271_vm3, %v4133_v20  ;;  %v3780_v10 = vadd.f32 %v14862_v40, %v3529_v18  ;;  %v4600_v2 = vshll.u32 %v14959_v8, 16 }
 0x35e   : >> { %v4136_v31 = vshrl.u32 %v3929_v25, 16  ;;  %v4139_v9 = vshll.u32 %v3929_v25, 16  ;;  %v5698_v23 = vshrl.u32 %v14961_v16, 16  ;;  %v5701_v53 = vshll.u32 %v14961_v16, 16 }
 0x35f   : >> { %v3821_v41 = vadd.f32 %v14811_v7, %v3780_v10  ;;  %v14972_v40 = vpop.f32.mrf.mxu1  ;;  %v4602_v18 = vrot.slane %v4600_v2, 1  ;;  %v14975_v26 = vpop.f32.mrf.mxu3 }
 0x360   : >> { %v4138_v51 = vrot.slane %v4136_v31, 6  ;;  %v4141_v20 = vrot.slane %v4139_v9, 7  ;;  %v3087_v42 = vpop.f32.mrf.mxu2  ;;  %v5700_v6 = vrot.slane %v5698_v23, 1  ;;  %v17939_v31 = vld [vmem:[#allocation24_spill] sm:$0xff]  ;;  %v12676_v23 = vld [vmem:[%s13278_s27 + $0xd0] sm:$0xff] }
 0x361   : >> { %v3857_v21 = vmax.f32 %v3821_v41, 0.0  ;;  %v3146_v25 = vadd.f32 %v3087_v42, %v2770_v50  ;;  %v4603_v36 = vsel %vm1062_vm2, %v4598_v30, %v4602_v18  ;;  %v14979_v10 = vpop.f32.mrf.mxu0  ;;  %vm17940_vm1 = vcmp.gt.f32.partialorder %v17939_v31, 0.5  ;;  %v12835_v30 = vld [vmem:[#allocation2 + $0x8] sm:$0xff]  ;;  %5869 = vmatpush.bf16.msrb.mxu1 %v12676_v23 }
 0x362   : >> { %v4142_v0 = vor.u32 %v4141_v20, %v4138_v51  ;;  %11682 = vmatmul.msk.bf16.gmra.mxu1 %vm325_vm10, %v4603_v36  ;;  %v5703_v42 = vrot.slane %v5701_v53, 2  ;;  %v14998_v20 = vld [vmem:[#allocation2 + $0x48] sm:$0xff] }
 0x363   : >> { %v3894_v9 = vsel %vm17940_vm1, %v3857_v21, 0.0  ;;  %v3530_v2 = vadd.f32 %v14894_v37, %v3146_v25  ;;  %v17941_v21 = vrot.slane %v14383_v60, 1 }
 0x364   : >> { %v4143_v50 = vsel %vm13290_vm8, %v4134_v15, %v4142_v0  ;;  %v3930_v41 = vpack.c.bf16 %v3894_v9, %v3894_v9  ;;  %v14996_v51 = vor.u32 %v5703_v42, %v5700_v6  ;;  %v17943_v42 = vrot.slane %v14882_v38, 2 }
 0x365   : >> { %4362 = vst.msk [vmem:[#allocation2 + $0x54] sm:$0xf] %vm271_vm3, %v4143_v50  ;;  %v3781_v32 = vadd.f32 %v14898_v3, %v3530_v2  ;;  %11701 = vmatmul.msk.bf16.gmra.mxu2 %vm325_vm10, %v12835_v30  ;;  %v5006_v37 = vsel %vm1535_vm9, %v17941_v21, %v17664_v28  ;;  %v17667_v3 = vrot.slane %v14961_v16, 2  ;;  %v17665_v2 = vrot.slane %v14549_v11, 1 }
 0x366   : >> { %v4146_v53 = vshrl.u32 %v3930_v41, 16  ;;  %v4149_v25 = vshll.u32 %v3930_v41, 16  ;;  %11735 = vmatmul.msk.bf16.gmra.mxu3 %vm325_vm10, %v5006_v37  ;;  %v15006_v60 = vsel %vm2162_vm12, %v14914_v45, %v14996_v51  ;;  %v17666_v45 = vrot.slane %v14998_v20, 3 }
 0x367   : >> { %v3822_v15 = vadd.f32 %v14811_v7, %v3781_v32  ;;  %17942 = vst [vmem:[#allocation74_spill] sm:$0xff] %v15006_v60  ;;  %v15008_v9 = vpop.f32.mrf.mxu1  ;;  %v15016_v50 = vsel %vm17701_vm11, %v17943_v42, %v17667_v3  ;;  %v15019_v30 = vpop.f32.mrf.mxu3  ;;  %v4144_v21 = vrot.slane %v4142_v0, 4  ;;  %v17947_v42 = vrot.slane %v14916_v27, 3 }
 0x368   : >> { %v4148_v36 = vrot.slane %v4146_v53, 6  ;;  %v4151_v31 = vrot.slane %v4149_v25, 7  ;;  %v3090_v6 = vpop.f32.mrf.mxu2  ;;  %17944 = vst [vmem:[#allocation75_spill] sm:$0xff] %v15016_v50  ;;  %v17945_v53 = vld [vmem:[#allocation25_spill] sm:$0xff]  ;;  %v17949_v0 = vrot.slane %v14464_v57, 1  ;;  %v2772_v57 = vadd.f32 %v14084_v19, %v14115_v55 }
 0x369   : >> { %v3858_v41 = vmax.f32 %v3822_v15, 0.0  ;;  %v3147_v32 = vadd.f32 %v3090_v6, %v14105_v58  ;;  %v15022_v23 = vpop.f32.mrf.mxu0  ;;  %vm17946_vm1 = vcmp.gt.f32.partialorder %v17945_v53, 0.5  ;;  %v15032_v15 = vsel %vm17700_vm5, %v17947_v42, %v17666_v45 }
 0x36a   : >> { %v4152_v37 = vor.u32 %v4151_v31, %v4148_v36  ;;  %17948 = vst [vmem:[#allocation76_spill] sm:$0xff] %v15032_v15  ;;  %v5382_v36 = vsel %vm1535_vm9, %v17949_v0, %v17665_v2 }
 0x36b   : >> { %v3895_v25 = vsel %vm17946_vm1, %v3858_v41, 0.0  ;;  %v3531_v28 = vadd.f32 %v14937_v35, %v3147_v32  ;;  %v4604_v41 = vshrl.u32 %v14959_v8, 16 }
 0x36c   : >> { %v4153_v58 = vsel %vm13290_vm8, %v4144_v21, %v4152_v37  ;;  %v3931_v6 = vpack.c.bf16 %v3895_v25, %v3895_v25  ;;  %v15041_v31 = vld [vmem:[#allocation2 + $0x50] sm:$0xff]  ;;  %11836 = vmatmul.msk.bf16.gmra.mxu0 %vm325_vm10, %v5382_v36  ;;  %v4154_v19 = vrot.slane %v4152_v37, 4 }
 0x36d   : >> { %v15043_v35 = vld [vmem:[#allocation2 + $0x50] sm:$0xff]  ;;  %4363 = vst.msk [vmem:[#allocation2 + $0x58] sm:$0xf] %vm271_vm3, %v4153_v58  ;;  %v3782_v27 = vadd.f32 %v14940_v46, %v3531_v28  ;;  %v4608_v53 = vshll.u32 %v15041_v31, 16  ;;  %v4606_v42 = vor.u32 %v4604_v41, %v4602_v18 }
 0x36e   : >> { %v4156_v32 = vshrl.u32 %v3931_v6, 16  ;;  %v4159_v21 = vshll.u32 %v3931_v6, 16  ;;  %v5707_v0 = vshrl.u32 %v15043_v35, 16  ;;  %v5710_v36 = vshll.u32 %v15043_v35, 16  ;;  %v12836_v37 = vld [vmem:[#allocation2 + $0x10] sm:$0xff] }
 0x36f   : >> { %v3823_v25 = vadd.f32 %v14811_v7, %v3782_v27  ;;  %v15054_v28 = vpop.f32.mrf.mxu1  ;;  %v4610_v46 = vrot.slane %v4608_v53, 1  ;;  %v15057_v15 = vpop.f32.mrf.mxu3 }
 0x370   : >> { %v4158_v2 = vrot.slane %v4156_v32, 6  ;;  %v4161_v58 = vrot.slane %v4159_v21, 7  ;;  %v3092_v45 = vpop.f32.mrf.mxu2  ;;  %v5709_v41 = vrot.slane %v5707_v0, 1  ;;  %v17950_v32 = vld [vmem:[#allocation26_spill] sm:$0xff] }
 0x371   : >> { %v3859_v3 = vmax.f32 %v3823_v25, 0.0  ;;  %v3148_v6 = vadd.f32 %v3092_v45, %v2772_v57  ;;  %v4611_v18 = vsel %vm1062_vm2, %v4606_v42, %v4610_v46  ;;  %v15061_v27 = vpop.f32.mrf.mxu0  ;;  %vm17951_vm1 = vcmp.gt.f32.partialorder %v17950_v32, 0.5  ;;  %v15079_v0 = vld [vmem:[#allocation2 + $0x50] sm:$0xff] }
 0x372   : >> { %v4162_v55 = vor.u32 %v4161_v58, %v4158_v2  ;;  %11683 = vmatmul.msk.bf16.gmra.mxu1 %vm325_vm10, %v4611_v18  ;;  %v5712_v25 = vrot.slane %v5710_v36, 2 }
 0x373   : >> { %v3896_v21 = vsel %vm17951_vm1, %v3859_v3, 0.0  ;;  %v3532_v53 = vadd.f32 %v14975_v26, %v3148_v6  ;;  %v17952_v3 = vrot.slane %v14462_v22, 1  ;;  %v17671_v6 = vrot.slane %v15043_v35, 2 }
 0x374   : >> { %v4163_v45 = vsel %vm13290_vm8, %v4154_v19, %v4162_v55  ;;  %v3932_v57 = vpack.c.bf16 %v3896_v21, %v3896_v21  ;;  %v15077_v42 = vor.u32 %v5712_v25, %v5709_v41  ;;  %v17669_v21 = vrot.slane %v14633_v13, 1 }
 0x375   : >> { %4364 = vst.msk [vmem:[#allocation2 + $0x5c] sm:$0xf] %vm271_vm3, %v4163_v45  ;;  %v3783_v2 = vadd.f32 %v14979_v10, %v3532_v53  ;;  %11702 = vmatmul.msk.bf16.gmra.mxu2 %vm325_vm10, %v12836_v37  ;;  %v5008_v26 = vsel %vm1535_vm9, %v17952_v3, %v17668_v62  ;;  %v17954_v53 = vrot.slane %v14961_v16, 2  ;;  %v4164_v37 = vrot.slane %v4162_v55, 4 }
 0x376   : >> { %v4166_v58 = vshrl.u32 %v3932_v57, 16  ;;  %v4169_v36 = vshll.u32 %v3932_v57, 16  ;;  %11736 = vmatmul.msk.bf16.gmra.mxu3 %vm325_vm10, %v5008_v26  ;;  %v15087_v19 = vsel %vm2162_vm12, %v14996_v51, %v15077_v42  ;;  %v17670_v51 = vrot.slane %v15079_v0, 3 }
 0x377   : >> { %v3824_v10 = vadd.f32 %v14811_v7, %v3783_v2  ;;  %17953 = vst [vmem:[#allocation77_spill] sm:$0xff] %v15087_v19  ;;  %v15089_v41 = vpop.f32.mrf.mxu1  ;;  %v15097_v25 = vsel %vm17701_vm11, %v17954_v53, %v17671_v6  ;;  %v15100_v2 = vpop.f32.mrf.mxu3  ;;  %v17958_v53 = vrot.slane %v14998_v20, 3  ;;  %v17960_v55 = vrot.slane %v14549_v11, 1 }
 0x378   : >> { %v4168_v22 = vrot.slane %v4166_v58, 6  ;;  %v4171_v18 = vrot.slane %v4169_v36, 7  ;;  %v3095_v32 = vpop.f32.mrf.mxu2  ;;  %17955 = vst [vmem:[#allocation78_spill] sm:$0xff] %v15097_v25  ;;  %v17956_v58 = vld [vmem:[#allocation27_spill] sm:$0xff]  ;;  %v2774_v11 = vadd.f32 %v14109_v12, %v14133_v63  ;;  %v17675_v25 = vrot.slane %v14705_v43, 1 }
 0x379   : >> { %v3860_v45 = vmax.f32 %v3824_v10, 0.0  ;;  %v3149_v57 = vadd.f32 %v3095_v32, %v14125_v61  ;;  %v15103_v26 = vpop.f32.mrf.mxu0  ;;  %vm17957_vm1 = vcmp.gt.f32.partialorder %v17956_v58, 0.5  ;;  %v15113_v10 = vsel %vm17700_vm5, %v17958_v53, %v17670_v51 }
 0x37a   : >> { %v4172_v3 = vor.u32 %v4171_v18, %v4168_v22  ;;  %17959 = vst [vmem:[#allocation79_spill] sm:$0xff] %v15113_v10  ;;  %v5384_v22 = vsel %vm1535_vm9, %v17960_v55, %v17669_v21 }
 0x37b   : >> { %v3897_v36 = vsel %vm17957_vm1, %v3860_v45, 0.0  ;;  %v3533_v62 = vadd.f32 %v15019_v30, %v3149_v57  ;;  %v4612_v45 = vshrl.u32 %v15041_v31, 16 }
 0x37c   : >> { %v4173_v61 = vsel %vm13290_vm8, %v4164_v37, %v4172_v3  ;;  %v3933_v32 = vpack.c.bf16 %v3897_v36, %v3897_v36  ;;  %v15122_v18 = vld [vmem:[#allocation2 + $0x58] sm:$0xff]  ;;  %11837 = vmatmul.msk.bf16.gmra.mxu0 %vm325_vm10, %v5384_v22  ;;  %v4174_v12 = vrot.slane %v4172_v3, 4 }
 0x37d   : >> { %v15124_v30 = vld [vmem:[#allocation2 + $0x58] sm:$0xff]  ;;  %4365 = vst.msk [vmem:[#allocation2 + $0x60] sm:$0xf] %vm271_vm3, %v4173_v61  ;;  %v3784_v20 = vadd.f32 %v15022_v23, %v3533_v62  ;;  %v4616_v58 = vshll.u32 %v15122_v18, 16  ;;  %v4614_v53 = vor.u32 %v4612_v45, %v4610_v46 }
 0x37e   : >> { %v4176_v57 = vshrl.u32 %v3933_v32, 16  ;;  %v4179_v37 = vshll.u32 %v3933_v32, 16  ;;  %v5716_v55 = vshrl.u32 %v15124_v30, 16  ;;  %v5719_v22 = vshll.u32 %v15124_v30, 16  ;;  %v12837_v3 = vld [vmem:[#allocation2 + $0x18] sm:$0xff] }
 0x37f   : >> { %v3825_v36 = vadd.f32 %v14811_v7, %v3784_v20  ;;  %v15135_v62 = vpop.f32.mrf.mxu1  ;;  %v4618_v23 = vrot.slane %v4616_v58, 1  ;;  %v15138_v10 = vpop.f32.mrf.mxu3 }
 0x380   : >> { %v4178_v21 = vrot.slane %v4176_v57, 6  ;;  %v4181_v61 = vrot.slane %v4179_v37, 7  ;;  %v3097_v51 = vpop.f32.mrf.mxu2  ;;  %v5718_v45 = vrot.slane %v5716_v55, 1  ;;  %v17961_v57 = vld [vmem:[#allocation28_spill] sm:$0xff]  ;;  %v15160_v55 = vld [vmem:[#allocation2 + $0x58] sm:$0xff] }
 0x381   : >> { %v3861_v6 = vmax.f32 %v3825_v36, 0.0  ;;  %v3150_v32 = vadd.f32 %v3097_v51, %v2774_v11  ;;  %v4619_v46 = vsel %vm1062_vm2, %v4614_v53, %v4618_v23  ;;  %v15142_v20 = vpop.f32.mrf.mxu0  ;;  %vm17962_vm1 = vcmp.gt.f32.partialorder %v17961_v57, 0.5 }
 0x382   : >> { %v4182_v63 = vor.u32 %v4181_v61, %v4178_v21  ;;  %11684 = vmatmul.msk.bf16.gmra.mxu1 %vm325_vm10, %v4619_v46  ;;  %v5721_v36 = vrot.slane %v5719_v22, 2 }
 0x383   : >> { %v3898_v37 = vsel %vm17962_vm1, %v3861_v6, 0.0  ;;  %v3534_v58 = vadd.f32 %v15057_v15, %v3150_v32  ;;  %v17963_v6 = vrot.slane %v14534_v1, 1  ;;  %v17674_v32 = vrot.slane %v15124_v30, 2 }
 0x384   : >> { %v4183_v51 = vsel %vm13290_vm8, %v4174_v12, %v4182_v63  ;;  %v3934_v11 = vpack.c.bf16 %v3898_v37, %v3898_v37  ;;  %v15158_v53 = vor.u32 %v5721_v36, %v5718_v45 }
 0x385   : >> { %4366 = vst.msk [vmem:[#allocation2 + $0x64] sm:$0xf] %vm271_vm3, %v4183_v51  ;;  %v3785_v21 = vadd.f32 %v15061_v27, %v3534_v58  ;;  %11703 = vmatmul.msk.bf16.gmra.mxu2 %vm325_vm10, %v12837_v3  ;;  %v5010_v15 = vsel %vm1535_vm9, %v17963_v6, %v17672_v33  ;;  %v17965_v58 = vrot.slane %v15043_v35, 2  ;;  %v4184_v6 = vrot.slane %v4182_v63, 4 }
 0x386   : >> { %v4186_v61 = vshrl.u32 %v3934_v11, 16  ;;  %v4189_v22 = vshll.u32 %v3934_v11, 16  ;;  %11737 = vmatmul.msk.bf16.gmra.mxu3 %vm325_vm10, %v5010_v15  ;;  %v15168_v12 = vsel %vm2162_vm12, %v15077_v42, %v15158_v53  ;;  %v17967_v11 = vld [vmem:[#allocation54_spill] sm:$0xff]  ;;  %v17673_v42 = vrot.slane %v15160_v55, 3 }
 0x387   : >> { %v3826_v27 = vadd.f32 %v14811_v7, %v3785_v21  ;;  %17964 = vst [vmem:[#allocation80_spill] sm:$0xff] %v15168_v12  ;;  %v15170_v45 = vpop.f32.mrf.mxu1  ;;  %v15178_v36 = vsel %vm17701_vm11, %v17965_v58, %v17674_v32  ;;  %v15181_v3 = vpop.f32.mrf.mxu3  ;;  %v17970_v58 = vrot.slane %v15079_v0, 3  ;;  %v17972_v63 = vrot.slane %v14707_v29, 1 }
 0x388   : >> { %v4188_v1 = vrot.slane %v4186_v61, 6  ;;  %v4191_v46 = vrot.slane %v4189_v22, 7  ;;  %v3100_v57 = vpop.f32.mrf.mxu2  ;;  %17966 = vst [vmem:[#allocation81_spill] sm:$0xff] %v15178_v36  ;;  %v17968_v22 = vld [vmem:[#allocation29_spill] sm:$0xff] }
 0x389   : >> { %v3862_v51 = vmax.f32 %v3826_v27, 0.0  ;;  %v3151_v21 = vadd.f32 %v3100_v57, %v17967_v11  ;;  %v15184_v61 = vpop.f32.mrf.mxu0  ;;  %vm17969_vm1 = vcmp.gt.f32.partialorder %v17968_v22, 0.5  ;;  %v15194_v27 = vsel %vm17700_vm5, %v17970_v58, %v17673_v42  ;;  %v17974_v58 = vld [vmem:[#allocation55_spill] sm:$0xff] }
 0x38a   : >> { %v4192_v15 = vor.u32 %v4191_v46, %v4188_v1  ;;  %17971 = vst [vmem:[#allocation54_spill] sm:$0xff] %v15194_v27  ;;  %v17973_v1 = vrot.slane %v14633_v13, 1  ;;  %v17975_v13 = vld [vmem:[#allocation53_spill] sm:$0xff] }
 0x38b   : >> { %v3899_v33 = vsel %vm17969_vm1, %v3862_v51, 0.0  ;;  %v3535_v37 = vadd.f32 %v15100_v2, %v3151_v21  ;;  %v4620_v21 = vshrl.u32 %v15122_v18, 16  ;;  %v2776_v42 = vadd.f32 %v17975_v13, %v17974_v58 }
 0x38c   : >> { %v4193_v57 = vsel %vm13290_vm8, %v4184_v6, %v4192_v15  ;;  %v3935_v11 = vpack.c.bf16 %v3899_v33, %v3899_v33  ;;  %v5386_v46 = vsel %vm1535_vm9, %v17973_v1, %v17972_v63  ;;  %v15203_v51 = vld [vmem:[#allocation2 + $0x60] sm:$0xff]  ;;  %v4194_v58 = vrot.slane %v4192_v15, 4 }
 0x38d   : >> { %v15205_v2 = vld [vmem:[#allocation2 + $0x60] sm:$0xff]  ;;  %4367 = vst.msk [vmem:[#allocation2 + $0x68] sm:$0xf] %vm271_vm3, %v4193_v57  ;;  %v3786_v0 = vadd.f32 %v15103_v26, %v3535_v37  ;;  %11838 = vmatmul.msk.bf16.gmra.mxu0 %vm325_vm10, %v5386_v46  ;;  %v4624_v22 = vshll.u32 %v15203_v51, 16  ;;  %v4622_v1 = vor.u32 %v4620_v21, %v4618_v23 }
 0x38e   : >> { %v4196_v6 = vshrl.u32 %v3935_v11, 16  ;;  %v4199_v33 = vshll.u32 %v3935_v11, 16  ;;  %v5725_v32 = vshrl.u32 %v15205_v2, 16  ;;  %v5728_v46 = vshll.u32 %v15205_v2, 16 }
 0x38f   : >> { %v3827_v63 = vadd.f32 %v14811_v7, %v3786_v0  ;;  %v15216_v26 = vpop.f32.mrf.mxu1  ;;  %v4626_v37 = vrot.slane %v4624_v22, 1  ;;  %v15219_v36 = vpop.f32.mrf.mxu3 }
 0x390   : >> { %v4198_v27 = vrot.slane %v4196_v6, 6  ;;  %v4201_v57 = vrot.slane %v4199_v33, 7  ;;  %v3102_v14 = vpop.f32.mrf.mxu2  ;;  %v5727_v21 = vrot.slane %v5725_v32, 1  ;;  %v17976_v6 = vld [vmem:[#allocation30_spill] sm:$0xff] }
 0x391   : >> { %v3863_v49 = vmax.f32 %v3827_v63, 0.0  ;;  %v3152_v11 = vadd.f32 %v3102_v14, %v2776_v42  ;;  %v4627_v23 = vsel %vm1062_vm2, %v4622_v1, %v4626_v37  ;;  %v15223_v0 = vpop.f32.mrf.mxu0  ;;  %vm17977_vm1 = vcmp.gt.f32.partialorder %v17976_v6, 0.5  ;;  %v15241_v1 = vld [vmem:[#allocation2 + $0x60] sm:$0xff] }
 0x392   : >> { %v4202_v13 = vor.u32 %v4201_v57, %v4198_v27  ;;  %11685 = vmatmul.msk.bf16.gmra.mxu1 %vm325_vm10, %v4627_v23  ;;  %v5730_v63 = vrot.slane %v5728_v46, 2  ;;  %v12838_v27 = vld [vmem:[#allocation2 + $0x20] sm:$0xff] }
 0x393   : >> { %v3900_v33 = vsel %vm17977_vm1, %v3863_v49, 0.0  ;;  %v3536_v22 = vadd.f32 %v15138_v10, %v3152_v11  ;;  %v17978_v49 = vrot.slane %v14609_v24, 1  ;;  %v17677_v11 = vrot.slane %v15205_v2, 2 }
 0x394   : >> { %v4203_v14 = vsel %vm13290_vm8, %v4194_v58, %v4202_v13  ;;  %v3936_v42 = vpack.c.bf16 %v3900_v33, %v3900_v33  ;;  %v15239_v32 = vor.u32 %v5730_v63, %v5727_v21 }
 0x395   : >> { %4368 = vst.msk [vmem:[#allocation2 + $0x6c] sm:$0xf] %vm271_vm3, %v4203_v14  ;;  %v3787_v15 = vadd.f32 %v15142_v20, %v3536_v22  ;;  %11704 = vmatmul.msk.bf16.gmra.mxu2 %vm325_vm10, %v12838_v27  ;;  %v5012_v10 = vsel %vm1535_vm9, %v17978_v49, %v17675_v25  ;;  %v17980_v22 = vrot.slane %v15124_v30, 2  ;;  %v4204_v49 = vrot.slane %v4202_v13, 4 }
 0x396   : >> { %v4206_v57 = vshrl.u32 %v3936_v42, 16  ;;  %v4209_v46 = vshll.u32 %v3936_v42, 16  ;;  %11738 = vmatmul.msk.bf16.gmra.mxu3 %vm325_vm10, %v5012_v10  ;;  %v15249_v58 = vsel %vm2162_vm12, %v15158_v53, %v15239_v32  ;;  %v17982_v42 = vld [vmem:[#allocation57_spill] sm:$0xff]  ;;  %v17676_v53 = vrot.slane %v15241_v1, 3 }
 0x397   : >> { %v3828_v20 = vadd.f32 %v14811_v7, %v3787_v15  ;;  %17979 = vst [vmem:[#allocation55_spill] sm:$0xff] %v15249_v58  ;;  %v15251_v21 = vpop.f32.mrf.mxu1  ;;  %v15259_v63 = vsel %vm17701_vm11, %v17980_v22, %v17677_v11  ;;  %v15262_v27 = vpop.f32.mrf.mxu3  ;;  %v17985_v22 = vrot.slane %v15160_v55, 3  ;;  %v17987_v13 = vrot.slane %v14796_v54, 1 }
 0x398   : >> { %v4208_v24 = vrot.slane %v4206_v57, 6  ;;  %v4211_v23 = vrot.slane %v4209_v46, 7  ;;  %v3105_v6 = vpop.f32.mrf.mxu2  ;;  %17981 = vst [vmem:[#allocation53_spill] sm:$0xff] %v15259_v63  ;;  %v17983_v46 = vld [vmem:[#allocation31_spill] sm:$0xff]  ;;  %v17684_v58 = vrot.slane %v14880_v5, 1 }
 0x399   : >> { %v3864_v14 = vmax.f32 %v3828_v20, 0.0  ;;  %v3153_v15 = vadd.f32 %v3105_v6, %v17982_v42  ;;  %v15265_v57 = vpop.f32.mrf.mxu0  ;;  %vm17984_vm1 = vcmp.gt.f32.partialorder %v17983_v46, 0.5  ;;  %v15275_v20 = vsel %vm17700_vm5, %v17985_v22, %v17676_v53  ;;  %v17989_v22 = vld [vmem:[#allocation58_spill] sm:$0xff] }
 0x39a   : >> { %v4212_v10 = vor.u32 %v4211_v23, %v4208_v24  ;;  %17986 = vst [vmem:[#allocation57_spill] sm:$0xff] %v15275_v20  ;;  %v17988_v24 = vrot.slane %v14707_v29, 1  ;;  %v17990_v29 = vld [vmem:[#allocation56_spill] sm:$0xff] }
 0x39b   : >> { %v3901_v25 = vsel %vm17984_vm1, %v3864_v14, 0.0  ;;  %v3537_v33 = vadd.f32 %v15181_v3, %v3153_v15  ;;  %v4628_v15 = vshrl.u32 %v15203_v51, 16  ;;  %v2778_v53 = vadd.f32 %v17990_v29, %v17989_v22 }
 0x39c   : >> { %v4213_v6 = vsel %vm13290_vm8, %v4204_v49, %v4212_v10  ;;  %v3937_v42 = vpack.c.bf16 %v3901_v25, %v3901_v25  ;;  %v5388_v23 = vsel %vm1535_vm9, %v17988_v24, %v17987_v13  ;;  %v15284_v14 = vld [vmem:[#allocation2 + $0x68] sm:$0xff]  ;;  %v4214_v22 = vrot.slane %v4212_v10, 4 }
 0x39d   : >> { %v15286_v3 = vld [vmem:[#allocation2 + $0x68] sm:$0xff]  ;;  %4369 = vst.msk [vmem:[#allocation2 + $0x70] sm:$0xf] %vm271_vm3, %v4213_v6  ;;  %v3788_v55 = vadd.f32 %v15184_v61, %v3537_v33  ;;  %11839 = vmatmul.msk.bf16.gmra.mxu0 %vm325_vm10, %v5388_v23  ;;  %v4632_v46 = vshll.u32 %v15284_v14, 16  ;;  %v4630_v24 = vor.u32 %v4628_v15, %v4626_v37 }
 0x39e   : >> { %v4216_v49 = vshrl.u32 %v3937_v42, 16  ;;  %v4219_v25 = vshll.u32 %v3937_v42, 16  ;;  %v5734_v11 = vshrl.u32 %v15286_v3, 16  ;;  %v5737_v23 = vshll.u32 %v15286_v3, 16 }
 0x39f   : >> { %v3829_v13 = vadd.f32 %v14811_v7, %v3788_v55  ;;  %v15297_v61 = vpop.f32.mrf.mxu1  ;;  %v4634_v33 = vrot.slane %v4632_v46, 1  ;;  %v15300_v47 = vpop.f32.mrf.mxu3 }
 0x3a0   : >> { %v4218_v20 = vrot.slane %v4216_v49, 6  ;;  %v4221_v6 = vrot.slane %v4219_v25, 7  ;;  %v3107_v63 = vpop.f32.mrf.mxu2  ;;  %v5736_v15 = vrot.slane %v5734_v11, 1  ;;  %v17991_v49 = vld [vmem:[#allocation32_spill] sm:$0xff] }
 0x3a1   : >> { %v3865_v50 = vmax.f32 %v3829_v13, 0.0  ;;  %v3154_v42 = vadd.f32 %v3107_v63, %v2778_v53  ;;  %v4635_v37 = vsel %vm1062_vm2, %v4630_v24, %v4634_v33  ;;  %v15304_v55 = vpop.f32.mrf.mxu0  ;;  %vm17992_vm1 = vcmp.gt.f32.partialorder %v17991_v49, 0.5 }
 0x3a2   : >> { %v4222_v29 = vor.u32 %v4221_v6, %v4218_v20  ;;  %11686 = vmatmul.msk.bf16.gmra.mxu1 %vm325_vm10, %v4635_v37  ;;  %v5739_v13 = vrot.slane %v5737_v23, 2  ;;  %v12839_v20 = vld [vmem:[#allocation2 + $0x28] sm:$0xff] }
 0x3a3   : >> { %v3902_v25 = vsel %vm17992_vm1, %v3865_v50, 0.0  ;;  %v3538_v46 = vadd.f32 %v15219_v36, %v3154_v42  ;;  %v17993_v50 = vrot.slane %v14705_v43, 1  ;;  %v15323_v23 = vld [vmem:[#allocation2 + $0x68] sm:$0xff] }
 0x3a4   : >> { %v4223_v63 = vsel %vm13290_vm8, %v4214_v22, %v4222_v29  ;;  %v3938_v53 = vpack.c.bf16 %v3902_v25, %v3902_v25  ;;  %v15320_v11 = vor.u32 %v5739_v13, %v5736_v15  ;;  %v17678_v15 = vrot.slane %v14882_v38, 1 }
 0x3a5   : >> { %4370 = vst.msk [vmem:[#allocation2 + $0x74] sm:$0xf] %vm271_vm3, %v4223_v63  ;;  %v3789_v10 = vadd.f32 %v15223_v0, %v3538_v46  ;;  %11705 = vmatmul.msk.bf16.gmra.mxu2 %vm325_vm10, %v12839_v20  ;;  %v5014_v36 = vsel %vm1535_vm9, %v17993_v50, %v17680_v59  ;;  %v17995_v46 = vld [vmem:[#allocation59_spill] sm:$0xff] }
 0x3a6   : >> { %v4226_v24 = vshrl.u32 %v3938_v53, 16  ;;  %v4229_v6 = vshll.u32 %v3938_v53, 16  ;;  %11739 = vmatmul.msk.bf16.gmra.mxu3 %vm325_vm10, %v5014_v36  ;;  %v15329_v0 = vsel %vm2162_vm12, %v15239_v32, %v15320_v11  ;;  %v17679_v53 = vrot.slane %v15286_v3, 2  ;;  %v17996_v36 = vld [vmem:[#allocation33_spill] sm:$0xff] }
 0x3a7   : >> { %v3830_v42 = vadd.f32 %v14811_v7, %v3789_v10  ;;  %17994 = vst [vmem:[#allocation58_spill] sm:$0xff] %v15329_v0  ;;  %v15331_v49 = vpop.f32.mrf.mxu1  ;;  %v15335_v63 = vpop.f32.mrf.mxu3  ;;  %v4224_v10 = vrot.slane %v4222_v29, 4  ;;  %v17681_v32 = vrot.slane %v15323_v23, 3  ;;  %vm17997_vm1 = vcmp.gt.f32.partialorder %v17996_v36, 0.5 }
 0x3a8   : >> { %v4228_v22 = vrot.slane %v4226_v24, 6  ;;  %v4231_v37 = vrot.slane %v4229_v6, 7  ;;  %v3110_v43 = vpop.f32.mrf.mxu2 }
 0x3a9   : >> { %v3866_v25 = vmax.f32 %v3830_v42, 0.0  ;;  %v3155_v13 = vadd.f32 %v3110_v43, %v17995_v46  ;;  %v15338_v50 = vpop.f32.mrf.mxu0  ;;  %v17998_v42 = vrot.slane %v15205_v2, 2 }
 0x3aa   : >> { %v4232_v20 = vor.u32 %v4231_v37, %v4228_v22  ;;  %v18000_v37 = vrot.slane %v14796_v54, 1  ;;  %v4636_v54 = vshrl.u32 %v15284_v14, 16 }
 0x3ab   : >> { %v3903_v24 = vsel %vm17997_vm1, %v3866_v25, 0.0  ;;  %v3539_v6 = vadd.f32 %v15262_v27, %v3155_v13  ;;  %v15349_v43 = vsel %vm17701_vm11, %v17998_v42, %v17679_v53  ;;  %v18001_v13 = vrot.slane %v15241_v1, 3  ;;  %v18004_v53 = vld [vmem:[#allocation43_spill] sm:$0xff] }
 0x3ac   : >> { %17999 = vst [vmem:[#allocation56_spill] sm:$0xff] %v15349_v43  ;;  %v4233_v29 = vsel %vm13290_vm8, %v4224_v10, %v4232_v20  ;;  %v3939_v22 = vpack.c.bf16 %v3903_v24, %v3903_v24  ;;  %v5390_v46 = vsel %vm1535_vm9, %v18000_v37, %v17678_v15  ;;  %v15358_v25 = vld [vmem:[#allocation2 + $0x70] sm:$0xff]  ;;  %v18003_v15 = vld [vmem:[#allocation44_spill] sm:$0xff]  ;;  %v4638_v43 = vor.u32 %v4636_v54, %v4634_v33 }
 0x3ad   : >> { %v15360_v27 = vld [vmem:[#allocation2 + $0x70] sm:$0xff]  ;;  %v15367_v36 = vsel %vm17700_vm5, %v18001_v13, %v17681_v32  ;;  %4371 = vst.msk [vmem:[#allocation2 + $0x78] sm:$0xf] %vm271_vm3, %v4233_v29  ;;  %v3790_v10 = vadd.f32 %v15265_v57, %v3539_v6  ;;  %11840 = vmatmul.msk.bf16.gmra.mxu0 %vm325_vm10, %v5390_v46  ;;  %v4640_v37 = vshll.u32 %v15358_v25, 16  ;;  %v2780_v59 = vadd.f32 %v18004_v53, %v18003_v15 }
 0x3ae   : >> { %18002 = vst [vmem:[#allocation59_spill] sm:$0xff] %v15367_v36  ;;  %v4236_v24 = vshrl.u32 %v3939_v22, 16  ;;  %v4239_v42 = vshll.u32 %v3939_v22, 16  ;;  %v5743_v13 = vshrl.u32 %v15360_v27, 16  ;;  %v5746_v46 = vshll.u32 %v15360_v27, 16 }
 0x3af   : >> { %v3831_v1 = vadd.f32 %v14811_v7, %v3790_v10  ;;  %v15378_v57 = vpop.f32.mrf.mxu1  ;;  %v4642_v6 = vrot.slane %v4640_v37, 1  ;;  %v15381_v0 = vpop.f32.mrf.mxu3  ;;  %v4234_v15 = vrot.slane %v4232_v20, 4 }
 0x3b0   : >> { %v4238_v32 = vrot.slane %v4236_v24, 6  ;;  %v4241_v29 = vrot.slane %v4239_v42, 7  ;;  %v3112_v36 = vpop.f32.mrf.mxu2  ;;  %v5745_v54 = vrot.slane %v5743_v13, 1  ;;  %v18005_v24 = vld [vmem:[#allocation34_spill] sm:$0xff] }
 0x3b1   : >> { %v3867_v52 = vmax.f32 %v3831_v1, 0.0  ;;  %v3156_v22 = vadd.f32 %v3112_v36, %v2780_v59  ;;  %v4643_v33 = vsel %vm1062_vm2, %v4638_v43, %v4642_v6  ;;  %v15385_v10 = vpop.f32.mrf.mxu0  ;;  %vm18006_vm1 = vcmp.gt.f32.partialorder %v18005_v24, 0.5 }
 0x3b2   : >> { %v4242_v53 = vor.u32 %v4241_v29, %v4238_v32  ;;  %11687 = vmatmul.msk.bf16.gmra.mxu1 %vm325_vm10, %v4643_v33  ;;  %v5748_v1 = vrot.slane %v5746_v46, 2  ;;  %v12840_v32 = vld [vmem:[#allocation2 + $0x30] sm:$0xff] }
 0x3b3   : >> { %v3904_v42 = vsel %vm18006_vm1, %v3867_v52, 0.0  ;;  %v3540_v37 = vadd.f32 %v15300_v47, %v3156_v22  ;;  %v18007_v52 = vrot.slane %v14794_v4, 1  ;;  %v15404_v46 = vld [vmem:[#allocation2 + $0x70] sm:$0xff] }
 0x3b4   : >> { %v4243_v59 = vsel %vm13290_vm8, %v4234_v15, %v4242_v53  ;;  %v3940_v36 = vpack.c.bf16 %v3904_v42, %v3904_v42  ;;  %v15401_v43 = vor.u32 %v5748_v1, %v5745_v54  ;;  %v17683_v54 = vrot.slane %v14961_v16, 1 }
 0x3b5   : >> { %4372 = vst.msk [vmem:[#allocation2 + $0x7c] sm:$0xf] %vm271_vm3, %v4243_v59  ;;  %v3791_v20 = vadd.f32 %v15304_v55, %v3540_v37  ;;  %11706 = vmatmul.msk.bf16.gmra.mxu2 %vm325_vm10, %v12840_v32  ;;  %v5016_v47 = vsel %vm1535_vm9, %v18007_v52, %v17684_v58  ;;  %v18009_v37 = vld [vmem:[#allocation45_spill] sm:$0xff]  ;;  %v18010_v52 = vld [vmem:[#allocation35_spill] sm:$0xff] }
 0x3b6   : >> { %v4246_v13 = vshrl.u32 %v3940_v36, 16  ;;  %v4249_v29 = vshll.u32 %v3940_v36, 16  ;;  %11740 = vmatmul.msk.bf16.gmra.mxu3 %vm325_vm10, %v5016_v47  ;;  %v15410_v55 = vsel %vm2162_vm12, %v15320_v11, %v15401_v43  ;;  %v17682_v36 = vrot.slane %v15360_v27, 2  ;;  %v15458_v58 = vld [vmem:[%s14080_s5] ss:$0 sm:$0xff] }
 0x3b7   : >> { %v3832_v22 = vadd.f32 %v14811_v7, %v3791_v20  ;;  %18008 = vst [vmem:[#allocation44_spill] sm:$0xff] %v15410_v55  ;;  %v15412_v24 = vpop.f32.mrf.mxu1  ;;  %v15416_v59 = vpop.f32.mrf.mxu3  ;;  %v4244_v7 = vrot.slane %v4242_v53, 4  ;;  %v17685_v11 = vrot.slane %v15404_v46, 3  ;;  %vm18011_vm1 = vcmp.gt.f32.partialorder %v18010_v52, 0.5 }
 0x3b8   : >> { %v4248_v15 = vrot.slane %v4246_v13, 6  ;;  %v4251_v33 = vrot.slane %v4249_v29, 7  ;;  %v3115_v4 = vpop.f32.mrf.mxu2  ;;  %v18012_v29 = vrot.slane %v15286_v3, 2 }
 0x3b9   : >> { %v3868_v42 = vmax.f32 %v3832_v22, 0.0  ;;  %v3157_v1 = vadd.f32 %v3115_v4, %v18009_v37  ;;  %v15419_v32 = vpop.f32.mrf.mxu0  ;;  %v18015_v37 = vrot.slane %v15323_v23, 3 }
 0x3ba   : >> { %v4252_v20 = vor.u32 %v4251_v33, %v4248_v15  ;;  %v15430_v22 = vsel %vm17701_vm11, %v18012_v29, %v17682_v36  ;;  %v18014_v33 = vrot.slane %v14882_v38, 1  ;;  %v4644_v38 = vshrl.u32 %v15358_v25, 16  ;;  %v18018_v36 = vld [vmem:[#allocation46_spill] sm:$0xff] }
 0x3bb   : >> { %v3905_v47 = vsel %vm18011_vm1, %v3868_v42, 0.0  ;;  %v3541_v13 = vadd.f32 %v15335_v63, %v3157_v1  ;;  %18013 = vst [vmem:[#allocation43_spill] sm:$0xff] %v15430_v22  ;;  %v15448_v1 = vsel %vm17700_vm5, %v18015_v37, %v17685_v11 }
 0x3bc   : >> { %v4253_v53 = vsel %vm13290_vm8, %v4244_v7, %v4252_v20  ;;  %v3941_v15 = vpack.c.bf16 %v3905_v47, %v3905_v47  ;;  %v5392_v4 = vsel %vm1535_vm9, %v18014_v33, %v17683_v54  ;;  %v15439_v42 = vld [vmem:[#allocation2 + $0x78] sm:$0xff]  ;;  %18016 = vst [vmem:[#allocation45_spill] sm:$0xff] %v15448_v1  ;;  %v18017_v33 = vld [vmem:[#allocation60_spill] sm:$0xff]  ;;  %v4646_v37 = vor.u32 %v4644_v38, %v4642_v6 }
 0x3bd   : >> { %v15441_v63 = vld [vmem:[#allocation2 + $0x78] sm:$0xff]  ;;  %4373 = vst.msk [vmem:[#allocation2 + $0x80] sm:$0xf] %vm271_vm3, %v4253_v53  ;;  %v3792_v7 = vadd.f32 %v15338_v50, %v3541_v13  ;;  %11841 = vmatmul.msk.bf16.gmra.mxu0 %vm325_vm10, %v5392_v4  ;;  %v4648_v29 = vshll.u32 %v15439_v42, 16  ;;  %v2782_v54 = vadd.f32 %v18018_v36, %v18017_v33  ;;  %v17686_v36 = vrot.slane %v14959_v8, 1 }
 0x3be   : >> { %v4256_v52 = vshrl.u32 %v3941_v15, 16  ;;  %v4259_v47 = vshll.u32 %v3941_v15, 16  ;;  %v5752_v53 = vshrl.u32 %v15441_v63, 16  ;;  %v5755_v15 = vshll.u32 %v15441_v63, 16 }
 0x3bf   : >> { %v3833_v23 = vadd.f32 %v15458_v58, %v3792_v7  ;;  %v15462_v4 = vpop.f32.mrf.mxu1  ;;  %v4650_v1 = vrot.slane %v4648_v29, 1  ;;  %v15465_v12 = vpop.f32.mrf.mxu3  ;;  %v4254_v33 = vrot.slane %v4252_v20, 4 }
 0x3c0   : >> { %v4258_v11 = vrot.slane %v4256_v52, 6  ;;  %v4261_v50 = vrot.slane %v4259_v47, 7  ;;  %v3117_v13 = vpop.f32.mrf.mxu2  ;;  %v5754_v38 = vrot.slane %v5752_v53, 1  ;;  %v18019_v52 = vld [vmem:[#allocation36_spill] sm:$0xff] }
 0x3c1   : >> { %v3869_v22 = vmax.f32 %v3833_v23, 0.0  ;;  %v3158_v55 = vadd.f32 %v3117_v13, %v2782_v54  ;;  %v4651_v6 = vsel %vm1062_vm2, %v4646_v37, %v4650_v1  ;;  %v15469_v7 = vpop.f32.mrf.mxu0  ;;  %vm18020_vm1 = vcmp.gt.f32.partialorder %v18019_v52, 0.5 }
 0x3c2   : >> { %v4262_v19 = vor.u32 %v4261_v50, %v4258_v11  ;;  %11688 = vmatmul.msk.bf16.gmra.mxu1 %vm325_vm10, %v4651_v6  ;;  %v5757_v23 = vrot.slane %v5755_v15, 2  ;;  %v12842_v11 = vld [vmem:[#allocation2 + $0x38] sm:$0xff] }
 0x3c3   : >> { %v3906_v47 = vsel %vm18020_vm1, %v3869_v22, 0.0  ;;  %v3542_v29 = vadd.f32 %v15381_v0, %v3158_v55  ;;  %v18021_v22 = vrot.slane %v14880_v5, 1  ;;  %v15494_v15 = vld [vmem:[#allocation2 + $0x78] sm:$0xff] }
 0x3c4   : >> { %v4263_v54 = vsel %vm13290_vm8, %v4254_v33, %v4262_v19  ;;  %v3942_v13 = vpack.c.bf16 %v3906_v47, %v3906_v47  ;;  %v15485_v55 = vor.u32 %v5757_v23, %v5754_v38  ;;  %v17688_v38 = vrot.slane %v15043_v35, 1 }
 0x3c5   : >> { %4374 = vst.msk [vmem:[#allocation2 + $0x84] sm:$0xf] %vm271_vm3, %v4263_v54  ;;  %v3793_v20 = vadd.f32 %v15385_v10, %v3542_v29  ;;  %11707 = vmatmul.msk.bf16.gmra.mxu2 %vm325_vm10, %v12842_v11  ;;  %v5018_v0 = vsel %vm1535_vm9, %v18021_v22, %v17686_v36  ;;  %v18023_v29 = vld [vmem:[#allocation47_spill] sm:$0xff]  ;;  %v17689_v22 = vrot.slane %v15494_v15, 3 }
 0x3c6   : >> { %v4266_v37 = vshrl.u32 %v3942_v13, 16  ;;  %v4269_v53 = vshll.u32 %v3942_v13, 16  ;;  %11741 = vmatmul.msk.bf16.gmra.mxu3 %vm325_vm10, %v5018_v0  ;;  %v15492_v10 = vsel %vm2162_vm12, %v15401_v43, %v15485_v55  ;;  %v4264_v13 = vrot.slane %v4262_v19, 4  ;;  %v18024_v0 = vld [vmem:[#allocation37_spill] sm:$0xff] }
 0x3c7   : >> { %v3834_v50 = vadd.f32 %v15458_v58, %v3793_v20  ;;  %18022 = vst [vmem:[#allocation60_spill] sm:$0xff] %v15492_v10  ;;  %v15496_v52 = vpop.f32.mrf.mxu1  ;;  %v15500_v54 = vpop.f32.mrf.mxu3  ;;  %v17687_v43 = vrot.slane %v15441_v63, 2  ;;  %vm18025_vm1 = vcmp.gt.f32.partialorder %v18024_v0, 0.5  ;;  %v18026_v19 = vrot.slane %v14961_v16, 1 }
 0x3c8   : >> { %v4268_v33 = vrot.slane %v4266_v37, 6  ;;  %v4271_v6 = vrot.slane %v4269_v53, 7  ;;  %v3120_v5 = vpop.f32.mrf.mxu2 }
 0x3c9   : >> { %v3870_v47 = vmax.f32 %v3834_v50, 0.0  ;;  %v3159_v23 = vadd.f32 %v3120_v5, %v18023_v29  ;;  %v15502_v11 = vpop.f32.mrf.mxu0  ;;  %v18027_v29 = vrot.slane %v15360_v27, 2 }
 0x3ca   : >> { %v4272_v20 = vor.u32 %v4271_v6, %v4268_v33  ;;  %v5394_v33 = vsel %vm1535_vm9, %v18026_v19, %v17688_v38 }
 0x3cb   : >> { %v3907_v37 = vsel %vm18025_vm1, %v3870_v47, 0.0  ;;  %v3543_v53 = vadd.f32 %v15416_v59, %v3159_v23  ;;  %v4652_v59 = vshrl.u32 %v15439_v42, 16  ;;  %v15529_v16 = vsel %vm17701_vm11, %v18027_v29, %v17687_v43 }
 0x3cc   : >> { %v4273_v50 = vsel %vm13290_vm8, %v4264_v13, %v4272_v20  ;;  %v3943_v36 = vpack.c.bf16 %v3907_v37, %v3907_v37  ;;  %v15516_v6 = vld [vmem:[#allocation2 + $0x80] sm:$0xff]  ;;  %18028 = vst [vmem:[#allocation46_spill] sm:$0xff] %v15529_v16  ;;  %v18029_v23 = vrot.slane %v15404_v46, 3 }
 0x3cd   : >> { %v15518_v5 = vld [vmem:[#allocation2 + $0x80] sm:$0xff]  ;;  %4375 = vst.msk [vmem:[#allocation2 + $0x88] sm:$0xf] %vm271_vm3, %v4273_v50  ;;  %v3794_v47 = vadd.f32 %v15419_v32, %v3543_v53  ;;  %11842 = vmatmul.msk.bf16.gmra.mxu0 %vm325_vm10, %v5394_v33  ;;  %v4656_v37 = vshll.u32 %v15516_v6, 16  ;;  %v4654_v33 = vor.u32 %v4652_v59, %v4650_v1 }
 0x3ce   : >> { %v15536_v13 = vsel %vm17700_vm5, %v18029_v23, %v17689_v22  ;;  %v4276_v0 = vshrl.u32 %v3943_v36, 16  ;;  %v4279_v32 = vshll.u32 %v3943_v36, 16  ;;  %v18031_v53 = vld [vmem:[#allocation48_spill] sm:$0xff]  ;;  %v5761_v29 = vshrl.u32 %v15518_v5, 16 }
 0x3cf   : >> { %18030 = vst [vmem:[#allocation47_spill] sm:$0xff] %v15536_v13  ;;  %v2784_v50 = vadd.f32 %v14926_v48, %v18031_v53  ;;  %v3835_v19 = vadd.f32 %v15458_v58, %v3794_v47  ;;  %v15543_v10 = vpop.f32.mrf.mxu1  ;;  %v15545_v46 = vrot.slane %v4656_v37, 1  ;;  %v5764_v23 = vshll.u32 %v15518_v5, 16  ;;  %v15548_v13 = vpop.f32.mrf.mxu3 }
 0x3d0   : >> { %v4278_v43 = vrot.slane %v4276_v0, 6  ;;  %v4281_v38 = vrot.slane %v4279_v32, 7  ;;  %v3122_v16 = vpop.f32.mrf.mxu2  ;;  %v17693_v48 = vrot.slane %v15041_v31, 1  ;;  %v4274_v53 = vrot.slane %v4272_v20, 4  ;;  %v18032_v32 = vld [vmem:[#allocation38_spill] sm:$0xff]  ;;  %v12843_v20 = vld [vmem:[#allocation2 + $0x40] sm:$0xff] }
 0x3d1   : >> { %v3871_v36 = vmax.f32 %v3835_v19, 0.0  ;;  %v3160_v22 = vadd.f32 %v3122_v16, %v2784_v50  ;;  %v4659_v1 = vsel %vm1062_vm2, %v4654_v33, %v15545_v46  ;;  %v15553_v59 = vpop.f32.mrf.mxu0  ;;  %v5763_v0 = vrot.slane %v5761_v29, 1 }
 0x3d2   : >> { %v4282_v47 = vor.u32 %v4281_v38, %v4278_v43  ;;  %vm18033_vm1 = vcmp.gt.f32.partialorder %v18032_v32, 0.5  ;;  %11689 = vmatmul.msk.bf16.gmra.mxu1 %vm325_vm10, %v4659_v1  ;;  %v5766_v16 = vrot.slane %v5764_v23, 2  ;;  %v18034_v43 = vrot.slane %v14959_v8, 1 }
 0x3d3   : >> { %v3908_v37 = vsel %vm18033_vm1, %v3871_v36, 0.0  ;;  %v3544_v60 = vadd.f32 %v15465_v12, %v3160_v22 }
 0x3d4   : >> { %v4283_v50 = vsel %vm13290_vm8, %v4274_v53, %v4282_v47  ;;  %v3944_v19 = vpack.c.bf16 %v3908_v37, %v3908_v37  ;;  %v5020_v12 = vsel %vm1535_vm9, %v18034_v43, %v17693_v48  ;;  %v15569_v22 = vor.u32 %v5766_v16, %v5763_v0 }
 0x3d5   : >> { %4376 = vst.msk [vmem:[#allocation2 + $0x8c] sm:$0xf] %vm271_vm3, %v4283_v50  ;;  %v3795_v38 = vadd.f32 %v15469_v7, %v3544_v60  ;;  %11708 = vmatmul.msk.bf16.gmra.mxu2 %vm325_vm10, %v12843_v20  ;;  %v15578_v7 = vld [vmem:[#allocation2 + $0x80] sm:$0xff]  ;;  %v17692_v0 = vrot.slane %v15124_v30, 1  ;;  %v4284_v16 = vrot.slane %v4282_v47, 4  ;;  %v18038_v47 = vrot.slane %v15043_v35, 1 }
 0x3d6   : >> { %v4286_v33 = vshrl.u32 %v3944_v19, 16  ;;  %v4289_v29 = vshll.u32 %v3944_v19, 16  ;;  %11742 = vmatmul.msk.bf16.gmra.mxu3 %vm325_vm10, %v5020_v12  ;;  %v15576_v60 = vsel %vm2162_vm12, %v15485_v55, %v15569_v22  ;;  %v17690_v19 = vrot.slane %v15518_v5, 2  ;;  %v18036_v20 = vld [vmem:[#allocation39_spill] sm:$0xff] }
 0x3d7   : >> { %v3836_v23 = vadd.f32 %v15458_v58, %v3795_v38  ;;  %18035 = vst [vmem:[#allocation48_spill] sm:$0xff] %v15576_v60  ;;  %v15580_v1 = vpop.f32.mrf.mxu1  ;;  %v15584_v58 = vpop.f32.mrf.mxu3  ;;  %v17691_v38 = vrot.slane %v15578_v7, 3  ;;  %vm18037_vm1 = vcmp.gt.f32.partialorder %v18036_v20, 0.5  ;;  %v4379_v60 = vld [vmem:[#allocation2 + $0x98] sm:$0x3] }
 0x3d8   : >> { %v4288_v36 = vrot.slane %v4286_v33, 6  ;;  %v4291_v8 = vrot.slane %v4289_v29, 7  ;;  %v4898_v53 = vpop.f32.mrf.mxu2  ;;  %v12679_v33 = vld [vmem:[%s13278_s27 + $0xe8] sm:$0xff]  ;;  %v12698_v29 = vld [vmem:[%s13278_s27 + $0xf8] sm:$0xff] }
 0x3d9   : >> { %v3872_v32 = vmax.f32 %v3836_v23, 0.0  ;;  %v4899_v37 = vadd.f32 %v4898_v53, %v14972_v40  ;;  %v15586_v55 = vpop.f32.mrf.mxu0  ;;  %6118 = vmatpush.bf16.msra.mxu2 %v12679_v33  ;;  %v4660_v33 = vshrl.u32 %v15516_v6, 16  ;;  %6494 = vmatpush.bf16.msra.mxu3 %v12698_v29 }
 0x3da   : >> { %v4292_v50 = vor.u32 %v4291_v8, %v4288_v36  ;;  %v5396_v36 = vsel %vm1535_vm9, %v18038_v47, %v17692_v0  ;;  %v17695_v0 = vrot.slane %v15122_v18, 1 }
 0x3db   : >> { %v3909_v43 = vsel %vm18037_vm1, %v3872_v32, 0.0  ;;  %v5202_v12 = vadd.f32 %v15500_v54, %v4899_v37  ;;  %v18040_v32 = vrot.slane %v15441_v63, 2  ;;  %v18042_v37 = vrot.slane %v15494_v15, 3 }
 0x3dc   : >> { %v4293_v40 = vsel %vm13290_vm8, %v4284_v16, %v4292_v50  ;;  %v3945_v23 = vpack.c.bf16 %v3909_v43, %v3909_v43  ;;  %v15602_v8 = vld [vmem:[#allocation2 + $0x88] sm:$0xff]  ;;  %v4662_v15 = vor.u32 %v4660_v33, %v15545_v46  ;;  %v4294_v48 = vrot.slane %v4292_v50, 4  ;;  %v12702_v33 = vld [vmem:[%s13278_s27 + $0x118] sm:$0xff] }
 0x3dd   : >> { %v15604_v53 = vld [vmem:[#allocation2 + $0x88] sm:$0xff]  ;;  %4377 = vst.msk [vmem:[#allocation2 + $0x90] sm:$0xf] %vm271_vm3, %v4293_v40  ;;  %11843 = vmatmul.msk.bf16.gmra.mxu0 %vm325_vm10, %v5396_v36  ;;  %v15609_v54 = vadd.f32 %v15502_v11, %v5202_v12  ;;  %v15616_v35 = vsel %vm17701_vm11, %v18040_v32, %v17690_v19  ;;  %v15623_v16 = vsel %vm17700_vm5, %v18042_v37, %v17691_v38  ;;  %v4664_v11 = vshll.u32 %v15602_v8, 16 }
 0x3de   : >> { %18041 = vst [vmem:[#allocation83_spill] sm:$0xff] %v15616_v35  ;;  %v4296_v20 = vshrl.u32 %v3945_v23, 16  ;;  %v4299_v43 = vshll.u32 %v3945_v23, 16  ;;  %v5770_v12 = vshrl.u32 %v15604_v53, 16  ;;  %v5773_v40 = vshll.u32 %v15604_v53, 16  ;;  %v12700_v46 = vld [vmem:[%s13278_s27 + $0x108] sm:$0xff]  ;;  %7127 = vmatpush.bf16.msra.mxu1 %v12702_v33 }
 0x3df   : >> { %18039 = vst [vmem:[#allocation82_spill] sm:$0xff] %v15609_v54  ;;  %v15629_v19 = vpop.f32.mrf.mxu1  ;;  %v4666_v37 = vrot.slane %v4664_v11, 1  ;;  %v5119_v38 = vpop.f32.mrf.mxu3  ;;  %v12844_v50 = vld [vmem:[#allocation2 + $0x48] sm:$0xff]  ;;  %6877 = vmatpush.bf16.msra.mxu0 %v12700_v46  ;;  %v6040_v33 = vrot.slane %v15604_v53, 2 }
 0x3e0   : >> { %18043 = vst [vmem:[#allocation84_spill] sm:$0xff] %v15623_v16  ;;  %v4298_v47 = vrot.slane %v4296_v20, 6  ;;  %v4301_v36 = vrot.slane %v4299_v43, 7  ;;  %v4900_v32 = vpop.f32.mrf.mxu2  ;;  %v5772_v29 = vrot.slane %v5770_v12, 1  ;;  %v5775_v43 = vrot.slane %v5773_v40, 2 }
 0x3e1   : >> { %v4901_v23 = vadd.f32 %v4900_v32, %v15008_v9  ;;  %v4667_v35 = vsel %vm1062_vm2, %v4662_v15, %v4666_v37  ;;  %v15635_v20 = vpop.f32.mrf.mxu0  ;;  %v18044_v40 = vrot.slane %v15041_v31, 1  ;;  %v15662_v31 = vld [vmem:[#allocation2 + $0x88] sm:$0xff] }
 0x3e2   : >> { %v4302_v16 = vor.u32 %v4301_v36, %v4298_v47  ;;  %11690 = vmatmul.msk.bf16.gmra.mxu1 %vm325_vm10, %v4667_v35  ;;  %v5776_v12 = vor.u32 %v5775_v43, %v5772_v29 }
 0x3e3   : >> { %v5203_v54 = vadd.f32 %v15548_v13, %v4901_v23  ;;  %v5022_v13 = vsel %vm1535_vm9, %v18044_v40, %v17695_v0  ;;  %v18049_v40 = vrot.slane %v15578_v7, 3 }
 0x3e4   : >> { %v4303_v9 = vsel %vm13290_vm8, %v4294_v48, %v4302_v16  ;;  %v4304_v11 = vrot.slane %v4302_v16, 4  ;;  %v4426_v32 = vld [vmem:[#allocation2 + $0x90] sm:$0x1]  ;;  %v15658_v36 = vsel %vm2162_vm12, %v15569_v22, %v5776_v12  ;;  %v17694_v22 = vrot.slane %v15662_v31, 3 }
 0x3e5   : >> { %4378 = vst.msk [vmem:[#allocation2 + $0x94] sm:$0xf] %vm271_vm3, %v4303_v9  ;;  %11709 = vmatmul.msk.bf16.gmra.mxu2 %vm325_vm10, %v12844_v50  ;;  %v4508_v35 = vunpack.c.l.b16 %v4426_v32  ;;  %v15651_v47 = vadd.f32 %v15553_v59, %v5203_v54  ;;  %v5397_v59 = vrot.slane %v15205_v2, 1  ;;  %v18047_v2 = vrot.slane %v15518_v5, 2 }
 0x3e6   : >> { %v4380_v16 = vsel %vm13161_vm6, %v4304_v11, %v4379_v60  ;;  %11743 = vmatmul.msk.bf16.gmra.mxu3 %vm325_vm10, %v5022_v13  ;;  %v18046_v11 = vrot.slane %v15124_v30, 1  ;;  %v15687_v13 = vsel %vm17700_vm5, %v18049_v40, %v17694_v22 }
 0x3e7   : >> { %4381 = vst [vmem:[#allocation2 + $0x98] sm:$0x3] %v4380_v16  ;;  %v15660_v15 = vpack.c.b16 %v4508_v35, %v4508_v35  ;;  %v15664_v29 = vpop.f32.mrf.mxu1 }
 0x3e8   : >> { %v4903_v23 = vpop.f32.mrf.mxu2  ;;  %v5398_v32 = vsel %vm1535_vm9, %v18046_v11, %v5397_v59  ;;  %18050 = vst [vmem:[#allocation86_spill] sm:$0xff] %v15687_v13 }
 0x3e9   : >> { %v4904_v54 = vadd.f32 %v4903_v23, %v15054_v28  ;;  %v5122_v60 = vpop.f32.mrf.mxu3  ;;  %v5498_v43 = vpop.f32.mrf.mxu0  ;;  %v4672_v46 = vshll.u32 %v15660_v15, 16  ;;  %v15680_v28 = vsel %vm17701_vm11, %v18047_v2, %v6040_v33 }
 0x3ea   : >> { %18048 = vst [vmem:[#allocation85_spill] sm:$0xff] %v15680_v28  ;;  %v5025_v28 = vrot.slane %v15284_v14, 1 }
 0x3eb   : >> { %v5204_v9 = vadd.f32 %v15584_v58, %v4904_v54  ;;  %v4668_v58 = vshrl.u32 %v15602_v8, 16  ;;  %v4674_v35 = vrot.slane %v4672_v46, 1 }
 0x3ec   : >> { %v15675_v50 = vld [vmem:[#allocation2 + $0x90] sm:$0xff] }
 0x3ed   : >> { %11844 = vmatmul.msk.bf16.gmra.mxu0 %vm325_vm10, %v5398_v32  ;;  %v15691_v30 = vadd.f32 %v15586_v55, %v5204_v9  ;;  %v5779_v48 = vshrl.u32 %v15675_v50, 16  ;;  %v5782_v16 = vshll.u32 %v15675_v50, 16  ;;  %v4670_v11 = vor.u32 %v4668_v58, %v4666_v37  ;;  %v12845_v58 = vld [vmem:[#allocation2 + $0x50] sm:$0xff] }
 0x3ee   : >> { %v5023_v32 = vrot.slane %v15203_v51, 1  ;;  %v5614_v37 = vld [vmem:[#allocation2 + $0x98] sm:$0x3] }
 0x3ef   : >> { %v15696_v54 = vpop.f32.mrf.mxu1  ;;  %v5781_v7 = vrot.slane %v5779_v48, 1  ;;  %v5784_v2 = vrot.slane %v5782_v16, 2  ;;  %v4675_v55 = vsel %vm1062_vm2, %v4670_v11, %v4674_v35  ;;  %v5624_v16 = vunpack.c.l.b16 %v5614_v37 }
 0x3f0   : >> { %v4905_v23 = vpop.f32.mrf.mxu2 }
 0x3f1   : >> { %v4906_v40 = vadd.f32 %v4905_v23, %v15089_v41  ;;  %v5124_v22 = vpop.f32.mrf.mxu3  ;;  %v5500_v9 = vpop.f32.mrf.mxu0  ;;  %v15701_v0 = vor.u32 %v5784_v2, %v5781_v7  ;;  %v18051_v41 = vrot.slane %v15122_v18, 1  ;;  %v6042_v18 = vrot.slane %v15675_v50, 2 }
 0x3f2   : >> { %11691 = vmatmul.msk.bf16.gmra.mxu1 %vm325_vm10, %v4675_v55 }
 0x3f3   : >> { %v5205_v46 = vadd.f32 %v5119_v38, %v4906_v40  ;;  %v15706_v44 = vsel %vm2162_vm12, %v5776_v12, %v15701_v0  ;;  %v5024_v48 = vsel %vm1535_vm9, %v18051_v41, %v5023_v32  ;;  %v6623_v38 = vld [vmem:[#allocation2 + $0xa0] sm:$0x7]  ;;  %v5399_v12 = vrot.slane %v15286_v3, 1 }
 0x3f4   : >> { %v6633_v40 = vunpack.c.l.b16 %v6623_v38  ;;  %v15721_v41 = vpack.c.b16 %v5624_v16, %v5624_v16  ;;  %v15725_v37 = vsel %vm17701_vm11, %v6040_v33, %v6042_v18 }
 0x3f5   : >> { %11710 = vmatmul.msk.bf16.gmra.mxu2 %vm325_vm10, %v12845_v58  ;;  %v15713_v35 = vadd.f32 %v15635_v20, %v5205_v46  ;;  %v5400_v20 = vsel %vm1535_vm9, %v5397_v59, %v5399_v12  ;;  %v12695_v46 = vld [vmem:[#allocation2 + $0x90] sm:$0xff]  ;;  %18052 = vst [vmem:[#allocation87_spill] sm:$0xff] %v15725_v37 }
 0x3f6   : >> { %11744 = vmatmul.msk.bf16.gmra.mxu3 %vm325_vm10, %v5024_v48  ;;  %v12696_v48 = vld [vmem:[#allocation2 + $0x98] sm:$0xff]  ;;  %v6044_v38 = vrot.slane %v15721_v41, 2 }
 0x3f7   : >> { %v15716_v11 = vpop.f32.mrf.mxu1  ;;  %v7051_v16 = vrot.slane %v12696_v48, 3  ;;  %v18058_v48 = vld [vmem:[#allocation49_spill] sm:$0xff] }
 0x3f8   : >> { %v4908_v23 = vpop.f32.mrf.mxu2  ;;  %v15738_v33 = vsel %vm17701_vm11, %v6042_v18, %v6044_v38  ;;  %v12846_v18 = vld [vmem:[#allocation2 + $0x58] sm:$0xff]  ;;  %v5026_v38 = vsel %vm1535_vm9, %v5023_v32, %v5025_v28 }
 0x3f9   : >> { %v4909_v7 = vadd.f32 %v4908_v23, %v15135_v62  ;;  %v5127_v2 = vpop.f32.mrf.mxu3  ;;  %v5503_v55 = vpop.f32.mrf.mxu0  ;;  %v15730_v62 = vpack.c.b16 %v6633_v40, %v6633_v40  ;;  %18054 = vst [vmem:[#allocation89_spill] sm:$0xff] %v15738_v33  ;;  %v18055_v40 = vrot.slane %v15662_v31, 3 }
 0x3fb   : >> { %v5206_v58 = vadd.f32 %v5122_v60, %v4909_v7  ;;  %18053 = vst [vmem:[#allocation88_spill] sm:$0xff] %v15730_v62  ;;  %v7049_v60 = vrot.slane %v12695_v46, 3 }
 0x3fd   : >> { %11845 = vmatmul.msk.bf16.gmra.mxu0 %vm325_vm10, %v5400_v20  ;;  %v15728_v3 = vadd.f32 %v5498_v43, %v5206_v58  ;;  %v7053_v43 = vrot.slane %v15730_v62, 3  ;;  %v15744_v20 = vsel %vm17700_vm5, %v18055_v40, %v7049_v60  ;;  %v15747_v37 = vsel %vm17700_vm5, %v7049_v60, %v7051_v16 }
 0x3fe   : >> { %18056 = vst [vmem:[#allocation90_spill] sm:$0xff] %v15744_v20  ;;  %v18066_v20 = vld [vmem:[#allocation82_spill] sm:$0xff] }
 0x3ff   : >> { %v15733_v13 = vpop.f32.mrf.mxu1  ;;  %18057 = vst [vmem:[#allocation91_spill] sm:$0xff] %v15747_v37 }
 0x400   : >> { %v4910_v23 = vpop.f32.mrf.mxu2 }
 0x401   : >> { %v4911_v59 = vadd.f32 %v4910_v23, %v15170_v45  ;;  %v5129_v7 = vpop.f32.mrf.mxu3  ;;  %v5505_v58 = vpop.f32.mrf.mxu0  ;;  %v15752_v45 = vsel %vm17700_vm5, %v7051_v16, %v7053_v43 }
 0x402   : >> { %11867 = vmatmul.msk.bf16.vlgmr.msrb.gmra.mxu1 %vm325_vm10, %v18058_v48  ;;  %18059 = vst [vmem:[#allocation49_spill] sm:$0xff] %v15752_v45  ;;  %v5027_v45 = vrot.slane %v15358_v25, 1 }
 0x403   : >> { %v5207_v46 = vadd.f32 %v5124_v22, %v4911_v59  ;;  %v5401_v22 = vrot.slane %v15360_v27, 1 }
 0x405   : >> { %11711 = vmatmul.msk.bf16.gmra.mxu2 %vm325_vm10, %v12846_v18  ;;  %v15756_v23 = vadd.f32 %v5500_v9, %v5207_v46  ;;  %v5402_v43 = vsel %vm1535_vm9, %v5399_v12, %v5401_v22  ;;  %v5028_v12 = vsel %vm1535_vm9, %v5025_v28, %v5027_v45 }
 0x406   : >> { %11745 = vmatmul.msk.bf16.gmra.mxu3 %vm325_vm10, %v5026_v38 }
 0x407   : >> { %v15759_v40 = vpop.f32.mrf.mxu1 }
 0x408   : >> { %v4913_v31 = vpop.f32.mrf.mxu2 }
 0x409   : >> { %v4914_v60 = vadd.f32 %v4913_v31, %v15216_v26  ;;  %v5132_v59 = vpop.f32.mrf.mxu3  ;;  %v18060_v26 = vld [vmem:[#allocation62_spill] sm:$0xff] }
 0x40a   : >> { %v5508_v48 = vpop.f32.mrf.mxu0 }
 0x40b   : >> { %v5208_v16 = vadd.f32 %v5127_v2, %v4914_v60 }
 0x40d   : >> { %11846 = vmatmul.msk.bf16.gmra.mxu0 %vm325_vm10, %v5402_v43  ;;  %v15765_v18 = vadd.f32 %v5503_v55, %v5208_v16 }
 0x40f   : >> { %v15767_v9 = vpop.f32.mrf.mxu1 }
 0x410   : >> { %v4915_v32 = vpop.f32.mrf.mxu2 }
 0x411   : >> { %v4916_v46 = vadd.f32 %v4915_v32, %v15251_v21  ;;  %v5134_v38 = vpop.f32.mrf.mxu3  ;;  %v5403_v21 = vrot.slane %v15441_v63, 1 }
 0x412   : >> { %v5510_v27 = vpop.f32.mrf.mxu0  ;;  %11868 = vmatmul.msk.bf16.gmra.mxu1 %vm325_vm10, %v18060_v26  ;;  %v5029_v26 = vrot.slane %v15439_v42, 1 }
 0x413   : >> { %v5209_v37 = vadd.f32 %v5129_v7, %v4916_v46  ;;  %v5404_v32 = vsel %vm1535_vm9, %v5401_v22, %v5403_v21 }
 0x414   : >> { %v5030_v22 = vsel %vm1535_vm9, %v5027_v45, %v5029_v26 }
 0x415   : >> { %11712 = vmatmul.msk.bf16.gmra.mxu2 %vm325_vm10, %v15203_v51  ;;  %v15776_v2 = vadd.f32 %v5505_v58, %v5209_v37 }
 0x416   : >> { %11746 = vmatmul.msk.bf16.gmra.mxu3 %vm325_vm10, %v5028_v12 }
 0x417   : >> { %v15779_v31 = vpop.f32.mrf.mxu1 }
 0x418   : >> { %v4918_v55 = vpop.f32.mrf.mxu2 }
 0x419   : >> { %v4919_v60 = vadd.f32 %v4918_v55, %v15297_v61  ;;  %v5137_v7 = vpop.f32.mrf.mxu3  ;;  %v18061_v61 = vld [vmem:[#allocation65_spill] sm:$0xff] }
 0x41a   : >> { %v5513_v16 = vpop.f32.mrf.mxu0 }
 0x41b   : >> { %v5210_v43 = vadd.f32 %v5132_v59, %v4919_v60 }
 0x41d   : >> { %11847 = vmatmul.msk.bf16.gmra.mxu0 %vm325_vm10, %v5404_v32  ;;  %v15785_v51 = vadd.f32 %v5508_v48, %v5210_v43 }
 0x41f   : >> { %v15787_v37 = vpop.f32.mrf.mxu1 }
 0x420   : >> { %v4920_v28 = vpop.f32.mrf.mxu2 }
 0x421   : >> { %v4921_v58 = vadd.f32 %v4920_v28, %v15331_v49  ;;  %v5139_v46 = vpop.f32.mrf.mxu3  ;;  %v5405_v49 = vrot.slane %v15518_v5, 1 }
 0x422   : >> { %v5515_v63 = vpop.f32.mrf.mxu0  ;;  %11869 = vmatmul.msk.bf16.gmra.mxu1 %vm325_vm10, %v18061_v61  ;;  %v5031_v61 = vrot.slane %v15516_v6, 1 }
 0x423   : >> { %v5211_v12 = vadd.f32 %v5134_v38, %v4921_v58  ;;  %v5406_v28 = vsel %vm1535_vm9, %v5403_v21, %v5405_v49 }
 0x425   : >> { %11713 = vmatmul.msk.bf16.gmra.mxu2 %vm325_vm10, %v15284_v14  ;;  %v15796_v59 = vadd.f32 %v5510_v27, %v5211_v12 }
 0x426   : >> { %11747 = vmatmul.msk.bf16.gmra.mxu3 %vm325_vm10, %v5030_v22 }
 0x427   : >> { %v15799_v55 = vpop.f32.mrf.mxu1 }
 0x428   : >> { %v4923_v48 = vpop.f32.mrf.mxu2 }
 0x429   : >> { %v4924_v60 = vadd.f32 %v4923_v48, %v15378_v57  ;;  %v5142_v38 = vpop.f32.mrf.mxu3  ;;  %v5032_v57 = vsel %vm1535_vm9, %v5029_v26, %v5031_v61 }
 0x42a   : >> { %v5518_v43 = vpop.f32.mrf.mxu0 }
 0x42b   : >> { %v5212_v32 = vadd.f32 %v5137_v7, %v4924_v60 }
 0x42d   : >> { %11848 = vmatmul.msk.bf16.gmra.mxu0 %vm325_vm10, %v5406_v28  ;;  %v15805_v14 = vadd.f32 %v5513_v16, %v5212_v32 }
 0x42f   : >> { %v15807_v27 = vpop.f32.mrf.mxu1 }
 0x430   : >> { %v4925_v45 = vpop.f32.mrf.mxu2 }
 0x431   : >> { %v4926_v58 = vadd.f32 %v4925_v45, %v15412_v24  ;;  %v5144_v12 = vpop.f32.mrf.mxu3  ;;  %v5407_v24 = vrot.slane %v15604_v53, 1  ;;  %v5033_v53 = vrot.slane %v15602_v8, 1 }
 0x432   : >> { %v5520_v5 = vpop.f32.mrf.mxu0  ;;  %11870 = vmatmul.msk.bf16.gmra.mxu1 %vm325_vm10, %v14696_v34 }
 0x433   : >> { %v5213_v22 = vadd.f32 %v5139_v46, %v4926_v58  ;;  %v5408_v34 = vsel %vm1535_vm9, %v5405_v49, %v5407_v24  ;;  %v5034_v49 = vsel %vm1535_vm9, %v5031_v61, %v5033_v53  ;;  %v5274_v61 = vld [vmem:[#allocation2 + $0x98] sm:$0x1] }
 0x435   : >> { %11714 = vmatmul.msk.bf16.gmra.mxu2 %vm325_vm10, %v15358_v25  ;;  %v15816_v21 = vadd.f32 %v5515_v63, %v5213_v22  ;;  %v5409_v22 = vrot.slane %v15675_v50, 1  ;;  %v5356_v50 = vunpack.c.l.b16 %v5274_v61 }
 0x436   : >> { %11748 = vmatmul.msk.bf16.gmra.mxu3 %vm325_vm10, %v5032_v57 }
 0x437   : >> { %v15819_v16 = vpop.f32.mrf.mxu1 }
 0x438   : >> { %v4928_v7 = vpop.f32.mrf.mxu2 }
 0x439   : >> { %v4929_v48 = vadd.f32 %v4928_v7, %v15462_v4  ;;  %v5147_v46 = vpop.f32.mrf.mxu3 }
 0x43a   : >> { %v5523_v60 = vpop.f32.mrf.mxu0 }
 0x43b   : >> { %v5214_v32 = vadd.f32 %v5142_v38, %v4929_v48 }
 0x43d   : >> { %11849 = vmatmul.msk.bf16.gmra.mxu0 %vm325_vm10, %v5408_v34  ;;  %v15825_v25 = vadd.f32 %v5518_v43, %v5214_v32 }
 0x43f   : >> { %v15827_v63 = vpop.f32.mrf.mxu1 }
 0x440   : >> { %v4930_v26 = vpop.f32.mrf.mxu2 }
 0x441   : >> { %v4931_v28 = vadd.f32 %v4930_v26, %v15496_v52  ;;  %v5149_v45 = vpop.f32.mrf.mxu3 }
 0x442   : >> { %v5525_v58 = vpop.f32.mrf.mxu0  ;;  %11871 = vmatmul.msk.bf16.gmra.mxu1 %vm325_vm10, %v14763_v39  ;;  %v12697_v39 = vld [vmem:[%s13278_s27 + $0xf0] sm:$0xff] }
 0x443   : >> { %v5215_v4 = vadd.f32 %v5144_v12, %v4931_v28  ;;  %6495 = vmatpush.bf16.msra.mxu3 %v12697_v39  ;;  %v6247_v39 = vld [vmem:[#allocation2 + $0x10] sm:$0xc] }
 0x445   : >> { %11715 = vmatmul.msk.bf16.gmra.mxu2 %vm325_vm10, %v15439_v42  ;;  %v15836_v38 = vadd.f32 %v5520_v5, %v5215_v4  ;;  %v5410_v42 = vsel %vm1535_vm9, %v5407_v24, %v5409_v22  ;;  %v12699_v24 = vld [vmem:[%s13278_s27 + $0x100] sm:$0xff] }
 0x446   : >> { %11749 = vmatmul.msk.bf16.gmra.mxu3 %vm325_vm10, %v5034_v49  ;;  %v12678_v49 = vld [vmem:[%s13278_s27 + $0xe0] sm:$0xff]  ;;  %6878 = vmatpush.bf16.msra.mxu0 %v12699_v24  ;;  %v12847_v24 = vld [vmem:[#allocation2 + $0x18] sm:$0xff] }
 0x447   : >> { %v15839_v52 = vpop.f32.mrf.mxu1  ;;  %6119 = vmatpush.bf16.msra.mxu2 %v12678_v49  ;;  %v6644_v49 = vshrl.u32 %v12847_v24, 16 }
 0x448   : >> { %v4933_v43 = vpop.f32.mrf.mxu2 }
 0x449   : >> { %v4934_v57 = vadd.f32 %v4933_v43, %v15543_v10  ;;  %v5152_v12 = vpop.f32.mrf.mxu3  ;;  %v5375_v43 = vpack.c.b16 %v5356_v50, %v5356_v50 }
 0x44a   : >> { %v5528_v7 = vpop.f32.mrf.mxu0 }
 0x44b   : >> { %v5216_v48 = vadd.f32 %v5147_v46, %v4934_v57  ;;  %v5035_v46 = vrot.slane %v15660_v15, 1 }
 0x44d   : >> { %11850 = vmatmul.msk.bf16.gmra.mxu0 %vm325_vm10, %v5410_v42  ;;  %v15846_v5 = vadd.f32 %v5523_v60, %v5216_v48  ;;  %v5036_v60 = vsel %vm1535_vm9, %v5033_v53, %v5035_v46 }
 0x44f   : >> { %v15848_v34 = vpop.f32.mrf.mxu1 }
 0x450   : >> { %v4935_v32 = vpop.f32.mrf.mxu2 }
 0x451   : >> { %v4936_v10 = vadd.f32 %v4935_v32, %v15580_v1  ;;  %v5154_v26 = vpop.f32.mrf.mxu3  ;;  %v6329_v32 = vunpack.c.l.b16 %v6247_v39  ;;  %v6646_v39 = vrot.slane %v6644_v49, 2 }
 0x452   : >> { %v5530_v28 = vpop.f32.mrf.mxu0  ;;  %11872 = vmatmul.msk.bf16.gmra.mxu1 %vm325_vm10, %v14848_v17 }
 0x453   : >> { %v5217_v4 = vadd.f32 %v5149_v45, %v4936_v10  ;;  %v5411_v45 = vrot.slane %v5375_v43, 1 }
 0x455   : >> { %11716 = vmatmul.msk.bf16.gmra.mxu2 %vm325_vm10, %v15516_v6  ;;  %v15859_v57 = vadd.f32 %v5525_v58, %v5217_v4  ;;  %v5412_v6 = vsel %vm1535_vm9, %v5409_v22, %v5411_v45  ;;  %v18062_v58 = vld [vmem:[#allocation64_spill] sm:$0xff] }
 0x456   : >> { %11750 = vmatmul.msk.bf16.gmra.mxu3 %vm325_vm10, %v5036_v60  ;;  %v18063_v50 = vunpack.c.l.b16 %v18062_v58 }
 0x457   : >> { %v15862_v15 = vpop.f32.mrf.mxu1 }
 0x458   : >> { %v4938_v1 = vpop.f32.mrf.mxu2  ;;  %v6366_v10 = vpack.c.b16 %v18063_v50, %v6329_v32 }
 0x459   : >> { %v4939_v17 = vadd.f32 %v4938_v1, %v15629_v19  ;;  %v5157_v48 = vpop.f32.mrf.mxu3  ;;  %v6647_v19 = vshll.u32 %v12847_v24, 16 }
 0x45a   : >> { %v5533_v42 = vpop.f32.mrf.mxu0  ;;  %v6636_v22 = vshrl.u32 %v6366_v10, 16  ;;  %v6639_v45 = vshll.u32 %v6366_v10, 16 }
 0x45b   : >> { %v5218_v61 = vadd.f32 %v5152_v12, %v4939_v17  ;;  %v6386_v12 = vrot.slane %v12847_v24, 2 }
 0x45c   : >> { %v6641_v58 = vrot.slane %v6639_v45, 3  ;;  %v12848_v45 = vld [vmem:[#allocation2 + $0x20] sm:$0xff] }
 0x45d   : >> { %11851 = vmatmul.msk.bf16.gmra.mxu0 %vm325_vm10, %v5412_v6  ;;  %v15867_v53 = vadd.f32 %v5528_v7, %v5218_v61  ;;  %v6385_v7 = vrot.slane %v6366_v10, 2  ;;  %v6649_v61 = vrot.slane %v6647_v19, 3 }
 0x45f   : >> { %v15871_v4 = vpop.f32.mrf.mxu1  ;;  %v6387_v6 = vsel %vm17701_vm11, %v6385_v7, %v6386_v12  ;;  %v6656_v7 = vshll.u32 %v12848_v45, 16 }
 0x460   : >> { %v4940_v46 = vpop.f32.mrf.mxu2 }
 0x461   : >> { %v4941_v43 = vadd.f32 %v4940_v46, %v15664_v29  ;;  %v5159_v60 = vpop.f32.mrf.mxu3  ;;  %v6638_v29 = vrot.slane %v6636_v22, 2 }
 0x462   : >> { %v5535_v1 = vpop.f32.mrf.mxu0  ;;  %11873 = vmatmul.msk.bf16.gmra.mxu1 %vm325_vm10, %v14924_v56 }
 0x463   : >> { %v5219_v17 = vadd.f32 %v5154_v26, %v4941_v43  ;;  %v6650_v26 = vor.u32 %v6649_v61, %v6646_v39  ;;  %v6642_v49 = vor.u32 %v6641_v58, %v6638_v29  ;;  %v6388_v61 = vrot.slane %v12848_v45, 2  ;;  %v18064_v58 = vld [vmem:[#allocation74_spill] sm:$0xff] }
 0x465   : >> { %11717 = vmatmul.msk.bf16.gmra.mxu2 %vm325_vm10, %v15602_v8  ;;  %v15879_v32 = vadd.f32 %v5530_v28, %v5219_v17  ;;  %v6651_v8 = vsel %vm17702_vm7, %v6642_v49, %v6650_v26  ;;  %v6653_v17 = vshrl.u32 %v12848_v45, 16  ;;  %v6389_v49 = vsel %vm17701_vm11, %v6386_v12, %v6388_v61 }
 0x466   : >> { %12001 = vmatmul.msk.bf16.vlgmr.msra.gmra.mxu3 %vm325_vm10, %v6387_v6 }
 0x467   : >> { %v15882_v46 = vpop.f32.mrf.mxu1 }
 0x468   : >> { %v4943_v50 = vpop.f32.mrf.mxu2 }
 0x469   : >> { %v4944_v56 = vadd.f32 %v4943_v50, %v15696_v54  ;;  %v5162_v10 = vpop.f32.mrf.mxu3  ;;  %v6655_v50 = vrot.slane %v6653_v17, 2 }
 0x46a   : >> { %v5538_v24 = vpop.f32.mrf.mxu0 }
 0x46b   : >> { %v5220_v19 = vadd.f32 %v5157_v48, %v4944_v56  ;;  %v12701_v48 = vld [vmem:[%s13278_s27 + $0x110] sm:$0xff]  ;;  %v6658_v56 = vrot.slane %v6656_v7, 3 }
 0x46c   : >> { %7128 = vmatpush.bf16.msra.mxu1 %v12701_v48 }
 0x46d   : >> { %12034 = vmatmul.msk.bf16.vlgmr.msra.gmra.mxu0 %vm325_vm10, %v6651_v8  ;;  %v15887_v28 = vadd.f32 %v5533_v42, %v5220_v19  ;;  %v18065_v42 = vld [vmem:[#allocation61_spill] sm:$0xff] }
 0x46f   : >> { %v15889_v22 = vpop.f32.mrf.mxu1 }
 0x470   : >> { %v4945_v43 = vpop.f32.mrf.mxu2 }
 0x471   : >> { %v4946_v39 = vadd.f32 %v4945_v43, %v15716_v11  ;;  %v5164_v54 = vpop.f32.mrf.mxu3 }
 0x472   : >> { %v5540_v6 = vpop.f32.mrf.mxu0  ;;  %11874 = vmatmul.msk.bf16.gmra.mxu1 %vm325_vm10, %v18064_v58 }
 0x473   : >> { %v5221_v29 = vadd.f32 %v5159_v60, %v4946_v39  ;;  %v6659_v60 = vor.u32 %v6658_v56, %v6655_v50 }
 0x475   : >> { %11900 = vmatmul.msk.bf16.vlgmr.msra.gmra.mxu2 %vm325_vm10, %v18065_v42  ;;  %v15898_v19 = vadd.f32 %v5535_v1, %v5221_v29  ;;  %v6660_v7 = vsel %vm17702_vm7, %v6650_v26, %v6659_v60  ;;  %v12849_v29 = vld [vmem:[#allocation2 + $0x28] sm:$0xff] }
 0x476   : >> { %12002 = vmatmul.msk.bf16.gmra.mxu3 %vm325_vm10, %v6389_v49  ;;  %v6662_v48 = vshrl.u32 %v12849_v29, 16  ;;  %v6665_v42 = vshll.u32 %v12849_v29, 16  ;;  %v6390_v56 = vrot.slane %v12849_v29, 2 }
 0x477   : >> { %v15901_v8 = vpop.f32.mrf.mxu1 }
 0x478   : >> { %v4948_v11 = vpop.f32.mrf.mxu2  ;;  %v6664_v26 = vrot.slane %v6662_v48, 2 }
 0x479   : >> { %v4949_v43 = vadd.f32 %v4948_v11, %v15733_v13  ;;  %v5167_v45 = vpop.f32.mrf.mxu3 }
 0x47a   : >> { %v5543_v39 = vpop.f32.mrf.mxu0 }
 0x47b   : >> { %v5222_v17 = vadd.f32 %v5162_v10, %v4949_v43  ;;  %v18067_v43 = vld [vmem:[#allocation77_spill] sm:$0xff] }
 0x47d   : >> { %12035 = vmatmul.msk.bf16.gmra.mxu0 %vm325_vm10, %v6660_v7  ;;  %v15906_v58 = vadd.f32 %v5538_v24, %v5222_v17  ;;  %v6667_v24 = vrot.slane %v6665_v42, 3  ;;  %v18068_v17 = vld [vmem:[#allocation63_spill] sm:$0xff]  ;;  %v6391_v7 = vsel %vm17701_vm11, %v6388_v61, %v6390_v56  ;;  %v12850_v61 = vld [vmem:[#allocation2 + $0x30] sm:$0xff] }
 0x47e   : >> { %v6671_v33 = vshrl.u32 %v12850_v61, 16 }
 0x47f   : >> { %v5871_v1 = vpop.f32.mrf.mxu1 }
 0x480   : >> { %v4950_v12 = vpop.f32.mrf.mxu2  ;;  %v15910_v50 = vadd.f32 %v5871_v1, %v18066_v20  ;;  %v6668_v20 = vor.u32 %v6667_v24, %v6664_v26  ;;  %v6392_v24 = vrot.slane %v12850_v61, 2 }
 0x481   : >> { %v4951_v49 = vadd.f32 %v4950_v12, %v15759_v40  ;;  %v5169_v13 = vpop.f32.mrf.mxu3 }
 0x482   : >> { %v5545_v11 = vpop.f32.mrf.mxu0  ;;  %11875 = vmatmul.msk.bf16.gmra.mxu1 %vm325_vm10, %v18067_v43  ;;  %v6669_v48 = vsel %vm17702_vm7, %v6659_v60, %v6668_v20  ;;  %v6673_v60 = vrot.slane %v6671_v33, 2 }
 0x483   : >> { %v5223_v10 = vadd.f32 %v5164_v54, %v4951_v49 }
 0x485   : >> { %11901 = vmatmul.msk.bf16.gmra.mxu2 %vm325_vm10, %v18068_v17  ;;  %v15924_v62 = vadd.f32 %v5540_v6, %v5223_v10  ;;  %v6393_v6 = vsel %vm17701_vm11, %v6390_v56, %v6392_v24 }
 0x486   : >> { %12003 = vmatmul.msk.bf16.gmra.mxu3 %vm325_vm10, %v6391_v7  ;;  %v6674_v7 = vshll.u32 %v12850_v61, 16 }
 0x487   : >> { %v5873_v12 = vpop.f32.mrf.mxu1  ;;  %18069 = vst [vmem:[#allocation62_spill] sm:$0xff] %v15924_v62 }
 0x488   : >> { %v4953_v40 = vpop.f32.mrf.mxu2  ;;  %v15920_v29 = vadd.f32 %v5873_v12, %v15651_v47  ;;  %v18070_v12 = vld [vmem:[#allocation80_spill] sm:$0xff] }
 0x489   : >> { %v4954_v1 = vadd.f32 %v4953_v40, %v15767_v9  ;;  %v5172_v54 = vpop.f32.mrf.mxu3 }
 0x48a   : >> { %v5548_v49 = vpop.f32.mrf.mxu0 }
 0x48b   : >> { %v5224_v43 = vadd.f32 %v5167_v45, %v4954_v1  ;;  %v6676_v1 = vrot.slane %v6674_v7, 3 }
 0x48d   : >> { %12036 = vmatmul.msk.bf16.gmra.mxu0 %vm325_vm10, %v6669_v48  ;;  %v18071_v48 = vld [vmem:[#allocation66_spill] sm:$0xff] }
 0x48f   : >> { %v5876_v17 = vpop.f32.mrf.mxu1 }
 0x490   : >> { %v4955_v42 = vpop.f32.mrf.mxu2  ;;  %v15928_v9 = vadd.f32 %v5876_v17, %v15691_v30  ;;  %v6677_v30 = vor.u32 %v6676_v1, %v6673_v60 }
 0x491   : >> { %v4956_v26 = vadd.f32 %v4955_v42, %v15779_v31  ;;  %v5174_v47 = vpop.f32.mrf.mxu3  ;;  %v15936_v42 = vadd.f32 %v5543_v39, %v5224_v43 }
 0x492   : >> { %v5550_v40 = vpop.f32.mrf.mxu0  ;;  %11876 = vmatmul.msk.bf16.gmra.mxu1 %vm325_vm10, %v18070_v12 }
 0x493   : >> { %v5225_v45 = vadd.f32 %v5169_v13, %v4956_v26  ;;  %v6678_v26 = vsel %vm17702_vm7, %v6668_v20, %v6677_v30 }
 0x495   : >> { %11902 = vmatmul.msk.bf16.gmra.mxu2 %vm325_vm10, %v18071_v48  ;;  %v12851_v48 = vld [vmem:[#allocation2 + $0x38] sm:$0xff]  ;;  %v15944_v60 = vadd.f32 %v5545_v11, %v5225_v45 }
 0x496   : >> { %12004 = vmatmul.msk.bf16.gmra.mxu3 %vm325_vm10, %v6393_v6  ;;  %v6680_v6 = vshrl.u32 %v12851_v48, 16  ;;  %v6683_v62 = vshll.u32 %v12851_v48, 16  ;;  %v6394_v43 = vrot.slane %v12851_v48, 2 }
 0x497   : >> { %v5878_v10 = vpop.f32.mrf.mxu1 }
 0x498   : >> { %v4958_v31 = vpop.f32.mrf.mxu2  ;;  %v15940_v13 = vadd.f32 %v5878_v10, %v15713_v35  ;;  %v6682_v20 = vrot.slane %v6680_v6, 2  ;;  %v6685_v10 = vrot.slane %v6683_v62, 3  ;;  %v6395_v11 = vsel %vm17701_vm11, %v6392_v24, %v6394_v43 }
 0x499   : >> { %v4959_v17 = vadd.f32 %v4958_v31, %v15787_v37  ;;  %v5177_v61 = vpop.f32.mrf.mxu3  ;;  %v18072_v31 = vld [vmem:[#allocation55_spill] sm:$0xff] }
 0x49a   : >> { %v5553_v33 = vpop.f32.mrf.mxu0 }
 0x49b   : >> { %v5226_v7 = vadd.f32 %v5172_v54, %v4959_v17  ;;  %v18073_v17 = vld [vmem:[#allocation68_spill] sm:$0xff] }
 0x49d   : >> { %12037 = vmatmul.msk.bf16.gmra.mxu0 %vm325_vm10, %v6678_v26  ;;  %v15956_v26 = vadd.f32 %v5548_v49, %v5226_v7 }
 0x49f   : >> { %v5881_v12 = vpop.f32.mrf.mxu1 }
 0x4a0   : >> { %v4960_v56 = vpop.f32.mrf.mxu2  ;;  %v15948_v37 = vadd.f32 %v5881_v12, %v15728_v3  ;;  %v6686_v3 = vor.u32 %v6685_v10, %v6682_v20 }
 0x4a1   : >> { %v4961_v39 = vadd.f32 %v4960_v56, %v15799_v55  ;;  %v5179_v35 = vpop.f32.mrf.mxu3 }
 0x4a2   : >> { %v5555_v1 = vpop.f32.mrf.mxu0  ;;  %11877 = vmatmul.msk.bf16.gmra.mxu1 %vm325_vm10, %v18072_v31  ;;  %v6687_v6 = vsel %vm17702_vm7, %v6677_v30, %v6686_v3  ;;  %v12852_v31 = vld [vmem:[#allocation2 + $0x40] sm:$0xff] }
 0x4a3   : >> { %v5227_v54 = vadd.f32 %v5174_v47, %v4961_v39  ;;  %v6396_v7 = vrot.slane %v12852_v31, 2 }
 0x4a5   : >> { %11903 = vmatmul.msk.bf16.gmra.mxu2 %vm325_vm10, %v18073_v17  ;;  %v6689_v17 = vshrl.u32 %v12852_v31, 16  ;;  %v15964_v20 = vadd.f32 %v5550_v40, %v5227_v54  ;;  %v6397_v40 = vsel %vm17701_vm11, %v6394_v43, %v6396_v7 }
 0x4a6   : >> { %12005 = vmatmul.msk.bf16.gmra.mxu3 %vm325_vm10, %v6395_v11  ;;  %v6692_v11 = vshll.u32 %v12852_v31, 16 }
 0x4a7   : >> { %v5883_v45 = vpop.f32.mrf.mxu1  ;;  %v6691_v30 = vrot.slane %v6689_v17, 2 }
 0x4a8   : >> { %v4963_v55 = vpop.f32.mrf.mxu2  ;;  %v15960_v47 = vadd.f32 %v5883_v45, %v15756_v23  ;;  %v6694_v45 = vrot.slane %v6692_v11, 3 }
 0x4a9   : >> { %v4964_v56 = vadd.f32 %v4963_v55, %v15807_v27  ;;  %v5182_v12 = vpop.f32.mrf.mxu3  ;;  %v18074_v55 = vld [vmem:[#allocation58_spill] sm:$0xff] }
 0x4aa   : >> { %v5558_v48 = vpop.f32.mrf.mxu0 }
 0x4ab   : >> { %v5228_v62 = vadd.f32 %v5177_v61, %v4964_v56  ;;  %v18075_v56 = vld [vmem:[#allocation50_spill] sm:$0xff] }
 0x4ad   : >> { %12038 = vmatmul.msk.bf16.gmra.mxu0 %vm325_vm10, %v6687_v6  ;;  %v15976_v6 = vadd.f32 %v5553_v33, %v5228_v62 }
 0x4af   : >> { %v5886_v39 = vpop.f32.mrf.mxu1 }
 0x4b0   : >> { %v4965_v24 = vpop.f32.mrf.mxu2  ;;  %v15968_v27 = vadd.f32 %v5886_v39, %v15765_v18  ;;  %v6695_v18 = vor.u32 %v6694_v45, %v6691_v30 }
 0x4b1   : >> { %v4966_v49 = vadd.f32 %v4965_v24, %v15819_v16  ;;  %v5184_v23 = vpop.f32.mrf.mxu3 }
 0x4b2   : >> { %v5560_v10 = vpop.f32.mrf.mxu0  ;;  %11878 = vmatmul.msk.bf16.gmra.mxu1 %vm325_vm10, %v18074_v55  ;;  %v6696_v11 = vsel %vm17702_vm7, %v6686_v3, %v6695_v18  ;;  %v12853_v55 = vld [vmem:[#allocation2 + $0x48] sm:$0xff] }
 0x4b3   : >> { %v5229_v61 = vadd.f32 %v5179_v35, %v4966_v49  ;;  %v6398_v62 = vrot.slane %v12853_v55, 2 }
 0x4b5   : >> { %11904 = vmatmul.msk.bf16.gmra.mxu2 %vm325_vm10, %v18075_v56  ;;  %v6698_v56 = vshrl.u32 %v12853_v55, 16  ;;  %v15984_v30 = vadd.f32 %v5555_v1, %v5229_v61  ;;  %v6399_v1 = vsel %vm17701_vm11, %v6396_v7, %v6398_v62 }
 0x4b6   : >> { %12006 = vmatmul.msk.bf16.gmra.mxu3 %vm325_vm10, %v6397_v40  ;;  %v6701_v40 = vshll.u32 %v12853_v55, 16 }
 0x4b7   : >> { %v5888_v54 = vpop.f32.mrf.mxu1  ;;  %v6700_v3 = vrot.slane %v6698_v56, 2 }
 0x4b8   : >> { %v4968_v16 = vpop.f32.mrf.mxu2  ;;  %v15980_v35 = vadd.f32 %v5888_v54, %v15776_v2  ;;  %v6703_v54 = vrot.slane %v6701_v40, 3 }
 0x4b9   : >> { %v4969_v24 = vadd.f32 %v4968_v16, %v15827_v63  ;;  %v5187_v39 = vpop.f32.mrf.mxu3  ;;  %v18076_v16 = vld [vmem:[#allocation44_spill] sm:$0xff] }
 0x4ba   : >> { %v5563_v31 = vpop.f32.mrf.mxu0 }
 0x4bb   : >> { %v5230_v17 = vadd.f32 %v5182_v12, %v4969_v24  ;;  %v18077_v24 = vld [vmem:[#allocation51_spill] sm:$0xff] }
 0x4bd   : >> { %12039 = vmatmul.msk.bf16.gmra.mxu0 %vm325_vm10, %v6696_v11  ;;  %v15996_v11 = vadd.f32 %v5558_v48, %v5230_v17 }
 0x4bf   : >> { %v5891_v49 = vpop.f32.mrf.mxu1 }
 0x4c0   : >> { %v4970_v43 = vpop.f32.mrf.mxu2  ;;  %v15988_v63 = vadd.f32 %v5891_v49, %v15785_v51  ;;  %v6704_v51 = vor.u32 %v6703_v54, %v6700_v3 }
 0x4c1   : >> { %v4971_v33 = vadd.f32 %v4970_v43, %v15839_v52  ;;  %v5189_v2 = vpop.f32.mrf.mxu3 }
 0x4c2   : >> { %v5565_v45 = vpop.f32.mrf.mxu0  ;;  %11879 = vmatmul.msk.bf16.gmra.mxu1 %vm325_vm10, %v18076_v16  ;;  %v6705_v40 = vsel %vm17702_vm7, %v6695_v18, %v6704_v51  ;;  %v12854_v16 = vld [vmem:[#allocation2 + $0x50] sm:$0xff] }
 0x4c3   : >> { %v5231_v12 = vadd.f32 %v5184_v23, %v4971_v33  ;;  %v6400_v17 = vrot.slane %v12854_v16, 2 }
 0x4c5   : >> { %11905 = vmatmul.msk.bf16.gmra.mxu2 %vm325_vm10, %v18077_v24  ;;  %v6707_v24 = vshrl.u32 %v12854_v16, 16  ;;  %v16004_v3 = vadd.f32 %v5560_v10, %v5231_v12  ;;  %v6401_v10 = vsel %vm17701_vm11, %v6398_v62, %v6400_v17 }
 0x4c6   : >> { %12007 = vmatmul.msk.bf16.gmra.mxu3 %vm325_vm10, %v6399_v1  ;;  %v6710_v1 = vshll.u32 %v12854_v16, 16 }
 0x4c7   : >> { %v5893_v61 = vpop.f32.mrf.mxu1 }
 0x4c8   : >> { %v4973_v52 = vpop.f32.mrf.mxu2  ;;  %v16000_v23 = vadd.f32 %v5893_v61, %v15796_v59  ;;  %v6712_v61 = vrot.slane %v6710_v1, 3 }
 0x4c9   : >> { %v4974_v43 = vadd.f32 %v4973_v52, %v15848_v34  ;;  %v5192_v49 = vpop.f32.mrf.mxu3  ;;  %v6709_v52 = vrot.slane %v6707_v24, 2 }
 0x4ca   : >> { %v5568_v55 = vpop.f32.mrf.mxu0 }
 0x4cb   : >> { %v5232_v56 = vadd.f32 %v5187_v39, %v4974_v43  ;;  %v18078_v39 = vld [vmem:[#allocation60_spill] sm:$0xff] }
 0x4cc   : >> { %v18079_v43 = vld [vmem:[#allocation52_spill] sm:$0xff] }
 0x4cd   : >> { %12040 = vmatmul.msk.bf16.gmra.mxu0 %vm325_vm10, %v6705_v40  ;;  %v16016_v40 = vadd.f32 %v5563_v31, %v5232_v56 }
 0x4cf   : >> { %v5896_v33 = vpop.f32.mrf.mxu1 }
 0x4d0   : >> { %v4975_v7 = vpop.f32.mrf.mxu2  ;;  %v16008_v34 = vadd.f32 %v5896_v33, %v15805_v14  ;;  %v6713_v14 = vor.u32 %v6712_v61, %v6709_v52  ;;  %v18080_v61 = vld [vmem:[#allocation48_spill] sm:$0xff] }
 0x4d1   : >> { %v4976_v48 = vadd.f32 %v4975_v7, %v15862_v15  ;;  %v5194_v59 = vpop.f32.mrf.mxu3 }
 0x4d2   : >> { %11880 = vmatmul.msk.bf16.gmra.mxu1 %vm325_vm10, %v18078_v39  ;;  %v5570_v18 = vpop.f32.mrf.mxu0  ;;  %v6714_v24 = vsel %vm17702_vm7, %v6704_v51, %v6713_v14  ;;  %v12855_v39 = vld [vmem:[#allocation2 + $0x58] sm:$0xff] }
 0x4d3   : >> { %v5233_v54 = vadd.f32 %v5189_v2, %v4976_v48  ;;  %v6402_v56 = vrot.slane %v12855_v39, 2 }
 0x4d5   : >> { %11906 = vmatmul.msk.bf16.gmra.mxu2 %vm325_vm10, %v18079_v43  ;;  %v6716_v43 = vshrl.u32 %v12855_v39, 16  ;;  %v16024_v52 = vadd.f32 %v5565_v45, %v5233_v54 }
 0x4d6   : >> { %12008 = vmatmul.msk.bf16.gmra.mxu3 %vm325_vm10, %v6401_v10  ;;  %v6719_v10 = vshll.u32 %v12855_v39, 16 }
 0x4d7   : >> { %v5898_v12 = vpop.f32.mrf.mxu1  ;;  %v6718_v51 = vrot.slane %v6716_v43, 2 }
 0x4d8   : >> { %v4978_v15 = vpop.f32.mrf.mxu2  ;;  %v16020_v7 = vadd.f32 %v5898_v12, %v15816_v21  ;;  %v18081_v12 = vld [vmem:[#allocation75_spill] sm:$0xff] }
 0x4d9   : >> { %v4979_v2 = vadd.f32 %v4978_v15, %v15871_v4  ;;  %v5197_v33 = vpop.f32.mrf.mxu3  ;;  %v6721_v15 = vrot.slane %v6719_v10, 3 }
 0x4da   : >> { %v5573_v1 = vpop.f32.mrf.mxu0 }
 0x4db   : >> { %v5234_v16 = vadd.f32 %v5192_v49, %v4979_v2  ;;  %v6403_v2 = vsel %vm17701_vm11, %v6400_v17, %v6402_v56 }
 0x4dd   : >> { %12041 = vmatmul.msk.bf16.gmra.mxu0 %vm325_vm10, %v6714_v24  ;;  %v16036_v24 = vadd.f32 %v5568_v55, %v5234_v16 }
 0x4df   : >> { %v5901_v48 = vpop.f32.mrf.mxu1 }
 0x4e0   : >> { %v4980_v62 = vpop.f32.mrf.mxu2  ;;  %v16028_v4 = vadd.f32 %v5901_v48, %v15825_v25  ;;  %v6722_v25 = vor.u32 %v6721_v15, %v6718_v51 }
 0x4e1   : >> { %v4981_v31 = vadd.f32 %v4980_v62, %v15882_v46  ;;  %v5199_v21 = vpop.f32.mrf.mxu3 }
 0x4e2   : >> { %11881 = vmatmul.msk.bf16.gmra.mxu1 %vm325_vm10, %v18080_v61  ;;  %v5575_v45 = vpop.f32.mrf.mxu0  ;;  %v6723_v43 = vsel %vm17702_vm7, %v6713_v14, %v6722_v25 }
 0x4e3   : >> { %v5235_v49 = vadd.f32 %v5194_v59, %v4981_v31  ;;  %v12856_v31 = vld [vmem:[#allocation2 + $0x60] sm:$0xff] }
 0x4e4   : >> { %v6725_v61 = vshrl.u32 %v12856_v31, 16  ;;  %v6404_v51 = vrot.slane %v12856_v31, 2 }
 0x4e5   : >> { %11907 = vmatmul.msk.bf16.gmra.mxu2 %vm325_vm10, %v18081_v12  ;;  %v6728_v12 = vshll.u32 %v12856_v31, 16 }
 0x4e6   : >> { %12009 = vmatmul.msk.bf16.gmra.mxu3 %vm325_vm10, %v6403_v2  ;;  %v16044_v2 = vadd.f32 %v5570_v18, %v5235_v49  ;;  %v6727_v14 = vrot.slane %v6725_v61, 2  ;;  %v6405_v18 = vsel %vm17701_vm11, %v6402_v56, %v6404_v51  ;;  %v12857_v61 = vld [vmem:[#allocation2 + $0x68] sm:$0xff] }
 0x4e7   : >> { %v5903_v54 = vpop.f32.mrf.mxu1  ;;  %v6730_v15 = vrot.slane %v6728_v12, 3  ;;  %v6734_v12 = vshrl.u32 %v12857_v61, 16 }
 0x4e8   : >> { %v4983_v46 = vpop.f32.mrf.mxu2  ;;  %v16040_v62 = vadd.f32 %v5903_v54, %v15836_v38 }
 0x4e9   : >> { %v4984_v59 = vadd.f32 %v4983_v46, %v15889_v22  ;;  %v6497_v48 = vpop.f32.mrf.mxu3  ;;  %v18082_v46 = vld [vmem:[#allocation78_spill] sm:$0xff]  ;;  %v6731_v54 = vor.u32 %v6730_v15, %v6727_v14 }
 0x4ea   : >> { %v6880_v16 = vpop.f32.mrf.mxu0 }
 0x4eb   : >> { %v5236_v39 = vadd.f32 %v5197_v33, %v4984_v59 }
 0x4ed   : >> { %12042 = vmatmul.msk.bf16.gmra.mxu0 %vm325_vm10, %v6723_v43 }
 0x4ef   : >> { %v5906_v10 = vpop.f32.mrf.mxu1 }
 0x4f0   : >> { %v4985_v17 = vpop.f32.mrf.mxu2  ;;  %v16048_v22 = vadd.f32 %v5906_v10, %v15846_v5  ;;  %v16056_v5 = vadd.f32 %v5573_v1, %v5236_v39  ;;  %v6732_v10 = vsel %vm17702_vm7, %v6722_v25, %v6731_v54  ;;  %v6406_v39 = vrot.slane %v12857_v61, 2 }
 0x4f1   : >> { %v4986_v55 = vadd.f32 %v4985_v17, %v15901_v8  ;;  %v6499_v38 = vpop.f32.mrf.mxu3  ;;  %v6736_v25 = vrot.slane %v6734_v12, 2 }
 0x4f2   : >> { %11882 = vmatmul.msk.bf16.gmra.mxu1 %vm325_vm10, %v15658_v36  ;;  %v6882_v17 = vpop.f32.mrf.mxu0 }
 0x4f3   : >> { %v5237_v33 = vadd.f32 %v5199_v21, %v4986_v55  ;;  %v6737_v55 = vshll.u32 %v12857_v61, 16 }
 0x4f5   : >> { %11908 = vmatmul.msk.bf16.gmra.mxu2 %vm325_vm10, %v18082_v46  ;;  %v16064_v14 = vadd.f32 %v5575_v45, %v5237_v33  ;;  %v6739_v15 = vrot.slane %v6737_v55, 3  ;;  %v6407_v45 = vsel %vm17701_vm11, %v6404_v51, %v6406_v39 }
 0x4f6   : >> { %12010 = vmatmul.msk.bf16.gmra.mxu3 %vm325_vm10, %v6405_v18  ;;  %v18083_v18 = vld [vmem:[#allocation81_spill] sm:$0xff] }
 0x4f7   : >> { %v5908_v49 = vpop.f32.mrf.mxu1 }
 0x4f8   : >> { %v6121_v8 = vpop.f32.mrf.mxu2  ;;  %v16060_v21 = vadd.f32 %v5908_v49, %v15859_v57 }
 0x4f9   : >> { %v6211_v59 = vadd.f32 %v6121_v8, %v15910_v50  ;;  %v6502_v36 = vpop.f32.mrf.mxu3 }
 0x4fa   : >> { %v6885_v46 = vpop.f32.mrf.mxu0 }
 0x4fb   : >> { %v6587_v43 = vadd.f32 %v6497_v48, %v6211_v59 }
 0x4fd   : >> { %12043 = vmatmul.msk.bf16.gmra.mxu0 %vm325_vm10, %v6732_v10  ;;  %v16078_v49 = vadd.f32 %v6880_v16, %v6587_v43 }
 0x4ff   : >> { %v5911_v31 = vpop.f32.mrf.mxu1 }
 0x500   : >> { %v6123_v56 = vpop.f32.mrf.mxu2  ;;  %v16068_v50 = vadd.f32 %v5911_v31, %v15867_v53  ;;  %v5791_v53 = vshll.u32 %v15721_v41, 16 }
 0x501   : >> { %v6212_v1 = vadd.f32 %v6123_v56, %v15920_v29  ;;  %v6504_v57 = vpop.f32.mrf.mxu3  ;;  %v5788_v29 = vshrl.u32 %v15721_v41, 16 }
 0x502   : >> { %11883 = vmatmul.msk.bf16.gmra.mxu1 %vm325_vm10, %v15706_v44  ;;  %v5793_v56 = vrot.slane %v5791_v53, 2  ;;  %v6887_v41 = vpop.f32.mrf.mxu0  ;;  %v18084_v53 = vld [vmem:[#allocation53_spill] sm:$0xff] }
 0x503   : >> { %v6588_v48 = vadd.f32 %v6499_v38, %v6212_v1  ;;  %v6740_v38 = vor.u32 %v6739_v15, %v6736_v25  ;;  %v5790_v10 = vrot.slane %v5788_v29, 1  ;;  %v12858_v25 = vld [vmem:[#allocation2 + $0x70] sm:$0xff] }
 0x504   : >> { %v6743_v16 = vshrl.u32 %v12858_v25, 16  ;;  %v6746_v43 = vshll.u32 %v12858_v25, 16 }
 0x505   : >> { %11909 = vmatmul.msk.bf16.gmra.mxu2 %vm325_vm10, %v18083_v18  ;;  %v6741_v61 = vsel %vm17702_vm7, %v6731_v54, %v6740_v38  ;;  %v5794_v12 = vor.u32 %v5793_v56, %v5790_v10  ;;  %v16086_v15 = vadd.f32 %v6882_v17, %v6588_v48 }
 0x506   : >> { %12011 = vmatmul.msk.bf16.gmra.mxu3 %vm325_vm10, %v6407_v45  ;;  %v6745_v45 = vrot.slane %v6743_v16, 2  ;;  %v6748_v29 = vrot.slane %v6746_v43, 3  ;;  %v18085_v43 = vld [vmem:[#allocation67_spill] sm:$0xff] }
 0x507   : >> { %v5913_v8 = vpop.f32.mrf.mxu1  ;;  %v5795_v54 = vsel %vm2162_vm12, %v15701_v0, %v5794_v12 }
 0x508   : >> { %v6126_v33 = vpop.f32.mrf.mxu2  ;;  %v16082_v59 = vadd.f32 %v5913_v8, %v15879_v32  ;;  %v6749_v48 = vor.u32 %v6748_v29, %v6745_v45 }
 0x509   : >> { %v6213_v44 = vadd.f32 %v6126_v33, %v15928_v9  ;;  %v6507_v51 = vpop.f32.mrf.mxu3 }
 0x50a   : >> { %v6750_v56 = vsel %vm17702_vm7, %v6740_v38, %v6749_v48 }
 0x50b   : >> { %v6589_v31 = vadd.f32 %v6502_v36, %v6213_v44  ;;  %v6408_v36 = vrot.slane %v12858_v25, 2  ;;  %v6890_v44 = vpop.f32.mrf.mxu0 }
 0x50d   : >> { %12044 = vmatmul.msk.bf16.gmra.mxu0 %vm325_vm10, %v6741_v61  ;;  %v6409_v17 = vsel %vm17701_vm11, %v6406_v39, %v6408_v36  ;;  %v16099_v8 = vadd.f32 %v6885_v46, %v6589_v31 }
 0x50f   : >> { %v5916_v1 = vpop.f32.mrf.mxu1 }
 0x510   : >> { %v6128_v55 = vpop.f32.mrf.mxu2  ;;  %v16090_v9 = vadd.f32 %v5916_v1, %v15887_v28 }
 0x511   : >> { %v6214_v32 = vadd.f32 %v6128_v55, %v15940_v13  ;;  %v6509_v33 = vpop.f32.mrf.mxu3  ;;  %v12859_v55 = vld [vmem:[#allocation2 + $0x78] sm:$0xff] }
 0x512   : >> { %11884 = vmatmul.msk.bf16.gmra.mxu1 %vm325_vm10, %v5795_v54  ;;  %v6752_v1 = vshrl.u32 %v12859_v55, 16  ;;  %v6755_v25 = vshll.u32 %v12859_v55, 16  ;;  %v18086_v54 = vld [vmem:[#allocation56_spill] sm:$0xff] }
 0x513   : >> { %v6590_v18 = vadd.f32 %v6504_v57, %v6214_v32  ;;  %v6892_v31 = vpop.f32.mrf.mxu0 }
 0x514   : >> { %v6754_v38 = vrot.slane %v6752_v1, 2  ;;  %v6757_v32 = vrot.slane %v6755_v25, 3 }
 0x515   : >> { %11910 = vmatmul.msk.bf16.gmra.mxu2 %vm325_vm10, %v18084_v53  ;;  %v16107_v16 = vadd.f32 %v6887_v41, %v6590_v18  ;;  %v18087_v53 = vld [vmem:[#allocation62_spill] sm:$0xff] }
 0x516   : >> { %12012 = vmatmul.msk.bf16.gmra.mxu3 %vm325_vm10, %v6409_v17  ;;  %v6758_v18 = vor.u32 %v6757_v32, %v6754_v38  ;;  %v18089_v38 = vld [vmem:[#allocation43_spill] sm:$0xff] }
 0x517   : >> { %v5918_v28 = vpop.f32.mrf.mxu1 }
 0x518   : >> { %v6131_v13 = vpop.f32.mrf.mxu2  ;;  %v16103_v57 = vadd.f32 %v5918_v28, %v15898_v19  ;;  %v6410_v19 = vrot.slane %v12859_v55, 2  ;;  %v6759_v28 = vsel %vm17702_vm7, %v6749_v48, %v6758_v18 }
 0x519   : >> { %v6215_v0 = vadd.f32 %v6131_v13, %v15948_v37  ;;  %v6512_v61 = vpop.f32.mrf.mxu3 }
 0x51a   : >> { %v6411_v45 = vsel %vm17701_vm11, %v6408_v36, %v6410_v19 }
 0x51b   : >> { %v6591_v10 = vadd.f32 %v6507_v51, %v6215_v0  ;;  %v6895_v0 = vpop.f32.mrf.mxu0 }
 0x51d   : >> { %12045 = vmatmul.msk.bf16.gmra.mxu0 %vm325_vm10, %v6750_v56 }
 0x51f   : >> { %v5921_v12 = vpop.f32.mrf.mxu1 }
 0x520   : >> { %v6133_v39 = vpop.f32.mrf.mxu2  ;;  %v16111_v37 = vadd.f32 %v5921_v12, %v15906_v58  ;;  %v16119_v58 = vadd.f32 %v6890_v44, %v6591_v10 }
 0x521   : >> { %v6216_v46 = vadd.f32 %v6133_v39, %v15960_v47  ;;  %v6514_v17 = vpop.f32.mrf.mxu3  ;;  %v12860_v39 = vld [vmem:[#allocation2 + $0x80] sm:$0xff] }
 0x522   : >> { %12067 = vmatmul.msk.bf16.vlgmr.msra.gmra.mxu1 %vm325_vm10, %v18085_v43  ;;  %v6761_v12 = vshrl.u32 %v12860_v39, 16  ;;  %v6764_v55 = vshll.u32 %v12860_v39, 16  ;;  %v6412_v10 = vrot.slane %v12860_v39, 2 }
 0x523   : >> { %v6592_v51 = vadd.f32 %v6509_v33, %v6216_v46  ;;  %v18088_v46 = vld [vmem:[#allocation69_spill] sm:$0xff] }
 0x524   : >> { %v6763_v48 = vrot.slane %v6761_v12, 2  ;;  %v6766_v43 = vrot.slane %v6764_v55, 3  ;;  %v6413_v32 = vsel %vm17701_vm11, %v6410_v19, %v6412_v10  ;;  %v18090_v55 = vld [vmem:[#allocation70_spill] sm:$0xff] }
 0x525   : >> { %11911 = vmatmul.msk.bf16.gmra.mxu2 %vm325_vm10, %v18086_v54  ;;  %v16127_v1 = vadd.f32 %v6892_v31, %v6592_v51  ;;  %v6897_v31 = vpop.f32.mrf.mxu0 }
 0x526   : >> { %12013 = vmatmul.msk.bf16.gmra.mxu3 %vm325_vm10, %v6411_v45 }
 0x527   : >> { %v5923_v47 = vpop.f32.mrf.mxu1 }
 0x528   : >> { %v6136_v41 = vpop.f32.mrf.mxu2  ;;  %v16123_v33 = vadd.f32 %v5923_v47, %v18087_v53 }
 0x529   : >> { %v6217_v29 = vadd.f32 %v6136_v41, %v15968_v27 }
 0x52b   : >> { %v6593_v13 = vadd.f32 %v6512_v61, %v6217_v29  ;;  %v6517_v61 = vpop.f32.mrf.mxu3 }
 0x52d   : >> { %12046 = vmatmul.msk.bf16.gmra.mxu0 %vm325_vm10, %v6759_v28  ;;  %v16139_v54 = vadd.f32 %v6895_v0, %v6593_v13  ;;  %v12861_v28 = vld [vmem:[#allocation2 + $0x88] sm:$0xff]  ;;  %v6900_v13 = vpop.f32.mrf.mxu0 }
 0x52f   : >> { %v5926_v56 = vpop.f32.mrf.mxu1 }
 0x530   : >> { %v6138_v36 = vpop.f32.mrf.mxu2  ;;  %v16131_v27 = vadd.f32 %v5926_v56, %v15936_v42  ;;  %v6767_v42 = vor.u32 %v6766_v43, %v6763_v48  ;;  %v6773_v56 = vshll.u32 %v12861_v28, 16 }
 0x531   : >> { %v6218_v44 = vadd.f32 %v6138_v36, %v15980_v35  ;;  %v6770_v36 = vshrl.u32 %v12861_v28, 16 }
 0x532   : >> { %12068 = vmatmul.msk.bf16.gmra.mxu1 %vm325_vm10, %v18088_v46  ;;  %v6768_v29 = vsel %vm17702_vm7, %v6758_v18, %v6767_v42 }
 0x533   : >> { %v6594_v25 = vadd.f32 %v6514_v17, %v6218_v44  ;;  %v6519_v53 = vpop.f32.mrf.mxu3  ;;  %v6772_v18 = vrot.slane %v6770_v36, 2  ;;  %v6775_v44 = vrot.slane %v6773_v56, 3  ;;  %v18092_v56 = vld [vmem:[#allocation71_spill] sm:$0xff] }
 0x535   : >> { %11912 = vmatmul.msk.bf16.gmra.mxu2 %vm325_vm10, %v18089_v38  ;;  %v16147_v39 = vadd.f32 %v6897_v31, %v6594_v25  ;;  %v6776_v43 = vor.u32 %v6775_v44, %v6772_v18  ;;  %v6902_v31 = vpop.f32.mrf.mxu0 }
 0x536   : >> { %12014 = vmatmul.msk.bf16.gmra.mxu3 %vm325_vm10, %v6413_v32 }
 0x537   : >> { %v5928_v51 = vpop.f32.mrf.mxu1 }
 0x538   : >> { %v6141_v35 = vpop.f32.mrf.mxu2  ;;  %v16143_v41 = vadd.f32 %v5928_v51, %v15944_v60  ;;  %v6414_v60 = vrot.slane %v12861_v28, 2  ;;  %v6777_v51 = vsel %vm17702_vm7, %v6767_v42, %v6776_v43 }
 0x539   : >> { %v6219_v45 = vadd.f32 %v6141_v35, %v15988_v63 }
 0x53a   : >> { %v6415_v46 = vsel %vm17701_vm11, %v6412_v10, %v6414_v60 }
 0x53b   : >> { %v6595_v47 = vadd.f32 %v6517_v61, %v6219_v45  ;;  %v18091_v61 = vld [vmem:[#allocation46_spill] sm:$0xff]  ;;  %v6522_v25 = vpop.f32.mrf.mxu3 }
 0x53d   : >> { %12047 = vmatmul.msk.bf16.gmra.mxu0 %vm325_vm10, %v6768_v29  ;;  %v12862_v29 = vld [vmem:[#allocation2 + $0x90] sm:$0xff] }
 0x53f   : >> { %v5931_v17 = vpop.f32.mrf.mxu1 }
 0x540   : >> { %v6143_v19 = vpop.f32.mrf.mxu2  ;;  %v16151_v63 = vadd.f32 %v5931_v17, %v15956_v26  ;;  %v16159_v26 = vadd.f32 %v6900_v13, %v6595_v47 }
 0x541   : >> { %v6220_v0 = vadd.f32 %v6143_v19, %v16000_v23  ;;  %v6782_v19 = vshll.u32 %v12862_v29, 16 }
 0x542   : >> { %12069 = vmatmul.msk.bf16.gmra.mxu1 %vm325_vm10, %v18090_v55  ;;  %v18093_v55 = vld [vmem:[#allocation83_spill] sm:$0xff] }
 0x543   : >> { %v6596_v12 = vadd.f32 %v6519_v53, %v6220_v0  ;;  %v6779_v53 = vshrl.u32 %v12862_v29, 16  ;;  %v6524_v28 = vpop.f32.mrf.mxu3  ;;  %v6784_v13 = vrot.slane %v6782_v19, 3  ;;  %v6905_v0 = vpop.f32.mrf.mxu0 }
 0x545   : >> { %11913 = vmatmul.msk.bf16.gmra.mxu2 %vm325_vm10, %v18091_v61  ;;  %v16167_v17 = vadd.f32 %v6902_v31, %v6596_v12  ;;  %v6781_v42 = vrot.slane %v6779_v53, 2 }
 0x546   : >> { %12015 = vmatmul.msk.bf16.gmra.mxu3 %vm325_vm10, %v6415_v46 }
 0x547   : >> { %v5933_v23 = vpop.f32.mrf.mxu1  ;;  %v6785_v18 = vor.u32 %v6784_v13, %v6781_v42  ;;  %v18096_v42 = vld [vmem:[#allocation88_spill] sm:$0xff] }
 0x548   : >> { %v6146_v48 = vpop.f32.mrf.mxu2  ;;  %v16163_v32 = vadd.f32 %v5933_v23, %v15964_v20  ;;  %v6416_v20 = vrot.slane %v12862_v29, 2  ;;  %v6283_v29 = vld [vmem:[#allocation2 + $0xa0] sm:$0x3]  ;;  %v6797_v13 = vshrl.u32 %v18096_v42, 16 }
 0x549   : >> { %v6221_v38 = vadd.f32 %v6146_v48, %v16008_v34  ;;  %v6786_v61 = vsel %vm17702_vm7, %v6776_v43, %v6785_v18  ;;  %v12863_v48 = vld [vmem:[#allocation2 + $0x98] sm:$0xff] }
 0x54a   : >> { %v6417_v12 = vsel %vm17701_vm11, %v6414_v60, %v6416_v20  ;;  %v6788_v23 = vshrl.u32 %v12863_v48, 16 }
 0x54b   : >> { %v6597_v35 = vadd.f32 %v6522_v25, %v6221_v38  ;;  %v6907_v46 = vpop.f32.mrf.mxu0  ;;  %v6791_v38 = vshll.u32 %v12863_v48, 16 }
 0x54d   : >> { %12048 = vmatmul.msk.bf16.gmra.mxu0 %vm325_vm10, %v6777_v51  ;;  %v6418_v51 = vrot.slane %v12863_v48, 2 }
 0x54f   : >> { %v5936_v45 = vpop.f32.mrf.mxu1  ;;  %v6419_v43 = vsel %vm17701_vm11, %v6416_v20, %v6418_v51 }
 0x550   : >> { %v6148_v10 = vpop.f32.mrf.mxu2  ;;  %v16171_v34 = vadd.f32 %v5936_v45, %v15976_v6  ;;  %v16179_v6 = vadd.f32 %v6905_v0, %v6597_v35  ;;  %v18094_v35 = vld [vmem:[#allocation72_spill] sm:$0xff]  ;;  %v18095_v45 = vld [vmem:[#allocation85_spill] sm:$0xff]  ;;  %v6800_v0 = vshll.u32 %v18096_v42, 16 }
 0x551   : >> { %v6222_v47 = vadd.f32 %v6148_v10, %v16020_v7  ;;  %v6793_v10 = vrot.slane %v6791_v38, 3 }
 0x552   : >> { %12070 = vmatmul.msk.bf16.gmra.mxu1 %vm325_vm10, %v18092_v56 }
 0x553   : >> { %v6598_v36 = vadd.f32 %v6524_v28, %v6222_v47 }
 0x555   : >> { %11914 = vmatmul.msk.bf16.gmra.mxu2 %vm325_vm10, %v18093_v55  ;;  %v16186_v31 = vadd.f32 %v6907_v46, %v6598_v36 }
 0x556   : >> { %12016 = vmatmul.msk.bf16.gmra.mxu3 %vm325_vm10, %v6417_v12  ;;  %v18097_v12 = vld [vmem:[#allocation73_spill] sm:$0xff] }
 0x557   : >> { %v5938_v7 = vpop.f32.mrf.mxu1 }
 0x558   : >> { %v16182_v44 = vadd.f32 %v5938_v7, %v15984_v30  ;;  %v6790_v30 = vrot.slane %v6788_v23, 2  ;;  %v6802_v7 = vrot.slane %v6800_v0, 3 }
 0x55a   : >> { %v6794_v19 = vor.u32 %v6793_v10, %v6790_v30 }
 0x55c   : >> { %v6795_v28 = vsel %vm17702_vm7, %v6785_v18, %v6794_v19 }
 0x55d   : >> { %12049 = vmatmul.msk.bf16.gmra.mxu0 %vm325_vm10, %v6786_v61  ;;  %v18098_v61 = vld [vmem:[#allocation87_spill] sm:$0xff] }
 0x55f   : >> { %v5941_v25 = vpop.f32.mrf.mxu1 }
 0x560   : >> { %v16189_v60 = vadd.f32 %v5941_v25, %v15996_v11  ;;  %v6365_v11 = vunpack.c.l.b16 %v6283_v29 }
 0x562   : >> { %12071 = vmatmul.msk.bf16.gmra.mxu1 %vm325_vm10, %v18094_v35  ;;  %v6384_v36 = vpack.c.b16 %v6365_v11, %v6365_v11  ;;  %v18099_v35 = vld [vmem:[#allocation76_spill] sm:$0xff] }
 0x564   : >> { %v6420_v55 = vrot.slane %v6384_v36, 2  ;;  %v18102_v36 = vld [vmem:[#allocation54_spill] sm:$0xff] }
 0x565   : >> { %11915 = vmatmul.msk.bf16.gmra.mxu2 %vm325_vm10, %v18095_v45 }
 0x566   : >> { %12017 = vmatmul.msk.bf16.gmra.mxu3 %vm325_vm10, %v6419_v43  ;;  %v6421_v18 = vsel %vm17701_vm11, %v6418_v51, %v6420_v55  ;;  %v18100_v51 = vld [vmem:[#allocation89_spill] sm:$0xff]  ;;  %v18101_v43 = vld [vmem:[#allocation79_spill] sm:$0xff] }
 0x567   : >> { %v5943_v53 = vpop.f32.mrf.mxu1 }
 0x568   : >> { %v16198_v47 = vadd.f32 %v5943_v53, %v16004_v3  ;;  %v6799_v3 = vrot.slane %v6797_v13, 2  ;;  %v16237_v53 = vld [vmem:[%s14080_s5 + $0x1] ss:$0 sm:$0xff]  ;;  %v7298_v13 = vld [vmem:[#allocation3 + $0x8] sm:$0xff] }
 0x56a   : >> { %v6803_v25 = vor.u32 %v6802_v7, %v6799_v3  ;;  %v18103_v7 = vld [vmem:[#allocation57_spill] sm:$0xff] }
 0x56d   : >> { %12050 = vmatmul.msk.bf16.gmra.mxu0 %vm325_vm10, %v6795_v28  ;;  %v7297_v28 = vld [vmem:[#allocation3] sm:$0xff] }
 0x56f   : >> { %v5946_v56 = vpop.f32.mrf.mxu1 }
 0x570   : >> { %v16205_v20 = vadd.f32 %v5946_v56, %v16016_v40  ;;  %v6804_v40 = vsel %vm17702_vm7, %v6794_v19, %v6803_v25 }
 0x572   : >> { %12072 = vmatmul.msk.bf16.gmra.mxu1 %vm325_vm10, %v18097_v12  ;;  %v7299_v12 = vld [vmem:[#allocation3 + $0x10] sm:$0xff] }
 0x575   : >> { %11916 = vmatmul.msk.bf16.gmra.mxu2 %vm325_vm10, %v18098_v61 }
 0x576   : >> { %12018 = vmatmul.msk.bf16.gmra.mxu3 %vm325_vm10, %v6421_v18 }
 0x577   : >> { %v5948_v46 = vpop.f32.mrf.mxu1 }
 0x578   : >> { %v16214_v48 = vadd.f32 %v5948_v46, %v16024_v52  ;;  %v7300_v46 = vld [vmem:[#allocation3 + $0x18] sm:$0xff] }
 0x57d   : >> { %12051 = vmatmul.msk.bf16.gmra.mxu0 %vm325_vm10, %v6804_v40 }
 0x57f   : >> { %v5951_v23 = vpop.f32.mrf.mxu1 }
 0x580   : >> { %v16219_v38 = vadd.f32 %v5951_v23, %v16036_v24 }
 0x582   : >> { %12073 = vmatmul.msk.bf16.gmra.mxu1 %vm325_vm10, %v18099_v35  ;;  %v7301_v35 = vld [vmem:[#allocation3 + $0x20] sm:$0xff] }
 0x585   : >> { %11917 = vmatmul.msk.bf16.gmra.mxu2 %vm325_vm10, %v18100_v51 }
 0x587   : >> { %v5953_v30 = vpop.f32.mrf.mxu1 }
 0x588   : >> { %v16226_v10 = vadd.f32 %v5953_v30, %v16044_v2  ;;  %v18104_v30 = vld [vmem:[#allocation59_spill] sm:$0xff] }
 0x58f   : >> { %v5956_v52 = vpop.f32.mrf.mxu1 }
 0x590   : >> { %v16229_v45 = vadd.f32 %v5956_v52, %v16056_v5 }
 0x592   : >> { %12074 = vmatmul.msk.bf16.gmra.mxu1 %vm325_vm10, %v18101_v43  ;;  %v6151_v43 = vpop.f32.mrf.mxu2 }
 0x597   : >> { %v5958_v29 = vpop.f32.mrf.mxu1 }
 0x598   : >> { %v16234_v24 = vadd.f32 %v5958_v29, %v16064_v14 }
 0x59f   : >> { %v7130_v19 = vpop.f32.mrf.mxu1 }
 0x5a0   : >> { %v7220_v11 = vadd.f32 %v7130_v19, %v16078_v49  ;;  %v7302_v19 = vld [vmem:[#allocation3 + $0x28] sm:$0xff] }
 0x5a2   : >> { %v7261_v2 = vadd.f32 %v16237_v53, %v7220_v11  ;;  %12075 = vmatmul.msk.bf16.gmra.mxu1 %vm325_vm10, %v18102_v36  ;;  %v6910_v36 = vpop.f32.mrf.mxu0 }
 0x5a4   : >> { %v7333_v5 = vadd.f32 %v7297_v28, %v7261_v2  ;;  %v6527_v28 = vpop.f32.mrf.mxu3 }
 0x5a6   : >> { %7369 = vst.msk [vmem:[#allocation3] sm:$0xff] %vm325_vm10, %v7333_v5 }
 0x5a7   : >> { %v7132_v56 = vpop.f32.mrf.mxu1 }
 0x5a8   : >> { %v7221_v42 = vadd.f32 %v7132_v56, %v16086_v15 }
 0x5aa   : >> { %v7262_v14 = vadd.f32 %v16237_v53, %v7221_v42  ;;  %v7303_v42 = vld [vmem:[#allocation3 + $0x30] sm:$0xff] }
 0x5ac   : >> { %v7334_v0 = vadd.f32 %v7298_v13, %v7262_v14  ;;  %v18105_v14 = vld [vmem:[#allocation45_spill] sm:$0xff] }
 0x5ae   : >> { %7370 = vst.msk [vmem:[#allocation3 + $0x8] sm:$0xff] %vm325_vm10, %v7334_v0 }
 0x5af   : >> { %v7135_v55 = vpop.f32.mrf.mxu1 }
 0x5b0   : >> { %v7222_v49 = vadd.f32 %v7135_v55, %v16099_v8 }
 0x5b2   : >> { %v7263_v3 = vadd.f32 %v16237_v53, %v7222_v49  ;;  %12076 = vmatmul.msk.bf16.gmra.mxu1 %vm325_vm10, %v18103_v7  ;;  %v6912_v49 = vpop.f32.mrf.mxu0  ;;  %v7304_v7 = vld [vmem:[#allocation3 + $0x38] sm:$0xff] }
 0x5b4   : >> { %v7335_v61 = vadd.f32 %v7299_v12, %v7263_v3 }
 0x5b6   : >> { %7371 = vst.msk [vmem:[#allocation3 + $0x10] sm:$0xff] %vm325_vm10, %v7335_v61 }
 0x5b7   : >> { %v7137_v18 = vpop.f32.mrf.mxu1 }
 0x5b8   : >> { %v7223_v15 = vadd.f32 %v7137_v18, %v16107_v16 }
 0x5ba   : >> { %v7264_v25 = vadd.f32 %v16237_v53, %v7223_v15 }
 0x5bc   : >> { %v7336_v40 = vadd.f32 %v7300_v46, %v7264_v25  ;;  %v7305_v25 = vld [vmem:[#allocation3 + $0x40] sm:$0xff] }
 0x5be   : >> { %7372 = vst.msk [vmem:[#allocation3 + $0x18] sm:$0xff] %vm325_vm10, %v7336_v40  ;;  %v6915_v40 = vpop.f32.mrf.mxu0 }
 0x5bf   : >> { %v7140_v23 = vpop.f32.mrf.mxu1 }
 0x5c0   : >> { %v7224_v8 = vadd.f32 %v7140_v23, %v16119_v58  ;;  %v6153_v58 = vpop.f32.mrf.mxu2 }
 0x5c2   : >> { %v7265_v51 = vadd.f32 %v16237_v53, %v7224_v8  ;;  %12077 = vmatmul.msk.bf16.gmra.mxu1 %vm325_vm10, %v18104_v30  ;;  %v18106_v8 = vld [vmem:[#allocation47_spill] sm:$0xff] }
 0x5c4   : >> { %v7337_v52 = vadd.f32 %v7301_v35, %v7265_v51 }
 0x5c6   : >> { %7373 = vst.msk [vmem:[#allocation3 + $0x20] sm:$0xff] %vm325_vm10, %v7337_v52 }
 0x5c7   : >> { %v7142_v16 = vpop.f32.mrf.mxu1 }
 0x5c8   : >> { %v7225_v29 = vadd.f32 %v7142_v16, %v16127_v1  ;;  %v6529_v1 = vpop.f32.mrf.mxu3  ;;  %v6156_v3 = vpop.f32.mrf.mxu2  ;;  %v7306_v16 = vld [vmem:[#allocation3 + $0x48] sm:$0xff] }
 0x5ca   : >> { %v7266_v11 = vadd.f32 %v16237_v53, %v7225_v29 }
 0x5cc   : >> { %v7338_v2 = vadd.f32 %v7302_v19, %v7266_v11  ;;  %v6917_v19 = vpop.f32.mrf.mxu0 }
 0x5ce   : >> { %7374 = vst.msk [vmem:[#allocation3 + $0x28] sm:$0xff] %vm325_vm10, %v7338_v2 }
 0x5cf   : >> { %v7145_v5 = vpop.f32.mrf.mxu1 }
 0x5d0   : >> { %v7226_v56 = vadd.f32 %v7145_v5, %v16139_v54  ;;  %v6532_v54 = vpop.f32.mrf.mxu3  ;;  %v6158_v35 = vpop.f32.mrf.mxu2 }
 0x5d2   : >> { %v7267_v13 = vadd.f32 %v16237_v53, %v7226_v56  ;;  %12078 = vmatmul.msk.bf16.gmra.mxu1 %vm325_vm10, %v18105_v14  ;;  %v7307_v56 = vld [vmem:[#allocation3 + $0x50] sm:$0xff] }
 0x5d4   : >> { %v7339_v0 = vadd.f32 %v7303_v42, %v7267_v13  ;;  %v18107_v13 = vld [vmem:[#allocation84_spill] sm:$0xff] }
 0x5d6   : >> { %7375 = vst.msk [vmem:[#allocation3 + $0x30] sm:$0xff] %vm325_vm10, %v7339_v0  ;;  %v6223_v0 = vadd.f32 %v6151_v43, %v16028_v4 }
 0x5d7   : >> { %v7147_v55 = vpop.f32.mrf.mxu1 }
 0x5d8   : >> { %v7227_v12 = vadd.f32 %v7147_v55, %v16147_v39  ;;  %v6534_v52 = vpop.f32.mrf.mxu3  ;;  %v6161_v11 = vpop.f32.mrf.mxu2 }
 0x5d9   : >> { %v6920_v55 = vpop.f32.mrf.mxu0 }
 0x5da   : >> { %v7268_v61 = vadd.f32 %v16237_v53, %v7227_v12 }
 0x5dc   : >> { %v7340_v18 = vadd.f32 %v7304_v7, %v7268_v61 }
 0x5de   : >> { %7376 = vst.msk [vmem:[#allocation3 + $0x38] sm:$0xff] %vm325_vm10, %v7340_v18  ;;  %v7308_v18 = vld [vmem:[#allocation3 + $0x58] sm:$0xff] }
 0x5df   : >> { %v7150_v15 = vpop.f32.mrf.mxu1 }
 0x5e0   : >> { %v7228_v46 = vadd.f32 %v7150_v15, %v16159_v26  ;;  %v6537_v14 = vpop.f32.mrf.mxu3  ;;  %v6163_v12 = vpop.f32.mrf.mxu2  ;;  %v6599_v15 = vadd.f32 %v6527_v28, %v6223_v0  ;;  %v6226_v0 = vadd.f32 %v6158_v35, %v16060_v21 }
 0x5e1   : >> { %v6922_v4 = vpop.f32.mrf.mxu0 }
 0x5e2   : >> { %v7269_v23 = vadd.f32 %v16237_v53, %v7228_v46  ;;  %12079 = vmatmul.msk.bf16.gmra.mxu1 %vm325_vm10, %v18106_v8  ;;  %v6982_v8 = vadd.f32 %v6910_v36, %v6599_v15 }
 0x5e4   : >> { %v7341_v39 = vadd.f32 %v7305_v25, %v7269_v23  ;;  %v6224_v23 = vadd.f32 %v6153_v58, %v16040_v62 }
 0x5e6   : >> { %7377 = vst.msk [vmem:[#allocation3 + $0x40] sm:$0xff] %vm325_vm10, %v7341_v39 }
 0x5e7   : >> { %v7152_v51 = vpop.f32.mrf.mxu1 }
 0x5e8   : >> { %v7229_v30 = vadd.f32 %v7152_v51, %v16167_v17  ;;  %v6539_v25 = vpop.f32.mrf.mxu3  ;;  %v6166_v51 = vpop.f32.mrf.mxu2 }
 0x5ea   : >> { %v7270_v29 = vadd.f32 %v16237_v53, %v7229_v30  ;;  %v7309_v30 = vld [vmem:[#allocation3 + $0x60] sm:$0xff] }
 0x5ec   : >> { %v7342_v26 = vadd.f32 %v7306_v16, %v7270_v29  ;;  %v6600_v16 = vadd.f32 %v6529_v1, %v6224_v23 }
 0x5ee   : >> { %7378 = vst.msk [vmem:[#allocation3 + $0x48] sm:$0xff] %vm325_vm10, %v7342_v26  ;;  %v6225_v26 = vadd.f32 %v6156_v3, %v16048_v22  ;;  %v6983_v62 = vadd.f32 %v6912_v49, %v6600_v16  ;;  %v6602_v49 = vadd.f32 %v6534_v52, %v6226_v0  ;;  %v7314_v0 = vld [vmem:[#allocation3 + $0x88] sm:$0xff] }
 0x5ef   : >> { %v7155_v2 = vpop.f32.mrf.mxu1 }
 0x5f0   : >> { %v7230_v5 = vadd.f32 %v7155_v2, %v16179_v6  ;;  %v6542_v58 = vpop.f32.mrf.mxu3  ;;  %v6168_v1 = vpop.f32.mrf.mxu2  ;;  %v6985_v21 = vadd.f32 %v6917_v19, %v6602_v49 }
 0x5f2   : >> { %v7271_v42 = vadd.f32 %v16237_v53, %v7230_v5  ;;  %12080 = vmatmul.msk.bf16.gmra.mxu1 %vm325_vm10, %v18107_v13  ;;  %v7310_v5 = vld [vmem:[#allocation3 + $0x68] sm:$0xff] }
 0x5f4   : >> { %v7343_v17 = vadd.f32 %v7307_v56, %v7271_v42  ;;  %v6601_v56 = vadd.f32 %v6532_v54, %v6225_v26  ;;  %v6925_v42 = vpop.f32.mrf.mxu0 }
 0x5f6   : >> { %7379 = vst.msk [vmem:[#allocation3 + $0x50] sm:$0xff] %vm325_vm10, %v7343_v17 }
 0x5f7   : >> { %v7157_v7 = vpop.f32.mrf.mxu1 }
 0x5f8   : >> { %v7231_v61 = vadd.f32 %v7157_v7, %v16186_v31  ;;  %v18108_v31 = vld [vmem:[#allocation86_spill] sm:$0xff]  ;;  %v6984_v7 = vadd.f32 %v6915_v40, %v6601_v56  ;;  %v6544_v3 = vpop.f32.mrf.mxu3  ;;  %v6171_v23 = vpop.f32.mrf.mxu2  ;;  %v6229_v56 = vadd.f32 %v6166_v51, %v16090_v9 }
 0x5f9   : >> { %v7315_v51 = vld [vmem:[#allocation3 + $0x90] sm:$0xff] }
 0x5fa   : >> { %v7272_v6 = vadd.f32 %v16237_v53, %v7231_v61 }
 0x5fc   : >> { %v7344_v46 = vadd.f32 %v7308_v18, %v7272_v6  ;;  %v7311_v18 = vld [vmem:[#allocation3 + $0x70] sm:$0xff]  ;;  %v6927_v54 = vpop.f32.mrf.mxu0 }
 0x5fd   : >> { %v18109_v6 = vld [vmem:[#allocation90_spill] sm:$0xff] }
 0x5fe   : >> { %7380 = vst.msk [vmem:[#allocation3 + $0x58] sm:$0xff] %vm325_vm10, %v7344_v46 }
 0x5ff   : >> { %v7160_v39 = vpop.f32.mrf.mxu1 }
 0x600   : >> { %v7232_v43 = vadd.f32 %v7160_v39, %v6982_v8  ;;  %v6227_v8 = vadd.f32 %v6161_v11, %v16068_v50  ;;  %v7312_v39 = vld [vmem:[#allocation3 + $0x78] sm:$0xff]  ;;  %v6547_v52 = vpop.f32.mrf.mxu3  ;;  %v6173_v26 = vpop.f32.mrf.mxu2  ;;  %v7313_v11 = vld [vmem:[#allocation3 + $0x80] sm:$0xff] }
 0x602   : >> { %v7273_v29 = vadd.f32 %v16237_v53, %v7232_v43  ;;  %12081 = vmatmul.msk.bf16.gmra.mxu1 %vm325_vm10, %v18108_v31  ;;  %v6603_v43 = vadd.f32 %v6537_v14, %v6227_v8  ;;  %v18111_v8 = vld [vmem:[#allocation49_spill] sm:$0xff] }
 0x604   : >> { %v7345_v28 = vadd.f32 %v7309_v30, %v7273_v29  ;;  %v6228_v29 = vadd.f32 %v6163_v12, %v16082_v59  ;;  %v6930_v31 = vpop.f32.mrf.mxu0 }
 0x606   : >> { %7381 = vst.msk [vmem:[#allocation3 + $0x60] sm:$0xff] %vm325_vm10, %v7345_v28  ;;  %v6986_v28 = vadd.f32 %v6920_v55, %v6603_v43 }
 0x607   : >> { %v7162_v2 = vpop.f32.mrf.mxu1 }
 0x608   : >> { %v7233_v36 = vadd.f32 %v7162_v2, %v6983_v62  ;;  %v6604_v2 = vadd.f32 %v6539_v25, %v6228_v29 }
 0x60a   : >> { %v7274_v13 = vadd.f32 %v16237_v53, %v7233_v36  ;;  %v18110_v36 = vld [vmem:[#allocation91_spill] sm:$0xff]  ;;  %v6987_v59 = vadd.f32 %v6922_v4, %v6604_v2 }
 0x60c   : >> { %v7346_v17 = vadd.f32 %v7310_v5, %v7274_v13  ;;  %v6549_v5 = vpop.f32.mrf.mxu3  ;;  %v6932_v13 = vpop.f32.mrf.mxu0 }
 0x60e   : >> { %7382 = vst.msk [vmem:[#allocation3 + $0x68] sm:$0xff] %vm325_vm10, %v7346_v17  ;;  %v6176_v17 = vpop.f32.mrf.mxu2 }
 0x60f   : >> { %v7165_v61 = vpop.f32.mrf.mxu1 }
 0x610   : >> { %v7234_v22 = vadd.f32 %v7165_v61, %v6984_v7  ;;  %v6605_v7 = vadd.f32 %v6542_v58, %v6229_v56 }
 0x612   : >> { %v7275_v15 = vadd.f32 %v16237_v53, %v7234_v22  ;;  %12082 = vmatmul.msk.bf16.gmra.mxu1 %vm325_vm10, %v18109_v6  ;;  %v6230_v22 = vadd.f32 %v6168_v1, %v16103_v57 }
 0x614   : >> { %v7347_v46 = vadd.f32 %v7311_v18, %v7275_v15  ;;  %v6988_v18 = vadd.f32 %v6925_v42, %v6605_v7  ;;  %v6552_v49 = vpop.f32.mrf.mxu3  ;;  %v6606_v6 = vadd.f32 %v6544_v3, %v6230_v22  ;;  %v6935_v4 = vpop.f32.mrf.mxu0  ;;  %v7319_v22 = vld [vmem:[#allocation3 + $0xb0] sm:$0xff] }
 0x616   : >> { %7383 = vst.msk [vmem:[#allocation3 + $0x70] sm:$0xff] %vm325_vm10, %v7347_v46  ;;  %v6178_v58 = vpop.f32.mrf.mxu2  ;;  %v6989_v57 = vadd.f32 %v6927_v54, %v6606_v6 }
 0x617   : >> { %v7167_v35 = vpop.f32.mrf.mxu1 }
 0x618   : >> { %v7235_v40 = vadd.f32 %v7167_v35, %v6985_v21  ;;  %v6231_v35 = vadd.f32 %v6171_v23, %v16111_v37  ;;  %v7317_v23 = vld [vmem:[#allocation3 + $0xa0] sm:$0xff] }
 0x61a   : >> { %v7276_v30 = vadd.f32 %v16237_v53, %v7235_v40  ;;  %v6607_v43 = vadd.f32 %v6547_v52, %v6231_v35  ;;  %v6233_v52 = vadd.f32 %v6176_v17, %v16131_v27 }
 0x61c   : >> { %v7348_v16 = vadd.f32 %v7312_v39, %v7276_v30  ;;  %v6554_v40 = vpop.f32.mrf.mxu3  ;;  %v7316_v39 = vld [vmem:[#allocation3 + $0x98] sm:$0xff]  ;;  %v6937_v30 = vpop.f32.mrf.mxu0 }
 0x61e   : >> { %7384 = vst.msk [vmem:[#allocation3 + $0x78] sm:$0xff] %vm325_vm10, %v7348_v16  ;;  %v6181_v29 = vpop.f32.mrf.mxu2 }
 0x61f   : >> { %v7170_v62 = vpop.f32.mrf.mxu1 }
 0x620   : >> { %v7236_v50 = vadd.f32 %v7170_v62, %v6986_v28  ;;  %v6232_v28 = vadd.f32 %v6173_v26, %v16123_v33  ;;  %v6990_v62 = vadd.f32 %v6930_v31, %v6607_v43  ;;  %v7318_v26 = vld [vmem:[#allocation3 + $0xa8] sm:$0xff] }
 0x622   : >> { %v7277_v19 = vadd.f32 %v16237_v53, %v7236_v50  ;;  %12083 = vmatmul.msk.bf16.gmra.mxu1 %vm325_vm10, %v18110_v36 }
 0x624   : >> { %v7349_v14 = vadd.f32 %v7313_v11, %v7277_v19  ;;  %v6608_v11 = vadd.f32 %v6549_v5, %v6232_v28  ;;  %v6557_v2 = vpop.f32.mrf.mxu3  ;;  %v6940_v36 = vpop.f32.mrf.mxu0  ;;  %v6234_v5 = vadd.f32 %v6178_v58, %v16143_v41 }
 0x626   : >> { %7385 = vst.msk [vmem:[#allocation3 + $0x80] sm:$0xff] %vm325_vm10, %v7349_v14  ;;  %v6991_v14 = vadd.f32 %v6932_v13, %v6608_v11  ;;  %v6183_v56 = vpop.f32.mrf.mxu2  ;;  %v6610_v13 = vadd.f32 %v6554_v40, %v6234_v5 }
 0x627   : >> { %v7172_v12 = vpop.f32.mrf.mxu1 }
 0x628   : >> { %v7237_v55 = vadd.f32 %v7172_v12, %v6987_v59  ;;  %v6609_v12 = vadd.f32 %v6552_v49, %v6233_v52  ;;  %v6235_v49 = vadd.f32 %v6181_v29, %v16151_v63 }
 0x62a   : >> { %v7278_v25 = vadd.f32 %v16237_v53, %v7237_v55  ;;  %v6992_v7 = vadd.f32 %v6935_v4, %v6609_v12 }
 0x62c   : >> { %v7350_v61 = vadd.f32 %v7314_v0, %v7278_v25  ;;  %v6559_v0 = vpop.f32.mrf.mxu3  ;;  %v6942_v27 = vpop.f32.mrf.mxu0 }
 0x62e   : >> { %7386 = vst.msk [vmem:[#allocation3 + $0x88] sm:$0xff] %vm325_vm10, %v7350_v61  ;;  %v6186_v61 = vpop.f32.mrf.mxu2 }
 0x62f   : >> { %v7175_v15 = vpop.f32.mrf.mxu1  ;;  %v6237_v28 = vadd.f32 %v6186_v61, %v16171_v34 }
 0x630   : >> { %v7238_v9 = vadd.f32 %v7175_v15, %v6988_v18 }
 0x632   : >> { %v7279_v46 = vadd.f32 %v16237_v53, %v7238_v9  ;;  %12084 = vmatmul.msk.bf16.gmra.mxu1 %vm325_vm10, %v18111_v8  ;;  %v6993_v9 = vadd.f32 %v6937_v30, %v6610_v13  ;;  %v6611_v8 = vadd.f32 %v6557_v2, %v6235_v49 }
 0x634   : >> { %v7351_v21 = vadd.f32 %v7315_v51, %v7279_v46  ;;  %v6562_v51 = vpop.f32.mrf.mxu3  ;;  %v7320_v46 = vld [vmem:[#allocation3 + $0xb8] sm:$0xff]  ;;  %v6945_v4 = vpop.f32.mrf.mxu0 }
 0x636   : >> { %7387 = vst.msk [vmem:[#allocation3 + $0x90] sm:$0xff] %vm325_vm10, %v7351_v21  ;;  %v6188_v21 = vpop.f32.mrf.mxu2 }
 0x637   : >> { %v7177_v1 = vpop.f32.mrf.mxu1 }
 0x638   : >> { %v7239_v42 = vadd.f32 %v7177_v1, %v6989_v57  ;;  %v6236_v57 = vadd.f32 %v6183_v56, %v16163_v32  ;;  %v6994_v1 = vadd.f32 %v6940_v36, %v6611_v8 }
 0x63a   : >> { %v7280_v3 = vadd.f32 %v16237_v53, %v7239_v42  ;;  %v6612_v43 = vadd.f32 %v6559_v0, %v6236_v57  ;;  %v7326_v57 = vld [vmem:[#allocation3 + $0xe8] sm:$0xff] }
 0x63c   : >> { %v7352_v16 = vadd.f32 %v7316_v39, %v7280_v3  ;;  %v6564_v40 = vpop.f32.mrf.mxu3  ;;  %v7321_v39 = vld [vmem:[#allocation3 + $0xc0] sm:$0xff]  ;;  %v6947_v30 = vpop.f32.mrf.mxu0 }
 0x63e   : >> { %7388 = vst.msk [vmem:[#allocation3 + $0x98] sm:$0xff] %vm325_vm10, %v7352_v16  ;;  %v6191_v29 = vpop.f32.mrf.mxu2 }
 0x63f   : >> { %v7180_v50 = vpop.f32.mrf.mxu1 }
 0x640   : >> { %v7240_v37 = vadd.f32 %v7180_v50, %v6990_v62  ;;  %v6995_v62 = vadd.f32 %v6942_v27, %v6612_v43  ;;  %v7324_v27 = vld [vmem:[#allocation3 + $0xd8] sm:$0xff] }
 0x642   : >> { %v7281_v54 = vadd.f32 %v16237_v53, %v7240_v37  ;;  %v7322_v37 = vld [vmem:[#allocation3 + $0xc8] sm:$0xff] }
 0x644   : >> { %v7353_v19 = vadd.f32 %v7317_v23, %v7281_v54  ;;  %v6613_v23 = vadd.f32 %v6562_v51, %v6237_v28  ;;  %v6567_v54 = vpop.f32.mrf.mxu3  ;;  %v6950_v52 = vpop.f32.mrf.mxu0 }
 0x646   : >> { %7389 = vst.msk [vmem:[#allocation3 + $0xa0] sm:$0xff] %vm325_vm10, %v7353_v19  ;;  %v6238_v19 = vadd.f32 %v6188_v21, %v16182_v44  ;;  %v6996_v36 = vadd.f32 %v6945_v4, %v6613_v23 }
 0x647   : >> { %v7182_v59 = vpop.f32.mrf.mxu1 }
 0x648   : >> { %v7241_v33 = vadd.f32 %v7182_v59, %v6991_v14  ;;  %v6193_v14 = vpop.f32.mrf.mxu2  ;;  %v7323_v59 = vld [vmem:[#allocation3 + $0xd0] sm:$0xff] }
 0x649   : >> { %v6240_v13 = vadd.f32 %v6193_v14, %v16198_v47 }
 0x64a   : >> { %v7282_v31 = vadd.f32 %v16237_v53, %v7241_v33  ;;  %v6614_v33 = vadd.f32 %v6564_v40, %v6238_v19 }
 0x64c   : >> { %v7354_v55 = vadd.f32 %v7318_v26, %v7282_v31  ;;  %v6569_v31 = vpop.f32.mrf.mxu3  ;;  %v6997_v0 = vadd.f32 %v6947_v30, %v6614_v33  ;;  %v6952_v44 = vpop.f32.mrf.mxu0 }
 0x64d   : >> { %v6616_v51 = vadd.f32 %v6569_v31, %v6240_v13 }
 0x64e   : >> { %7390 = vst.msk [vmem:[#allocation3 + $0xa8] sm:$0xff] %vm325_vm10, %v7354_v55  ;;  %v6239_v55 = vadd.f32 %v6191_v29, %v16189_v60 }
 0x64f   : >> { %v7185_v25 = vpop.f32.mrf.mxu1 }
 0x650   : >> { %v7242_v17 = vadd.f32 %v7185_v25, %v6992_v7  ;;  %v6196_v25 = vpop.f32.mrf.mxu2 }
 0x651   : >> { %v6241_v4 = vadd.f32 %v6196_v25, %v16205_v20 }
 0x652   : >> { %v7283_v18 = vadd.f32 %v16237_v53, %v7242_v17  ;;  %v6615_v17 = vadd.f32 %v6567_v54, %v6239_v55 }
 0x654   : >> { %v7355_v15 = vadd.f32 %v7319_v22, %v7283_v18  ;;  %v6998_v18 = vadd.f32 %v6950_v52, %v6615_v17 }
 0x656   : >> { %7391 = vst.msk [vmem:[#allocation3 + $0xb0] sm:$0xff] %vm325_vm10, %v7355_v15  ;;  %v6572_v15 = vpop.f32.mrf.mxu3 }
 0x657   : >> { %v7187_v6 = vpop.f32.mrf.mxu1 }
 0x658   : >> { %v7243_v41 = vadd.f32 %v7187_v6, %v6993_v9  ;;  %v7325_v9 = vld [vmem:[#allocation3 + $0xe0] sm:$0xff]  ;;  %v6955_v6 = vpop.f32.mrf.mxu0 }
 0x65a   : >> { %v7284_v58 = vadd.f32 %v16237_v53, %v7243_v41 }
 0x65c   : >> { %v7356_v35 = vadd.f32 %v7320_v46, %v7284_v58  ;;  %v6198_v46 = vpop.f32.mrf.mxu2  ;;  %v6999_v58 = vadd.f32 %v6952_v44, %v6616_v51  ;;  %v7331_v51 = vld [vmem:[#allocation3 + $0x110] sm:$0xff] }
 0x65d   : >> { %v6242_v43 = vadd.f32 %v6198_v46, %v16214_v48 }
 0x65e   : >> { %7392 = vst.msk [vmem:[#allocation3 + $0xb8] sm:$0xff] %vm325_vm10, %v7356_v35  ;;  %v6574_v35 = vpop.f32.mrf.mxu3 }
 0x65f   : >> { %v7190_v42 = vpop.f32.mrf.mxu1  ;;  %v6618_v29 = vadd.f32 %v6574_v35, %v6242_v43  ;;  %v12722_v43 = vld [vmem:[%s17601_s1 + $0x250] sm:$0xff] (%p364_p4) }
 0x660   : >> { %v7244_v63 = vadd.f32 %v7190_v42, %v6994_v1  ;;  %v6617_v1 = vadd.f32 %v6572_v15, %v6241_v4 }
 0x662   : >> { %v7285_v3 = vadd.f32 %v16237_v53, %v7244_v63  ;;  %v6957_v63 = vpop.f32.mrf.mxu0 }
 0x663   : >> { %v7001_v23 = vadd.f32 %v6957_v63, %v6618_v29  ;;  %v7414_v63 = vld [vmem:[#allocation3 + $0x48] sm:$0xff] (%p364_p4) }
 0x664   : >> { %v7357_v16 = vadd.f32 %v7321_v39, %v7285_v3  ;;  %v6201_v39 = vpop.f32.mrf.mxu2  ;;  %v7000_v3 = vadd.f32 %v6955_v6, %v6617_v1  ;;  %v7412_v1 = vld [vmem:[#allocation3 + $0x38] sm:$0xff] (%p364_p4) }
 0x666   : >> { %7393 = vst.msk [vmem:[#allocation3 + $0xc0] sm:$0xff] %vm325_vm10, %v7357_v16  ;;  %v7327_v16 = vld [vmem:[#allocation3 + $0xf0] sm:$0xff] }
 0x667   : >> { %v7192_v50 = vpop.f32.mrf.mxu1 }
 0x668   : >> { %v7245_v32 = vadd.f32 %v7192_v50, %v6995_v62  ;;  %v6577_v62 = vpop.f32.mrf.mxu3 }
 0x66a   : >> { %v7286_v11 = vadd.f32 %v16237_v53, %v7245_v32  ;;  %v6960_v32 = vpop.f32.mrf.mxu0 }
 0x66c   : >> { %v7358_v2 = vadd.f32 %v7322_v37, %v7286_v11  ;;  %v6243_v37 = vadd.f32 %v6201_v39, %v16219_v38  ;;  %v6203_v11 = vpop.f32.mrf.mxu2  ;;  %v18112_v39 = vld [vmem:[#allocation11_spill] sm:$0xff] (%p364_p4) }
 0x66d   : > { %vm18113_vm1 = vcmp.gt.f32.partialorder (%p364_p4), %v18112_v39, 0.5 }
 0x66e   : >> { %7394 = vst.msk [vmem:[#allocation3 + $0xc8] sm:$0xff] %vm325_vm10, %v7358_v2  ;;  %v7328_v2 = vld [vmem:[#allocation3 + $0xf8] sm:$0xff]  ;;  %v6619_v19 = vadd.f32 %v6577_v62, %v6243_v37 }
 0x66f   : >> { %v7195_v56 = vpop.f32.mrf.mxu1  ;;  %v18120_v37 = vld [vmem:[#allocation15_spill] sm:$0xff] (%p364_p4) }
 0x670   : >> { %v7246_v34 = vadd.f32 %v7195_v56, %v6996_v36  ;;  %v6579_v14 = vpop.f32.mrf.mxu3  ;;  %v6244_v56 = vadd.f32 %v6203_v11, %v16226_v10 }
 0x672   : >> { %v7287_v26 = vadd.f32 %v16237_v53, %v7246_v34  ;;  %v7002_v34 = vadd.f32 %v6960_v32, %v6619_v19  ;;  %v6962_v38 = vpop.f32.mrf.mxu0  ;;  %v6620_v31 = vadd.f32 %v6579_v14, %v6244_v56  ;;  %v7422_v32 = vld [vmem:[#allocation3 + $0x88] sm:$0xff] (%p364_p4) }
 0x673   : > { %v7458_v14 = vsel (%p364_p4), %vm252_vm13, %v7422_v32, 0.0 }
 0x674   : >> { %v7359_v12 = vadd.f32 %v7323_v59, %v7287_v26  ;;  %v6206_v26 = vpop.f32.mrf.mxu2  ;;  %v7003_v44 = vadd.f32 %v6962_v38, %v6620_v31 }
 0x676   : >> { %7395 = vst.msk [vmem:[#allocation3 + $0xd0] sm:$0xff] %vm325_vm10, %v7359_v12  ;;  %v7329_v12 = vld [vmem:[#allocation3 + $0x100] sm:$0xff] }
 0x677   : >> { %v7197_v5 = vpop.f32.mrf.mxu1 }
 0x678   : >> { %v7247_v7 = vadd.f32 %v7197_v5, %v6997_v0  ;;  %v6245_v5 = vadd.f32 %v6206_v26, %v16229_v45 }
 0x67a   : >> { %v7288_v61 = vadd.f32 %v16237_v53, %v7247_v7  ;;  %v6582_v7 = vpop.f32.mrf.mxu3 }
 0x67b   : >> { %v6621_v17 = vadd.f32 %v6582_v7, %v6245_v5 }
 0x67c   : >> { %v7360_v22 = vadd.f32 %v7324_v27, %v7288_v61  ;;  %v7330_v27 = vld [vmem:[#allocation3 + $0x108] sm:$0xff]  ;;  %v6208_v13 = vpop.f32.mrf.mxu2 }
 0x67d   : >> { %v6246_v15 = vadd.f32 %v6208_v13, %v16234_v24 }
 0x67e   : >> { %7396 = vst.msk [vmem:[#allocation3 + $0xd8] sm:$0xff] %vm325_vm10, %v7360_v22  ;;  %v6965_v22 = vpop.f32.mrf.mxu0 }
 0x67f   : >> { %v7200_v49 = vpop.f32.mrf.mxu1 }
 0x680   : >> { %v7248_v60 = vadd.f32 %v7200_v49, %v6998_v18  ;;  %v7004_v49 = vadd.f32 %v6965_v22, %v6621_v17  ;;  %v7425_v22 = vld [vmem:[#allocation3 + $0xa0] sm:$0xff] (%p364_p4) }
 0x682   : >> { %v7289_v41 = vadd.f32 %v16237_v53, %v7248_v60 }
 0x684   : >> { %v7361_v8 = vadd.f32 %v7325_v9, %v7289_v41  ;;  %v6584_v9 = vpop.f32.mrf.mxu3 }
 0x685   : >> { %v6622_v6 = vadd.f32 %v6584_v9, %v6246_v15  ;;  %v12725_v9 = vld [vmem:[%s17601_s1 + $0x268] sm:$0xff] (%p364_p4) }
 0x686   : >> { %7397 = vst.msk [vmem:[#allocation3 + $0xe0] sm:$0xff] %vm325_vm10, %v7361_v8  ;;  %v6967_v8 = vpop.f32.mrf.mxu0 }
 0x687   : >> { %v7202_v21 = vpop.f32.mrf.mxu1  ;;  %v7005_v4 = vadd.f32 %v6967_v8, %v6622_v6 }
 0x688   : >> { %v7249_v47 = vadd.f32 %v7202_v21, %v6999_v58 }
 0x68a   : >> { %v7290_v42 = vadd.f32 %v16237_v53, %v7249_v47  ;;  %v7332_v47 = vld [vmem:[#allocation3 + $0x118] sm:$0xff] }
 0x68c   : >> { %v7362_v40 = vadd.f32 %v7326_v57, %v7290_v42  ;;  %v12723_v57 = vld [vmem:[%s17601_s1 + $0x258] sm:$0xff] (%p364_p4)  ;;  %v7413_v42 = vld [vmem:[#allocation3 + $0x40] sm:$0xff] (%p364_p4) }
 0x68d   : > { %12797 = vmatpush.bf16.msra.mxu1 (%p364_p4), %v12723_v57  ;;  %12798 = vmatpush.bf16.msra.mxu2 (%p364_p4), %v12723_v57 }
 0x68e   : >> { %7398 = vst.msk [vmem:[#allocation3 + $0xe8] sm:$0xff] %vm325_vm10, %v7362_v40  ;;  %v7415_v40 = vld [vmem:[#allocation3 + $0x50] sm:$0xff] (%p364_p4)  ;;  %8313 = vmatpush.bf16.msra.mxu0 (%p364_p4), %v12723_v57  ;;  %12799 = vmatpush.bf16.msra.mxu3 (%p364_p4), %v12723_v57 }
 0x68f   : >> { %v7205_v30 = vpop.f32.mrf.mxu1 }
 0x690   : >> { %v7250_v20 = vadd.f32 %v7205_v30, %v7000_v3  ;;  %v7416_v3 = vld [vmem:[#allocation3 + $0x58] sm:$0xff] (%p364_p4)  ;;  %v18114_v30 = vld [vmem:[#allocation12_spill] sm:$0xff] (%p364_p4) }
 0x691   : > { %vm18115_vm5 = vcmp.gt.f32.partialorder (%p364_p4), %v18114_v30, 0.5  ;;  %12800 = vmatpush.bf16.msra.mxu1 (%p364_p4), %v12722_v43  ;;  %12801 = vmatpush.bf16.msra.mxu2 (%p364_p4), %v12722_v43 }
 0x692   : >> { %v7291_v28 = vadd.f32 %v16237_v53, %v7250_v20  ;;  %v7449_v20 = vsel (%p364_p4), %vm18115_vm5, %v7413_v42, 0.0  ;;  %8314 = vmatpush.bf16.msra.mxu0 (%p364_p4), %v12722_v43  ;;  %12802 = vmatpush.bf16.msra.mxu3 (%p364_p4), %v12722_v43  ;;  %v18130_v42 = vld [vmem:[#allocation25_spill] sm:$0xff] (%p364_p4) }
 0x693   : > { %v7485_v11 = vpack.c.bf16 (%p364_p4), %v7449_v20, %v7449_v20 }
 0x694   : >> { %v7363_v50 = vadd.f32 %v7327_v16, %v7291_v28  ;;  %v18116_v16 = vld [vmem:[#allocation13_spill] sm:$0xff] (%p364_p4)  ;;  %v18118_v28 = vld [vmem:[#allocation14_spill] sm:$0xff] (%p364_p4) }
 0x695   : > { %vm18117_vm11 = vcmp.gt.f32.partialorder (%p364_p4), %v18116_v16, 0.5  ;;  %vm18119_vm7 = vcmp.gt.f32.partialorder (%p364_p4), %v18118_v28, 0.5  ;;  %v7595_v56 = vshrl.u32 (%p364_p4), %v7485_v11, 16  ;;  %8672 = vmatpush.bf16.msrb.mxu2 (%p364_p4), %v12725_v9 }
 0x696   : >> { %7399 = vst.msk [vmem:[#allocation3 + $0xf0] sm:$0xff] %vm325_vm10, %v7363_v50  ;;  %v7450_v29 = vsel (%p364_p4), %vm18117_vm11, %v7414_v63, 0.0  ;;  %v7451_v62 = vsel (%p364_p4), %vm18119_vm7, %v7415_v40, 0.0  ;;  %vm18131_vm7 = vcmp.gt.f32.partialorder (%p364_p4), %v18130_v42, 0.5  ;;  %v7494_v40 = vpack.c.bf16 (%p364_p4), %v7458_v14, %v7458_v14 }
 0x697   : >> { %v7207_v54 = vpop.f32.mrf.mxu1 }
 0x698   : >> { %v7251_v48 = vadd.f32 %v7207_v54, %v7001_v23  ;;  %v7486_v54 = vpack.c.bf16 (%p364_p4), %v7450_v29, %v7450_v29  ;;  %v7685_v29 = vshrl.u32 (%p364_p4), %v7494_v40, 16 }
 0x69a   : >> { %v7292_v52 = vadd.f32 %v16237_v53, %v7251_v48  ;;  %v7487_v48 = vpack.c.bf16 (%p364_p4), %v7451_v62, %v7451_v62  ;;  %v7688_v62 = vshll.u32 (%p364_p4), %v7494_v40, 16 }
 0x69c   : >> { %v7364_v36 = vadd.f32 %v7328_v2, %v7292_v52  ;;  %v7618_v31 = vshll.u32 (%p364_p4), %v7487_v48, 16 }
 0x69e   : >> { %7400 = vst.msk [vmem:[#allocation3 + $0xf8] sm:$0xff] %vm325_vm10, %v7364_v36  ;;  %v7620_v17 = vrot.slane (%p364_p4), %v7618_v31, 7 }
 0x69f   : >> { %v7210_v59 = vpop.f32.mrf.mxu1 }
 0x6a0   : >> { %v7252_v33 = vadd.f32 %v7210_v59, %v7002_v34  ;;  %v7598_v34 = vshll.u32 (%p364_p4), %v7485_v11, 16  ;;  %v7605_v59 = vshrl.u32 (%p364_p4), %v7486_v54, 16  ;;  %v7687_v11 = vrot.slane (%p364_p4), %v7685_v29, 6 }
 0x6a2   : >> { %v7293_v55 = vadd.f32 %v16237_v53, %v7252_v33  ;;  %v7608_v33 = vshll.u32 (%p364_p4), %v7486_v54, 16  ;;  %v7600_v5 = vrot.slane (%p364_p4), %v7598_v34, 7  ;;  %v12746_v34 = vld [vmem:[%s17601_s1 + $0x288] sm:$0xff] (%p364_p4) }
 0x6a3   : > { %9426 = vmatpush.bf16.msrb.mxu0 (%p364_p4), %v12746_v34 }
 0x6a4   : >> { %v7365_v0 = vadd.f32 %v7329_v12, %v7293_v55  ;;  %v7615_v12 = vshrl.u32 (%p364_p4), %v7487_v48, 16  ;;  %v7423_v55 = vld [vmem:[#allocation3 + $0x90] sm:$0xff] (%p364_p4)  ;;  %v7610_v7 = vrot.slane (%p364_p4), %v7608_v33, 7 }
 0x6a6   : >> { %7401 = vst.msk [vmem:[#allocation3 + $0x100] sm:$0xff] %vm325_vm10, %v7365_v0  ;;  %v7597_v0 = vrot.slane (%p364_p4), %v7595_v56, 6  ;;  %v12721_v56 = vld [vmem:[%s17601_s1 + $0x248] sm:$0xff] (%p364_p4) }
 0x6a7   : >> { %v7212_v25 = vpop.f32.mrf.mxu1  ;;  %8460 = vmatpush.bf16.msrb.mxu1 (%p364_p4), %v12721_v56 }
 0x6a8   : >> { %v7253_v10 = vadd.f32 %v7212_v25, %v7003_v44  ;;  %v7607_v44 = vrot.slane (%p364_p4), %v7605_v59, 6  ;;  %v7424_v25 = vld [vmem:[#allocation3 + $0x98] sm:$0xff] (%p364_p4)  ;;  %v7601_v13 = vor.u32 (%p364_p4), %v7600_v5, %v7597_v0 }
 0x6aa   : >> { %v7294_v61 = vadd.f32 %v16237_v53, %v7253_v10 }
 0x6ac   : >> { %v7366_v18 = vadd.f32 %v7330_v27, %v7294_v61  ;;  %v7617_v27 = vrot.slane (%p364_p4), %v7615_v12, 6 }
 0x6ae   : >> { %7402 = vst.msk [vmem:[#allocation3 + $0x108] sm:$0xff] %vm325_vm10, %v7366_v18  ;;  %v7611_v18 = vor.u32 (%p364_p4), %v7610_v7, %v7607_v44  ;;  %v7621_v6 = vor.u32 (%p364_p4), %v7620_v17, %v7617_v27  ;;  %v18133_v27 = vld [vmem:[#allocation5_spill] sm:$0xff] (%p364_p4) }
 0x6af   : >> { %v7215_v60 = vpop.f32.mrf.mxu1 }
 0x6b0   : >> { %v7254_v45 = vadd.f32 %v7215_v60, %v7004_v49  ;;  %v7426_v49 = vld [vmem:[#allocation3 + $0xa8] sm:$0xff] (%p364_p4)  ;;  %v18123_v60 = vld [vmem:[#allocation22_spill] sm:$0xff] (%p364_p4) }
 0x6b1   : > { %vm18124_vm5 = vcmp.gt.f32.partialorder (%p364_p4), %v18123_v60, 0.5  ;;  %v7462_v63 = vsel (%p364_p4), %vm18131_vm7, %v7426_v49, 0.0  ;;  %v16430_v49 = vld [vmem:[#allocation2] sm:$0xff] (%p364_p4)  }
 0x6b2   : >> { %v7295_v41 = vadd.f32 %v16237_v53, %v7254_v45  ;;  %v7459_v45 = vsel (%p364_p4), %vm18124_vm5, %v7423_v55, 0.0  ;;  %v7498_v16 = vpack.c.bf16 (%p364_p4), %v7462_v63, %v7462_v63 }
 0x6b4   : >> { %v7367_v46 = vadd.f32 %v7331_v51, %v7295_v41  ;;  %v7728_v0 = vshll.u32 (%p364_p4), %v7498_v16, 16 }
 0x6b6   : >> { %7403 = vst.msk [vmem:[#allocation3 + $0x110] sm:$0xff] %vm325_vm10, %v7367_v46  ;;  %v18125_v46 = vld [vmem:[#allocation23_spill] sm:$0xff] (%p364_p4) }
 0x6b7   : >> { %v7217_v58 = vpop.f32.mrf.mxu1  ;;  %vm18126_vm13 = vcmp.gt.f32.partialorder (%p364_p4), %v18125_v46, 0.5 }
 0x6b8   : >> { %v7255_v21 = vadd.f32 %v7217_v58, %v7005_v4  ;;  %v7460_v8 = vsel (%p364_p4), %vm18126_vm13, %v7424_v25, 0.0  ;;  %v7603_v4 = vrot.slane (%p364_p4), %v7601_v13, 4  ;;  %v7613_v58 = vrot.slane (%p364_p4), %v7611_v18, 4 }
 0x6b9   : > { %v7496_v30 = vpack.c.bf16 (%p364_p4), %v7460_v8, %v7460_v8 }
 0x6ba   : >> { %v7296_v24 = vadd.f32 %v16237_v53, %v7255_v21  ;;  %366 = sbr.rel (!%p364_p4) target bundleno = 92 (0x5c), region = 103  ;;  %v7448_v53 = vsel (%p364_p4), %vm18113_vm1, %v7412_v1, 0.0  ;;  %vm18121_vm1 = vcmp.gt.f32.partialorder (%p364_p4), %v18120_v37, 0.5  ;;  %v7623_v1 = vrot.slane (%p364_p4), %v7621_v6, 4  ;;  %v7405_v37 = vld [vmem:[#allocation3] sm:$0xff] (%p364_p4) }
 0x6bb   : > { %v7484_v50 = vpack.c.bf16 (%p364_p4), %v7448_v53, %v7448_v53  ;;  %v7452_v23 = vsel (%p364_p4), %vm18121_vm1, %v7416_v3, 0.0  ;;  %v7612_v39 = vsel (%p364_p4), %vm13290_vm8, %v7603_v4, %v7611_v18  ;;  %v7622_v53 = vsel (%p364_p4), %vm13290_vm8, %v7613_v58, %v7621_v6 }
 0x6bc   : >> { %v7368_v35 = vadd.f32 %v7332_v47, %v7296_v24  ;;  %v7488_v2 = vpack.c.bf16 (%p364_p4), %v7452_v23, %v7452_v23  ;;  %v18127_v47 = vld [vmem:[#allocation24_spill] sm:$0xff] (%p364_p4)  ;;  %v7495_v3 = vpack.c.bf16 (%p364_p4), %v7459_v45, %v7459_v45  ;;  %7922 = vst.msk [vmem:[#allocation2 + $0x2c] sm:$0xf] (%p364_p4), %vm271_vm3, %v7612_v39  ;;  %v7406_v23 = vld [vmem:[#allocation3 + $0x8] sm:$0xff] (%p364_p4)  ;;  %v7705_v54 = vshrl.u32 (%p364_p4), %v7496_v30, 16 }
 0x6bd   : > { %v7585_v19 = vshrl.u32 (%p364_p4), %v7484_v50, 16  ;;  %v7588_v52 = vshll.u32 (%p364_p4), %v7484_v50, 16  ;;  %vm18128_vm11 = vcmp.gt.f32.partialorder (%p364_p4), %v18127_v47, 0.5  ;;  %7923 = vst.msk [vmem:[#allocation2 + $0x30] sm:$0xf] (%p364_p4), %vm271_vm3, %v7622_v53  ;;  %v7708_v48 = vshll.u32 (%p364_p4), %v7496_v30, 16 }
 0x6be   : >> { %7404 = vst.msk [vmem:[#allocation3 + $0x118] sm:$0xff] %vm325_vm10, %v7368_v35  ;;  %v7625_v61 = vshrl.u32 (%p364_p4), %v7488_v2, 16  ;;  %v7628_v15 = vshll.u32 (%p364_p4), %v7488_v2, 16  ;;  %v7461_v24 = vsel (%p364_p4), %vm18128_vm11, %v7425_v22, 0.0  ;;  %v7695_v50 = vshrl.u32 (%p364_p4), %v7495_v3, 16 }
 0x6bf   : > { %v7587_v38 = vrot.slane %v7585_v19, 6  ;;  %v7590_v26 = vrot.slane %v7588_v52, 7  ;;  %v7497_v20 = vpack.c.bf16 %v7461_v24, %v7461_v24  ;;  %v7698_v32 = vshll.u32 %v7495_v3, 16 }
 0x6c0   : > { %v7627_v41 = vrot.slane %v7625_v61, 6  ;;  %v7630_v21 = vrot.slane %v7628_v15, 7  ;;  %v7690_v19 = vrot.slane %v7688_v62, 7  ;;  %v7697_v52 = vrot.slane %v7695_v50, 6 }
 0x6c1   : > { %v16388_v10 = vor.u32 %v7590_v26, %v7587_v38  ;;  %v7715_v2 = vshrl.u32 %v7497_v20, 16  ;;  %v7700_v36 = vrot.slane %v7698_v32, 7  ;;  %v7718_v14 = vshll.u32 %v7497_v20, 16  ;;  %v7911_v32 = vld [vmem:[#allocation2 + $0x8] sm:$0xe] }
 0x6c2   : > { %v16408_v43 = vor.u32 %v7630_v21, %v7627_v41  ;;  %v7707_v59 = vrot.slane %v7705_v54, 6  ;;  %v7710_v33 = vrot.slane %v7708_v48, 7  ;;  %v7725_v26 = vshrl.u32 %v7498_v16, 16  ;;  %v18137_v54 = vld [vmem:[#allocation17_spill] sm:$0xff] }
 0x6c3   : > { %v7593_v51 = vrot.slane %v16388_v10, 4  ;;  %v7717_v38 = vrot.slane %v7715_v2, 6  ;;  %v16423_v12 = vor.u32 %v7690_v19, %v7687_v11  ;;  %v7701_v31 = vor.u32 %v7700_v36, %v7697_v52 }
 0x6c4   : > { %v7632_v28 = vsel %vm13290_vm8, %v7623_v1, %v16408_v43  ;;  %v7720_v55 = vrot.slane %v7718_v14, 7  ;;  %v7711_v5 = vor.u32 %v7710_v33, %v7707_v59  ;;  %v7727_v44 = vrot.slane %v7725_v26, 6  ;;  %v7418_v1 = vld [vmem:[#allocation3 + $0x68] sm:$0xff]  ;;  %v7427_v14 = vld [vmem:[#allocation3 + $0xb0] sm:$0xff]  ;;  %v7428_v33 = vld [vmem:[#allocation3 + $0xb8] sm:$0xff] }
 0x6c5   : > { %v7602_v57 = vsel %vm13290_vm8, %v7593_v51, %v7601_v13  ;;  %7924 = vst.msk [vmem:[#allocation2 + $0x34] sm:$0xf] %vm271_vm3, %v7632_v28  ;;  %v7441_v25 = vsel %vm235_vm0, %v7405_v37, 0.0  ;;  %vm18134_vm1 = vcmp.gt.f32.partialorder %v18133_v27, 0.5  ;;  %v7693_v22 = vrot.slane %v16423_v12, 4  ;;  %v18140_v27 = vld [vmem:[#allocation26_spill] sm:$0xff] }
 0x6c6   : > { %7921 = vst.msk [vmem:[#allocation2 + $0x28] sm:$0xf] %vm271_vm3, %v7602_v57  ;;  %v7442_v17 = vsel %vm18134_vm1, %v7406_v23, 0.0  ;;  %v7703_v13 = vrot.slane %v7701_v31, 4  ;;  %v7721_v18 = vor.u32 %v7720_v55, %v7717_v38  ;;  %v7730_v15 = vrot.slane %v7728_v0, 7  ;;  %v7417_v57 = vld [vmem:[#allocation3 + $0x60] sm:$0xff] }
 0x6c7   : > { %v7713_v60 = vrot.slane %v7711_v5, 4  ;;  %v7477_v45 = vpack.c.bf16 %v7441_v25, %v7441_v25  ;;  %v7478_v9 = vpack.c.bf16 %v7442_v17, %v7442_v17  ;;  %v8094_v51 = vshrl.u32 %v16430_v49, 16  ;;  %v18135_v23 = vld [vmem:[#allocation16_spill] sm:$0xff] }
 0x6c8   : > { %v7702_v8 = vsel %vm13290_vm8, %v7693_v22, %v7701_v31  ;;  %v7712_v4 = vsel %vm13290_vm8, %v7703_v13, %v7711_v5  ;;  %v7723_v21 = vrot.slane %v7721_v18, 4  ;;  %v16441_v47 = vor.u32 %v7730_v15, %v7727_v44  ;;  %v18142_v13 = vld [vmem:[#allocation27_spill] sm:$0xff] }
 0x6c9   : > { %v7722_v58 = vsel %vm13290_vm8, %v7713_v60, %v7721_v18  ;;  %7931 = vst.msk [vmem:[#allocation2 + $0x50] sm:$0xf] %vm271_vm3, %v7702_v8  ;;  %v7516_v24 = vshrl.u32 %v7477_v45, 16  ;;  %v7519_v40 = vshll.u32 %v7477_v45, 16  ;;  %v7525_v39 = vshrl.u32 %v7478_v9, 16 }
 0x6ca   : > { %7932 = vst.msk [vmem:[#allocation2 + $0x54] sm:$0xf] %vm271_vm3, %v7712_v4  ;;  %v7732_v53 = vsel %vm13290_vm8, %v7723_v21, %v16441_v47  ;;  %v7528_v30 = vshll.u32 %v7478_v9, 16  ;;  %v8096_v20 = vshll.u32 %v16430_v49, 16  ;;  %vm18136_vm0 = vcmp.gt.f32.partialorder %v18135_v23, 0.5  ;;  %v18144_v23 = vld [vmem:[#allocation6_spill] sm:$0xff] }
 0x6cb   : > { %7933 = vst.msk [vmem:[#allocation2 + $0x58] sm:$0xf] %vm271_vm3, %v7722_v58  ;;  %v7518_v3 = vrot.slane %v7516_v24, 6  ;;  %v7521_v28 = vrot.slane %v7519_v40, 7  ;;  %v7527_v62 = vrot.slane %v7525_v39, 6  ;;  %v7453_v11 = vsel %vm18136_vm0, %v7417_v57, 0.0 }
 0x6cc   : > { %v16433_v6 = vld [vmem:[#allocation2 + $0x30] sm:$0xff]  ;;  %7934 = vst.msk [vmem:[#allocation2 + $0x5c] sm:$0xf] %vm271_vm3, %v7732_v53  ;;  %v7530_v50 = vrot.slane %v7528_v30, 7  ;;  %v8098_v37 = vrot.slane %v8096_v20, 1  ;;  %vm18138_vm5 = vcmp.gt.f32.partialorder %v18137_v54, 0.5  ;;  %v7489_v52 = vpack.c.bf16 %v7453_v11, %v7453_v11 }
 0x6cd   : > { %v12707_v61 = vld [vmem:[#allocation2 + $0x28] sm:$0xff]  ;;  %v8141_v63 = vshll.u32 %v16433_v6, 16  ;;  %v7454_v48 = vsel %vm18138_vm5, %v7418_v1, 0.0  ;;  %v7522_v19 = vor.u32 %v7521_v28, %v7518_v3  ;;  %v7633_v34 = vrot.slane %v16408_v43, 4  ;;  %v7407_v39 = vld [vmem:[#allocation3 + $0x10] sm:$0xff]  ;;  %v7408_v53 = vld [vmem:[#allocation3 + $0x18] sm:$0xff] }
 0x6ce   : > { %v8133_v41 = vshll.u32 %v12707_v61, 16  ;;  %v8137_v46 = vshrl.u32 %v12707_v61, 16  ;;  %v7490_v36 = vpack.c.bf16 %v7454_v48, %v7454_v48  ;;  %v16464_v56 = vor.u32 %v7530_v50, %v7527_v62  ;;  %v18146_v54 = vld [vmem:[#allocation7_spill] sm:$0xff] }
 0x6cf   : > { %v16454_v29 = vrot.slane %v8141_v63, 1  ;;  %v8145_v59 = vshrl.u32 %v16433_v6, 16  ;;  %v7523_v38 = vrot.slane %v7522_v19, 4  ;;  %v7912_v31 = vsel %vm13167_vm4, %v7522_v19, %v7911_v32 }
 0x6d0   : > { %v16444_v42 = vrot.slane %v8133_v41, 1  ;;  %v7635_v55 = vshrl.u32 %v7489_v52, 16  ;;  %v7638_v0 = vshll.u32 %v7489_v52, 16  ;;  %7913 = vst [vmem:[#allocation2 + $0x8] sm:$0xe] %v7912_v31  ;;  %v16470_v44 = vor.u32 %v8098_v37, %v8094_v51 }
 0x6d1   : > { %v12712_v5 = vld [vmem:[#allocation2 + $0x50] sm:$0xff]  ;;  %v7645_v7 = vshrl.u32 %v7490_v36, 16  ;;  %v7648_v25 = vshll.u32 %v7490_v36, 16  ;;  %vm18141_vm13 = vcmp.gt.f32.partialorder %v18140_v27, 0.5  ;;  %v7532_v43 = vsel %vm13290_vm8, %v7523_v38, %v16464_v56 }
 0x6d2   : > { %v8139_v16 = vor.u32 %v8137_v46, %v16444_v42  ;;  %v7463_v17 = vsel %vm18141_vm13, %v7427_v14, 0.0  ;;  %v7637_v61 = vrot.slane %v7635_v55, 6  ;;  %v7640_v22 = vrot.slane %v7638_v0, 7  ;;  %7914 = vst.msk [vmem:[#allocation2 + $0xc] sm:$0xf] %vm271_vm3, %v7532_v43  ;;  %v7434_v0 = vld [vmem:[#allocation3 + $0xe8] sm:$0xff] }
 0x6d3   : > { %vm18143_vm11 = vcmp.gt.f32.partialorder %v18142_v13, 0.5  ;;  %v12713_v15 = vld [vmem:[#allocation2 + $0x58] sm:$0xff]  ;;  %v8173_v60 = vshll.u32 %v12712_v5, 16  ;;  %v8177_v45 = vshrl.u32 %v12712_v5, 16  ;;  %v7647_v9 = vrot.slane %v7645_v7, 6  ;;  %v18150_v13 = vld [vmem:[#allocation32_spill] sm:$0xff] }
 0x6d4   : > { %v8144_v2 = vsel %vm1062_vm2, %v8139_v16, %v16454_v29  ;;  %v7464_v18 = vsel %vm18143_vm11, %v7428_v33, 0.0  ;;  %v7499_v51 = vpack.c.bf16 %v7463_v17, %v7463_v17  ;;  %v7641_v6 = vor.u32 %v7640_v22, %v7637_v61  ;;  %v7433_v33 = vld [vmem:[#allocation3 + $0xe0] sm:$0xff]  ;;  %v7436_v43 = vld [vmem:[#allocation3 + $0xf8] sm:$0xff] }
 0x6d5   : > { %12176 = vmatmul.msk.bf16.vlgmr.msra.gmra.mxu1 %vm325_vm10, %v8144_v2  ;;  %v7650_v41 = vrot.slane %v7648_v25, 7  ;;  %v7500_v46 = vpack.c.bf16 %v7464_v18, %v7464_v18  ;;  %v7733_v8 = vrot.slane %v16441_v47, 4  ;;  %v16481_v4 = vrot.slane %v8173_v60, 1  ;;  %v7435_v25 = vld [vmem:[#allocation3 + $0xf0] sm:$0xff]  ;;  %v18148_v61 = vld [vmem:[#allocation31_spill] sm:$0xff] }
 0x6d6   : > { %v8181_v58 = vshll.u32 %v12713_v15, 16  ;;  %v7735_v21 = vshrl.u32 %v7499_v51, 16  ;;  %v7738_v24 = vshll.u32 %v7499_v51, 16  ;;  %v7642_v57 = vsel %vm13290_vm8, %v7633_v34, %v7641_v6  ;;  %v7432_v34 = vld [vmem:[#allocation3 + $0xd8] sm:$0xff] }
 0x6d7   : > { %v7643_v1 = vrot.slane %v7641_v6, 4  ;;  %v16485_v63 = vor.u32 %v7650_v41, %v7647_v9  ;;  %v7745_v40 = vshrl.u32 %v7500_v46, 16  ;;  %v8179_v3 = vor.u32 %v8177_v45, %v16481_v4  ;;  %7925 = vst.msk [vmem:[#allocation2 + $0x38] sm:$0xf] %vm271_vm3, %v7642_v57  ;;  %v18152_v6 = vld [vmem:[#allocation33_spill] sm:$0xff] }
 0x6d8   : > { %v8183_v30 = vrot.slane %v8181_v58, 1  ;;  %v7737_v47 = vrot.slane %v7735_v21, 6  ;;  %v7740_v20 = vrot.slane %v7738_v24, 7  ;;  %v7748_v62 = vshll.u32 %v7500_v46, 16  ;;  %v18154_v46 = vld [vmem:[#allocation34_spill] sm:$0xff] }
 0x6d9   : > { %v7652_v16 = vsel %vm13290_vm8, %v7643_v1, %v16485_v63  ;;  %v7747_v28 = vrot.slane %v7745_v40, 6  ;;  %v8185_v50 = vshrl.u32 %v12713_v15, 16  ;;  %vm18145_vm4 = vcmp.gt.f32.partialorder %v18144_v23, 0.5  ;;  %v16499_v2 = vld [vmem:[#allocation2 + $0x8] sm:$0xff]  ;;  %v18156_v1 = vld [vmem:[#allocation35_spill] sm:$0xff] }
 0x6da   : > { %v8184_v32 = vsel %vm1062_vm2, %v8179_v3, %v8183_v30  ;;  %7926 = vst.msk [vmem:[#allocation2 + $0x3c] sm:$0xf] %vm271_vm3, %v7652_v16  ;;  %v7741_v37 = vor.u32 %v7740_v20, %v7737_v47  ;;  %v7443_v11 = vsel %vm18145_vm4, %v7407_v39, 0.0  ;;  %vm18147_vm7 = vcmp.gt.f32.partialorder %v18146_v54, 0.5 }
 0x6db   : > { %v7444_v48 = vsel %vm18147_vm7, %v7408_v53, 0.0  ;;  %12181 = vmatmul.msk.bf16.vlgmr.msra.gmra.mxu2 %vm325_vm10, %v8184_v32  ;;  %v8147_v19 = vor.u32 %v8145_v59, %v16454_v29  ;;  %v7750_v52 = vrot.slane %v7748_v62, 7  ;;  %v7479_v36 = vpack.c.bf16 %v7443_v11, %v7443_v11 }
 0x6dc   : > { %v7480_v14 = vpack.c.bf16 %v7444_v48, %v7444_v48  ;;  %v7742_v38 = vsel %vm13290_vm8, %v7733_v8, %v7741_v37  ;;  %v7743_v26 = vrot.slane %v7741_v37, 4  ;;  %v16504_v31 = vor.u32 %v8185_v50, %v8183_v30 }
 0x6dd   : > { %v7533_v55 = vrot.slane %v16464_v56, 4  ;;  %v8101_v5 = vshll.u32 %v16499_v2, 16  ;;  %v16508_v7 = vor.u32 %v7750_v52, %v7747_v28  ;;  %7935 = vst.msk [vmem:[#allocation2 + $0x60] sm:$0xf] %vm271_vm3, %v7742_v38  ;;  %v7535_v29 = vshrl.u32 %v7479_v36, 16 }
 0x6de   : > { %v7538_v59 = vshll.u32 %v7479_v36, 16  ;;  %v7545_v27 = vshrl.u32 %v7480_v14, 16  ;;  %v7548_v17 = vshll.u32 %v7480_v14, 16  ;;  %vm18149_vm1 = vcmp.gt.f32.partialorder %v18148_v61, 0.5 }
 0x6df   : > { %v7468_v22 = vsel %vm18149_vm1, %v7432_v34, 0.0  ;;  %vm18151_vm0 = vcmp.gt.f32.partialorder %v18150_v13, 0.5  ;;  %v16515_v56 = vrot.slane %v8101_v5, 1  ;;  %v7752_v15 = vsel %vm13290_vm8, %v7743_v26, %v16508_v7 }
 0x6e0   : > { %v7469_v18 = vsel %vm18151_vm0, %v7433_v33, 0.0  ;;  %v7537_v60 = vrot.slane %v7535_v29, 6  ;;  %v7540_v45 = vrot.slane %v7538_v59, 7  ;;  %7936 = vst.msk [vmem:[#allocation2 + $0x64] sm:$0xf] %vm271_vm3, %v7752_v15  ;;  %v7547_v9 = vrot.slane %v7545_v27, 6 }
 0x6e1   : > { %v7550_v51 = vrot.slane %v7548_v17, 7  ;;  %vm18153_vm5 = vcmp.gt.f32.partialorder %v18152_v6, 0.5  ;;  %vm18155_vm13 = vcmp.gt.f32.partialorder %v18154_v46, 0.5  ;;  %v8104_v58 = vsel %vm1062_vm2, %v16470_v44, %v16515_v56  ;;  %v16528_v21 = vld [vmem:[#allocation2 + $0x38] sm:$0xff] }
 0x6e2   : > { %v7470_v41 = vsel %vm18153_vm5, %v7434_v0, 0.0  ;;  %v7471_v8 = vsel %vm18155_vm13, %v7435_v25, 0.0  ;;  %v7541_v24 = vor.u32 %v7540_v45, %v7537_v60  ;;  %v8105_v57 = vshrl.u32 %v16499_v2, 16  ;;  %12171 = vmatmul.msk.bf16.vlgmr.msra.gmra.mxu0 %vm325_vm10, %v8104_v58  ;;  %v7419_v25 = vld [vmem:[#allocation3 + $0x70] sm:$0xff] }
 0x6e3   : > { %vm18157_vm11 = vcmp.gt.f32.partialorder %v18156_v1, 0.5  ;;  %v16534_v39 = vor.u32 %v7550_v51, %v7547_v9  ;;  %v7504_v53 = vpack.c.bf16 %v7468_v22, %v7468_v22  ;;  %v7505_v3 = vpack.c.bf16 %v7469_v18, %v7469_v18  ;;  %v7420_v22 = vld [vmem:[#allocation3 + $0x78] sm:$0xff]  ;;  %v18158_v51 = vld [vmem:[#allocation18_spill] sm:$0xff] }
 0x6e4   : > { %v7472_v40 = vsel %vm18157_vm11, %v7436_v43, 0.0  ;;  %v7506_v30 = vpack.c.bf16 %v7470_v41, %v7470_v41  ;;  %v8149_v47 = vshll.u32 %v16528_v21, 16  ;;  %v7542_v44 = vsel %vm13290_vm8, %v7533_v55, %v7541_v24 }
 0x6e5   : > { %v7543_v20 = vrot.slane %v7541_v24, 4  ;;  %v7507_v16 = vpack.c.bf16 %v7471_v8, %v7471_v8  ;;  %7915 = vst.msk [vmem:[#allocation2 + $0x10] sm:$0xf] %vm271_vm3, %v7542_v44  ;;  %v7508_v28 = vpack.c.bf16 %v7472_v40, %v7472_v40  ;;  %v7785_v62 = vshrl.u32 %v7504_v53, 16 }
 0x6e6   : > { %v7788_v50 = vshll.u32 %v7504_v53, 16  ;;  %v7795_v32 = vshrl.u32 %v7505_v3, 16  ;;  %v16540_v37 = vrot.slane %v8149_v47, 1  ;;  %v7798_v11 = vshll.u32 %v7505_v3, 16  ;;  %v7429_v47 = vld [vmem:[#allocation3 + $0xc0] sm:$0xff] }
 0x6e7   : > { %v7552_v23 = vsel %vm13290_vm8, %v7543_v20, %v16534_v39  ;;  %v7805_v54 = vshrl.u32 %v7506_v30, 16  ;;  %v7787_v48 = vrot.slane %v7785_v62, 6  ;;  %v7808_v14 = vshll.u32 %v7506_v30, 16  ;;  %v16548_v33 = vld [vmem:[#allocation2 + $0x60] sm:$0xff] }
 0x6e8   : > { %7916 = vst.msk [vmem:[#allocation2 + $0x14] sm:$0xf] %vm271_vm3, %v7552_v23  ;;  %v7790_v52 = vrot.slane %v7788_v50, 7  ;;  %v7797_v36 = vrot.slane %v7795_v32, 6  ;;  %v8152_v34 = vsel %vm1062_vm2, %v8147_v19, %v16540_v37  ;;  %v7800_v38 = vrot.slane %v7798_v11, 7  ;;  %v7430_v32 = vld [vmem:[#allocation3 + $0xc8] sm:$0xff] }
 0x6e9   : > { %v7807_v26 = vrot.slane %v7805_v54, 6  ;;  %v7815_v55 = vshrl.u32 %v7507_v16, 16  ;;  %12177 = vmatmul.msk.bf16.gmra.mxu1 %vm325_vm10, %v8152_v34  ;;  %v7810_v5 = vrot.slane %v7808_v14, 7  ;;  %v7818_v29 = vshll.u32 %v7507_v16, 16 }
 0x6ea   : > { %v16551_v0 = vor.u32 %v7790_v52, %v7787_v48  ;;  %v7825_v59 = vshrl.u32 %v7508_v28, 16  ;;  %v8189_v27 = vshll.u32 %v16548_v33, 16  ;;  %v7801_v17 = vor.u32 %v7800_v38, %v7797_v36  ;;  %v18161_v48 = vld [vmem:[#allocation28_spill] sm:$0xff] }
 0x6eb   : > { %v7817_v43 = vrot.slane %v7815_v55, 6  ;;  %v7828_v61 = vshll.u32 %v7508_v28, 16  ;;  %v7811_v13 = vor.u32 %v7810_v5, %v7807_v26  ;;  %v7820_v18 = vrot.slane %v7818_v29, 7  ;;  %v18163_v26 = vld [vmem:[#allocation29_spill] sm:$0xff]  ;;  %v12744_v29 = vld [vmem:[%s17601_s1 + $0x278] sm:$0xff] }
 0x6ec   : > { %v7793_v19 = vrot.slane %v16551_v0, 4  ;;  %v7827_v15 = vrot.slane %v7825_v59, 6  ;;  %v16555_v60 = vrot.slane %v8189_v27, 1  ;;  %v7803_v45 = vrot.slane %v7801_v17, 4  ;;  %v12724_v59 = vld [vmem:[%s17601_s1 + $0x260] sm:$0xff]  ;;  %9045 = vmatpush.bf16.msrb.mxu3 %v12744_v29 }
 0x6ed   : > { %v7830_v9 = vrot.slane %v7828_v61, 7  ;;  %vm18159_vm4 = vcmp.gt.f32.partialorder %v18158_v51, 0.5  ;;  %v7813_v46 = vrot.slane %v7811_v13, 4  ;;  %v7821_v8 = vor.u32 %v7820_v18, %v7817_v43  ;;  %8673 = vmatpush.bf16.msrb.mxu2 %v12724_v59  ;;  %v7421_v29 = vld [vmem:[#allocation3 + $0x80] sm:$0xff] }
 0x6ee   : > { %v7455_v6 = vsel %vm18159_vm4, %v7419_v25, 0.0  ;;  %v7802_v41 = vsel %vm13290_vm8, %v7793_v19, %v7801_v17  ;;  %v7456_v24 = vsel %vm250_vm14, %v7420_v22, 0.0  ;;  %v8192_v1 = vsel %vm1062_vm2, %v16504_v31, %v16555_v60  ;;  %v7409_v17 = vld [vmem:[#allocation3 + $0x20] sm:$0xff] }
 0x6ef   : > { %v16566_v40 = vld [vmem:[#allocation2 + $0x10] sm:$0xff]  ;;  %v7812_v53 = vsel %vm13290_vm8, %v7803_v45, %v7811_v13  ;;  %v16570_v3 = vor.u32 %v7830_v9, %v7827_v15  ;;  %7941 = vst.msk [vmem:[#allocation2 + $0x78] sm:$0xf] %vm271_vm3, %v7802_v41  ;;  %v7491_v30 = vpack.c.bf16 %v7455_v6, %v7455_v6  ;;  %12182 = vmatmul.msk.bf16.gmra.mxu2 %vm325_vm10, %v8192_v1  ;;  %v7823_v20 = vrot.slane %v7821_v8, 4 }
 0x6f0   : > { %v7822_v44 = vsel %vm13290_vm8, %v7813_v46, %v7821_v8  ;;  %7942 = vst.msk [vmem:[#allocation2 + $0x7c] sm:$0xf] %vm271_vm3, %v7812_v53  ;;  %v7492_v31 = vpack.c.bf16 %v7456_v24, %v7456_v24  ;;  %v8107_v16 = vor.u32 %v8105_v57, %v16515_v56  ;;  %v8109_v28 = vshll.u32 %v16566_v40, 16  ;;  %v7410_v9 = vld [vmem:[#allocation3 + $0x28] sm:$0xff]  ;;  %v18165_v46 = vld [vmem:[#allocation8_spill] sm:$0xff] }
 0x6f1   : > { %7943 = vst.msk [vmem:[#allocation2 + $0x80] sm:$0xf] %vm271_vm3, %v7822_v44  ;;  %v7655_v62 = vshrl.u32 %v7491_v30, 16  ;;  %v7658_v50 = vshll.u32 %v7491_v30, 16  ;;  %v7832_v23 = vsel %vm13290_vm8, %v7823_v20, %v16570_v3  ;;  %vm18162_vm14 = vcmp.gt.f32.partialorder %v18161_v48, 0.5  ;;  %v12720_v30 = vld [vmem:[%s17601_s1 + $0x240] sm:$0xff] }
 0x6f2   : > { %v7665_v11 = vshrl.u32 %v7492_v31, 16  ;;  %v7668_v54 = vshll.u32 %v7492_v31, 16  ;;  %v7465_v52 = vsel %vm18162_vm14, %v7429_v47, 0.0  ;;  %v16587_v36 = vrot.slane %v8109_v28, 1  ;;  %7944 = vst.msk [vmem:[#allocation2 + $0x84] sm:$0xf] %vm271_vm3, %v7832_v23  ;;  %8461 = vmatpush.bf16.msrb.mxu1 %v12720_v30 }
 0x6f3   : > { %v7653_v56 = vrot.slane %v16485_v63, 4  ;;  %v7657_v57 = vrot.slane %v7655_v62, 6  ;;  %v7660_v14 = vrot.slane %v7658_v50, 7  ;;  %vm18164_vm7 = vcmp.gt.f32.partialorder %v18163_v26, 0.5  ;;  %v18167_v20 = vld [vmem:[#allocation9_spill] sm:$0xff]  ;;  %v7437_v48 = vld [vmem:[#allocation3 + $0x100] sm:$0xff] }
 0x6f4   : > { %v7667_v34 = vrot.slane %v7665_v11, 6  ;;  %v7670_v38 = vrot.slane %v7668_v54, 7  ;;  %v7466_v55 = vsel %vm18164_vm7, %v7430_v32, 0.0  ;;  %v7501_v5 = vpack.c.bf16 %v7465_v52, %v7465_v52 }
 0x6f5   : > { %v8112_v25 = vsel %vm1062_vm2, %v8107_v16, %v16587_v36  ;;  %v7661_v63 = vor.u32 %v7660_v14, %v7657_v57  ;;  %v7502_v27 = vpack.c.bf16 %v7466_v55, %v7466_v55  ;;  %v7753_v51 = vrot.slane %v16508_v7, 4 }
 0x6f6   : > { %12172 = vmatmul.msk.bf16.gmra.mxu0 %vm325_vm10, %v8112_v25  ;;  %v16602_v43 = vor.u32 %v7670_v38, %v7667_v34  ;;  %v7755_v61 = vshrl.u32 %v7501_v5, 16  ;;  %v7758_v22 = vshll.u32 %v7501_v5, 16  ;;  %vm18166_vm1 = vcmp.gt.f32.partialorder %v18165_v46, 0.5  ;;  %v7438_v34 = vld [vmem:[#allocation3 + $0x108] sm:$0xff] }
 0x6f7   : > { %v12717_v19 = vld [vmem:[#allocation2 + $0x78] sm:$0xff]  ;;  %v7662_v13 = vsel %vm13290_vm8, %v7653_v56, %v7661_v63  ;;  %v7663_v18 = vrot.slane %v7661_v63, 4  ;;  %v7765_v15 = vshrl.u32 %v7502_v27, 16  ;;  %v7768_v45 = vshll.u32 %v7502_v27, 16  ;;  %v18169_v27 = vld [vmem:[#allocation36_spill] sm:$0xff] }
 0x6f8   : > { %7927 = vst.msk [vmem:[#allocation2 + $0x40] sm:$0xf] %vm271_vm3, %v7662_v13  ;;  %v7757_v6 = vrot.slane %v7755_v61, 6  ;;  %v7760_v41 = vrot.slane %v7758_v22, 7  ;;  %v7445_v8 = vsel %vm18166_vm1, %v7409_v17, 0.0  ;;  %v8213_v58 = vshll.u32 %v12717_v19, 16 }
 0x6f9   : > { %v8217_v24 = vshrl.u32 %v12717_v19, 16  ;;  %v7672_v1 = vsel %vm13290_vm8, %v7663_v18, %v16602_v43  ;;  %v7767_v53 = vrot.slane %v7765_v15, 6  ;;  %v16616_v47 = vld [vmem:[#allocation2 + $0x80] sm:$0xff]  ;;  %v7770_v44 = vrot.slane %v7768_v45, 7  ;;  %v18171_v19 = vld [vmem:[#allocation37_spill] sm:$0xff] }
 0x6fa   : > { %7928 = vst.msk [vmem:[#allocation2 + $0x44] sm:$0xf] %vm271_vm3, %v7672_v1  ;;  %v7761_v7 = vor.u32 %v7760_v41, %v7757_v6  ;;  %vm18168_vm0 = vcmp.gt.f32.partialorder %v18167_v20, 0.5  ;;  %v7481_v16 = vpack.c.bf16 %v7445_v8, %v7445_v8  ;;  %v16621_v28 = vrot.slane %v8213_v58, 1 }
 0x6fb   : > { %v7446_v31 = vsel %vm18168_vm0, %v7410_v9, 0.0  ;;  %v8153_v62 = vshrl.u32 %v16528_v21, 16  ;;  %v8221_v32 = vshll.u32 %v16616_v47, 16  ;;  %v16627_v54 = vor.u32 %v7770_v44, %v7767_v53 }
 0x6fc   : > { %v7482_v50 = vpack.c.bf16 %v7446_v31, %v7446_v31  ;;  %v7762_v23 = vsel %vm13290_vm8, %v7753_v51, %v7761_v7  ;;  %v7763_v11 = vrot.slane %v7761_v7, 4  ;;  %v8219_v52 = vor.u32 %v8217_v24, %v16621_v28  ;;  %v7431_v7 = vld [vmem:[#allocation3 + $0xd0] sm:$0xff] }
 0x6fd   : > { %7937 = vst.msk [vmem:[#allocation2 + $0x68] sm:$0xf] %vm271_vm3, %v7762_v23  ;;  %v7555_v56 = vshrl.u32 %v7481_v16, 16  ;;  %v7558_v57 = vshll.u32 %v7481_v16, 16  ;;  %v16631_v38 = vrot.slane %v8221_v32, 1  ;;  %v7553_v55 = vrot.slane %v16534_v39, 4 }
 0x6fe   : > { %v7565_v14 = vshrl.u32 %v7482_v50, 16  ;;  %v7772_v26 = vsel %vm13290_vm8, %v7763_v11, %v16627_v54  ;;  %v7568_v5 = vshll.u32 %v7482_v50, 16  ;;  %vm18170_vm5 = vcmp.gt.f32.partialorder %v18169_v27, 0.5  ;;  %v12745_v32 = vld [vmem:[%s17601_s1 + $0x280] sm:$0xff] }
 0x6ff   : > { %7938 = vst.msk [vmem:[#allocation2 + $0x6c] sm:$0xf] %vm271_vm3, %v7772_v26  ;;  %v7557_v59 = vrot.slane %v7555_v56, 6  ;;  %v7560_v25 = vrot.slane %v7558_v57, 7  ;;  %v7473_v17 = vsel %vm18170_vm5, %v7437_v48, 0.0  ;;  %v8224_v61 = vsel %vm1062_vm2, %v8219_v52, %v16631_v38  ;;  %9427 = vmatpush.bf16.msrb.mxu0 %v12745_v32 }
 0x700   : > { %v7567_v63 = vrot.slane %v7565_v14, 6  ;;  %v7570_v22 = vrot.slane %v7568_v5, 7  ;;  %vm18172_vm13 = vcmp.gt.f32.partialorder %v18171_v19, 0.5  ;;  %v7509_v18 = vpack.c.bf16 %v7473_v17, %v7473_v17  ;;  %12186 = vmatmul.msk.bf16.vlgmr.msra.gmra.mxu3 %vm325_vm10, %v8224_v61 }
 0x701   : > { %v7474_v13 = vsel %vm18172_vm13, %v7438_v34, 0.0  ;;  %v16645_v39 = vld [vmem:[#allocation2 + $0x40] sm:$0xff]  ;;  %v8155_v15 = vor.u32 %v8153_v62, %v16540_v37  ;;  %v8193_v45 = vshrl.u32 %v16548_v33, 16  ;;  %v7561_v9 = vor.u32 %v7560_v25, %v7557_v59  ;;  %v18174_v34 = vld [vmem:[#allocation30_spill] sm:$0xff] }
 0x702   : > { %v7510_v51 = vpack.c.bf16 %v7474_v13, %v7474_v13  ;;  %v16649_v6 = vor.u32 %v7570_v22, %v7567_v63  ;;  %v7835_v41 = vshrl.u32 %v7509_v18, 16  ;;  %v7838_v46 = vshll.u32 %v7509_v18, 16  ;;  %v7411_v59 = vld [vmem:[#allocation3 + $0x30] sm:$0xff]  ;;  %v7440_v18 = vld [vmem:[#allocation3 + $0x118] sm:$0xff] }
 0x703   : > { %v7457_v58 = vsel %vm251_vm15, %v7421_v29, 0.0  ;;  %v8157_v24 = vshll.u32 %v16645_v39, 16  ;;  %v7562_v1 = vsel %vm13290_vm8, %v7553_v55, %v7561_v9  ;;  %v7563_v53 = vrot.slane %v7561_v9, 4  ;;  %v7439_v13 = vld [vmem:[#allocation3 + $0x110] sm:$0xff] }
 0x704   : > { %v7845_v30 = vshrl.u32 %v7510_v51, 16  ;;  %7917 = vst.msk [vmem:[#allocation2 + $0x18] sm:$0xf] %vm271_vm3, %v7562_v1  ;;  %v7833_v37 = vrot.slane %v16570_v3, 4  ;;  %v7837_v33 = vrot.slane %v7835_v41, 6  ;;  %v7840_v44 = vrot.slane %v7838_v46, 7 }
 0x705   : > { %v7848_v20 = vshll.u32 %v7510_v51, 16  ;;  %v16658_v31 = vrot.slane %v8157_v24, 1  ;;  %v7572_v16 = vsel %vm13290_vm8, %v7563_v53, %v16649_v6  ;;  %v7493_v50 = vpack.c.bf16 %v7457_v58, %v7457_v58  ;;  %v18176_v51 = vld [vmem:[#allocation10_spill] sm:$0xff] }
 0x706   : > { %v7847_v62 = vrot.slane %v7845_v30, 6  ;;  %v16666_v23 = vld [vmem:[#allocation2 + $0x68] sm:$0xff]  ;;  %v8195_v11 = vor.u32 %v8193_v45, %v16555_v60  ;;  %7918 = vst.msk [vmem:[#allocation2 + $0x1c] sm:$0xf] %vm271_vm3, %v7572_v16  ;;  %v8113_v3 = vshrl.u32 %v16566_v40, 16  ;;  %v7841_v48 = vor.u32 %v7840_v44, %v7837_v33  ;;  %v12743_v41 = vld [vmem:[%s17601_s1 + $0x270] sm:$0xff] }
 0x707   : > { %v7850_v52 = vrot.slane %v7848_v20, 7  ;;  %v8160_v56 = vsel %vm1062_vm2, %v8155_v15, %v16658_v31  ;;  %v7675_v57 = vshrl.u32 %v7493_v50, 16  ;;  %v7678_v14 = vshll.u32 %v7493_v50, 16  ;;  %9046 = vmatpush.bf16.msrb.mxu3 %v12743_v41  ;;  %v18178_v44 = vld [vmem:[#allocation38_spill] sm:$0xff] }
 0x708   : > { %vm18175_vm15 = vcmp.gt.f32.partialorder %v18174_v34, 0.5  ;;  %12178 = vmatmul.msk.bf16.gmra.mxu1 %vm325_vm10, %v8160_v56  ;;  %v8197_v55 = vshll.u32 %v16666_v23, 16  ;;  %v7842_v60 = vsel %vm13290_vm8, %v7833_v37, %v7841_v48  ;;  %v7843_v5 = vrot.slane %v7841_v48, 4 }
 0x709   : > { %v7467_v26 = vsel %vm18175_vm15, %v7431_v7, 0.0  ;;  %v16679_v29 = vor.u32 %v7850_v52, %v7847_v62  ;;  %7945 = vst.msk [vmem:[#allocation2 + $0x88] sm:$0xf] %vm271_vm3, %v7842_v60  ;;  %v7673_v25 = vrot.slane %v16602_v43, 4  ;;  %v7677_v63 = vrot.slane %v7675_v57, 6 }
 0x70a   : > { %v7680_v27 = vrot.slane %v7678_v14, 7  ;;  %v7503_v17 = vpack.c.bf16 %v7467_v26, %v7467_v26  ;;  %v16683_v61 = vrot.slane %v8197_v55, 1  ;;  %v8115_v22 = vor.u32 %v8113_v3, %v16587_v36 }
 0x70b   : > { %v7852_v19 = vsel %vm13290_vm8, %v7843_v5, %v16679_v29  ;;  %vm18177_vm11 = vcmp.gt.f32.partialorder %v18176_v51, 0.5  ;;  %v8225_v46 = vshrl.u32 %v16616_v47, 16  ;;  %v7773_v8 = vrot.slane %v16627_v54, 4  ;;  %v18180_v54 = vld [vmem:[#allocation39_spill] sm:$0xff] }
 0x70c   : > { %7946 = vst.msk [vmem:[#allocation2 + $0x8c] sm:$0xf] %vm271_vm3, %v7852_v19  ;;  %v7681_v15 = vor.u32 %v7680_v27, %v7677_v63  ;;  %v7775_v45 = vshrl.u32 %v7503_v17, 16  ;;  %v7778_v9 = vshll.u32 %v7503_v17, 16  ;;  %v7447_v43 = vsel %vm18177_vm11, %v7411_v59, 0.0 }
 0x70d   : > { %v8200_v36 = vsel %vm1062_vm2, %v8195_v11, %v16683_v61  ;;  %v7483_v58 = vpack.c.bf16 %v7447_v43, %v7447_v43  ;;  %v16700_v24 = vld [vmem:[#allocation2 + $0x18] sm:$0xff]  ;;  %vm18179_vm4 = vcmp.gt.f32.partialorder %v18178_v44, 0.5  ;;  %vm18181_vm14 = vcmp.gt.f32.partialorder %v18180_v54, 0.5 }
 0x70e   : > { %12183 = vmatmul.msk.bf16.gmra.mxu2 %vm325_vm10, %v8200_v36  ;;  %v7682_v1 = vsel %vm13290_vm8, %v7673_v25, %v7681_v15  ;;  %v7683_v53 = vrot.slane %v7681_v15, 4  ;;  %v7777_v30 = vrot.slane %v7775_v45, 6  ;;  %v7780_v7 = vrot.slane %v7778_v9, 7 }
 0x70f   : > { %7929 = vst.msk [vmem:[#allocation2 + $0x48] sm:$0xf] %vm271_vm3, %v7682_v1  ;;  %v7575_v37 = vshrl.u32 %v7483_v58, 16  ;;  %v7578_v33 = vshll.u32 %v7483_v58, 16  ;;  %v7475_v47 = vsel %vm18179_vm4, %v7439_v13, 0.0  ;;  %v7476_v20 = vsel %vm18181_vm14, %v7440_v18, 0.0 }
 0x710   : > { %v8117_v16 = vshll.u32 %v16700_v24, 16  ;;  %v7692_v62 = vsel %vm13290_vm8, %v7683_v53, %v16423_v12  ;;  %v7781_v50 = vor.u32 %v7780_v7, %v7777_v30  ;;  %v7573_v32 = vrot.slane %v16649_v6, 4 }
 0x711   : > { %7930 = vst.msk [vmem:[#allocation2 + $0x4c] sm:$0xf] %vm271_vm3, %v7692_v62  ;;  %v7577_v11 = vrot.slane %v7575_v37, 6  ;;  %v7580_v3 = vrot.slane %v7578_v33, 7  ;;  %v7511_v48 = vpack.c.bf16 %v7475_v47, %v7475_v47  ;;  %v7512_v52 = vpack.c.bf16 %v7476_v20, %v7476_v20 }
 0x712   : > { %v8119_v56 = vrot.slane %v8117_v16, 1  ;;  %v8227_v57 = vor.u32 %v8225_v46, %v16631_v38  ;;  %v7782_v14 = vsel %vm13290_vm8, %v7773_v8, %v7781_v50  ;;  %v7783_v34 = vrot.slane %v7781_v50, 4 }
 0x713   : > { %v16718_v26 = vld [vmem:[#allocation2 + $0x88] sm:$0xff]  ;;  %7939 = vst.msk [vmem:[#allocation2 + $0x70] sm:$0xf] %vm271_vm3, %v7782_v14  ;;  %v7581_v12 = vor.u32 %v7580_v3, %v7577_v11  ;;  %v7855_v55 = vshrl.u32 %v7511_v48, 16  ;;  %v7858_v6 = vshll.u32 %v7511_v48, 16  ;;  %v7865_v60 = vshrl.u32 %v7512_v52, 16 }
 0x714   : > { %v8120_v5 = vsel %vm1062_vm2, %v8115_v22, %v8119_v56  ;;  %v8161_v59 = vshrl.u32 %v16645_v39, 16  ;;  %v7792_v38 = vsel %vm13290_vm8, %v7783_v34, %v16551_v0  ;;  %v7868_v25 = vshll.u32 %v7512_v52, 16  ;;  %v12769_v48 = vld [vmem:[%s17601_s1 + $0x2b8] sm:$0xff] }
 0x715   : > { %12173 = vmatmul.msk.bf16.gmra.mxu0 %vm325_vm10, %v8120_v5  ;;  %v8229_v63 = vshll.u32 %v16718_v26, 16  ;;  %7940 = vst.msk [vmem:[#allocation2 + $0x74] sm:$0xf] %vm271_vm3, %v7792_v38  ;;  %v7582_v27 = vsel %vm13290_vm8, %v7573_v32, %v7581_v12  ;;  %v7583_v17 = vrot.slane %v7581_v12, 4  ;;  %v7857_v19 = vrot.slane %v7855_v55, 6  ;;  %v12748_v52 = vld [vmem:[%s17601_s1 + $0x298] sm:$0xff]  ;;  %10428 = vmatpush.bf16.msra.mxu3 %v12769_v48 }
 0x716   : > { %7919 = vst.msk [vmem:[#allocation2 + $0x20] sm:$0xf] %vm271_vm3, %v7582_v27  ;;  %v7853_v22 = vrot.slane %v16679_v29, 4  ;;  %v7860_v13 = vrot.slane %v7858_v6, 7  ;;  %v7867_v18 = vrot.slane %v7865_v60, 6  ;;  %v7870_v15 = vrot.slane %v7868_v25, 7  ;;  %9674 = vmatpush.bf16.msra.mxu1 %v12748_v52 }
 0x717   : > { %v8231_v0 = vrot.slane %v8229_v63, 1  ;;  %v7592_v45 = vsel %vm13290_vm8, %v7583_v17, %v16388_v10  ;;  %v8163_v36 = vor.u32 %v8161_v59, %v16658_v31  ;;  %v8201_v46 = vshrl.u32 %v16666_v23, 16  ;;  %v8801_v12 = vld [vmem:[#allocation2 + $0x8] sm:$0xe]  ;;  %v16782_v55 = vld [vmem:[#allocation2 + $0xc] sm:$0xf] }
 0x718   : > { %v16736_v9 = vld [vmem:[#allocation2 + $0x48] sm:$0xff]  ;;  %7920 = vst.msk [vmem:[#allocation2 + $0x24] sm:$0xf] %vm271_vm3, %v7592_v45  ;;  %v7861_v51 = vor.u32 %v7860_v13, %v7857_v19  ;;  %v16739_v43 = vor.u32 %v7870_v15, %v7867_v18  ;;  %v8121_v31 = vshrl.u32 %v16700_v24, 16  ;;  %v8233_v50 = vshrl.u32 %v16718_v26, 16  ;;  %v16796_v19 = vld [vmem:[#allocation2 + $0x10] sm:$0xff] }
 0x719   : > { %v8232_v41 = vsel %vm1062_vm2, %v8227_v57, %v8231_v0  ;;  %v8165_v29 = vshll.u32 %v16736_v9, 16  ;;  %v8203_v7 = vor.u32 %v8201_v46, %v16683_v61  ;;  %v12767_v61 = vld [vmem:[%s17601_s1 + $0x2a8] sm:$0xff]  ;;  %v8169_v32 = vshrl.u32 %v16736_v9, 16  ;;  %v12790_v15 = vld [vmem:[#allocation2] sm:$0xf0] }
 0x71a   : > { %12187 = vmatmul.msk.bf16.gmra.mxu3 %vm325_vm10, %v8232_v41  ;;  %v7862_v10 = vsel %vm13290_vm8, %v7853_v22, %v7861_v51  ;;  %v7863_v8 = vrot.slane %v7861_v51, 4  ;;  %v8123_v47 = vor.u32 %v8121_v31, %v8119_v56  ;;  %10047 = vmatpush.bf16.msra.mxu2 %v12767_v61  ;;  %v8235_v56 = vor.u32 %v8233_v50, %v8231_v0  ;;  %v12771_v38 = vld [vmem:[%s17601_s1 + $0x2c8] sm:$0xff]  ;;  %v12791_v0 = vld [vmem:[#allocation2] sm:$0xe] }
 0x71b   : > { %7947 = vst.msk [vmem:[#allocation2 + $0x90] sm:$0xf] %vm271_vm3, %v7862_v10  ;;  %v8167_v58 = vrot.slane %v8165_v29, 1  ;;  %v8880_v25 = vunpack.c.l.b16 %v8801_v12  ;;  %v17703_v63 = vunpack.c.l.b16 %v16782_v55  ;;  %10676 = vmatpush.bf16.msra.mxu0 %v12771_v38  ;;  %v8937_v18 = vrot.slane %v16796_v19, 1 }
 0x71c   : > { %v16749_v1 = vld [vmem:[#allocation2 + $0x70] sm:$0xff]  ;;  %v7872_v53 = vsel %vm13290_vm8, %v7863_v8, %v16739_v43  ;;  %v9196_v41 = vshll.u32 %v16796_v19, 16 }
 0x71d   : > { %7948 = vst.msk [vmem:[#allocation2 + $0x94] sm:$0xf] %vm271_vm3, %v7872_v53  ;;  %v8168_v30 = vsel %vm1062_vm2, %v8163_v36, %v8167_v58  ;;  %v8205_v37 = vshll.u32 %v16749_v1, 16  ;;  %v8171_v14 = vor.u32 %v8169_v32, %v8167_v58  ;;  %v8209_v34 = vshrl.u32 %v16749_v1, 16 }
 0x71e   : > { %12179 = vmatmul.msk.bf16.gmra.mxu1 %vm325_vm10, %v8168_v30  ;;  %v12792_v36 = vor.u32 %v12791_v0, %v12790_v15  ;;  %v8564_v53 = vrot.slane %v16499_v2, 1  ;;  %vm18190_vm3 = vsmask.f32 5376 }
 0x71f   : > { %v16760_v33 = vld [vmem:[#allocation2 + $0x20] sm:$0xff]  ;;  %v8207_v44 = vrot.slane %v8205_v37, 1  ;;  %v8176_v5 = vsel %vm1062_vm2, %v8171_v14, %v16481_v4  ;;  %v8917_v4 = vpack.c.b16 %v17703_v63, %v8880_v25  ;;  %v12727_v37 = vld [vmem:[#allocation2 + $0x18] sm:$0xff]  ;;  %vm18198_vm0 = vmmov %vm18190_vm3 }
 0x720   : > { %v8125_v54 = vshll.u32 %v16760_v33, 16  ;;  %v8129_v60 = vshrl.u32 %v16760_v33, 16  ;;  %v8563_v58 = vrot.slane %v12792_v36, 1  ;;  %v12728_v32 = vld [vmem:[#allocation2 + $0x20] sm:$0xff]  ;;  %vm18202_vm11 = vmmov %vm18198_vm0 }
 0x721   : > { %v8208_v35 = vsel %vm1062_vm2, %v8203_v7, %v8207_v44  ;;  %v8211_v59 = vor.u32 %v8209_v34, %v8207_v44  ;;  %v8936_v13 = vrot.slane %v8917_v4, 1  ;;  %v9185_v45 = vshrl.u32 %v8917_v4, 16 }
 0x722   : > { %v7993_v20 = vld [vmem:[#allocation2 + $0x90] sm:$0x1]  ;;  %12184 = vmatmul.msk.bf16.gmra.mxu2 %vm325_vm10, %v8208_v35  ;;  %v8127_v16 = vrot.slane %v8125_v54, 1  ;;  %v9188_v51 = vshll.u32 %v8917_v4, 16  ;;  %v8565_v7 = vsel %vm1535_vm9, %v8563_v58, %v8564_v53  ;;  %v9202_v54 = vshrl.u32 %v12727_v37, 16  ;;  %v12865_v58 = vld [vmem:[#allocation2 + $0x28] sm:$0xff] }
 0x723   : > { %v8072_v62 = vunpack.c.l.b16 %v7993_v20  ;;  %v8216_v17 = vsel %vm1062_vm2, %v8211_v59, %v16621_v28  ;;  %v9193_v28 = vshrl.u32 %v16796_v19, 16  ;;  %v8938_v29 = vsel %vm1535_vm9, %v8936_v13, %v8937_v18 }
 0x724   : > { %v8128_v11 = vsel %vm1062_vm2, %v8123_v47, %v8127_v16  ;;  %v8131_v27 = vor.u32 %v8129_v60, %v8127_v16  ;;  %v9187_v46 = vrot.slane %v9185_v45, 1  ;;  %v9190_v10 = vrot.slane %v9188_v51, 2  ;;  %v12729_v60 = vld [vmem:[#allocation2 + $0x28] sm:$0xff]  ;;  %v12730_v45 = vld [vmem:[#allocation2 + $0x30] sm:$0xff] }
 0x725   : > { %v16771_v3 = vpack.c.b16 %v8072_v62, %v8072_v62  ;;  %12174 = vmatmul.msk.bf16.gmra.mxu0 %vm325_vm10, %v8128_v11  ;;  %v9195_v8 = vrot.slane %v9193_v28, 1  ;;  %v8939_v47 = vrot.slane %v12727_v37, 1  ;;  %v9205_v35 = vshll.u32 %v12727_v37, 16 }
 0x726   : > { %v8136_v22 = vsel %vm1062_vm2, %v8131_v27, %v16444_v42  ;;  %v9198_v42 = vrot.slane %v9196_v41, 2  ;;  %v9191_v31 = vor.u32 %v9190_v10, %v9187_v46  ;;  %v9204_v16 = vrot.slane %v9202_v54, 1 }
 0x727   : > { %v8237_v57 = vshll.u32 %v16771_v3, 16  ;;  %v8940_v20 = vsel %vm1535_vm9, %v8937_v18, %v8939_v47  ;;  %v9207_v62 = vrot.slane %v9205_v35, 2  ;;  %v8941_v48 = vrot.slane %v12728_v32, 1 }
 0x728   : > { %v9199_v30 = vor.u32 %v9198_v42, %v9195_v8  ;;  %v9211_v52 = vshrl.u32 %v12728_v32, 16  ;;  %v8943_v59 = vrot.slane %v12729_v60, 1  ;;  %v9220_v38 = vshrl.u32 %v12729_v60, 16 }
 0x729   : > { %v8239_v26 = vrot.slane %v8237_v57, 1  ;;  %v9208_v50 = vor.u32 %v9207_v62, %v9204_v16  ;;  %v8942_v57 = vsel %vm1535_vm9, %v8939_v47, %v8941_v48  ;;  %v9223_v25 = vshll.u32 %v12729_v60, 16  ;;  %v12731_v47 = vld [vmem:[#allocation2 + $0x38] sm:$0xff] }
 0x72a   : > { %v9200_v44 = vsel %vm2162_vm12, %v9191_v31, %v9199_v30  ;;  %v9213_v14 = vrot.slane %v9211_v52, 1  ;;  %v8944_v27 = vsel %vm1535_vm9, %v8941_v48, %v8943_v59  ;;  %v8570_v18 = vrot.slane %v16760_v33, 1  ;;  %v12866_v48 = vld [vmem:[#allocation2 + $0x30] sm:$0xff] }
 0x72b   : > { %v8240_v6 = vsel %vm1062_vm2, %v8235_v56, %v8239_v26  ;;  %v9209_v11 = vsel %vm2162_vm12, %v9199_v30, %v9208_v50  ;;  %v9214_v56 = vshll.u32 %v12728_v32, 16  ;;  %v9225_v13 = vrot.slane %v9223_v25, 2 }
 0x72c   : > { %12188 = vmatmul.msk.bf16.gmra.mxu3 %vm325_vm10, %v8240_v6  ;;  %v9229_v46 = vshrl.u32 %v12730_v45, 16  ;;  %v9232_v10 = vshll.u32 %v12730_v45, 16  ;;  %v8947_v35 = vrot.slane %v12731_v47, 1  ;;  %v9238_v16 = vshrl.u32 %v12731_v47, 16 }
 0x72d   : > { %v9216_v34 = vrot.slane %v9214_v56, 2  ;;  %v9241_v62 = vshll.u32 %v12731_v47, 16  ;;  %v8574_v52 = vrot.slane %v12866_v48, 1  ;;  %vm18193_vm2 = vcmask 1044480  }
 0x72e   : > { %12180 = vmatmul.msk.bf16.gmra.mxu1 %vm325_vm10, %v8176_v5  ;;  %v9231_v8 = vrot.slane %v9229_v46, 1  ;;  %v9234_v42 = vrot.slane %v9232_v10, 2  ;;  %v9240_v32 = vrot.slane %v9238_v16, 1  ;;  %v12733_v46 = vld [vmem:[#allocation2 + $0x48] sm:$0xff]  ;;  %vm18197_vm1 = vmmov %vm18193_vm2 }
 0x72f   : > { %v9217_v26 = vor.u32 %v9216_v34, %v9213_v14  ;;  %v12732_v34 = vld [vmem:[#allocation2 + $0x40] sm:$0xff]  ;;  %vm18201_vm15 = vmmov %vm18197_vm1 }
 0x730   : > { %v9235_v37 = vor.u32 %v9234_v42, %v9231_v8 }
 0x731   : > { %v9218_v5 = vsel %vm2162_vm12, %v9208_v50, %v9217_v26 }
 0x732   : > { %12185 = vmatmul.msk.bf16.gmra.mxu2 %vm325_vm10, %v8216_v17 }
 0x735   : > { %12175 = vmatmul.msk.bf16.gmra.mxu0 %vm325_vm10, %v8136_v22  ;;  %v9222_v22 = vrot.slane %v9220_v38, 1  ;;  %v9250_v38 = vshll.u32 %v12732_v34, 16 }
 0x737   : > { %v9226_v15 = vor.u32 %v9225_v13, %v9222_v22  ;;  %v9252_v13 = vrot.slane %v9250_v38, 2  ;;  %v12768_v38 = vld [vmem:[%s17601_s1 + $0x2b0] sm:$0xff] }
 0x738   : > { %10429 = vmatpush.bf16.msra.mxu3 %v12768_v38 }
 0x739   : > { %v9227_v51 = vsel %vm2162_vm12, %v9217_v26, %v9226_v15  ;;  %v9236_v54 = vsel %vm2162_vm12, %v9226_v15, %v9235_v37 }
 0x73c   : > { %12325 = vmatmul.msk.bf16.vlgmr.msrb.gmra.mxu3 %vm325_vm10, %v8938_v29  ;;  %v8945_v29 = vrot.slane %v12730_v45, 1 }
 0x73e   : > { %12197 = vmatmul.msk.bf16.vlgmr.msrb.gmra.mxu1 %vm325_vm10, %v16430_v49  ;;  %v8566_v49 = vrot.slane %v16566_v40, 1 }
 0x740   : > { %v8567_v61 = vsel %vm1535_vm9, %v8564_v53, %v8566_v49  ;;  %v8572_v53 = vrot.slane %v12865_v58, 1 }
 0x742   : > { %12227 = vmatmul.msk.bf16.vlgmr.msrb.gmra.mxu2 %vm325_vm10, %v8565_v7 }
 0x745   : > { %12355 = vmatmul.msk.bf16.vlgmr.msrb.gmra.mxu0 %vm325_vm10, %v9200_v44  ;;  %v8573_v44 = vsel %vm1535_vm9, %v8570_v18, %v8572_v53 }
 0x74c   : > { %12326 = vmatmul.msk.bf16.gmra.mxu3 %vm325_vm10, %v8940_v20 }
 0x74e   : > { %12198 = vmatmul.msk.bf16.gmra.mxu1 %vm325_vm10, %v16499_v2  ;;  %v8568_v2 = vrot.slane %v16700_v24, 1 }
 0x750   : > { %v8569_v6 = vsel %vm1535_vm9, %v8566_v49, %v8568_v2  ;;  %v8571_v0 = vsel %vm1535_vm9, %v8568_v2, %v8570_v18 }
 0x752   : > { %12228 = vmatmul.msk.bf16.gmra.mxu2 %vm325_vm10, %v8567_v61  ;;  %v16830_v12 = vpop.f32.mrf.mxu1 }
 0x755   : > { %12356 = vmatmul.msk.bf16.gmra.mxu0 %vm325_vm10, %v9209_v11  ;;  %v9243_v11 = vrot.slane %v9241_v62, 2 }
 0x757   : > { %v9244_v56 = vor.u32 %v9243_v11, %v9240_v32 }
 0x75a   : > { %v16837_v17 = vpop.f32.mrf.mxu1 }
 0x75c   : > { %12327 = vmatmul.msk.bf16.gmra.mxu3 %vm325_vm10, %v8942_v57  ;;  %v8575_v57 = vsel %vm1535_vm9, %v8572_v53, %v8574_v52 }
 0x75e   : > { %12199 = vmatmul.msk.bf16.gmra.mxu1 %vm325_vm10, %v16566_v40  ;;  %v16841_v4 = vpop.f32.mrf.mxu2 }
 0x75f   : > { %v16839_v40 = vpop.f32.mrf.mxu0 }
 0x762   : > { %12229 = vmatmul.msk.bf16.gmra.mxu2 %vm325_vm10, %v8569_v6  ;;  %v9245_v6 = vsel %vm2162_vm12, %v9235_v37, %v9244_v56  ;;  %v9256_v37 = vshrl.u32 %v12733_v46, 16 }
 0x765   : > { %12357 = vmatmul.msk.bf16.gmra.mxu0 %vm325_vm10, %v9218_v5  ;;  %v8949_v5 = vrot.slane %v12732_v34, 1 }
 0x766   : > { %v16850_v28 = vpop.f32.mrf.mxu1  ;;  %v16854_v36 = vpop.f32.mrf.mxu2 }
 0x767   : > { %v16852_v41 = vpop.f32.mrf.mxu0  ;;  %v8950_v25 = vsel %vm1535_vm9, %v8947_v35, %v8949_v5 }
 0x76c   : > { %12328 = vmatmul.msk.bf16.gmra.mxu3 %vm325_vm10, %v8944_v27 }
 0x76e   : > { %12200 = vmatmul.msk.bf16.gmra.mxu1 %vm325_vm10, %v16700_v24  ;;  %v8946_v24 = vsel %vm1535_vm9, %v8943_v59, %v8945_v29  ;;  %v16859_v31 = vpop.f32.mrf.mxu1  ;;  %v9247_v59 = vshrl.u32 %v12732_v34, 16 }
 0x770   : > { %v9249_v22 = vrot.slane %v9247_v59, 1 }
 0x772   : > { %12230 = vmatmul.msk.bf16.gmra.mxu2 %vm325_vm10, %v8571_v0  ;;  %v16863_v7 = vpop.f32.mrf.mxu2  ;;  %v8576_v0 = vrot.slane %v16528_v21, 1 }
 0x773   : > { %v16861_v30 = vpop.f32.mrf.mxu0 }
 0x775   : > { %12358 = vmatmul.msk.bf16.gmra.mxu0 %vm325_vm10, %v9227_v51  ;;  %v9253_v51 = vor.u32 %v9252_v13, %v9249_v22 }
 0x77a   : > { %v16875_v50 = vpop.f32.mrf.mxu2 }
 0x77b   : > { %v16873_v49 = vpop.f32.mrf.mxu0 }
 0x77c   : > { %12329 = vmatmul.msk.bf16.gmra.mxu3 %vm325_vm10, %v8946_v24  ;;  %v9254_v24 = vsel %vm2162_vm12, %v9244_v56, %v9253_v51  ;;  %v12734_v56 = vld [vmem:[#allocation2 + $0x50] sm:$0xff] }
 0x77d   : > { %v8953_v59 = vrot.slane %v12734_v56, 1  ;;  %v9265_v22 = vshrl.u32 %v12734_v56, 16  ;;  %v9268_v13 = vshll.u32 %v12734_v56, 16  ;;  %v12735_v56 = vld [vmem:[#allocation2 + $0x58] sm:$0xff] }
 0x77e   : > { %12201 = vmatmul.msk.bf16.gmra.mxu1 %vm325_vm10, %v16760_v33  ;;  %v8948_v33 = vsel %vm1535_vm9, %v8945_v29, %v8947_v35  ;;  %v8577_v29 = vsel %vm1535_vm9, %v8574_v52, %v8576_v0  ;;  %v9258_v35 = vrot.slane %v9256_v37, 1  ;;  %v9274_v63 = vshrl.u32 %v12735_v56, 16 }
 0x782   : > { %12231 = vmatmul.msk.bf16.gmra.mxu2 %vm325_vm10, %v8573_v44  ;;  %v9259_v44 = vshll.u32 %v12733_v46, 16 }
 0x783   : > { %v16878_v61 = vpop.f32.mrf.mxu3 }
 0x784   : > { %v9261_v16 = vrot.slane %v9259_v44, 2  ;;  %v8580_v44 = vrot.slane %v16736_v9, 1 }
 0x785   : > { %12359 = vmatmul.msk.bf16.gmra.mxu0 %vm325_vm10, %v9236_v54  ;;  %v16871_v20 = vpop.f32.mrf.mxu1 }
 0x78b   : > { %v16891_v60 = vpop.f32.mrf.mxu3 }
 0x78c   : > { %12330 = vmatmul.msk.bf16.gmra.mxu3 %vm325_vm10, %v8948_v33  ;;  %v8578_v33 = vrot.slane %v16645_v39, 1 }
 0x78d   : > { %v16883_v14 = vpop.f32.mrf.mxu1 }
 0x78e   : > { %12202 = vmatmul.msk.bf16.gmra.mxu1 %vm325_vm10, %v12865_v58  ;;  %v8951_v58 = vrot.slane %v12733_v46, 1  ;;  %v8579_v52 = vsel %vm1535_vm9, %v8576_v0, %v8578_v33  ;;  %v9267_v46 = vrot.slane %v9265_v22, 1 }
 0x790   : > { %v8952_v47 = vsel %vm1535_vm9, %v8949_v5, %v8951_v58  ;;  %v8954_v0 = vsel %vm1535_vm9, %v8951_v58, %v8953_v59 }
 0x791   : > { %v16887_v26 = vpop.f32.mrf.mxu2 }
 0x792   : > { %v16885_v2 = vpop.f32.mrf.mxu0  ;;  %12232 = vmatmul.msk.bf16.gmra.mxu2 %vm325_vm10, %v8575_v57 }
 0x795   : > { %12360 = vmatmul.msk.bf16.gmra.mxu0 %vm325_vm10, %v9245_v6  ;;  %v12766_v6 = vld [vmem:[%s17601_s1 + $0x2a0] sm:$0xff] }
 0x796   : > { %10048 = vmatpush.bf16.msra.mxu2 %v12766_v6 }
 0x799   : > { %v16898_v18 = vpop.f32.mrf.mxu2 }
 0x79a   : > { %v16895_v27 = vpop.f32.mrf.mxu0 }
 0x79b   : > { %v16900_v15 = vpop.f32.mrf.mxu1 }
 0x79c   : > { %12331 = vmatmul.msk.bf16.gmra.mxu3 %vm325_vm10, %v8950_v25 }
 0x79d   : > { %v16903_v45 = vpop.f32.mrf.mxu3 }
 0x79e   : > { %12203 = vmatmul.msk.bf16.gmra.mxu1 %vm325_vm10, %v12866_v48  ;;  %v9262_v48 = vor.u32 %v9261_v16, %v9258_v35 }
 0x7a0   : > { %v9263_v34 = vsel %vm2162_vm12, %v9253_v51, %v9262_v48  ;;  %v12747_v51 = vld [vmem:[%s17601_s1 + $0x290] sm:$0xff] }
 0x7a1   : > { %9675 = vmatpush.bf16.msra.mxu1 %v12747_v51 }
 0x7a2   : > { %v16907_v10 = vpop.f32.mrf.mxu0  ;;  %12233 = vmatmul.msk.bf16.gmra.mxu2 %vm325_vm10, %v8577_v29 }
 0x7a3   : > { %v16911_v8 = vpop.f32.mrf.mxu1 }
 0x7a5   : > { %v16913_v42 = vpop.f32.mrf.mxu3  ;;  %12361 = vmatmul.msk.bf16.gmra.mxu0 %vm325_vm10, %v9254_v24  ;;  %v16916_v53 = vpop.f32.mrf.mxu2  ;;  %v9270_v24 = vrot.slane %v9268_v13, 2  ;;  %v8955_v13 = vrot.slane %v12735_v56, 1 }
 0x7a6   : > { %18182 = vst [vmem:[#allocation11_spill] sm:$0xff] %v16913_v42 }
 0x7a7   : > { %v9271_v16 = vor.u32 %v9270_v24, %v9267_v46 }
 0x7a9   : > { %v9272_v6 = vsel %vm2162_vm12, %v9262_v48, %v9271_v16 }
 0x7aa   : > { %v16919_v54 = vpop.f32.mrf.mxu0 }
 0x7ab   : > { %v16922_v62 = vpop.f32.mrf.mxu1 }
 0x7ac   : > { %12332 = vmatmul.msk.bf16.gmra.mxu3 %vm325_vm10, %v8952_v47  ;;  %v12770_v47 = vld [vmem:[%s17601_s1 + $0x2c0] sm:$0xff] }
 0x7ad   : > { %v16925_v32 = vpop.f32.mrf.mxu2  ;;  %10677 = vmatpush.bf16.msra.mxu0 %v12770_v47 }
 0x7ae   : > { %12204 = vmatmul.msk.bf16.gmra.mxu1 %vm325_vm10, %v16528_v21 }
 0x7af   : > { %v16927_v11 = vpop.f32.mrf.mxu3 }
 0x7b0   : > { %18183 = vst [vmem:[#allocation12_spill] sm:$0xff] %v16927_v11 }
 0x7b2   : > { %v16932_v57 = vpop.f32.mrf.mxu0  ;;  %12234 = vmatmul.msk.bf16.gmra.mxu2 %vm325_vm10, %v8579_v52  ;;  %v8581_v52 = vsel %vm1535_vm9, %v8578_v33, %v8580_v44  ;;  %v8956_v33 = vsel %vm1535_vm9, %v8953_v59, %v8955_v13 }
 0x7b3   : > { %v16939_v5 = vpop.f32.mrf.mxu1 }
 0x7b5   : > { %12362 = vmatmul.msk.bf16.gmra.mxu0 %vm325_vm10, %v9263_v34  ;;  %v16942_v21 = vpop.f32.mrf.mxu2 }
 0x7b7   : > { %v16947_v25 = vpop.f32.mrf.mxu3 }
 0x7b8   : > { %18184 = vst [vmem:[#allocation13_spill] sm:$0xff] %v16947_v25  ;;  %v9276_v25 = vrot.slane %v9274_v63, 1 }
 0x7ba   : > { %v16953_v29 = vpop.f32.mrf.mxu0 }
 0x7bb   : > { %v8463_v37 = vpop.f32.mrf.mxu1 }
 0x7bc   : > { %12333 = vmatmul.msk.bf16.gmra.mxu3 %vm325_vm10, %v8954_v0  ;;  %v8464_v22 = vadd.f32 %v8463_v37, %v16839_v40  ;;  %v12867_v40 = vld [vmem:[#allocation2 + $0x50] sm:$0xff] }
 0x7bd   : > { %v16960_v35 = vpop.f32.mrf.mxu2  ;;  %v8582_v37 = vrot.slane %v12867_v40, 1 }
 0x7be   : > { %12205 = vmatmul.msk.bf16.gmra.mxu1 %vm325_vm10, %v16645_v39  ;;  %v9277_v39 = vshll.u32 %v12735_v56, 16  ;;  %v12736_v56 = vld [vmem:[#allocation2 + $0x60] sm:$0xff] }
 0x7bf   : > { %v9048_v58 = vpop.f32.mrf.mxu3  ;;  %v8583_v59 = vsel %vm1535_vm9, %v8580_v44, %v8582_v37  ;;  %v9286_v44 = vshll.u32 %v12736_v56, 16 }
 0x7c0   : > { %v9279_v11 = vrot.slane %v9277_v39, 2 }
 0x7c2   : > { %v9429_v34 = vpop.f32.mrf.mxu0  ;;  %12235 = vmatmul.msk.bf16.gmra.mxu2 %vm325_vm10, %v8581_v52 }
 0x7c3   : > { %v8465_v38 = vpop.f32.mrf.mxu1 }
 0x7c5   : > { %12363 = vmatmul.msk.bf16.gmra.mxu0 %vm325_vm10, %v9272_v6  ;;  %v8675_v0 = vpop.f32.mrf.mxu2  ;;  %v8466_v6 = vadd.f32 %v8465_v38, %v16852_v41 }
 0x7c6   : > { %v8765_v51 = vadd.f32 %v8675_v0, %v8464_v22 }
 0x7c7   : > { %v9050_v47 = vpop.f32.mrf.mxu3 }
 0x7c8   : > { %v9138_v46 = vadd.f32 %v9048_v58, %v8765_v51  ;;  %v9280_v58 = vor.u32 %v9279_v11, %v9276_v25  ;;  %v9283_v25 = vshrl.u32 %v12736_v56, 16 }
 0x7ca   : > { %v9431_v24 = vpop.f32.mrf.mxu0  ;;  %v16970_v52 = vadd.f32 %v9429_v34, %v9138_v46  ;;  %v9281_v51 = vsel %vm2162_vm12, %v9271_v16, %v9280_v58 }
 0x7cb   : > { %v8468_v48 = vpop.f32.mrf.mxu1 }
 0x7cc   : > { %12334 = vmatmul.msk.bf16.gmra.mxu3 %vm325_vm10, %v8956_v33  ;;  %v8469_v41 = vadd.f32 %v8468_v48, %v16861_v30  ;;  %v12868_v30 = vld [vmem:[#allocation2 + $0x58] sm:$0xff] }
 0x7cd   : > { %v8677_v42 = vpop.f32.mrf.mxu2  ;;  %v8584_v48 = vrot.slane %v12868_v30, 1 }
 0x7ce   : > { %v8766_v22 = vadd.f32 %v8677_v42, %v8466_v6  ;;  %12206 = vmatmul.msk.bf16.gmra.mxu1 %vm325_vm10, %v16736_v9  ;;  %v8957_v42 = vrot.slane %v12736_v56, 1 }
 0x7cf   : > { %v9053_v0 = vpop.f32.mrf.mxu3 }
 0x7d0   : > { %v9139_v63 = vadd.f32 %v9050_v47, %v8766_v22  ;;  %v8958_v33 = vsel %vm1535_vm9, %v8955_v13, %v8957_v42  ;;  %v9285_v22 = vrot.slane %v9283_v25, 1  ;;  %v8585_v13 = vsel %vm1535_vm9, %v8582_v37, %v8584_v48 }
 0x7d2   : > { %v9434_v34 = vpop.f32.mrf.mxu0  ;;  %12236 = vmatmul.msk.bf16.gmra.mxu2 %vm325_vm10, %v8583_v59  ;;  %v16979_v39 = vadd.f32 %v9431_v24, %v9139_v63  ;;  %v9288_v59 = vrot.slane %v9286_v44, 2 }
 0x7d3   : > { %v8470_v46 = vpop.f32.mrf.mxu1 }
 0x7d4   : > { %v8471_v63 = vadd.f32 %v8470_v46, %v16873_v49 }
 0x7d5   : > { %12364 = vmatmul.msk.bf16.gmra.mxu0 %vm325_vm10, %v9281_v51  ;;  %v8680_v38 = vpop.f32.mrf.mxu2 }
 0x7d6   : > { %v8767_v9 = vadd.f32 %v8680_v38, %v8469_v41 }
 0x7d7   : > { %v9055_v11 = vpop.f32.mrf.mxu3 }
 0x7d8   : > { %v9140_v47 = vadd.f32 %v9053_v0, %v8767_v9  ;;  %v9289_v0 = vor.u32 %v9288_v59, %v9285_v22  ;;  %v12737_v9 = vld [vmem:[#allocation2 + $0x68] sm:$0xff] }
 0x7d9   : > { %v8959_v46 = vrot.slane %v12737_v9, 1  ;;  %v9292_v59 = vshrl.u32 %v12737_v9, 16  ;;  %v9295_v37 = vshll.u32 %v12737_v9, 16 }
 0x7da   : > { %v9436_v6 = vpop.f32.mrf.mxu0  ;;  %v16984_v16 = vadd.f32 %v9434_v34, %v9140_v47  ;;  %v9290_v34 = vsel %vm2162_vm12, %v9280_v58, %v9289_v0 }
 0x7db   : > { %v8473_v24 = vpop.f32.mrf.mxu1 }
 0x7dc   : > { %12335 = vmatmul.msk.bf16.gmra.mxu3 %vm325_vm10, %v8958_v33  ;;  %v8474_v49 = vadd.f32 %v8473_v24, %v16885_v2  ;;  %v12869_v2 = vld [vmem:[#allocation2 + $0x60] sm:$0xff] }
 0x7dd   : > { %v8682_v51 = vpop.f32.mrf.mxu2  ;;  %v8586_v24 = vrot.slane %v12869_v2, 1 }
 0x7de   : > { %v8768_v41 = vadd.f32 %v8682_v51, %v8471_v63  ;;  %12207 = vmatmul.msk.bf16.gmra.mxu1 %vm325_vm10, %v12867_v40  ;;  %v8960_v63 = vsel %vm1535_vm9, %v8957_v42, %v8959_v46 }
 0x7df   : > { %v9058_v38 = vpop.f32.mrf.mxu3  ;;  %v8587_v42 = vsel %vm1535_vm9, %v8584_v48, %v8586_v24 }
 0x7e0   : > { %v9141_v56 = vadd.f32 %v9055_v11, %v8768_v41  ;;  %v9294_v41 = vrot.slane %v9292_v59, 1 }
 0x7e2   : > { %v9439_v25 = vpop.f32.mrf.mxu0  ;;  %12237 = vmatmul.msk.bf16.gmra.mxu2 %vm325_vm10, %v8585_v13  ;;  %v16992_v44 = vadd.f32 %v9436_v6, %v9141_v56  ;;  %v9297_v13 = vrot.slane %v9295_v37, 2 }
 0x7e3   : > { %v8475_v47 = vpop.f32.mrf.mxu1 }
 0x7e4   : > { %v8476_v56 = vadd.f32 %v8475_v47, %v16895_v27 }
 0x7e5   : > { %12365 = vmatmul.msk.bf16.gmra.mxu0 %vm325_vm10, %v9290_v34  ;;  %v8685_v33 = vpop.f32.mrf.mxu2 }
 0x7e6   : > { %v8769_v40 = vadd.f32 %v8685_v33, %v8474_v49 }
 0x7e7   : > { %v9060_v22 = vpop.f32.mrf.mxu3 }
 0x7e8   : > { %v9142_v11 = vadd.f32 %v9058_v38, %v8769_v40  ;;  %v9298_v38 = vor.u32 %v9297_v13, %v9294_v41  ;;  %v12738_v40 = vld [vmem:[#allocation2 + $0x70] sm:$0xff] }
 0x7e9   : > { %v8961_v47 = vrot.slane %v12738_v40, 1  ;;  %v9301_v13 = vshrl.u32 %v12738_v40, 16  ;;  %v9304_v48 = vshll.u32 %v12738_v40, 16 }
 0x7ea   : > { %v9441_v51 = vpop.f32.mrf.mxu0  ;;  %v16997_v58 = vadd.f32 %v9439_v25, %v9142_v11  ;;  %v9299_v25 = vsel %vm2162_vm12, %v9289_v0, %v9298_v38 }
 0x7eb   : > { %v8478_v6 = vpop.f32.mrf.mxu1 }
 0x7ec   : > { %12336 = vmatmul.msk.bf16.gmra.mxu3 %vm325_vm10, %v8960_v63  ;;  %v8479_v27 = vadd.f32 %v8478_v6, %v16907_v10  ;;  %v8588_v10 = vrot.slane %v16666_v23, 1 }
 0x7ed   : > { %v8687_v34 = vpop.f32.mrf.mxu2 }
 0x7ee   : > { %v8770_v49 = vadd.f32 %v8687_v34, %v8476_v56  ;;  %12208 = vmatmul.msk.bf16.gmra.mxu1 %vm325_vm10, %v12868_v30  ;;  %v8962_v56 = vsel %vm1535_vm9, %v8959_v46, %v8961_v47  ;;  %v8589_v46 = vsel %vm1535_vm9, %v8586_v24, %v8588_v10 }
 0x7ef   : > { %v9063_v33 = vpop.f32.mrf.mxu3 }
 0x7f0   : > { %v9143_v9 = vadd.f32 %v9060_v22, %v8770_v49  ;;  %v9303_v49 = vrot.slane %v9301_v13, 1 }
 0x7f2   : > { %v9444_v59 = vpop.f32.mrf.mxu0  ;;  %12238 = vmatmul.msk.bf16.gmra.mxu2 %vm325_vm10, %v8587_v42  ;;  %v17005_v37 = vadd.f32 %v9441_v51, %v9143_v9  ;;  %v9306_v42 = vrot.slane %v9304_v48, 2 }
 0x7f3   : > { %v8480_v11 = vpop.f32.mrf.mxu1 }
 0x7f4   : > { %v8481_v6 = vadd.f32 %v8480_v11, %v16919_v54 }
 0x7f5   : > { %12366 = vmatmul.msk.bf16.gmra.mxu0 %vm325_vm10, %v9299_v25  ;;  %v8690_v63 = vpop.f32.mrf.mxu2 }
 0x7f6   : > { %v8771_v30 = vadd.f32 %v8690_v63, %v8479_v27  ;;  %v12739_v63 = vld [vmem:[#allocation2 + $0x78] sm:$0xff] }
 0x7f7   : > { %v9065_v41 = vpop.f32.mrf.mxu3  ;;  %v8963_v11 = vrot.slane %v12739_v63, 1  ;;  %v9313_v24 = vshll.u32 %v12739_v63, 16 }
 0x7f8   : > { %v9144_v22 = vadd.f32 %v9063_v33, %v8771_v30  ;;  %v9307_v33 = vor.u32 %v9306_v42, %v9303_v49  ;;  %v9310_v49 = vshrl.u32 %v12739_v63, 16 }
 0x7f9   : > { %v8964_v42 = vsel %vm1535_vm9, %v8961_v47, %v8963_v11 }
 0x7fa   : > { %v9446_v34 = vpop.f32.mrf.mxu0  ;;  %v17010_v0 = vadd.f32 %v9444_v59, %v9144_v22  ;;  %v9308_v59 = vsel %vm2162_vm12, %v9298_v38, %v9307_v33 }
 0x7fb   : > { %v8483_v51 = vpop.f32.mrf.mxu1 }
 0x7fc   : > { %12337 = vmatmul.msk.bf16.gmra.mxu3 %vm325_vm10, %v8962_v56  ;;  %v8484_v54 = vadd.f32 %v8483_v51, %v16932_v57  ;;  %v8590_v57 = vrot.slane %v16749_v1, 1 }
 0x7fd   : > { %v8692_v9 = vpop.f32.mrf.mxu2 }
 0x7fe   : > { %v8772_v25 = vadd.f32 %v8692_v9, %v8481_v6  ;;  %12209 = vmatmul.msk.bf16.gmra.mxu1 %vm325_vm10, %v12869_v2  ;;  %v9312_v9 = vrot.slane %v9310_v49, 1  ;;  %v8591_v47 = vsel %vm1535_vm9, %v8588_v10, %v8590_v57 }
 0x7ff   : > { %v9068_v27 = vpop.f32.mrf.mxu3 }
 0x800   : > { %v9145_v40 = vadd.f32 %v9065_v41, %v8772_v25  ;;  %v9315_v25 = vrot.slane %v9313_v24, 2 }
 0x802   : > { %v9449_v30 = vpop.f32.mrf.mxu0  ;;  %12239 = vmatmul.msk.bf16.gmra.mxu2 %vm325_vm10, %v8589_v46  ;;  %v17019_v13 = vadd.f32 %v9446_v34, %v9145_v40 }
 0x803   : > { %v8485_v48 = vpop.f32.mrf.mxu1 }
 0x804   : > { %v8486_v51 = vadd.f32 %v8485_v48, %v16953_v29 }
 0x805   : > { %12367 = vmatmul.msk.bf16.gmra.mxu0 %vm325_vm10, %v9308_v59  ;;  %v8695_v22 = vpop.f32.mrf.mxu2 }
 0x806   : > { %v8773_v2 = vadd.f32 %v8695_v22, %v8484_v54  ;;  %v12740_v54 = vld [vmem:[#allocation2 + $0x80] sm:$0xff] }
 0x807   : > { %v9070_v56 = vpop.f32.mrf.mxu3  ;;  %v8965_v48 = vrot.slane %v12740_v54, 1  ;;  %v9322_v10 = vshll.u32 %v12740_v54, 16 }
 0x808   : > { %v9146_v41 = vadd.f32 %v9068_v27, %v8773_v2  ;;  %v9316_v27 = vor.u32 %v9315_v25, %v9312_v9 }
 0x809   : > { %v8966_v9 = vsel %vm1535_vm9, %v8963_v11, %v8965_v48 }
 0x80a   : > { %v9451_v6 = vpop.f32.mrf.mxu0  ;;  %v17024_v38 = vadd.f32 %v9449_v30, %v9146_v41  ;;  %v9317_v22 = vsel %vm2162_vm12, %v9307_v33, %v9316_v27 }
 0x80b   : > { %v8488_v34 = vpop.f32.mrf.mxu1 }
 0x80c   : > { %12338 = vmatmul.msk.bf16.gmra.mxu3 %vm325_vm10, %v8964_v42  ;;  %v8489_v29 = vadd.f32 %v8488_v34, %v16830_v12  ;;  %v9319_v42 = vshrl.u32 %v12740_v54, 16  ;;  %v12870_v12 = vld [vmem:[#allocation2 + $0x78] sm:$0xff] }
 0x80d   : > { %v8697_v46 = vpop.f32.mrf.mxu2  ;;  %v8592_v34 = vrot.slane %v12870_v12, 1 }
 0x80e   : > { %v8774_v40 = vadd.f32 %v8697_v46, %v8486_v51  ;;  %12210 = vmatmul.msk.bf16.gmra.mxu1 %vm325_vm10, %v16666_v23  ;;  %v9321_v51 = vrot.slane %v9319_v42, 1  ;;  %v9324_v46 = vrot.slane %v9322_v10, 2  ;;  %v12741_v42 = vld [vmem:[#allocation2 + $0x88] sm:$0xff] }
 0x80f   : > { %v9073_v59 = vpop.f32.mrf.mxu3 }
 0x810   : > { %v9147_v63 = vadd.f32 %v9070_v56, %v8774_v40  ;;  %v7873_v40 = vrot.slane %v16739_v43, 4 }
 0x812   : > { %v9454_v30 = vpop.f32.mrf.mxu0  ;;  %12240 = vmatmul.msk.bf16.gmra.mxu2 %vm325_vm10, %v8591_v47  ;;  %v17034_v2 = vadd.f32 %v9451_v6, %v9147_v63  ;;  %v7949_v63 = vld [vmem:[#allocation2 + $0x98] sm:$0x3] }
 0x813   : > { %v8490_v49 = vpop.f32.mrf.mxu1 }
 0x814   : > { %v8491_v47 = vadd.f32 %v8490_v49, %v16837_v17 }
 0x815   : > { %12368 = vmatmul.msk.bf16.gmra.mxu0 %vm325_vm10, %v9317_v22  ;;  %v8700_v24 = vpop.f32.mrf.mxu2 }
 0x816   : > { %v8775_v23 = vadd.f32 %v8700_v24, %v8489_v29  ;;  %v8593_v24 = vsel %vm1535_vm9, %v8590_v57, %v8592_v34  ;;  %v9331_v57 = vshll.u32 %v12741_v42, 16 }
 0x817   : > { %v9075_v41 = vpop.f32.mrf.mxu3 }
 0x818   : > { %v9148_v56 = vadd.f32 %v9073_v59, %v8775_v23  ;;  %v7950_v59 = vsel %vm13161_vm6, %v7873_v40, %v7949_v63  ;;  %v9328_v40 = vshrl.u32 %v12741_v42, 16  ;;  %v9333_v54 = vrot.slane %v9331_v57, 2 }
 0x819   : > { %7951 = vst [vmem:[#allocation2 + $0x98] sm:$0x3] %v7950_v59  ;;  %vm18191_vm6 = vcmask 1045504  }
 0x81a   : > { %v9456_v25 = vpop.f32.mrf.mxu0  ;;  %v17039_v33 = vadd.f32 %v9454_v30, %v9148_v56  ;;  %v9325_v30 = vor.u32 %v9324_v46, %v9321_v51  ;;  %vm18192_vm8 = vmmov %vm18191_vm6 }
 0x81b   : > { %v8493_v6 = vpop.f32.mrf.mxu1  ;;  %vm18196_vm7 = vmmov %vm18191_vm6 }
 0x81c   : > { %12339 = vmatmul.msk.bf16.gmra.mxu3 %vm325_vm10, %v8966_v9  ;;  %v9326_v43 = vsel %vm2162_vm12, %v9316_v27, %v9325_v30  ;;  %v8494_v56 = vadd.f32 %v8493_v6, %v16850_v28  ;;  %v8967_v9 = vrot.slane %v12741_v42, 1  ;;  %v12871_v28 = vld [vmem:[#allocation2 + $0x80] sm:$0xff]  ;;  %vm18199_vm5 = vmmov %vm18191_vm6 }
 0x81d   : > { %v8702_v22 = vpop.f32.mrf.mxu2  ;;  %v8594_v6 = vrot.slane %v12871_v28, 1  ;;  %vm18200_vm13 = vmmov %vm18199_vm5 }
 0x81e   : > { %v8776_v11 = vadd.f32 %v8702_v22, %v8491_v47  ;;  %12211 = vmatmul.msk.bf16.gmra.mxu1 %vm325_vm10, %v16749_v1  ;;  %v8968_v47 = vsel %vm1535_vm9, %v8965_v48, %v8967_v9  ;;  %v9330_v22 = vrot.slane %v9328_v40, 1  ;;  %vm18203_vm4 = vmmov %vm18199_vm5 }
 0x81f   : > { %v9078_v29 = vpop.f32.mrf.mxu3  ;;  %v8595_v48 = vsel %vm1535_vm9, %v8592_v34, %v8594_v6  ;;  %vm18204_vm14 = vmmov %vm18203_vm4 }
 0x820   : > { %v9149_v23 = vadd.f32 %v9075_v41, %v8776_v11 }
 0x822   : > { %v9459_v10 = vpop.f32.mrf.mxu0  ;;  %12241 = vmatmul.msk.bf16.gmra.mxu2 %vm325_vm10, %v8593_v24  ;;  %v17051_v17 = vadd.f32 %v9456_v25, %v9149_v23 }
 0x823   : > { %v8495_v49 = vpop.f32.mrf.mxu1 }
 0x824   : > { %v8496_v59 = vadd.f32 %v8495_v49, %v16859_v31 }
 0x825   : > { %12369 = vmatmul.msk.bf16.gmra.mxu0 %vm325_vm10, %v9326_v43  ;;  %v8705_v1 = vpop.f32.mrf.mxu2  ;;  %v12742_v43 = vld [vmem:[#allocation2 + $0x90] sm:$0xff] }
 0x826   : > { %v8777_v51 = vadd.f32 %v8705_v1, %v8494_v56  ;;  %v8969_v49 = vrot.slane %v12742_v43, 1  ;;  %v9340_v34 = vshll.u32 %v12742_v43, 16 }
 0x827   : > { %v9080_v46 = vpop.f32.mrf.mxu3 }
 0x828   : > { %v9150_v41 = vadd.f32 %v9078_v29, %v8777_v51  ;;  %v9334_v29 = vor.u32 %v9333_v54, %v9330_v22  ;;  %v8837_v22 = vld [vmem:[#allocation2 + $0x98] sm:$0x1] }
 0x82a   : > { %v9461_v63 = vpop.f32.mrf.mxu0  ;;  %v17056_v27 = vadd.f32 %v9459_v10, %v9150_v41  ;;  %v9335_v10 = vsel %vm2162_vm12, %v9325_v30, %v9334_v29  ;;  %v9337_v41 = vshrl.u32 %v12742_v43, 16  ;;  %v9342_v30 = vrot.slane %v9340_v34, 2  ;;  %v17075_v34 = vld [vmem:[#allocation2 + $0x14] sm:$0xf] }
 0x82b   : > { %v8498_v25 = vpop.f32.mrf.mxu1 }
 0x82c   : > { %12340 = vmatmul.msk.bf16.gmra.mxu3 %vm325_vm10, %v8968_v47  ;;  %v8499_v31 = vadd.f32 %v8498_v25, %v16871_v20  ;;  %v8970_v47 = vsel %vm1535_vm9, %v8967_v9, %v8969_v49 }
 0x82d   : > { %v8707_v11 = vpop.f32.mrf.mxu2 }
 0x82e   : > { %v8778_v24 = vadd.f32 %v8707_v11, %v8496_v59  ;;  %12212 = vmatmul.msk.bf16.gmra.mxu1 %vm325_vm10, %v12870_v12  ;;  %v9339_v59 = vrot.slane %v9337_v41, 1  ;;  %v9803_v41 = vld [vmem:[#allocation2 + $0x10] sm:$0xc] }
 0x82f   : > { %v9083_v23 = vpop.f32.mrf.mxu3 }
 0x830   : > { %v9151_v42 = vadd.f32 %v9080_v46, %v8778_v24  ;;  %v9174_v24 = vld [vmem:[#allocation2 + $0x98] sm:$0x3]  ;;  %v9343_v9 = vor.u32 %v9342_v30, %v9339_v59  ;;  %v9883_v59 = vunpack.c.l.b16 %v17075_v34 }
 0x832   : > { %v9464_v56 = vpop.f32.mrf.mxu0  ;;  %12242 = vmatmul.msk.bf16.gmra.mxu2 %vm325_vm10, %v8595_v48  ;;  %v17064_v51 = vadd.f32 %v9461_v63, %v9151_v42  ;;  %v12872_v63 = vld [vmem:[#allocation2 + $0x88] sm:$0xff]  ;;  %v8916_v42 = vunpack.c.l.b16 %v8837_v22 }
 0x833   : > { %v8500_v1 = vpop.f32.mrf.mxu1  ;;  %v8596_v25 = vrot.slane %v12872_v63, 1 }
 0x834   : > { %v8501_v48 = vadd.f32 %v8500_v1, %v16883_v14  ;;  %v9344_v14 = vsel %vm2162_vm12, %v9334_v29, %v9343_v9 }
 0x835   : > { %12370 = vmatmul.msk.bf16.gmra.mxu0 %vm325_vm10, %v9335_v10  ;;  %v8710_v40 = vpop.f32.mrf.mxu2 }
 0x836   : > { %v8779_v12 = vadd.f32 %v8710_v40, %v8499_v31  ;;  %v9181_v31 = vunpack.c.l.b16 %v9174_v24  ;;  %v8597_v40 = vsel %vm1535_vm9, %v8594_v6, %v8596_v25 }
 0x837   : > { %v9085_v57 = vpop.f32.mrf.mxu3 }
 0x838   : > { %v9152_v46 = vadd.f32 %v9083_v23, %v8779_v12  ;;  %v8935_v12 = vpack.c.b16 %v8916_v42, %v8916_v42  ;;  %v17079_v1 = vpack.c.b16 %v9181_v31, %v9181_v31  ;;  %v17091_v31 = vld [vmem:[#allocation2 + $0x18] sm:$0xff] }
 0x83a   : > { %v9466_v54 = vpop.f32.mrf.mxu0  ;;  %v17069_v11 = vadd.f32 %v9464_v56, %v9152_v46  ;;  %18186 = vst [vmem:[#allocation14_spill] sm:$0xff] %v17079_v1  ;;  %v9346_v42 = vshrl.u32 %v17079_v1, 16  ;;  %v9349_v29 = vshll.u32 %v17079_v1, 16 }
 0x83b   : > { %v8503_v20 = vpop.f32.mrf.mxu1 }
 0x83c   : > { %12341 = vmatmul.msk.bf16.gmra.mxu3 %vm325_vm10, %v8970_v47  ;;  %v8504_v6 = vadd.f32 %v8503_v20, %v16900_v15  ;;  %v9351_v15 = vrot.slane %v9349_v29, 2 }
 0x83d   : > { %v8712_v10 = vpop.f32.mrf.mxu2 }
 0x83e   : > { %v8780_v43 = vadd.f32 %v8712_v10, %v8501_v48  ;;  %12213 = vmatmul.msk.bf16.gmra.mxu1 %vm325_vm10, %v12871_v28  ;;  %v9882_v28 = vunpack.c.l.b16 %v9803_v41  ;;  %v8598_v41 = vrot.slane %v16771_v3, 1 }
 0x83f   : > { %v9088_v23 = vpop.f32.mrf.mxu3 }
 0x840   : > { %v9153_v56 = vadd.f32 %v9085_v57, %v8780_v43  ;;  %v8971_v57 = vrot.slane %v8935_v12, 1  ;;  %v17088_v10 = vpack.c.b16 %v9883_v59, %v9882_v28  ;;  %v10198_v28 = vshll.u32 %v17091_v31, 16 }
 0x842   : > { %v9469_v46 = vpop.f32.mrf.mxu0  ;;  %12243 = vmatmul.msk.bf16.gmra.mxu2 %vm325_vm10, %v8597_v40  ;;  %v17081_v47 = vadd.f32 %v9466_v54, %v9153_v56  ;;  %v8972_v43 = vsel %vm1535_vm9, %v8969_v49, %v8971_v57  ;;  %v9348_v56 = vrot.slane %v9346_v42, 1  ;;  %v10187_v34 = vshrl.u32 %v17088_v10, 16 }
 0x843   : > { %v8505_v22 = vpop.f32.mrf.mxu1  ;;  %v10195_v49 = vshrl.u32 %v17091_v31, 16  ;;  %v8599_v42 = vsel %vm1535_vm9, %v8596_v25, %v8598_v41  ;;  %vm18194_vm9 = vmmov %vm18190_vm3 }
 0x844   : > { %18187 = vst [vmem:[#allocation15_spill] sm:$0xff] %v17081_v47  ;;  %v10189_v3 = vrot.slane %v10187_v34, 2 }
 0x845   : > { %12371 = vmatmul.msk.bf16.gmra.mxu0 %vm325_vm10, %v9344_v14  ;;  %v8715_v30 = vpop.f32.mrf.mxu2  ;;  %v8506_v14 = vadd.f32 %v8505_v22, %v16911_v8  ;;  %v10197_v8 = vrot.slane %v10195_v49, 2  ;;  %v10200_v22 = vrot.slane %v10198_v28, 3 }
 0x846   : > { %v8781_v24 = vadd.f32 %v8715_v30, %v8504_v6  ;;  %v9555_v6 = vld [vmem:[#allocation2 + $0x8] sm:$0xc] }
 0x847   : > { %v9090_v48 = vpop.f32.mrf.mxu3  ;;  %v9562_v29 = vunpack.c.l.b16 %v9555_v6  ;;  %v10201_v41 = vor.u32 %v10200_v22, %v10197_v8  ;;  %v10568_v8 = vrot.slane %v17091_v31, 3 }
 0x848   : > { %v9154_v54 = vadd.f32 %v9088_v23, %v8781_v24  ;;  %v10190_v23 = vshll.u32 %v17088_v10, 16  ;;  %v9352_v24 = vor.u32 %v9351_v15, %v9348_v56  ;;  %v10557_v56 = vld [vmem:[#allocation2 + $0x10] sm:$0x8] }
 0x849   : > { %v10564_v49 = vunpack.c.l.b16 %v10557_v56 }
 0x84a   : > { %v9471_v40 = vpop.f32.mrf.mxu0  ;;  %v17093_v20 = vadd.f32 %v9469_v46, %v9154_v54 }
 0x84b   : > { %v8508_v12 = vpop.f32.mrf.mxu1 }
 0x84c   : > { %18188 = vst [vmem:[#allocation21_spill] sm:$0xff] %v17093_v20  ;;  %12342 = vmatmul.msk.bf16.gmra.mxu3 %vm325_vm10, %v8972_v43  ;;  %v10192_v43 = vrot.slane %v10190_v23, 3  ;;  %v9353_v20 = vsel %vm2162_vm12, %v9343_v9, %v9352_v24  ;;  %v8509_v25 = vadd.f32 %v8508_v12, %v16922_v62  ;;  %v9566_v9 = vrot.slane %v16796_v19, 2  ;;  %vm18195_vm12 = vmmov %vm18191_vm6 }
 0x84d   : > { %v8717_v57 = vpop.f32.mrf.mxu2  ;;  %v10565_v24 = vpack.c.b16 %v9883_v59, %v10564_v49  ;;  %v9938_v12 = vrot.slane %v17088_v10, 2 }
 0x84e   : > { %v8782_v30 = vadd.f32 %v8717_v57, %v8506_v14  ;;  %12214 = vmatmul.msk.bf16.gmra.mxu1 %vm325_vm10, %v12872_v63  ;;  %v18189_v57 = vunpack.c.l.b16 %v16782_v55  ;;  %v10193_v15 = vor.u32 %v10192_v43, %v10189_v3  ;;  %v9939_v3 = vrot.slane %v17091_v31, 2 }
 0x84f   : > { %v9093_v46 = vpop.f32.mrf.mxu3 }
 0x850   : > { %v9155_v54 = vadd.f32 %v9090_v48, %v8782_v30  ;;  %v9563_v63 = vpack.c.b16 %v18189_v57, %v9562_v29  ;;  %v10202_v6 = vsel %vm18190_vm3, %v10193_v15, %v10201_v41  ;;  %v17114_v30 = vld [vmem:[#allocation2 + $0x20] sm:$0xff]  ;;  %v9940_v22 = vsel %vm18192_vm8, %v9938_v12, %v9939_v3  ;;  %vm18205_vm3 = vmmov %vm18197_vm1 }
 0x851   : > { %v10207_v29 = vshll.u32 %v17114_v30, 16  ;;  %vm18207_vm8 = vmmov %vm18203_vm4 }
 0x852   : > { %v9474_v1 = vpop.f32.mrf.mxu0  ;;  %12244 = vmatmul.msk.bf16.gmra.mxu2 %vm325_vm10, %v8599_v42  ;;  %v17106_v47 = vadd.f32 %v9471_v40, %v9155_v54  ;;  %v9565_v28 = vrot.slane %v9563_v63, 2 }
 0x853   : > { %v8510_v14 = vpop.f32.mrf.mxu1  ;;  %v10209_v63 = vrot.slane %v10207_v29, 3 }
 0x854   : > { %v8511_v19 = vadd.f32 %v8510_v14, %v16939_v5 }
 0x855   : > { %12372 = vmatmul.msk.bf16.gmra.mxu0 %vm325_vm10, %v9353_v20  ;;  %v8720_v48 = vpop.f32.mrf.mxu2  ;;  %v9567_v20 = vsel %vm18191_vm6, %v9565_v28, %v9566_v9  ;;  %v12873_v28 = vld [vmem:[#allocation2 + $0x18] sm:$0xff]  ;;  %vm18206_vm6 = vmmov %vm18198_vm0 }
 0x856   : > { %v8783_v34 = vadd.f32 %v8720_v48, %v8509_v25 }
 0x857   : > { %v9095_v23 = vpop.f32.mrf.mxu3 }
 0x858   : > { %v9156_v40 = vadd.f32 %v9093_v46, %v8783_v34  ;;  %v10204_v46 = vshrl.u32 %v17114_v30, 16 }
 0x85a   : > { %v9476_v55 = vpop.f32.mrf.mxu0  ;;  %v17116_v42 = vadd.f32 %v9474_v1, %v9156_v40  ;;  %v10567_v1 = vrot.slane %v10565_v24, 3  ;;  %v10206_v10 = vrot.slane %v10204_v46, 2  ;;  %v17135_v24 = vld [vmem:[#allocation2 + $0x28] sm:$0xff] }
 0x85b   : > { %v8513_v62 = vpop.f32.mrf.mxu1  ;;  %v10213_v46 = vshrl.u32 %v17135_v24, 16  ;;  %v10216_v29 = vshll.u32 %v17135_v24, 16 }
 0x85c   : > { %12513 = vmatmul.msk.bf16.vlgmr.msra.gmra.mxu3 %vm325_vm10, %v10202_v6  ;;  %v10569_v5 = vsel %vm18193_vm2, %v10567_v1, %v10568_v8  ;;  %v8514_v15 = vadd.f32 %v8513_v62, %v16841_v4  ;;  %v10210_v48 = vor.u32 %v10209_v63, %v10206_v10  ;;  %v9941_v62 = vrot.slane %v17114_v30, 2  ;;  %vm18208_vm2 = vmmov %vm18203_vm4 }
 0x85d   : > { %v8722_v54 = vpop.f32.mrf.mxu2 }
 0x85e   : > { %v8784_v43 = vadd.f32 %v8722_v54, %v8511_v19  ;;  %12385 = vmatmul.msk.bf16.vlgmr.msra.gmra.mxu1 %vm325_vm10, %v9567_v20  ;;  %v10211_v6 = vsel %vm18194_vm9, %v10201_v41, %v10210_v48  ;;  %v9942_v1 = vsel %vm18196_vm7, %v9939_v3, %v9941_v62  ;;  %v12874_v3 = vld [vmem:[#allocation2 + $0x20] sm:$0xff]  ;;  %vm18209_vm9 = vmmov %vm18197_vm1 }
 0x85f   : > { %v9098_v59 = vpop.f32.mrf.mxu3  ;;  %vm18211_vm7 = vmmov %vm18208_vm2 }
 0x860   : > { %v9157_v57 = vadd.f32 %v9095_v23, %v8784_v43  ;;  %v9568_v23 = vrot.slane %v12873_v28, 2 }
 0x862   : > { %v9479_v56 = vpop.f32.mrf.mxu0  ;;  %12483 = vmatmul.msk.bf16.vlgmr.msra.gmra.mxu2 %vm325_vm10, %v9940_v22  ;;  %v17130_v14 = vadd.f32 %v9476_v55, %v9157_v57  ;;  %v9569_v4 = vsel %vm18195_vm12, %v9566_v9, %v9568_v23  ;;  %v10215_v57 = vrot.slane %v10213_v46, 2  ;;  %v10218_v9 = vrot.slane %v10216_v29, 3  ;;  %vm18210_vm12 = vmmov %vm18198_vm0 }
 0x863   : > { %v8515_v25 = vpop.f32.mrf.mxu1 }
 0x864   : > { %v8516_v19 = vadd.f32 %v8515_v25, %v16854_v36  ;;  %v10219_v25 = vor.u32 %v10218_v9, %v10215_v57 }
 0x865   : > { %12543 = vmatmul.msk.bf16.vlgmr.msra.gmra.mxu0 %vm325_vm10, %v10569_v5  ;;  %v8725_v34 = vpop.f32.mrf.mxu2 }
 0x866   : > { %v8785_v31 = vadd.f32 %v8725_v34, %v8514_v15  ;;  %v10220_v28 = vsel %vm18198_vm0, %v10210_v48, %v10219_v25  ;;  %vm18213_vm0 = vmmov %vm18205_vm3 }
 0x867   : > { %v9100_v49 = vpop.f32.mrf.mxu3 }
 0x868   : > { %v9158_v40 = vadd.f32 %v9098_v59, %v8785_v31  ;;  %v10570_v59 = vrot.slane %v17114_v30, 3  ;;  %v9570_v31 = vrot.slane %v12874_v3, 2 }
 0x86a   : > { %v9481_v20 = vpop.f32.mrf.mxu0  ;;  %v17137_v12 = vadd.f32 %v9479_v56, %v9158_v40  ;;  %v10571_v36 = vsel %vm18197_vm1, %v10568_v8, %v10570_v59  ;;  %v17155_v40 = vld [vmem:[#allocation2 + $0x30] sm:$0xff]  ;;  %vm18212_vm1 = vmmov %vm18208_vm2 }
 0x86b   : > { %v8518_v55 = vpop.f32.mrf.mxu1  ;;  %v10225_v46 = vshll.u32 %v17155_v40, 16 }
 0x86c   : > { %12514 = vmatmul.msk.bf16.gmra.mxu3 %vm325_vm10, %v10211_v6  ;;  %v8519_v5 = vadd.f32 %v8518_v55, %v16863_v7  ;;  %v9571_v7 = vsel %vm18199_vm5, %v9568_v23, %v9570_v31  ;;  %v9943_v55 = vrot.slane %v17135_v24, 2  ;;  %vm18214_vm5 = vmmov %vm18206_vm6 }
 0x86d   : > { %v8727_v54 = vpop.f32.mrf.mxu2  ;;  %v10227_v23 = vrot.slane %v10225_v46, 3 }
 0x86e   : > { %v8786_v41 = vadd.f32 %v8727_v54, %v8516_v19  ;;  %12386 = vmatmul.msk.bf16.gmra.mxu1 %vm325_vm10, %v9569_v4  ;;  %v10222_v19 = vshrl.u32 %v17155_v40, 16 }
 0x86f   : > { %v9103_v43 = vpop.f32.mrf.mxu3 }
 0x870   : > { %v9159_v22 = vadd.f32 %v9100_v49, %v8786_v41  ;;  %v10572_v41 = vrot.slane %v17135_v24, 3 }
 0x872   : > { %v9484_v10 = vpop.f32.mrf.mxu0  ;;  %12484 = vmatmul.msk.bf16.gmra.mxu2 %vm325_vm10, %v9942_v1  ;;  %v17150_v63 = vadd.f32 %v9481_v20, %v9159_v22  ;;  %v10224_v22 = vrot.slane %v10222_v19, 2 }
 0x873   : > { %v8520_v56 = vpop.f32.mrf.mxu1 }
 0x874   : > { %v8521_v4 = vadd.f32 %v8520_v56, %v16875_v50  ;;  %v10573_v50 = vsel %vm18201_vm15, %v10570_v59, %v10572_v41  ;;  %v10228_v56 = vor.u32 %v10227_v23, %v10224_v22  ;;  %vm18216_vm15 = vmmov %vm18212_vm1 }
 0x875   : > { %12544 = vmatmul.msk.bf16.gmra.mxu0 %vm325_vm10, %v10571_v36  ;;  %v8730_v15 = vpop.f32.mrf.mxu2 }
 0x876   : > { %v8787_v30 = vadd.f32 %v8730_v15, %v8519_v5  ;;  %v10229_v3 = vsel %vm18202_vm11, %v10219_v25, %v10228_v56  ;;  %vm18217_vm11 = vmmov %vm18213_vm0 }
 0x877   : > { %v9105_v34 = vpop.f32.mrf.mxu3 }
 0x878   : > { %v9160_v49 = vadd.f32 %v9103_v43, %v8787_v30  ;;  %v9944_v43 = vsel %vm18200_vm13, %v9941_v62, %v9943_v55  ;;  %v12875_v62 = vld [vmem:[#allocation2 + $0x28] sm:$0xff]  ;;  %vm18215_vm13 = vmmov %vm18212_vm1 }
 0x879   : > { %v9572_v30 = vrot.slane %v12875_v62, 2 }
 0x87a   : > { %v9486_v6 = vpop.f32.mrf.mxu0  ;;  %v17157_v8 = vadd.f32 %v9484_v10, %v9160_v49  ;;  %v17175_v49 = vld [vmem:[#allocation2 + $0x38] sm:$0xff] }
 0x87b   : > { %v8523_v20 = vpop.f32.mrf.mxu1  ;;  %v10234_v19 = vshll.u32 %v17175_v49, 16 }
 0x87c   : > { %12515 = vmatmul.msk.bf16.gmra.mxu3 %vm325_vm10, %v10220_v28  ;;  %v8524_v36 = vadd.f32 %v8523_v20, %v16887_v26  ;;  %v9573_v26 = vsel %vm18203_vm4, %v9570_v31, %v9572_v30  ;;  %v9945_v20 = vrot.slane %v17155_v40, 2  ;;  %vm18218_vm4 = vmmov %vm18214_vm5 }
 0x87d   : > { %v8732_v29 = vpop.f32.mrf.mxu2  ;;  %v10236_v31 = vrot.slane %v10234_v19, 3 }
 0x87e   : > { %v8788_v48 = vadd.f32 %v8732_v29, %v8521_v4  ;;  %12387 = vmatmul.msk.bf16.gmra.mxu1 %vm325_vm10, %v9571_v7  ;;  %v10231_v4 = vshrl.u32 %v17175_v49, 16 }
 0x87f   : > { %v9108_v54 = vpop.f32.mrf.mxu3 }
 0x880   : > { %v9161_v1 = vadd.f32 %v9105_v34, %v8788_v48  ;;  %v10574_v48 = vrot.slane %v17155_v40, 3 }
 0x882   : > { %v9489_v57 = vpop.f32.mrf.mxu0  ;;  %12485 = vmatmul.msk.bf16.gmra.mxu2 %vm325_vm10, %v9944_v43  ;;  %v17170_v9 = vadd.f32 %v9486_v6, %v9161_v1  ;;  %v10233_v1 = vrot.slane %v10231_v4, 2 }
 0x883   : > { %v8525_v10 = vpop.f32.mrf.mxu1 }
 0x884   : > { %v8526_v7 = vadd.f32 %v8525_v10, %v16898_v18  ;;  %v10575_v18 = vsel %vm18205_vm3, %v10572_v41, %v10574_v48  ;;  %v10237_v10 = vor.u32 %v10236_v31, %v10233_v1  ;;  %vm18221_vm3 = vmmov %vm18212_vm1 }
 0x885   : > { %12545 = vmatmul.msk.bf16.gmra.mxu0 %vm325_vm10, %v10573_v50  ;;  %v8735_v5 = vpop.f32.mrf.mxu2 }
 0x886   : > { %v8789_v24 = vadd.f32 %v8735_v5, %v8524_v36  ;;  %v10238_v62 = vsel %vm18206_vm6, %v10228_v56, %v10237_v10  ;;  %vm18222_vm6 = vmmov %vm18213_vm0 }
 0x887   : > { %v9110_v15 = vpop.f32.mrf.mxu3 }
 0x888   : > { %v9162_v34 = vadd.f32 %v9108_v54, %v8789_v24  ;;  %v9946_v54 = vsel %vm18204_vm14, %v9943_v55, %v9945_v20  ;;  %v12876_v55 = vld [vmem:[#allocation2 + $0x30] sm:$0xff]  ;;  %vm18219_vm14 = vmmov %vm18212_vm1 }
 0x889   : > { %v9574_v24 = vrot.slane %v12876_v55, 2 }
 0x88a   : > { %v9491_v28 = vpop.f32.mrf.mxu0  ;;  %v17177_v59 = vadd.f32 %v9489_v57, %v9162_v34  ;;  %v17195_v34 = vld [vmem:[#allocation2 + $0x40] sm:$0xff] }
 0x88b   : > { %v8528_v6 = vpop.f32.mrf.mxu1  ;;  %v10243_v4 = vshll.u32 %v17195_v34, 16 }
 0x88c   : > { %12516 = vmatmul.msk.bf16.gmra.mxu3 %vm325_vm10, %v10229_v3  ;;  %v8529_v50 = vadd.f32 %v8528_v6, %v16916_v53  ;;  %v9575_v53 = vsel %vm18207_vm8, %v9572_v30, %v9574_v24  ;;  %v9947_v6 = vrot.slane %v17175_v49, 2  ;;  %vm18224_vm8 = vmmov %vm18218_vm4 }
 0x88d   : > { %v8737_v46 = vpop.f32.mrf.mxu2  ;;  %v10245_v30 = vrot.slane %v10243_v4, 3 }
 0x88e   : > { %v8790_v25 = vadd.f32 %v8737_v46, %v8526_v7  ;;  %12388 = vmatmul.msk.bf16.gmra.mxu1 %vm325_vm10, %v9573_v26  ;;  %v10240_v7 = vshrl.u32 %v17195_v34, 16 }
 0x88f   : > { %v9113_v29 = vpop.f32.mrf.mxu3 }
 0x890   : > { %v9163_v43 = vadd.f32 %v9110_v15, %v8790_v25  ;;  %v10576_v25 = vrot.slane %v17175_v49, 3 }
 0x892   : > { %v9494_v22 = vpop.f32.mrf.mxu0  ;;  %12486 = vmatmul.msk.bf16.gmra.mxu2 %vm325_vm10, %v9946_v54  ;;  %v17190_v23 = vadd.f32 %v9491_v28, %v9163_v43  ;;  %v10242_v43 = vrot.slane %v10240_v7, 2 }
 0x893   : > { %v8530_v57 = vpop.f32.mrf.mxu1 }
 0x894   : > { %v8531_v26 = vadd.f32 %v8530_v57, %v16925_v32  ;;  %v10577_v32 = vsel %vm18209_vm9, %v10574_v48, %v10576_v25  ;;  %v10246_v57 = vor.u32 %v10245_v30, %v10242_v43  ;;  %vm18227_vm9 = vmmov %vm18212_vm1 }
 0x895   : > { %12546 = vmatmul.msk.bf16.gmra.mxu0 %vm325_vm10, %v10575_v18  ;;  %v8740_v36 = vpop.f32.mrf.mxu2 }
 0x896   : > { %v8791_v40 = vadd.f32 %v8740_v36, %v8529_v50  ;;  %v10247_v55 = vsel %vm18210_vm12, %v10237_v10, %v10246_v57  ;;  %vm18228_vm12 = vmmov %vm18213_vm0 }
 0x897   : > { %v9115_v5 = vpop.f32.mrf.mxu3 }
 0x898   : > { %v9164_v15 = vadd.f32 %v9113_v29, %v8791_v40  ;;  %v9948_v29 = vsel %vm18208_vm2, %v9945_v20, %v9947_v6  ;;  %v12877_v20 = vld [vmem:[#allocation2 + $0x38] sm:$0xff]  ;;  %vm18225_vm2 = vmmov %vm18212_vm1 }
 0x899   : > { %v9576_v40 = vrot.slane %v12877_v20, 2 }
 0x89a   : > { %v9496_v3 = vpop.f32.mrf.mxu0  ;;  %v17197_v41 = vadd.f32 %v9494_v22, %v9164_v15  ;;  %v17215_v15 = vld [vmem:[#allocation2 + $0x48] sm:$0xff] }
 0x89b   : > { %v8533_v28 = vpop.f32.mrf.mxu1  ;;  %v10252_v7 = vshll.u32 %v17215_v15, 16 }
 0x89c   : > { %12517 = vmatmul.msk.bf16.gmra.mxu3 %vm325_vm10, %v10238_v62  ;;  %v8534_v18 = vadd.f32 %v8533_v28, %v16942_v21  ;;  %v9577_v21 = vsel %vm18211_vm7, %v9574_v24, %v9576_v40  ;;  %v9949_v28 = vrot.slane %v17195_v34, 2  ;;  %vm18229_vm7 = vmmov %vm18218_vm4 }
 0x89d   : > { %v8742_v19 = vpop.f32.mrf.mxu2  ;;  %v10254_v24 = vrot.slane %v10252_v7, 3 }
 0x89e   : > { %v8792_v56 = vadd.f32 %v8742_v19, %v8531_v26  ;;  %12389 = vmatmul.msk.bf16.gmra.mxu1 %vm325_vm10, %v9575_v53  ;;  %v10249_v26 = vshrl.u32 %v17215_v15, 16 }
 0x89f   : > { %v9118_v46 = vpop.f32.mrf.mxu3 }
 0x8a0   : > { %v9165_v54 = vadd.f32 %v9115_v5, %v8792_v56  ;;  %v10578_v56 = vrot.slane %v17195_v34, 3 }
 0x8a2   : > { %v9499_v1 = vpop.f32.mrf.mxu0  ;;  %12487 = vmatmul.msk.bf16.gmra.mxu2 %vm325_vm10, %v9948_v29  ;;  %v17210_v31 = vadd.f32 %v9496_v3, %v9165_v54  ;;  %v10251_v54 = vrot.slane %v10249_v26, 2 }
 0x8a3   : > { %v8535_v22 = vpop.f32.mrf.mxu1 }
 0x8a4   : > { %v8536_v53 = vadd.f32 %v8535_v22, %v16960_v35  ;;  %v10579_v35 = vsel %vm18213_vm0, %v10576_v25, %v10578_v56  ;;  %v10255_v22 = vor.u32 %v10254_v24, %v10251_v54  ;;  %vm18230_vm0 = vmmov %vm18212_vm1 }
 0x8a5   : > { %12547 = vmatmul.msk.bf16.gmra.mxu0 %vm325_vm10, %v10577_v32  ;;  %v8745_v50 = vpop.f32.mrf.mxu2 }
 0x8a6   : > { %v8793_v49 = vadd.f32 %v8745_v50, %v8534_v18  ;;  %v10256_v20 = vsel %vm18214_vm5, %v10246_v57, %v10255_v22  ;;  %vm18231_vm5 = vmmov %vm18222_vm6 }
 0x8a7   : > { %v9120_v36 = vpop.f32.mrf.mxu3 }
 0x8a8   : > { %v9166_v5 = vadd.f32 %v9118_v46, %v8793_v49  ;;  %v9950_v46 = vsel %vm18212_vm1, %v9947_v6, %v9949_v28  ;;  %v12878_v6 = vld [vmem:[#allocation2 + $0x40] sm:$0xff] }
 0x8a9   : > { %v9578_v49 = vrot.slane %v12878_v6, 2 }
 0x8aa   : > { %v9501_v62 = vpop.f32.mrf.mxu0  ;;  %v17217_v48 = vadd.f32 %v9499_v1, %v9166_v5  ;;  %v17235_v5 = vld [vmem:[#allocation2 + $0x50] sm:$0xff] }
 0x8ab   : > { %v8538_v3 = vpop.f32.mrf.mxu1  ;;  %v10261_v26 = vshll.u32 %v17235_v5, 16 }
 0x8ac   : > { %12518 = vmatmul.msk.bf16.gmra.mxu3 %vm325_vm10, %v10247_v55  ;;  %v8539_v32 = vadd.f32 %v8538_v3, %v16878_v61  ;;  %v9579_v61 = vsel %vm18215_vm13, %v9576_v40, %v9578_v49  ;;  %v9951_v3 = vrot.slane %v17215_v15, 2  ;;  %vm18232_vm13 = vmmov %vm18218_vm4 }
 0x8ad   : > { %v8747_v4 = vpop.f32.mrf.mxu2  ;;  %v10263_v40 = vrot.slane %v10261_v26, 3 }
 0x8ae   : > { %v8794_v10 = vadd.f32 %v8747_v4, %v8536_v53  ;;  %12390 = vmatmul.msk.bf16.gmra.mxu1 %vm325_vm10, %v9577_v21  ;;  %v10258_v53 = vshrl.u32 %v17235_v5, 16 }
 0x8af   : > { %v9123_v19 = vpop.f32.mrf.mxu3 }
 0x8b0   : > { %v9167_v29 = vadd.f32 %v9120_v36, %v8794_v10  ;;  %v10580_v10 = vrot.slane %v17215_v15, 3 }
 0x8b2   : > { %v9504_v43 = vpop.f32.mrf.mxu0  ;;  %12488 = vmatmul.msk.bf16.gmra.mxu2 %vm325_vm10, %v9950_v46  ;;  %v17230_v30 = vadd.f32 %v9501_v62, %v9167_v29  ;;  %v10260_v29 = vrot.slane %v10258_v53, 2 }
 0x8b3   : > { %v8540_v1 = vpop.f32.mrf.mxu1 }
 0x8b4   : > { %v8541_v21 = vadd.f32 %v8540_v1, %v16891_v60  ;;  %v10581_v60 = vsel %vm18217_vm11, %v10578_v56, %v10580_v10  ;;  %v10264_v1 = vor.u32 %v10263_v40, %v10260_v29  ;;  %vm18234_vm11 = vmmov %vm18230_vm0 }
 0x8b5   : > { %12548 = vmatmul.msk.bf16.gmra.mxu0 %vm325_vm10, %v10579_v35  ;;  %v8750_v18 = vpop.f32.mrf.mxu2 }
 0x8b6   : > { %v8795_v34 = vadd.f32 %v8750_v18, %v8539_v32  ;;  %v10265_v6 = vsel %vm18218_vm4, %v10255_v22, %v10264_v1  ;;  %vm18235_vm4 = vmmov %vm18231_vm5 }
 0x8b7   : > { %v9125_v50 = vpop.f32.mrf.mxu3 }
 0x8b8   : > { %v9168_v36 = vadd.f32 %v9123_v19, %v8795_v34  ;;  %v9952_v19 = vsel %vm18216_vm15, %v9949_v28, %v9951_v3  ;;  %v12879_v28 = vld [vmem:[#allocation2 + $0x48] sm:$0xff]  ;;  %vm18233_vm15 = vmmov %vm18230_vm0 }
 0x8b9   : > { %v9580_v34 = vrot.slane %v12879_v28, 2 }
 0x8ba   : > { %v9506_v55 = vpop.f32.mrf.mxu0  ;;  %v17237_v25 = vadd.f32 %v9504_v43, %v9168_v36  ;;  %v17255_v36 = vld [vmem:[#allocation2 + $0x58] sm:$0xff] }
 0x8bb   : > { %v8543_v62 = vpop.f32.mrf.mxu1  ;;  %v10267_v53 = vshrl.u32 %v17255_v36, 16  ;;  %v10270_v26 = vshll.u32 %v17255_v36, 16 }
 0x8bc   : > { %12519 = vmatmul.msk.bf16.gmra.mxu3 %vm325_vm10, %v10256_v20  ;;  %v8544_v35 = vadd.f32 %v8543_v62, %v16903_v45  ;;  %v9581_v45 = vsel %vm18219_vm14, %v9578_v49, %v9580_v34  ;;  %v9953_v62 = vrot.slane %v17235_v5, 2  ;;  %vm18236_vm14 = vmmov %vm18229_vm7 }
 0x8bd   : > { %v8752_v7 = vpop.f32.mrf.mxu2  ;;  %v10269_v29 = vrot.slane %v10267_v53, 2  ;;  %v10272_v49 = vrot.slane %v10270_v26, 3  ;;  %v9955_v53 = vrot.slane %v17255_v36, 2  ;;  %v18226_v26 = vld [vmem:[#allocation13_spill] sm:$0xff] }
 0x8be   : > { %v8796_v57 = vadd.f32 %v8752_v7, %v8541_v21  ;;  %12391 = vmatmul.msk.bf16.gmra.mxu1 %vm325_vm10, %v9579_v61  ;;  %v18220_v61 = vld [vmem:[#allocation11_spill] sm:$0xff] }
 0x8bf   : > { %v9128_v4 = vpop.f32.mrf.mxu3 }
 0x8c0   : > { %v9169_v46 = vadd.f32 %v9125_v50, %v8796_v57 }
 0x8c2   : > { %v9509_v54 = vpop.f32.mrf.mxu0  ;;  %12489 = vmatmul.msk.bf16.gmra.mxu2 %vm325_vm10, %v9952_v19  ;;  %v17250_v24 = vadd.f32 %v9506_v55, %v9169_v46  ;;  %v9954_v19 = vsel %vm18221_vm3, %v9951_v3, %v9953_v62  ;;  %v12880_v3 = vld [vmem:[#allocation2 + $0x50] sm:$0xff]  ;;  %vm18237_vm3 = vmmov %vm18230_vm0 }
 0x8c3   : > { %v8545_v43 = vpop.f32.mrf.mxu1 }
 0x8c4   : > { %v8546_v21 = vadd.f32 %v8545_v43, %v18220_v61  ;;  %v17275_v61 = vld [vmem:[#allocation2 + $0x60] sm:$0xff] }
 0x8c5   : > { %12549 = vmatmul.msk.bf16.gmra.mxu0 %vm325_vm10, %v10581_v60  ;;  %v8755_v32 = vpop.f32.mrf.mxu2 }
 0x8c6   : > { %v8797_v15 = vadd.f32 %v8755_v32, %v8544_v35  ;;  %v18223_v35 = vld [vmem:[#allocation12_spill] sm:$0xff] }
 0x8c7   : > { %v9130_v18 = vpop.f32.mrf.mxu3 }
 0x8c8   : > { %v9170_v50 = vadd.f32 %v9128_v4, %v8797_v15  ;;  %v10582_v4 = vrot.slane %v17235_v5, 3  ;;  %v10273_v15 = vor.u32 %v10272_v49, %v10269_v29  ;;  %v10584_v29 = vrot.slane %v17255_v36, 3 }
 0x8c9   : > { %v9956_v49 = vsel %vm18227_vm9, %v9953_v62, %v9955_v53  ;;  %vm18241_vm9 = vmmov %vm18230_vm0 }
 0x8ca   : > { %v9511_v20 = vpop.f32.mrf.mxu0  ;;  %v17257_v56 = vadd.f32 %v9509_v54, %v9170_v50  ;;  %v10583_v54 = vsel %vm18222_vm6, %v10580_v10, %v10582_v4  ;;  %vm18238_vm6 = vmmov %vm18230_vm0 }
 0x8cb   : > { %v8548_v55 = vpop.f32.mrf.mxu1 }
 0x8cc   : > { %12520 = vmatmul.msk.bf16.gmra.mxu3 %vm325_vm10, %v10265_v6  ;;  %v8549_v32 = vadd.f32 %v8548_v55, %v18223_v35 }
 0x8cd   : > { %v8757_v7 = vpop.f32.mrf.mxu2 }
 0x8ce   : > { %v8798_v22 = vadd.f32 %v8757_v7, %v8546_v21  ;;  %12392 = vmatmul.msk.bf16.gmra.mxu1 %vm325_vm10, %v9581_v45  ;;  %v10274_v45 = vsel %vm18224_vm8, %v10264_v1, %v10273_v15  ;;  %vm18239_vm8 = vmmov %vm18235_vm4 }
 0x8cf   : > { %v9133_v57 = vpop.f32.mrf.mxu3 }
 0x8d0   : > { %v9171_v46 = vadd.f32 %v9130_v18, %v8798_v22  ;;  %v9582_v18 = vrot.slane %v12880_v3, 2  ;;  %v10276_v22 = vshrl.u32 %v17275_v61, 16 }
 0x8d2   : > { %v9514_v40 = vpop.f32.mrf.mxu0  ;;  %12490 = vmatmul.msk.bf16.gmra.mxu2 %vm325_vm10, %v9954_v19  ;;  %v17270_v60 = vadd.f32 %v9511_v20, %v9171_v46  ;;  %v9583_v55 = vsel %vm18225_vm2, %v9580_v34, %v9582_v18  ;;  %vm18240_vm2 = vmmov %vm18229_vm7 }
 0x8d3   : > { %v8550_v43 = vpop.f32.mrf.mxu1 }
 0x8d4   : > { %v8551_v7 = vadd.f32 %v8550_v43, %v18226_v26  ;;  %v10585_v43 = vsel %vm18228_vm12, %v10582_v4, %v10584_v29  ;;  %v17297_v26 = vld [vmem:[%s17602_s2 + $0x4] ss:$0 sm:$0xff]  ;;  %vm18242_vm12 = vmmov %vm18230_vm0 }
 0x8d5   : > { %12550 = vmatmul.msk.bf16.gmra.mxu0 %vm325_vm10, %v10583_v54  ;;  %v8760_v28 = vpop.f32.mrf.mxu2  ;;  %v10278_v54 = vrot.slane %v10276_v22, 2 }
 0x8d6   : > { %v8799_v5 = vadd.f32 %v8760_v28, %v8549_v32 }
 0x8d7   : > { %v9135_v50 = vpop.f32.mrf.mxu3 }
 0x8d8   : > { %v9172_v6 = vadd.f32 %v9133_v57, %v8799_v5  ;;  %v10279_v57 = vshll.u32 %v17275_v61, 16 }
 0x8da   : > { %v9516_v21 = vpop.f32.mrf.mxu0  ;;  %v17277_v10 = vadd.f32 %v9514_v40, %v9172_v6  ;;  %v10281_v34 = vrot.slane %v10279_v57, 3 }
 0x8db   : > { %v9677_v20 = vpop.f32.mrf.mxu1 }
 0x8dc   : > { %12521 = vmatmul.msk.bf16.gmra.mxu3 %vm325_vm10, %v10274_v45  ;;  %v9767_v5 = vadd.f32 %v9677_v20, %v16970_v52  ;;  %v10282_v3 = vor.u32 %v10281_v34, %v10278_v54  ;;  %v10846_v20 = vld [vmem:[%s13180_s20] sm:$0xff] }
 0x8dd   : > { %v8762_v19 = vpop.f32.mrf.mxu2 }
 0x8de   : > { %v8800_v1 = vadd.f32 %v8762_v19, %v8551_v7  ;;  %12393 = vmatmul.msk.bf16.gmra.mxu1 %vm325_vm10, %v9583_v55  ;;  %v10283_v4 = vsel %vm18229_vm7, %v10273_v15, %v10282_v3  ;;  %v9957_v19 = vrot.slane %v17275_v61, 2  ;;  %vm18243_vm7 = vmmov %vm18235_vm4 }
 0x8df   : > { %v10431_v46 = vpop.f32.mrf.mxu3 }
 0x8e0   : > { %v9173_v40 = vadd.f32 %v9135_v50, %v8800_v1  ;;  %v12881_v50 = vld [vmem:[#allocation2 + $0x58] sm:$0xff] }
 0x8e1   : > { %v9584_v45 = vrot.slane %v12881_v50, 2 }
 0x8e2   : > { %v10679_v35 = vpop.f32.mrf.mxu0  ;;  %12491 = vmatmul.msk.bf16.gmra.mxu2 %vm325_vm10, %v9956_v49  ;;  %v17290_v32 = vadd.f32 %v9516_v21, %v9173_v40  ;;  %v17300_v21 = vld [vmem:[#allocation2 + $0x68] sm:$0xff] }
 0x8e3   : > { %v9679_v28 = vpop.f32.mrf.mxu1  ;;  %v9585_v57 = vsel %vm18212_vm1, %v9582_v18, %v9584_v45  ;;  %v10285_v49 = vshrl.u32 %v17300_v21, 16  ;;  %v10288_v15 = vshll.u32 %v17300_v21, 16  ;;  %v9958_v18 = vsel %vm18230_vm0, %v9955_v53, %v9957_v19  ;;  %vm18244_vm1 = vmmov %vm18240_vm2 }
 0x8e5   : > { %12551 = vmatmul.msk.bf16.gmra.mxu0 %vm325_vm10, %v10585_v43  ;;  %v10050_v36 = vpop.f32.mrf.mxu2  ;;  %v10586_v43 = vrot.slane %v17275_v61, 3 }
 0x8e6   : > { %v10140_v6 = vadd.f32 %v10050_v36, %v9767_v5  ;;  %v10287_v36 = vrot.slane %v10285_v49, 2 }
 0x8e7   : > { %v10433_v62 = vpop.f32.mrf.mxu3  ;;  %v10587_v50 = vsel %vm18231_vm5, %v10584_v29, %v10586_v43  ;;  %vm18245_vm5 = vmmov %vm18230_vm0 }
 0x8e8   : > { %v10521_v55 = vadd.f32 %v10431_v46, %v10140_v6  ;;  %v9768_v46 = vadd.f32 %v9679_v28, %v16979_v39  ;;  %v10290_v39 = vrot.slane %v10288_v15, 3  ;;  %v17324_v15 = vld [vmem:[#allocation2 + $0x70] sm:$0xff] }
 0x8ea   : > { %v10769_v7 = vadd.f32 %v10679_v35, %v10521_v55  ;;  %v10681_v52 = vpop.f32.mrf.mxu0  ;;  %v10847_v55 = vld [vmem:[%s13180_s20 + $0x8] sm:$0xff]  ;;  %v10291_v53 = vor.u32 %v10290_v39, %v10287_v36 }
 0x8eb   : > { %v9682_v22 = vpop.f32.mrf.mxu1 }
 0x8ec   : > { %12522 = vmatmul.msk.bf16.gmra.mxu3 %vm325_vm10, %v10283_v4  ;;  %v10810_v1 = vadd.f32 %v17297_v26, %v10769_v7  ;;  %v9769_v61 = vadd.f32 %v9682_v22, %v16984_v16  ;;  %v10292_v29 = vsel %vm18232_vm13, %v10282_v3, %v10291_v53  ;;  %v10297_v3 = vshll.u32 %v17324_v15, 16  ;;  %vm18246_vm13 = vmmov %vm18235_vm4 }
 0x8ed   : > { %v10052_v40 = vpop.f32.mrf.mxu2 }
 0x8ee   : > { %v10882_v54 = vadd.f32 %v10846_v20, %v10810_v1  ;;  %v10141_v34 = vadd.f32 %v10052_v40, %v9768_v46  ;;  %12394 = vmatmul.msk.bf16.gmra.mxu1 %vm325_vm10, %v9585_v57  ;;  %v12882_v1 = vld [vmem:[#allocation2 + $0x60] sm:$0xff] }
 0x8ef   : > { %v10436_v35 = vpop.f32.mrf.mxu3  ;;  %v9586_v46 = vrot.slane %v12882_v1, 2 }
 0x8f0   : > { %10918 = vst.msk [vmem:[%s13185_s23] sm:$0xff] %vm325_vm10, %v10882_v54  ;;  %v10522_v5 = vadd.f32 %v10433_v62, %v10141_v34  ;;  %v10848_v34 = vld [vmem:[%s13180_s20 + $0x10] sm:$0xff] }
 0x8f1   : > { %v9587_v22 = vsel %vm18233_vm15, %v9584_v45, %v9586_v46  ;;  %vm18247_vm15 = vmmov %vm18244_vm1 }
 0x8f2   : > { %v10770_v28 = vadd.f32 %v10681_v52, %v10522_v5  ;;  %v10684_v6 = vpop.f32.mrf.mxu0  ;;  %12492 = vmatmul.msk.bf16.gmra.mxu2 %vm325_vm10, %v9958_v18  ;;  %v9959_v18 = vrot.slane %v17300_v21, 2 }
 0x8f3   : > { %v9684_v4 = vpop.f32.mrf.mxu1 }
 0x8f4   : > { %v10811_v7 = vadd.f32 %v17297_v26, %v10770_v28  ;;  %v9770_v36 = vadd.f32 %v9684_v4, %v16992_v44  ;;  %v9960_v45 = vsel %vm18234_vm11, %v9957_v19, %v9959_v18  ;;  %v10299_v44 = vrot.slane %v10297_v3, 3  ;;  %vm18248_vm11 = vmmov %vm18230_vm0 }
 0x8f5   : > { %12552 = vmatmul.msk.bf16.gmra.mxu0 %vm325_vm10, %v10587_v50  ;;  %v10055_v62 = vpop.f32.mrf.mxu2 }
 0x8f6   : > { %v10883_v20 = vadd.f32 %v10847_v55, %v10811_v7  ;;  %v10142_v57 = vadd.f32 %v10055_v62, %v9769_v61  ;;  %v10588_v55 = vrot.slane %v17300_v21, 3 }
 0x8f7   : > { %v10438_v52 = vpop.f32.mrf.mxu3 }
 0x8f8   : > { %10919 = vst.msk [vmem:[%s13185_s23 + $0x8] sm:$0xff] %vm325_vm10, %v10883_v20  ;;  %v10523_v49 = vadd.f32 %v10436_v35, %v10142_v57  ;;  %v10294_v35 = vshrl.u32 %v17324_v15, 16  ;;  %v10589_v20 = vsel %vm18235_vm4, %v10586_v43, %v10588_v55  ;;  %v10849_v57 = vld [vmem:[%s13180_s20 + $0x18] sm:$0xff]  ;;  %vm18249_vm4 = vmmov %vm18230_vm0 }
 0x8fa   : > { %v10771_v40 = vadd.f32 %v10684_v6, %v10523_v49  ;;  %v10686_v54 = vpop.f32.mrf.mxu0  ;;  %v10296_v61 = vrot.slane %v10294_v35, 2 }
 0x8fb   : > { %v9687_v16 = vpop.f32.mrf.mxu1 }
 0x8fc   : > { %12523 = vmatmul.msk.bf16.gmra.mxu3 %vm325_vm10, %v10292_v29  ;;  %v10812_v5 = vadd.f32 %v17297_v26, %v10771_v40  ;;  %v9771_v21 = vadd.f32 %v9687_v16, %v16997_v58  ;;  %v10300_v19 = vor.u32 %v10299_v44, %v10296_v61 }
 0x8fd   : > { %v10057_v39 = vpop.f32.mrf.mxu2 }
 0x8fe   : > { %v10884_v28 = vadd.f32 %v10848_v34, %v10812_v5  ;;  %v10143_v6 = vadd.f32 %v10057_v39, %v9770_v36  ;;  %12395 = vmatmul.msk.bf16.gmra.mxu1 %vm325_vm10, %v9587_v22  ;;  %v12883_v34 = vld [vmem:[#allocation2 + $0x68] sm:$0xff]  ;;  %v10301_v43 = vsel %vm18236_vm14, %v10291_v53, %v10300_v19  ;;  %v17348_v36 = vld [vmem:[#allocation2 + $0x78] sm:$0xff]  ;;  %v10850_v39 = vld [vmem:[%s13180_s20 + $0x20] sm:$0xff] }
 0x8ff   : > { %v10441_v50 = vpop.f32.mrf.mxu3  ;;  %v9588_v22 = vrot.slane %v12883_v34, 2  ;;  %v10306_v53 = vshll.u32 %v17348_v36, 16  ;;  %vm18250_vm14 = vmmov %vm18243_vm7 }
 0x900   : > { %10920 = vst.msk [vmem:[%s13185_s23 + $0x10] sm:$0xff] %vm325_vm10, %v10884_v28  ;;  %v10524_v7 = vadd.f32 %v10438_v52, %v10143_v6  ;;  %v9961_v28 = vrot.slane %v17324_v15, 2 }
 0x901   : > { %v9589_v16 = vsel %vm18237_vm3, %v9586_v46, %v9588_v22  ;;  %vm18251_vm3 = vmmov %vm18244_vm1 }
 0x902   : > { %v10772_v4 = vadd.f32 %v10686_v54, %v10524_v7  ;;  %v10689_v62 = vpop.f32.mrf.mxu0  ;;  %12493 = vmatmul.msk.bf16.gmra.mxu2 %vm325_vm10, %v9960_v45  ;;  %v9962_v46 = vsel %vm18238_vm6, %v9959_v18, %v9961_v28  ;;  %vm18252_vm6 = vmmov %vm18230_vm0 }
 0x903   : > { %v9689_v1 = vpop.f32.mrf.mxu1 }
 0x904   : > { %v10813_v49 = vadd.f32 %v17297_v26, %v10772_v4  ;;  %v9772_v45 = vadd.f32 %v9689_v1, %v17005_v37  ;;  %v10308_v37 = vrot.slane %v10306_v53, 3  ;;  %v9963_v53 = vrot.slane %v17348_v36, 2 }
 0x905   : > { %12553 = vmatmul.msk.bf16.gmra.mxu0 %vm325_vm10, %v10589_v20  ;;  %v10060_v52 = vpop.f32.mrf.mxu2 }
 0x906   : > { %v10885_v29 = vadd.f32 %v10849_v57, %v10813_v49  ;;  %v10144_v40 = vadd.f32 %v10060_v52, %v9771_v21  ;;  %v10851_v52 = vld [vmem:[%s13180_s20 + $0x28] sm:$0xff] }
 0x907   : > { %v10443_v54 = vpop.f32.mrf.mxu3 }
 0x908   : > { %10921 = vst.msk [vmem:[%s13185_s23 + $0x18] sm:$0xff] %vm325_vm10, %v10885_v29  ;;  %v10525_v5 = vadd.f32 %v10441_v50, %v10144_v40  ;;  %v10303_v50 = vshrl.u32 %v17348_v36, 16 }
 0x90a   : > { %v10773_v35 = vadd.f32 %v10689_v62, %v10525_v5  ;;  %v10691_v3 = vpop.f32.mrf.mxu0  ;;  %v10590_v62 = vrot.slane %v17324_v15, 3  ;;  %v10305_v57 = vrot.slane %v10303_v50, 2  ;;  %v10852_v50 = vld [vmem:[%s13180_s20 + $0x30] sm:$0xff] }
 0x90b   : > { %v9692_v58 = vpop.f32.mrf.mxu1 }
 0x90c   : > { %12524 = vmatmul.msk.bf16.gmra.mxu3 %vm325_vm10, %v10301_v43  ;;  %v10814_v6 = vadd.f32 %v17297_v26, %v10773_v35  ;;  %v10591_v21 = vsel %vm18239_vm8, %v10588_v55, %v10590_v62  ;;  %v9773_v15 = vadd.f32 %v9692_v58, %v17010_v0  ;;  %v10309_v18 = vor.u32 %v10308_v37, %v10305_v57  ;;  %v12884_v35 = vld [vmem:[#allocation2 + $0x70] sm:$0xff]  ;;  %vm18253_vm8 = vmmov %vm18230_vm0 }
 0x90d   : > { %v10062_v7 = vpop.f32.mrf.mxu2  ;;  %v10592_v37 = vrot.slane %v17348_v36, 3 }
 0x90e   : > { %v10886_v61 = vadd.f32 %v10850_v39, %v10814_v6  ;;  %v10145_v44 = vadd.f32 %v10062_v7, %v9772_v45  ;;  %12396 = vmatmul.msk.bf16.gmra.mxu1 %vm325_vm10, %v9589_v16  ;;  %v10310_v55 = vsel %vm18240_vm2, %v10300_v19, %v10309_v18  ;;  %v17372_v16 = vld [vmem:[#allocation2 + $0x80] sm:$0xff]  ;;  %vm18254_vm2 = vmmov %vm18243_vm7 }
 0x90f   : > { %v10446_v4 = vpop.f32.mrf.mxu3  ;;  %v10315_v19 = vshll.u32 %v17372_v16, 16 }
 0x910   : > { %10922 = vst.msk [vmem:[%s13185_s23 + $0x20] sm:$0xff] %vm325_vm10, %v10886_v61  ;;  %v10526_v20 = vadd.f32 %v10443_v54, %v10145_v44  ;;  %v10312_v44 = vshrl.u32 %v17372_v16, 16 }
 0x912   : > { %v10774_v1 = vadd.f32 %v10691_v3, %v10526_v20  ;;  %v10694_v49 = vpop.f32.mrf.mxu0  ;;  %12494 = vmatmul.msk.bf16.gmra.mxu2 %vm325_vm10, %v9962_v46  ;;  %v9590_v3 = vrot.slane %v12884_v35, 2 }
 0x913   : > { %v9694_v29 = vpop.f32.mrf.mxu1 }
 0x914   : > { %v10815_v40 = vadd.f32 %v17297_v26, %v10774_v1  ;;  %v9591_v58 = vsel %vm18241_vm9, %v9588_v22, %v9590_v3  ;;  %v9774_v61 = vadd.f32 %v9694_v29, %v17019_v13  ;;  %v9964_v22 = vsel %vm18242_vm12, %v9961_v28, %v9963_v53  ;;  %vm18255_vm9 = vmmov %vm18244_vm1 }
 0x915   : > { %12554 = vmatmul.msk.bf16.gmra.mxu0 %vm325_vm10, %v10591_v21  ;;  %v10065_v54 = vpop.f32.mrf.mxu2  ;;  %v10317_v13 = vrot.slane %v10315_v19, 3  ;;  %v10593_v29 = vsel %vm18243_vm7, %v10590_v62, %v10592_v37  ;;  %vm18256_vm12 = vmmov %vm18230_vm0 }
 0x916   : > { %v10887_v34 = vadd.f32 %v10851_v52, %v10815_v40  ;;  %v10146_v5 = vadd.f32 %v10065_v54, %v9773_v15  ;;  %v10853_v40 = vld [vmem:[%s13180_s20 + $0x38] sm:$0xff]  ;;  %vm18258_vm7 = vmmov %vm18230_vm0 }
 0x917   : > { %v10448_v43 = vpop.f32.mrf.mxu3 }
 0x918   : > { %10923 = vst.msk [vmem:[%s13185_s23 + $0x28] sm:$0xff] %vm325_vm10, %v10887_v34  ;;  %v10527_v39 = vadd.f32 %v10446_v4, %v10146_v5 }
 0x91a   : > { %v10775_v6 = vadd.f32 %v10694_v49, %v10527_v39  ;;  %v10696_v45 = vpop.f32.mrf.mxu0  ;;  %v10314_v49 = vrot.slane %v10312_v44, 2  ;;  %v12885_v39 = vld [vmem:[#allocation2 + $0x78] sm:$0xff] }
 0x91b   : > { %v9697_v0 = vpop.f32.mrf.mxu1 }
 0x91c   : > { %12525 = vmatmul.msk.bf16.gmra.mxu3 %vm325_vm10, %v10310_v55  ;;  %v10816_v7 = vadd.f32 %v17297_v26, %v10775_v6  ;;  %v9775_v36 = vadd.f32 %v9697_v0, %v17024_v38  ;;  %v10318_v28 = vor.u32 %v10317_v13, %v10314_v49  ;;  %v9592_v55 = vrot.slane %v12885_v39, 2 }
 0x91d   : > { %v10067_v4 = vpop.f32.mrf.mxu2 }
 0x91e   : > { %v10888_v46 = vadd.f32 %v10852_v50, %v10816_v7  ;;  %v10147_v20 = vadd.f32 %v10067_v4, %v9774_v61  ;;  %12397 = vmatmul.msk.bf16.gmra.mxu1 %vm325_vm10, %v9591_v58  ;;  %v10319_v62 = vsel %vm18244_vm1, %v10309_v18, %v10318_v28  ;;  %v10854_v7 = vld [vmem:[%s13180_s20 + $0x40] sm:$0xff]  ;;  %v9593_v0 = vsel %vm18230_vm0, %v9590_v3, %v9592_v55  ;;  %vm18259_vm1 = vmmov %vm18254_vm2 }
 0x91f   : > { %v10451_v57 = vpop.f32.mrf.mxu3  ;;  %v9965_v61 = vrot.slane %v17372_v16, 2  ;;  %vm18262_vm0 = vmmov %vm18251_vm3 }
 0x920   : > { %10924 = vst.msk [vmem:[%s13185_s23 + $0x30] sm:$0xff] %vm325_vm10, %v10888_v46  ;;  %v10528_v1 = vadd.f32 %v10448_v43, %v10147_v20 }
 0x921   : > { %v9966_v3 = vsel %vm18245_vm5, %v9963_v53, %v9965_v61  ;;  %vm18263_vm5 = vmmov %vm18249_vm4 }
 0x922   : > { %v10776_v21 = vadd.f32 %v10696_v45, %v10528_v1  ;;  %v10699_v52 = vpop.f32.mrf.mxu0  ;;  %12495 = vmatmul.msk.bf16.gmra.mxu2 %vm325_vm10, %v9964_v22  ;;  %v17396_v45 = vld [vmem:[#allocation2 + $0x88] sm:$0xff]  ;;  %v10594_v1 = vrot.slane %v17372_v16, 3 }
 0x923   : > { %v9699_v15 = vpop.f32.mrf.mxu1  ;;  %v10321_v4 = vshrl.u32 %v17396_v45, 16  ;;  %v10324_v18 = vshll.u32 %v17396_v45, 16 }
 0x924   : > { %v10817_v54 = vadd.f32 %v17297_v26, %v10776_v21  ;;  %v9776_v19 = vadd.f32 %v9699_v15, %v17034_v2 }
 0x925   : > { %12555 = vmatmul.msk.bf16.gmra.mxu0 %vm325_vm10, %v10593_v29  ;;  %v10070_v34 = vpop.f32.mrf.mxu2  ;;  %v10323_v13 = vrot.slane %v10321_v4, 2  ;;  %v10326_v2 = vrot.slane %v10324_v18, 3  ;;  %v10595_v29 = vsel %vm18246_vm13, %v10592_v37, %v10594_v1  ;;  %vm18264_vm13 = vmmov %vm18249_vm4 }
 0x926   : > { %v10889_v5 = vadd.f32 %v10853_v40, %v10817_v54  ;;  %v10148_v43 = vadd.f32 %v10070_v34, %v9775_v36  ;;  %v10855_v40 = vld [vmem:[%s13180_s20 + $0x48] sm:$0xff] }
 0x927   : > { %v10453_v35 = vpop.f32.mrf.mxu3  ;;  %v10327_v53 = vor.u32 %v10326_v2, %v10323_v13 }
 0x928   : > { %10925 = vst.msk [vmem:[%s13185_s23 + $0x38] sm:$0xff] %vm325_vm10, %v10889_v5  ;;  %v10529_v6 = vadd.f32 %v10451_v57, %v10148_v43 }
 0x929   : > { %v10328_v37 = vsel %vm18247_vm15, %v10318_v28, %v10327_v53  ;;  %vm18265_vm15 = vmmov %vm18259_vm1 }
 0x92a   : > { %v10777_v50 = vadd.f32 %v10699_v52, %v10529_v6  ;;  %v10701_v58 = vpop.f32.mrf.mxu0 }
 0x92b   : > { %v9702_v38 = vpop.f32.mrf.mxu1 }
 0x92c   : > { %12526 = vmatmul.msk.bf16.gmra.mxu3 %vm325_vm10, %v10319_v62  ;;  %v10818_v44 = vadd.f32 %v17297_v26, %v10777_v50  ;;  %v9777_v16 = vadd.f32 %v9702_v38, %v17039_v33  ;;  %v17420_v62 = vld [vmem:[#allocation2 + $0x90] sm:$0xff] }
 0x92d   : > { %v10072_v46 = vpop.f32.mrf.mxu2  ;;  %v10330_v4 = vshrl.u32 %v17420_v62, 16  ;;  %v10333_v28 = vshll.u32 %v17420_v62, 16 }
 0x92e   : > { %v10890_v20 = vadd.f32 %v10854_v7, %v10818_v44  ;;  %v10149_v57 = vadd.f32 %v10072_v46, %v9776_v19  ;;  %12398 = vmatmul.msk.bf16.gmra.mxu1 %vm325_vm10, %v9593_v0  ;;  %v10856_v7 = vld [vmem:[%s13180_s20 + $0x50] sm:$0xff]  ;;  %v9967_v0 = vrot.slane %v17396_v45, 2 }
 0x92f   : > { %v10456_v22 = vpop.f32.mrf.mxu3 }
 0x930   : > { %10926 = vst.msk [vmem:[%s13185_s23 + $0x40] sm:$0xff] %vm325_vm10, %v10890_v20  ;;  %v10530_v49 = vadd.f32 %v10453_v35, %v10149_v57  ;;  %v12886_v35 = vld [vmem:[#allocation2 + $0x80] sm:$0xff] }
 0x931   : > { %v9594_v39 = vrot.slane %v12886_v35, 2  ;;  %v17444_v35 = vld [vmem:[#allocation2 + $0x98] sm:$0xff] }
 0x932   : > { %v10778_v21 = vadd.f32 %v10701_v58, %v10530_v49  ;;  %v10704_v52 = vpop.f32.mrf.mxu0  ;;  %12496 = vmatmul.msk.bf16.gmra.mxu2 %vm325_vm10, %v9966_v3  ;;  %v10332_v49 = vrot.slane %v10330_v4, 2 }
 0x933   : > { %v9704_v15 = vpop.f32.mrf.mxu1  ;;  %v9595_v38 = vsel %vm18248_vm11, %v9592_v55, %v9594_v39  ;;  %v9968_v55 = vsel %vm18249_vm4, %v9965_v61, %v9967_v0 }
 0x934   : > { %v10819_v54 = vadd.f32 %v17297_v26, %v10778_v21  ;;  %v9778_v19 = vadd.f32 %v9704_v15, %v17051_v17  ;;  %v10335_v17 = vrot.slane %v10333_v28, 3 }
 0x935   : > { %12556 = vmatmul.msk.bf16.gmra.mxu0 %vm325_vm10, %v10595_v29  ;;  %v10075_v36 = vpop.f32.mrf.mxu2 }
 0x936   : > { %v10891_v34 = vadd.f32 %v10855_v40, %v10819_v54  ;;  %v10150_v5 = vadd.f32 %v10075_v36, %v9777_v16  ;;  %v10336_v61 = vor.u32 %v10335_v17, %v10332_v49 }
 0x937   : > { %v10458_v43 = vpop.f32.mrf.mxu3 }
 0x938   : > { %10927 = vst.msk [vmem:[%s13185_s23 + $0x48] sm:$0xff] %vm325_vm10, %v10891_v34  ;;  %v10531_v6 = vadd.f32 %v10456_v22, %v10150_v5  ;;  %v10596_v22 = vrot.slane %v17396_v45, 3  ;;  %v12887_v34 = vld [vmem:[#allocation2 + $0x88] sm:$0xff] }
 0x939   : > { %v9596_v5 = vrot.slane %v12887_v34, 2 }
 0x93a   : > { %v10779_v50 = vadd.f32 %v10704_v52, %v10531_v6  ;;  %v10706_v58 = vpop.f32.mrf.mxu0  ;;  %v10597_v21 = vsel %vm18250_vm14, %v10594_v1, %v10596_v22  ;;  %v10857_v52 = vld [vmem:[%s13180_s20 + $0x58] sm:$0xff]  ;;  %v10337_v1 = vsel %vm18251_vm3, %v10327_v53, %v10336_v61  ;;  %v10342_v53 = vshll.u32 %v17444_v35, 16 }
 0x93b   : > { %v9707_v33 = vpop.f32.mrf.mxu1 }
 0x93c   : > { %12527 = vmatmul.msk.bf16.gmra.mxu3 %vm325_vm10, %v10328_v37  ;;  %v10820_v44 = vadd.f32 %v17297_v26, %v10779_v50  ;;  %v9779_v45 = vadd.f32 %v9707_v33, %v17056_v27  ;;  %v10858_v50 = vld [vmem:[%s13180_s20 + $0x60] sm:$0xff] }
 0x93d   : > { %v10077_v18 = vpop.f32.mrf.mxu2 }
 0x93e   : > { %v10892_v46 = vadd.f32 %v10856_v7, %v10820_v44  ;;  %v10151_v20 = vadd.f32 %v10077_v18, %v9778_v19  ;;  %12399 = vmatmul.msk.bf16.gmra.mxu1 %vm325_vm10, %v9595_v38  ;;  %v9969_v7 = vrot.slane %v17420_v62, 2  ;;  %v10339_v44 = vshrl.u32 %v17444_v35, 16 }
 0x93f   : > { %v10461_v57 = vpop.f32.mrf.mxu3 }
 0x940   : > { %10928 = vst.msk [vmem:[%s13185_s23 + $0x50] sm:$0xff] %vm325_vm10, %v10892_v46  ;;  %v10532_v3 = vadd.f32 %v10458_v43, %v10151_v20  ;;  %v10598_v46 = vrot.slane %v17420_v62, 3 }
 0x942   : > { %v10780_v13 = vadd.f32 %v10706_v58, %v10532_v3  ;;  %v10709_v2 = vpop.f32.mrf.mxu0  ;;  %12497 = vmatmul.msk.bf16.gmra.mxu2 %vm325_vm10, %v9968_v55  ;;  %v9597_v58 = vsel %vm18252_vm6, %v9594_v39, %v9596_v5  ;;  %v9970_v39 = vsel %vm18253_vm8, %v9967_v0, %v9969_v7  ;;  %v10176_v55 = vld [vmem:[#allocation2 + $0xa0] sm:$0x7]  ;;  %v10599_v17 = vsel %vm18254_vm2, %v10596_v22, %v10598_v46 }
 0x943   : > { %v9709_v29 = vpop.f32.mrf.mxu1 }
 0x944   : > { %v10821_v40 = vadd.f32 %v17297_v26, %v10780_v13  ;;  %v9780_v38 = vadd.f32 %v9709_v29, %v17064_v51  ;;  %v10344_v51 = vrot.slane %v10342_v53, 3  ;;  %v10859_v13 = vld [vmem:[%s13180_s20 + $0x68] sm:$0xff] }
 0x945   : > { %12557 = vmatmul.msk.bf16.gmra.mxu0 %vm325_vm10, %v10597_v21  ;;  %v10080_v15 = vpop.f32.mrf.mxu2 }
 0x946   : > { %v10893_v54 = vadd.f32 %v10857_v52, %v10821_v40  ;;  %v10152_v16 = vadd.f32 %v10080_v15, %v9779_v45  ;;  %v10183_v52 = vunpack.c.l.b16 %v10176_v55 }
 0x947   : > { %v10463_v36 = vpop.f32.mrf.mxu3 }
 0x948   : > { %10929 = vst.msk [vmem:[%s13185_s23 + $0x58] sm:$0xff] %vm325_vm10, %v10893_v54  ;;  %v10533_v43 = vadd.f32 %v10461_v57, %v10152_v16  ;;  %v10341_v57 = vrot.slane %v10339_v44, 2  ;;  %v12888_v54 = vld [vmem:[#allocation2 + $0x90] sm:$0xff]  ;;  %v17468_v34 = vpack.c.b16 %v10183_v52, %v10183_v52 }
 0x949   : > { %v9598_v16 = vrot.slane %v12888_v54, 2 }
 0x94a   : > { %v10781_v6 = vadd.f32 %v10709_v2, %v10533_v43  ;;  %v10711_v37 = vpop.f32.mrf.mxu0  ;;  %v10345_v0 = vor.u32 %v10344_v51, %v10341_v57  ;;  %v9839_v57 = vld [vmem:[#allocation2 + $0xa0] sm:$0x3] }
 0x94b   : > { %v9712_v27 = vpop.f32.mrf.mxu1 }
 0x94c   : > { %12528 = vmatmul.msk.bf16.gmra.mxu3 %vm325_vm10, %v10337_v1  ;;  %v10822_v33 = vadd.f32 %v17297_v26, %v10781_v6  ;;  %v9781_v62 = vadd.f32 %v9712_v27, %v17069_v11  ;;  %v10860_v1 = vld [vmem:[%s13180_s20 + $0x70] sm:$0xff] }
 0x94d   : > { %v10082_v19 = vpop.f32.mrf.mxu2 }
 0x94e   : > { %v10894_v4 = vadd.f32 %v10858_v50, %v10822_v33  ;;  %v10153_v28 = vadd.f32 %v10082_v19, %v9780_v38  ;;  %12400 = vmatmul.msk.bf16.gmra.mxu1 %vm325_vm10, %v9597_v58  ;;  %v9971_v50 = vrot.slane %v17444_v35, 2  ;;  %v18257_v58 = vld [vmem:[#allocation15_spill] sm:$0xff]  ;;  %v10348_v38 = vshrl.u32 %v17468_v34, 16 }
 0x94f   : > { %v10466_v18 = vpop.f32.mrf.mxu3 }
 0x950   : > { %10930 = vst.msk [vmem:[%s13185_s23 + $0x60] sm:$0xff] %vm325_vm10, %v10894_v4  ;;  %v10534_v20 = vadd.f32 %v10463_v36, %v10153_v28  ;;  %v10346_v36 = vsel %vm18255_vm9, %v10336_v61, %v10345_v0  ;;  %v10351_v61 = vshll.u32 %v17468_v34, 16  ;;  %v10600_v28 = vrot.slane %v17444_v35, 3 }
 0x952   : > { %v10782_v3 = vadd.f32 %v10711_v37, %v10534_v20  ;;  %v10714_v49 = vpop.f32.mrf.mxu0  ;;  %12498 = vmatmul.msk.bf16.gmra.mxu2 %vm325_vm10, %v9970_v39  ;;  %v9599_v37 = vsel %vm18256_vm12, %v9596_v5, %v9598_v16  ;;  %v9972_v5 = vsel %vm18258_vm7, %v9969_v7, %v9971_v50  ;;  %v10350_v39 = vrot.slane %v10348_v38, 2  ;;  %v18260_v7 = vld [vmem:[#allocation21_spill] sm:$0xff] }
 0x953   : > { %v9714_v2 = vpop.f32.mrf.mxu1  ;;  %v10353_v20 = vrot.slane %v10351_v61, 3 }
 0x954   : > { %v10823_v21 = vadd.f32 %v17297_v26, %v10782_v3  ;;  %v9782_v33 = vadd.f32 %v9714_v2, %v18257_v58  ;;  %v10601_v3 = vsel %vm18259_vm1, %v10598_v46, %v10600_v28 }
 0x955   : > { %12558 = vmatmul.msk.bf16.gmra.mxu0 %vm325_vm10, %v10599_v17  ;;  %v10085_v29 = vpop.f32.mrf.mxu2 }
 0x956   : > { %v10895_v40 = vadd.f32 %v10859_v13, %v10823_v21  ;;  %v10154_v45 = vadd.f32 %v10085_v29, %v9781_v62  ;;  %v9918_v13 = vunpack.c.l.b16 %v9839_v57  ;;  %v10354_v21 = vor.u32 %v10353_v20, %v10350_v39 }
 0x957   : > { %v10468_v15 = vpop.f32.mrf.mxu3 }
 0x958   : > { %10931 = vst.msk [vmem:[%s13185_s23 + $0x68] sm:$0xff] %vm325_vm10, %v10895_v40  ;;  %v10535_v22 = vadd.f32 %v10466_v18, %v10154_v45  ;;  %v18261_v45 = vld [vmem:[#allocation14_spill] sm:$0xff]  ;;  %v9937_v54 = vpack.c.b16 %v9918_v13, %v9918_v13 }
 0x95a   : > { %v10783_v43 = vadd.f32 %v10714_v49, %v10535_v22  ;;  %v10716_v11 = vpop.f32.mrf.mxu0  ;;  %v10861_v49 = vld [vmem:[%s13180_s20 + $0x78] sm:$0xff]  ;;  %v10355_v22 = vsel %vm18262_vm0, %v10345_v0, %v10354_v21  ;;  %v10602_v0 = vrot.slane %v17468_v34, 3 }
 0x95b   : > { %v9717_v6 = vpop.f32.mrf.mxu1 }
 0x95c   : > { %12529 = vmatmul.msk.bf16.gmra.mxu3 %vm325_vm10, %v10346_v36  ;;  %v10824_v27 = vadd.f32 %v17297_v26, %v10783_v43  ;;  %v9783_v2 = vadd.f32 %v9717_v6, %v18260_v7 }
 0x95d   : > { %v10087_v44 = vpop.f32.mrf.mxu2 }
 0x95e   : > { %v10896_v53 = vadd.f32 %v10860_v1, %v10824_v27  ;;  %v10155_v19 = vadd.f32 %v10087_v44, %v9782_v33  ;;  %12401 = vmatmul.msk.bf16.gmra.mxu1 %vm325_vm10, %v9599_v37  ;;  %v9973_v37 = vrot.slane %v9937_v54, 2 }
 0x95f   : > { %v10471_v4 = vpop.f32.mrf.mxu3 }
 0x960   : > { %10932 = vst.msk [vmem:[%s13185_s23 + $0x70] sm:$0xff] %vm325_vm10, %v10896_v53  ;;  %v10536_v18 = vadd.f32 %v10468_v15, %v10155_v19  ;;  %v9600_v15 = vrot.slane %v18261_v45, 2  ;;  %v9974_v53 = vsel %vm18264_vm13, %v9971_v50, %v9973_v37 }
 0x962   : > { %v10784_v51 = vadd.f32 %v10716_v11, %v10536_v18  ;;  %v10719_v55 = vpop.f32.mrf.mxu0  ;;  %12499 = vmatmul.msk.bf16.gmra.mxu2 %vm325_vm10, %v9972_v5  ;;  %v10862_v11 = vld [vmem:[%s13180_s20 + $0x80] sm:$0xff]  ;;  %v9601_v6 = vsel %vm18263_vm5, %v9598_v16, %v9600_v15  ;;  %v10863_v5 = vld [vmem:[%s13180_s20 + $0x88] sm:$0xff] }
 0x963   : > { %v9719_v17 = vpop.f32.mrf.mxu1 }
 0x964   : > { %v10825_v35 = vadd.f32 %v17297_v26, %v10784_v51  ;;  %v9784_v58 = vadd.f32 %v9719_v17, %v17106_v47  ;;  %v10603_v47 = vsel %vm18265_vm15, %v10600_v28, %v10602_v0  ;;  %v10864_v28 = vld [vmem:[%s13180_s20 + $0x90] sm:$0xff] }
 0x965   : > { %12559 = vmatmul.msk.bf16.gmra.mxu0 %vm325_vm10, %v10601_v3  ;;  %v10090_v62 = vpop.f32.mrf.mxu2 }
 0x966   : > { %v10897_v52 = vadd.f32 %v10861_v49, %v10825_v35  ;;  %v10156_v29 = vadd.f32 %v10090_v62, %v9783_v2 }
 0x967   : > { %v10473_v40 = vpop.f32.mrf.mxu3 }
 0x968   : > { %10933 = vst.msk [vmem:[%s13185_s23 + $0x78] sm:$0xff] %vm325_vm10, %v10897_v52  ;;  %v10537_v46 = vadd.f32 %v10471_v4, %v10156_v29 }
 0x96a   : > { %v10785_v36 = vadd.f32 %v10719_v55, %v10537_v46  ;;  %v10721_v43 = vpop.f32.mrf.mxu0 }
 0x96b   : > { %v9722_v1 = vpop.f32.mrf.mxu1 }
 0x96c   : > { %12530 = vmatmul.msk.bf16.gmra.mxu3 %vm325_vm10, %v10355_v22  ;;  %v10826_v27 = vadd.f32 %v17297_v26, %v10785_v36  ;;  %v9785_v20 = vadd.f32 %v9722_v1, %v17116_v42 }
 0x96d   : > { %v10092_v33 = vpop.f32.mrf.mxu2 }
 0x96e   : > { %v10898_v38 = vadd.f32 %v10862_v11, %v10826_v27  ;;  %v10157_v61 = vadd.f32 %v10092_v33, %v9784_v58  ;;  %12402 = vmatmul.msk.bf16.gmra.mxu1 %vm325_vm10, %v9601_v6  ;;  %v10866_v6 = vld [vmem:[%s13180_s20 + $0xa0] sm:$0xff] }
 0x96f   : > { %v10476_v44 = vpop.f32.mrf.mxu3 }
 0x970   : > { %10934 = vst.msk [vmem:[%s13185_s23 + $0x80] sm:$0xff] %vm325_vm10, %v10898_v38  ;;  %v10538_v16 = vadd.f32 %v10473_v40, %v10157_v61  ;;  %v10865_v40 = vld [vmem:[%s13180_s20 + $0x98] sm:$0xff] }
 0x972   : > { %v10786_v19 = vadd.f32 %v10721_v43, %v10538_v16  ;;  %v10724_v4 = vpop.f32.mrf.mxu0  ;;  %12500 = vmatmul.msk.bf16.gmra.mxu2 %vm325_vm10, %v9974_v53  ;;  %v10867_v16 = vld [vmem:[%s13180_s20 + $0xa8] sm:$0xff] }
 0x973   : > { %v9724_v18 = vpop.f32.mrf.mxu1 }
 0x974   : > { %v10827_v39 = vadd.f32 %v17297_v26, %v10786_v19  ;;  %v9786_v35 = vadd.f32 %v9724_v18, %v17130_v14 }
 0x975   : > { %12560 = vmatmul.msk.bf16.gmra.mxu0 %vm325_vm10, %v10603_v47  ;;  %v10095_v34 = vpop.f32.mrf.mxu2 }
 0x976   : > { %v10899_v50 = vadd.f32 %v10863_v5, %v10827_v39  ;;  %v10158_v57 = vadd.f32 %v10095_v34, %v9785_v20 }
 0x977   : > { %v10478_v51 = vpop.f32.mrf.mxu3 }
 0x978   : > { %10935 = vst.msk [vmem:[%s13185_s23 + $0x88] sm:$0xff] %vm325_vm10, %v10899_v50  ;;  %v10539_v55 = vadd.f32 %v10476_v44, %v10158_v57  ;;  %v10868_v57 = vld [vmem:[%s13180_s20 + $0xb0] sm:$0xff] }
 0x97a   : > { %v10787_v3 = vadd.f32 %v10724_v4, %v10539_v55  ;;  %v10726_v49 = vpop.f32.mrf.mxu0 }
 0x97b   : > { %v9727_v17 = vpop.f32.mrf.mxu1 }
 0x97c   : > { %v10828_v13 = vadd.f32 %v17297_v26, %v10787_v3  ;;  %v9787_v54 = vadd.f32 %v9727_v17, %v17137_v12 }
 0x97d   : > { %v10097_v42 = vpop.f32.mrf.mxu2 }
 0x97e   : > { %v10900_v7 = vadd.f32 %v10864_v28, %v10828_v13  ;;  %v10159_v2 = vadd.f32 %v10097_v42, %v9786_v35 }
 0x97f   : > { %v10481_v21 = vpop.f32.mrf.mxu3 }
 0x980   : > { %10936 = vst.msk [vmem:[%s13185_s23 + $0x90] sm:$0xff] %vm325_vm10, %v10900_v7  ;;  %v10540_v62 = vadd.f32 %v10478_v51, %v10159_v2  ;;  %v10869_v7 = vld [vmem:[%s13180_s20 + $0xb8] sm:$0xff] }
 0x982   : > { %v10788_v52 = vadd.f32 %v10726_v49, %v10540_v62  ;;  %v10729_v29 = vpop.f32.mrf.mxu0 }
 0x983   : > { %v9729_v45 = vpop.f32.mrf.mxu1 }
 0x984   : > { %v10829_v15 = vadd.f32 %v17297_v26, %v10788_v52  ;;  %v9788_v58 = vadd.f32 %v9729_v45, %v17150_v63 }
 0x985   : > { %v10100_v46 = vpop.f32.mrf.mxu2 }
 0x986   : > { %v10901_v14 = vadd.f32 %v10865_v40, %v10829_v15  ;;  %v10160_v22 = vadd.f32 %v10100_v46, %v9787_v54  ;;  %v10870_v46 = vld [vmem:[%s13180_s20 + $0xc0] sm:$0xff] }
 0x987   : > { %v10483_v36 = vpop.f32.mrf.mxu3 }
 0x988   : > { %10937 = vst.msk [vmem:[%s13185_s23 + $0x98] sm:$0xff] %vm325_vm10, %v10901_v14  ;;  %v10541_v43 = vadd.f32 %v10481_v21, %v10160_v22 }
 0x98a   : > { %v10789_v11 = vadd.f32 %v10729_v29, %v10541_v43  ;;  %v10731_v1 = vpop.f32.mrf.mxu0 }
 0x98b   : > { %v9732_v37 = vpop.f32.mrf.mxu1 }
 0x98c   : > { %v10830_v27 = vadd.f32 %v17297_v26, %v10789_v11  ;;  %v9789_v47 = vadd.f32 %v9732_v37, %v17157_v8 }
 0x98d   : > { %v10102_v33 = vpop.f32.mrf.mxu2 }
 0x98e   : > { %v10902_v12 = vadd.f32 %v10866_v6, %v10830_v27  ;;  %v10161_v38 = vadd.f32 %v10102_v33, %v9788_v58  ;;  %v10871_v58 = vld [vmem:[%s13180_s20 + $0xc8] sm:$0xff] }
 0x98f   : > { %v10486_v61 = vpop.f32.mrf.mxu3 }
 0x990   : > { %10938 = vst.msk [vmem:[%s13185_s23 + $0xa0] sm:$0xff] %vm325_vm10, %v10902_v12  ;;  %v10542_v44 = vadd.f32 %v10483_v36, %v10161_v38 }
 0x992   : > { %v10790_v0 = vadd.f32 %v10731_v1, %v10542_v44  ;;  %v10734_v53 = vpop.f32.mrf.mxu0 }
 0x993   : > { %v9734_v19 = vpop.f32.mrf.mxu1 }
 0x994   : > { %v10831_v4 = vadd.f32 %v17297_v26, %v10790_v0  ;;  %v9790_v3 = vadd.f32 %v9734_v19, %v17170_v9 }
 0x995   : > { %v10105_v5 = vpop.f32.mrf.mxu2 }
 0x996   : > { %v10903_v63 = vadd.f32 %v10867_v16, %v10831_v4  ;;  %v10162_v18 = vadd.f32 %v10105_v5, %v9789_v47  ;;  %v10872_v4 = vld [vmem:[%s13180_s20 + $0xd0] sm:$0xff] }
 0x997   : > { %v10488_v39 = vpop.f32.mrf.mxu3 }
 0x998   : > { %10939 = vst.msk [vmem:[%s13185_s23 + $0xa8] sm:$0xff] %vm325_vm10, %v10903_v63  ;;  %v10543_v20 = vadd.f32 %v10486_v61, %v10162_v18 }
 0x99a   : > { %v10791_v34 = vadd.f32 %v10734_v53, %v10543_v20  ;;  %v10736_v50 = vpop.f32.mrf.mxu0 }
 0x99b   : > { %v9737_v51 = vpop.f32.mrf.mxu1 }
 0x99c   : > { %v10832_v55 = vadd.f32 %v17297_v26, %v10791_v34  ;;  %v9791_v62 = vadd.f32 %v9737_v51, %v17177_v59  ;;  %v10873_v51 = vld [vmem:[%s13180_s20 + $0xd8] sm:$0xff] }
 0x99d   : > { %v10107_v49 = vpop.f32.mrf.mxu2 }
 0x99e   : > { %v10904_v8 = vadd.f32 %v10868_v57, %v10832_v55  ;;  %v10163_v28 = vadd.f32 %v10107_v49, %v9790_v3 }
 0x99f   : > { %v10491_v17 = vpop.f32.mrf.mxu3 }
 0x9a0   : > { %10940 = vst.msk [vmem:[%s13185_s23 + $0xb0] sm:$0xff] %vm325_vm10, %v10904_v8  ;;  %v10544_v13 = vadd.f32 %v10488_v39, %v10163_v28 }
 0x9a2   : > { %v10792_v35 = vadd.f32 %v10736_v50, %v10544_v13  ;;  %v10739_v42 = vpop.f32.mrf.mxu0 }
 0x9a3   : > { %v9739_v2 = vpop.f32.mrf.mxu1 }
 0x9a4   : > { %v10833_v21 = vadd.f32 %v17297_v26, %v10792_v35  ;;  %v9792_v36 = vadd.f32 %v9739_v2, %v17190_v23 }
 0x9a5   : > { %v10110_v52 = vpop.f32.mrf.mxu2 }
 0x9a6   : > { %v10905_v9 = vadd.f32 %v10869_v7, %v10833_v21  ;;  %v10164_v29 = vadd.f32 %v10110_v52, %v9791_v62  ;;  %v10874_v7 = vld [vmem:[%s13180_s20 + $0xe0] sm:$0xff] }
 0x9a7   : > { %v10493_v40 = vpop.f32.mrf.mxu3 }
 0x9a8   : > { %10941 = vst.msk [vmem:[%s13185_s23 + $0xb8] sm:$0xff] %vm325_vm10, %v10905_v9  ;;  %v10545_v45 = vadd.f32 %v10491_v17, %v10164_v29 }
 0x9aa   : > { %v10793_v15 = vadd.f32 %v10739_v42, %v10545_v45  ;;  %v10741_v54 = vpop.f32.mrf.mxu0 }
 0x9ab   : > { %v9742_v14 = vpop.f32.mrf.mxu1 }
 0x9ac   : > { %v10834_v22 = vadd.f32 %v17297_v26, %v10793_v15  ;;  %v9793_v38 = vadd.f32 %v9742_v14, %v17197_v41 }
 0x9ad   : > { %v10112_v43 = vpop.f32.mrf.mxu2 }
 0x9ae   : > { %v10906_v59 = vadd.f32 %v10870_v46, %v10834_v22  ;;  %v10165_v11 = vadd.f32 %v10112_v43, %v9792_v36 }
 0x9af   : > { %v10496_v1 = vpop.f32.mrf.mxu3 }
 0x9b0   : > { %10942 = vst.msk [vmem:[%s13185_s23 + $0xc0] sm:$0xff] %vm325_vm10, %v10906_v59  ;;  %v10546_v6 = vadd.f32 %v10493_v40, %v10165_v11 }
 0x9b2   : > { %v10794_v37 = vadd.f32 %v10741_v54, %v10546_v6  ;;  %v10744_v27 = vpop.f32.mrf.mxu0  ;;  %v10875_v54 = vld [vmem:[%s13180_s20 + $0xe8] sm:$0xff] }
 0x9b3   : > { %v9744_v33 = vpop.f32.mrf.mxu1 }
 0x9b4   : > { %v10835_v12 = vadd.f32 %v17297_v26, %v10794_v37  ;;  %v9794_v63 = vadd.f32 %v9744_v33, %v17210_v31  ;;  %v10876_v37 = vld [vmem:[%s13180_s20 + $0xf0] sm:$0xff] }
 0x9b5   : > { %v10115_v61 = vpop.f32.mrf.mxu2 }
 0x9b6   : > { %v10907_v23 = vadd.f32 %v10871_v58, %v10835_v12  ;;  %v10166_v44 = vadd.f32 %v10115_v61, %v9793_v38  ;;  %v12889_v58 = vld [vmem:[%s17602_s2 + $0x4] ss:$0 sm:$0xff] }
 0x9b7   : > { %v10498_v0 = vpop.f32.mrf.mxu3 }
 0x9b8   : > { %10943 = vst.msk [vmem:[%s13185_s23 + $0xc8] sm:$0xff] %vm325_vm10, %v10907_v23  ;;  %v10547_v53 = vadd.f32 %v10496_v1, %v10166_v44 }
 0x9ba   : > { %v10795_v16 = vadd.f32 %v10744_v27, %v10547_v53  ;;  %v10746_v19 = vpop.f32.mrf.mxu0 }
 0x9bb   : > { %v9747_v47 = vpop.f32.mrf.mxu1 }
 0x9bc   : > { %v10836_v5 = vadd.f32 %v17297_v26, %v10795_v16  ;;  %v9795_v49 = vadd.f32 %v9747_v47, %v17217_v48 }
 0x9bd   : > { %v10117_v18 = vpop.f32.mrf.mxu2 }
 0x9be   : > { %v10908_v41 = vadd.f32 %v10872_v4, %v10836_v5  ;;  %v10167_v39 = vadd.f32 %v10117_v18, %v9794_v63 }
 0x9bf   : > { %v10501_v20 = vpop.f32.mrf.mxu3 }
 0x9c0   : > { %10944 = vst.msk [vmem:[%s13185_s23 + $0xd0] sm:$0xff] %vm325_vm10, %v10908_v41  ;;  %v10548_v34 = vadd.f32 %v10498_v0, %v10167_v39  ;;  %v10877_v0 = vld [vmem:[%s13180_s20 + $0xf8] sm:$0xff]  ;;  %v10878_v41 = vld [vmem:[%s13180_s20 + $0x100] sm:$0xff] }
 0x9c2   : > { %v10796_v50 = vadd.f32 %v10746_v19, %v10548_v34  ;;  %v10749_v57 = vpop.f32.mrf.mxu0 }
 0x9c3   : > { %v9749_v55 = vpop.f32.mrf.mxu1 }
 0x9c4   : > { %v10837_v3 = vadd.f32 %v17297_v26, %v10796_v50  ;;  %v9796_v62 = vadd.f32 %v9749_v55, %v17230_v30 }
 0x9c5   : > { %v10120_v8 = vpop.f32.mrf.mxu2 }
 0x9c6   : > { %v10909_v31 = vadd.f32 %v10873_v51, %v10837_v3  ;;  %v10168_v28 = vadd.f32 %v10120_v8, %v9795_v49  ;;  %v10879_v8 = vld [vmem:[%s13180_s20 + $0x108] sm:$0xff] }
 0x9c7   : > { %v10503_v17 = vpop.f32.mrf.mxu3 }
 0x9c8   : > { %10945 = vst.msk [vmem:[%s13185_s23 + $0xd8] sm:$0xff] %vm325_vm10, %v10909_v31  ;;  %v10549_v13 = vadd.f32 %v10501_v20, %v10168_v28 }
 0x9ca   : > { %v10797_v35 = vadd.f32 %v10749_v57, %v10549_v13  ;;  %v10751_v42 = vpop.f32.mrf.mxu0 }
 0x9cb   : > { %v9752_v2 = vpop.f32.mrf.mxu1 }
 0x9cc   : > { %v10838_v21 = vadd.f32 %v17297_v26, %v10797_v35  ;;  %v9797_v22 = vadd.f32 %v9752_v2, %v17237_v25 }
 0x9cd   : > { %v10122_v52 = vpop.f32.mrf.mxu2 }
 0x9ce   : > { %v10910_v48 = vadd.f32 %v10874_v7, %v10838_v21  ;;  %v10169_v9 = vadd.f32 %v10122_v52, %v9796_v62  ;;  %v10880_v62 = vld [vmem:[%s13180_s20 + $0x110] sm:$0xff] }
 0x9cf   : > { %v10506_v29 = vpop.f32.mrf.mxu3 }
 0x9d0   : > { %10946 = vst.msk [vmem:[%s13185_s23 + $0xe0] sm:$0xff] %vm325_vm10, %v10910_v48  ;;  %v10550_v40 = vadd.f32 %v10503_v17, %v10169_v9 }
 0x9d2   : > { %v10798_v45 = vadd.f32 %v10751_v42, %v10550_v40  ;;  %v10754_v15 = vpop.f32.mrf.mxu0 }
 0x9d3   : > { %v9754_v46 = vpop.f32.mrf.mxu1 }
 0x9d4   : > { %v10839_v14 = vadd.f32 %v17297_v26, %v10798_v45  ;;  %v9798_v25 = vadd.f32 %v9754_v46, %v17250_v24  ;;  %v10881_v46 = vld [vmem:[%s13180_s20 + $0x118] sm:$0xff] }
 0x9d5   : > { %v10125_v36 = vpop.f32.mrf.mxu2 }
 0x9d6   : > { %v10911_v30 = vadd.f32 %v10875_v54, %v10839_v14  ;;  %v10170_v43 = vadd.f32 %v10125_v36, %v9797_v22 }
 0x9d7   : > { %v10508_v59 = vpop.f32.mrf.mxu3 }
 0x9d8   : > { %10947 = vst.msk [vmem:[%s13185_s23 + $0xe8] sm:$0xff] %vm325_vm10, %v10911_v30  ;;  %v10551_v11 = vadd.f32 %v10506_v29, %v10170_v43 }
 0x9da   : > { %v10799_v1 = vadd.f32 %v10754_v15, %v10551_v11  ;;  %v10756_v6 = vpop.f32.mrf.mxu0 }
 0x9db   : > { %v9757_v27 = vpop.f32.mrf.mxu1 }
 0x9dc   : > { %v10840_v26 = vadd.f32 %v12889_v58, %v10799_v1  ;;  %v9799_v19 = vadd.f32 %v9757_v27, %v17257_v56 }
 0x9dd   : > { %v10127_v33 = vpop.f32.mrf.mxu2 }
 0x9de   : > { %v10912_v12 = vadd.f32 %v10876_v37, %v10840_v26  ;;  %v10171_v38 = vadd.f32 %v10127_v33, %v9798_v25 }
 0x9df   : > { %v10511_v23 = vpop.f32.mrf.mxu3 }
 0x9e0   : > { %10948 = vst.msk [vmem:[%s13185_s23 + $0xf0] sm:$0xff] %vm325_vm10, %v10912_v12  ;;  %v10552_v61 = vadd.f32 %v10508_v59, %v10171_v38 }
 0x9e2   : > { %v10800_v44 = vadd.f32 %v10756_v6, %v10552_v61  ;;  %v10759_v53 = vpop.f32.mrf.mxu0 }
 0x9e3   : > { %v9759_v47 = vpop.f32.mrf.mxu1 }
 0x9e4   : > { %v10841_v16 = vadd.f32 %v12889_v58, %v10800_v44  ;;  %v9800_v34 = vadd.f32 %v9759_v47, %v17270_v60 }
 0x9e5   : > { %v10130_v4 = vpop.f32.mrf.mxu2 }
 0x9e6   : > { %v10913_v5 = vadd.f32 %v10877_v0, %v10841_v16  ;;  %v10172_v24 = vadd.f32 %v10130_v4, %v9799_v19 }
 0x9e7   : > { %v10513_v39 = vpop.f32.mrf.mxu3 }
 0x9e8   : > { %10949 = vst.msk [vmem:[%s13185_s23 + $0xf8] sm:$0xff] %vm325_vm10, %v10913_v5  ;;  %v10553_v63 = vadd.f32 %v10511_v23, %v10172_v24 }
 0x9ea   : > { %v10801_v18 = vadd.f32 %v10759_v53, %v10553_v63  ;;  %v10761_v50 = vpop.f32.mrf.mxu0 }
 0x9eb   : > { %v9762_v55 = vpop.f32.mrf.mxu1 }
 0x9ec   : > { %v10842_v20 = vadd.f32 %v12889_v58, %v10801_v18  ;;  %v9801_v28 = vadd.f32 %v9762_v55, %v17277_v10 }
 0x9ed   : > { %v10132_v57 = vpop.f32.mrf.mxu2 }
 0x9ee   : > { %v10914_v51 = vadd.f32 %v10878_v41, %v10842_v20  ;;  %v10173_v56 = vadd.f32 %v10132_v57, %v9800_v34 }
 0x9ef   : > { %v10516_v17 = vpop.f32.mrf.mxu3 }
 0x9f0   : > { %10950 = vst.msk [vmem:[%s13185_s23 + $0x100] sm:$0xff] %vm325_vm10, %v10914_v51  ;;  %v10554_v3 = vadd.f32 %v10513_v39, %v10173_v56 }
 0x9f2   : > { %v10802_v49 = vadd.f32 %v10761_v50, %v10554_v3  ;;  %v10764_v42 = vpop.f32.mrf.mxu0 }
 0x9f3   : > { %v9764_v2 = vpop.f32.mrf.mxu1 }
 0x9f4   : > { %v10843_v31 = vadd.f32 %v12889_v58, %v10802_v49  ;;  %v9802_v48 = vadd.f32 %v9764_v2, %v17290_v32 }
 0x9f5   : > { %v10135_v13 = vpop.f32.mrf.mxu2 }
 0x9f6   : > { %v10915_v35 = vadd.f32 %v10879_v8, %v10843_v31  ;;  %v10174_v60 = vadd.f32 %v10135_v13, %v9801_v28 }
 0x9f7   : > { %v10518_v40 = vpop.f32.mrf.mxu3 }
 0x9f8   : > { %10951 = vst.msk [vmem:[%s13185_s23 + $0x108] sm:$0xff] %vm325_vm10, %v10915_v35  ;;  %v10555_v7 = vadd.f32 %v10516_v17, %v10174_v60 }
 0x9fa   : > { %v10803_v21 = vadd.f32 %v10764_v42, %v10555_v7  ;;  %v10766_v15 = vpop.f32.mrf.mxu0 }
 0x9fc   : > { %v10844_v52 = vadd.f32 %v12889_v58, %v10803_v21 }
 0x9fd   : > { %v10137_v9 = vpop.f32.mrf.mxu2 }
 0x9fe   : > { %v10916_v29 = vadd.f32 %v10880_v62, %v10844_v52  ;;  %v10175_v10 = vadd.f32 %v10137_v9, %v9802_v48 }
 0xa00   : > { %10952 = vst.msk [vmem:[%s13185_s23 + $0x110] sm:$0xff] %vm325_vm10, %v10916_v29  ;;  %v10556_v45 = vadd.f32 %v10518_v40, %v10175_v10 }
 0xa02   : > { %v10804_v54 = vadd.f32 %v10766_v15, %v10556_v45 }
 0xa04   : > { %v10845_v14 = vadd.f32 %v12889_v58, %v10804_v54 }
 0xa06   : > { %v10917_v22 = vadd.f32 %v10881_v46, %v10845_v14 }
 0xa08   : > { %10953 = vst.msk [vmem:[%s13185_s23 + $0x118] sm:$0xff] %vm325_vm10, %v10917_v22 }
 0xa09 PF: > { %s14_s15 = sadd.s32 1, %s12900_s15  }
 0xa0a   : > { %p11_p5 = scmp.ge.s32.totalorder %s14_s15, 4  }
 0xa0c   :  { %13 = sbr.rel (!%p11_p5) target bundleno = 1 (0x1), region = 114 }

</bundles_post_ra>
